<compile_context>
chip_gen: v7x
topology: tpu7x:2x2x1
jax: 0.10.0
libtpu: 0.0.40
codegen_flags: <defaults>
</compile_context>

<pallas_src>
import jax
import jax.numpy as jnp
from jax import lax
from jax.experimental import pallas as pl
from jax.experimental.pallas import tpu as pltpu

EPS = 1e-5  # nn.InstanceNorm2d default


def resnet_block_kernel(x_ref, w1_ref, w2_ref, o_ref, pad_ref, acc_ref):
    H, W, C = x_ref.shape
    inv_hw = 1.0 / float(H * W)

    def write_reflect_pad(img):
        """ReflectionPad2d(1) of `img` (H, W, C) written into pad_ref (H+2, W+2, C)."""
        pad_ref[1:H + 1, 1:W + 1, :] = img
        # reflect rows: pad[0] = img[1], pad[H+1] = img[H-2]
        pad_ref[0:1, 1:W + 1, :] = img[1:2, :, :]
        pad_ref[H + 1:H + 2, 1:W + 1, :] = img[H - 2:H - 1, :, :]
        # reflect cols from the already-written pad rows (this also fixes corners)
        pad_ref[:, 0:1, :] = pad_ref[:, 2:3, :]
        pad_ref[:, W + 1:W + 2, :] = pad_ref[:, W - 1:W, :]

    def conv3x3_into_acc(w_ref):
        """acc_ref <- 3x3 conv of the reflect-padded image with packed weights.

        Nine accumulating (H*W, C) x (C, C) MXU matmuls, one per (dy, dx) tap,
        loaded directly from the padded scratch -- no (H, W, 9C) im2col tensor.
        For realistic C (>= 128, e.g. 256) each matmul's K fills the MXU depth.
        """
        for dy in range(3):
            row_acc = None
            for dx in range(3):
                k = dy * 3 + dx
                tap = pad_ref[dy:dy + H, dx:dx + W, :].reshape(H * W, C)
                part = jnp.dot(tap, w_ref[k * C:(k + 1) * C, :],
                               preferred_element_type=jnp.float32)
                row_acc = part if row_acc is None else row_acc + part
            if dy == 0:
                acc_ref[...] = row_acc
            else:
                acc_ref[...] += row_acc

    def instance_norm(a, apply_relu):
        """Fused InstanceNorm2d(affine=False) (+ optional ReLU) on (H*W, C) f32."""
        mean = jnp.sum(a, axis=0, keepdims=True) * inv_hw
        var = jnp.sum(a * a, axis=0, keepdims=True) * inv_hw - mean * mean
        var = jnp.maximum(var, 0.0)          # guard single-pass cancellation
        y = (a - mean) * lax.rsqrt(var + EPS)
        if apply_relu:
            y = jnp.maximum(y, 0.0)
        return y

    # conv1 -> InstanceNorm -> ReLU
    write_reflect_pad(x_ref[...])
    conv3x3_into_acc(w1_ref)
    h = instance_norm(acc_ref[...], apply_relu=True)

    # conv2 -> InstanceNorm   (padded scratch + accumulator reused)
    write_reflect_pad(h.astype(jnp.bfloat16).reshape(H, W, C))
    conv3x3_into_acc(w2_ref)
    y = instance_norm(acc_ref[...], apply_relu=False)
    o_ref[...] = y.reshape(H, W, C).astype(o_ref.dtype)


def _pack_weight(w):
    """PyTorch conv weight (Cout, Cin, 3, 3) -> (9*Cin, Cout) bf16, tap-major (dy, dx, cin)."""
    cout, cin = w.shape[0], w.shape[1]
    return jnp.transpose(w, (2, 3, 1, 0)).reshape(9 * cin, cout).astype(jnp.bfloat16)


def _vmem_limit_bytes(H, W, C):
    """VMEM budget from actual shapes (instead of a hard-coded number)."""
    bf16, f32 = 2, 4
    img_bf16 = H * W * C * bf16
    img_f32 = H * W * C * f32
    weights = 2 * 9 * C * C * bf16                     # w1 + w2 (one copy each)
    est = (2 * img_bf16                                # input double-buffer
           + 2 * img_bf16                              # bf16 output double-buffer
           + 2 * weights                               # weight buffers (constant index map)
           + (H + 2) * (W + 2) * C * bf16              # reflect-padded scratch
           + img_f32                                   # f32 conv accumulator scratch
           + 3 * img_f32)                              # headroom for traced IN temporaries
    return int(min(max(est * 1.25, 32 * 1024 * 1024), 56 * 1024 * 1024))


def resnet_block_nhwc(x_nhwc, w1_packed, w2_packed):
    """Fused kernel core: NHWC bf16 in -> NHWC bf16 out.

    Keep activations in this layout/dtype across a stack of ResnetBlocks so the
    NCHW<->NHWC transposes and f32<->bf16 casts are not paid per block.
    Lane-dense stores require C to be a multiple of 128 (true for e.g. C=256).
    """
    N, H, W, C = x_nhwc.shape

    img_in_spec = pl.BlockSpec((None, H, W, C), lambda n: (n, 0, 0, 0))
    img_out_spec = pl.BlockSpec((None, H, W, C), lambda n: (n, 0, 0, 0))
    w_spec = pl.BlockSpec((9 * C, C), lambda n: (0, 0))   # constant -> weights stay resident

    cost = pl.CostEstimate(
        flops=int(N * 2 * 2 * (H * W) * (9 * C) * C),       # two 3x3 convs
        transcendentals=int(N * 2 * C),                     # per-channel rsqrt, both norms
        bytes_accessed=int(2 * N * H * W * C * 2 + 2 * 9 * C * C * 2),
    )

    return pl.pallas_call(
        resnet_block_kernel,
        out_shape=jax.ShapeDtypeStruct((N, H, W, C), jnp.bfloat16),
        grid_spec=pltpu.PrefetchScalarGridSpec(
            num_scalar_prefetch=0,
            grid=(N,),                                      # one image per grid step
            in_specs=[img_in_spec, w_spec, w_spec],
            out_specs=img_out_spec,
            scratch_shapes=[
                pltpu.VMEM((H + 2, W + 2, C), jnp.bfloat16),  # reflect-padded image
                pltpu.VMEM((H * W, C), jnp.float32),          # conv accumulator
            ],
        ),
        compiler_params=pltpu.CompilerParams(
            # TODO(synk): for N == 1 on v7x, add a second parallel grid axis
            # (W split with a 1-col halo + two-pass InstanceNorm) so both
            # TensorCores are used; with N >= 2 the batch axis covers megacore.
            dimension_semantics=("parallel",),
            vmem_limit_bytes=_vmem_limit_bytes(H, W, C),
        ),
        cost_estimate=cost,
    )(x_nhwc, w1_packed, w2_packed)


@jax.jit
def resnet_block(x_nchw, w1, b1, w2, b2):
    """Convenience NCHW f32 wrapper matching the PyTorch module parameters.

    b1/b2 are accepted for API parity but never reach the kernel: a per-channel
    conv bias is exactly cancelled by InstanceNorm2d(affine=False).
    """
    del b1, b2
    x_nhwc = jnp.transpose(x_nchw, (0, 2, 3, 1)).astype(jnp.bfloat16)
    y = resnet_block_nhwc(x_nhwc, _pack_weight(w1), _pack_weight(w2))
    return jnp.transpose(y, (0, 3, 1, 2)).astype(jnp.float32)


def _reference(x_nchw, w1, b1, w2, b2):
    """Pure-JAX f32 reference (lax.conv, with the bias) for validation."""
    def conv(x, w, b):  # x NCHW, w (Cout, Cin, kh, kw)
        y = lax.conv_general_dilated(
            x, w, window_strides=(1, 1), padding='VALID',
            dimension_numbers=('NCHW', 'OIHW', 'NCHW'))
        return y + b.reshape(1, -1, 1, 1)

    def inorm(x):
        mean = jnp.mean(x, axis=(2, 3), keepdims=True)
        var = jnp.mean((x - mean) ** 2, axis=(2, 3), keepdims=True)
        return (x - mean) / jnp.sqrt(var + EPS)

    def refpad(x):
        return jnp.pad(x, ((0, 0), (0, 0), (1, 1), (1, 1)), mode='reflect')

    h = jnp.maximum(inorm(conv(refpad(x_nchw), w1, b1)), 0.0)
    return inorm(conv(refpad(h), w2, b2))


if __name__ == "__main__":
    N, C, H, W = 2, 4, 16, 16
    key = jax.random.PRNGKey(0)
    kx, k1, k2, k3, k4 = jax.random.split(key, 5)

    # Deterministic synthetic parameters (PyTorch-style uniform init scale).
    fan_in = C * 3 * 3
    bound = 1.0 / (fan_in ** 0.5)
    x = jax.random.normal(kx, (N, C, H, W), jnp.float32)
    w1 = jax.random.uniform(k1, (C, C, 3, 3), jnp.float32, -bound, bound)
    b1 = jax.random.uniform(k2, (C,), jnp.float32, -bound, bound)
    w2 = jax.random.uniform(k3, (C, C, 3, 3), jnp.float32, -bound, bound)
    b2 = jax.random.uniform(k4, (C,), jnp.float32, -bound, bound)

    out = resnet_block(x, w1, b1, w2, b2)
    jax.block_until_ready(out)

    ref = _reference(x, w1, b1, w2, b2)
    assert out.shape == (N, C, H, W)
    # bf16 activations into/out of the kernel (f32 accumulation + f32 IN stats)
    # -> loosened absolute tolerance.
    err = float(jnp.max(jnp.abs(out - ref)))
    assert err < 1e-1, f"mismatch vs reference: max abs err = {err}"

    print("KERNEL_OK")
</pallas_src>

<mosaic_0001>
module attributes {stable_mosaic.version = 11 : i64} {
  func.func @resnet_block_kernel(%arg0: i32, %arg1: memref<1x16x16x4xbf16, #tpu.memory_space<vmem>>, %arg2: memref<36x4xbf16, #tpu.memory_space<vmem>>, %arg3: memref<36x4xbf16, #tpu.memory_space<vmem>>, %arg4: memref<1x16x16x4xbf16, #tpu.memory_space<vmem>>, %arg5: memref<18x18x4xbf16, #tpu.memory_space<vmem>>, %arg6: memref<256x4xf32, #tpu.memory_space<vmem>>) attributes {dimension_semantics = [#tpu.dimension_semantics<parallel>], iteration_bounds = array<i64: 2>, scalar_prefetch = 0 : i64, scratch_operands = 2 : i64, tpu.core_type = #tpu.core_type<tc>, window_params = [{transform_indices = @transform_0, window_bounds = array<i64: 1, 16, 16, 4>}, {pipeline_mode = #tpu.pipeline_mode<synchronous>, transform_indices = @transform_1, window_bounds = array<i64: 36, 4>}, {pipeline_mode = #tpu.pipeline_mode<synchronous>, transform_indices = @transform_2, window_bounds = array<i64: 36, 4>}, {transform_indices = @transform_3, window_bounds = array<i64: 1, 16, 16, 4>}]} {
    %c0 = arith.constant 0 : index
    %c0_0 = arith.constant 0 : index
    %c0_1 = arith.constant 0 : index
    %c0_2 = arith.constant 0 : index
    %0 = vector.load %arg1[%c0, %c0_0, %c0_1, %c0_2] : memref<1x16x16x4xbf16, #tpu.memory_space<vmem>>, vector<1x16x16x4xbf16>
    %1 = vector.shape_cast %0 : vector<1x16x16x4xbf16> to vector<16x16x4xbf16>
    %c1 = arith.constant 1 : index
    %c1_3 = arith.constant 1 : index
    %c0_4 = arith.constant 0 : index
    %2 = vector.load %arg5[%c1, %c1_3, %c0_4] : memref<18x18x4xbf16, #tpu.memory_space<vmem>>, vector<16x16x4xbf16>
    tpu.vector_store %arg5[%c1, %c1_3, %c0_4], %1 {strides = array<i32>} : memref<18x18x4xbf16, #tpu.memory_space<vmem>>, vector<16x16x4xbf16>,
    %3 = vector.extract_strided_slice %1 {offsets = [1, 0, 0], sizes = [1, 16, 4], strides = [1, 1, 1]} : vector<16x16x4xbf16> to vector<1x16x4xbf16>
    %c0_5 = arith.constant 0 : index
    %c1_6 = arith.constant 1 : index
    %c0_7 = arith.constant 0 : index
    %4 = vector.load %arg5[%c0_5, %c1_6, %c0_7] : memref<18x18x4xbf16, #tpu.memory_space<vmem>>, vector<1x16x4xbf16>
    tpu.vector_store %arg5[%c0_5, %c1_6, %c0_7], %3 {strides = array<i32>} : memref<18x18x4xbf16, #tpu.memory_space<vmem>>, vector<1x16x4xbf16>,
    %5 = vector.extract_strided_slice %1 {offsets = [14, 0, 0], sizes = [1, 16, 4], strides = [1, 1, 1]} : vector<16x16x4xbf16> to vector<1x16x4xbf16>
    %c17 = arith.constant 17 : index
    %c1_8 = arith.constant 1 : index
    %c0_9 = arith.constant 0 : index
    %6 = vector.load %arg5[%c17, %c1_8, %c0_9] : memref<18x18x4xbf16, #tpu.memory_space<vmem>>, vector<1x16x4xbf16>
    tpu.vector_store %arg5[%c17, %c1_8, %c0_9], %5 {strides = array<i32>} : memref<18x18x4xbf16, #tpu.memory_space<vmem>>, vector<1x16x4xbf16>,
    %c0_10 = arith.constant 0 : index
    %c2 = arith.constant 2 : index
    %c0_11 = arith.constant 0 : index
    %7 = vector.load %arg5[%c0_10, %c2, %c0_11] : memref<18x18x4xbf16, #tpu.memory_space<vmem>>, vector<18x1x4xbf16>
    %c0_12 = arith.constant 0 : index
    %c0_13 = arith.constant 0 : index
    %c0_14 = arith.constant 0 : index
    %8 = vector.load %arg5[%c0_12, %c0_13, %c0_14] : memref<18x18x4xbf16, #tpu.memory_space<vmem>>, vector<18x1x4xbf16>
    tpu.vector_store %arg5[%c0_12, %c0_13, %c0_14], %7 {strides = array<i32>} : memref<18x18x4xbf16, #tpu.memory_space<vmem>>, vector<18x1x4xbf16>,
    %c0_15 = arith.constant 0 : index
    %c15 = arith.constant 15 : index
    %c0_16 = arith.constant 0 : index
    %9 = vector.load %arg5[%c0_15, %c15, %c0_16] : memref<18x18x4xbf16, #tpu.memory_space<vmem>>, vector<18x1x4xbf16>
    %c0_17 = arith.constant 0 : index
    %c17_18 = arith.constant 17 : index
    %c0_19 = arith.constant 0 : index
    %10 = vector.load %arg5[%c0_17, %c17_18, %c0_19] : memref<18x18x4xbf16, #tpu.memory_space<vmem>>, vector<18x1x4xbf16>
    tpu.vector_store %arg5[%c0_17, %c17_18, %c0_19], %9 {strides = array<i32>} : memref<18x18x4xbf16, #tpu.memory_space<vmem>>, vector<18x1x4xbf16>,
    %c0_20 = arith.constant 0 : index
    %c0_21 = arith.constant 0 : index
    %c0_22 = arith.constant 0 : index
    %11 = vector.load %arg5[%c0_20, %c0_21, %c0_22] : memref<18x18x4xbf16, #tpu.memory_space<vmem>>, vector<16x16x4xbf16>
    %12 = vector.shape_cast %11 : vector<16x16x4xbf16> to vector<256x4xbf16>
    %c0_23 = arith.constant 0 : index
    %c0_24 = arith.constant 0 : index
    %13 = vector.load %arg2[%c0_23, %c0_24] : memref<36x4xbf16, #tpu.memory_space<vmem>>, vector<4x4xbf16>
    %cst = arith.constant dense<0.000000e+00> : vector<256x4xf32>
    %14 = tpu.matmul %12, %13, %cst {dimension_numbers = #tpu.dot_dimension_numbers<[1], [0], [0], [1], [0, 0, 1, 1], [], []>} : vector<256x4xbf16>, vector<4x4xbf16>, vector<256x4xf32> -> vector<256x4xf32>
    %c0_25 = arith.constant 0 : index
    %c1_26 = arith.constant 1 : index
    %c0_27 = arith.constant 0 : index
    %15 = vector.load %arg5[%c0_25, %c1_26, %c0_27] : memref<18x18x4xbf16, #tpu.memory_space<vmem>>, vector<16x16x4xbf16>
    %16 = vector.shape_cast %15 : vector<16x16x4xbf16> to vector<256x4xbf16>
    %c4 = arith.constant 4 : index
    %c0_28 = arith.constant 0 : index
    %17 = vector.load %arg2[%c4, %c0_28] : memref<36x4xbf16, #tpu.memory_space<vmem>>, vector<4x4xbf16>
    %cst_29 = arith.constant dense<0.000000e+00> : vector<256x4xf32>
    %18 = tpu.matmul %16, %17, %cst_29 {dimension_numbers = #tpu.dot_dimension_numbers<[1], [0], [0], [1], [0, 0, 1, 1], [], []>} : vector<256x4xbf16>, vector<4x4xbf16>, vector<256x4xf32> -> vector<256x4xf32>
    %19 = arith.addf %14, %18 : vector<256x4xf32>
    %c0_30 = arith.constant 0 : index
    %c2_31 = arith.constant 2 : index
    %c0_32 = arith.constant 0 : index
    %20 = vector.load %arg5[%c0_30, %c2_31, %c0_32] : memref<18x18x4xbf16, #tpu.memory_space<vmem>>, vector<16x16x4xbf16>
    %21 = vector.shape_cast %20 : vector<16x16x4xbf16> to vector<256x4xbf16>
    %c8 = arith.constant 8 : index
    %c0_33 = arith.constant 0 : index
    %22 = vector.load %arg2[%c8, %c0_33] : memref<36x4xbf16, #tpu.memory_space<vmem>>, vector<4x4xbf16>
    %cst_34 = arith.constant dense<0.000000e+00> : vector<256x4xf32>
    %23 = tpu.matmul %21, %22, %cst_34 {dimension_numbers = #tpu.dot_dimension_numbers<[1], [0], [0], [1], [0, 0, 1, 1], [], []>} : vector<256x4xbf16>, vector<4x4xbf16>, vector<256x4xf32> -> vector<256x4xf32>
    %24 = arith.addf %19, %23 : vector<256x4xf32>
    %c0_35 = arith.constant 0 : index
    %c0_36 = arith.constant 0 : index
    %25 = vector.load %arg6[%c0_35, %c0_36] : memref<256x4xf32, #tpu.memory_space<vmem>>, vector<256x4xf32>
    tpu.vector_store %arg6[%c0_35, %c0_36], %24 {strides = array<i32>} : memref<256x4xf32, #tpu.memory_space<vmem>>, vector<256x4xf32>,
    %c1_37 = arith.constant 1 : index
    %c0_38 = arith.constant 0 : index
    %c0_39 = arith.constant 0 : index
    %26 = vector.load %arg5[%c1_37, %c0_38, %c0_39] : memref<18x18x4xbf16, #tpu.memory_space<vmem>>, vector<16x16x4xbf16>
    %27 = vector.shape_cast %26 : vector<16x16x4xbf16> to vector<256x4xbf16>
    %c12 = arith.constant 12 : index
    %c0_40 = arith.constant 0 : index
    %28 = vector.load %arg2[%c12, %c0_40] : memref<36x4xbf16, #tpu.memory_space<vmem>>, vector<4x4xbf16>
    %cst_41 = arith.constant dense<0.000000e+00> : vector<256x4xf32>
    %29 = tpu.matmul %27, %28, %cst_41 {dimension_numbers = #tpu.dot_dimension_numbers<[1], [0], [0], [1], [0, 0, 1, 1], [], []>} : vector<256x4xbf16>, vector<4x4xbf16>, vector<256x4xf32> -> vector<256x4xf32>
    %c1_42 = arith.constant 1 : index
    %c1_43 = arith.constant 1 : index
    %c0_44 = arith.constant 0 : index
    %30 = vector.load %arg5[%c1_42, %c1_43, %c0_44] : memref<18x18x4xbf16, #tpu.memory_space<vmem>>, vector<16x16x4xbf16>
    %31 = vector.shape_cast %30 : vector<16x16x4xbf16> to vector<256x4xbf16>
    %c16 = arith.constant 16 : index
    %c0_45 = arith.constant 0 : index
    %32 = vector.load %arg2[%c16, %c0_45] : memref<36x4xbf16, #tpu.memory_space<vmem>>, vector<4x4xbf16>
    %cst_46 = arith.constant dense<0.000000e+00> : vector<256x4xf32>
    %33 = tpu.matmul %31, %32, %cst_46 {dimension_numbers = #tpu.dot_dimension_numbers<[1], [0], [0], [1], [0, 0, 1, 1], [], []>} : vector<256x4xbf16>, vector<4x4xbf16>, vector<256x4xf32> -> vector<256x4xf32>
    %34 = arith.addf %29, %33 : vector<256x4xf32>
    %c1_47 = arith.constant 1 : index
    %c2_48 = arith.constant 2 : index
    %c0_49 = arith.constant 0 : index
    %35 = vector.load %arg5[%c1_47, %c2_48, %c0_49] : memref<18x18x4xbf16, #tpu.memory_space<vmem>>, vector<16x16x4xbf16>
    %36 = vector.shape_cast %35 : vector<16x16x4xbf16> to vector<256x4xbf16>
    %c20 = arith.constant 20 : index
    %c0_50 = arith.constant 0 : index
    %37 = vector.load %arg2[%c20, %c0_50] : memref<36x4xbf16, #tpu.memory_space<vmem>>, vector<4x4xbf16>
    %cst_51 = arith.constant dense<0.000000e+00> : vector<256x4xf32>
    %38 = tpu.matmul %36, %37, %cst_51 {dimension_numbers = #tpu.dot_dimension_numbers<[1], [0], [0], [1], [0, 0, 1, 1], [], []>} : vector<256x4xbf16>, vector<4x4xbf16>, vector<256x4xf32> -> vector<256x4xf32>
    %39 = arith.addf %34, %38 : vector<256x4xf32>
    %c0_52 = arith.constant 0 : index
    %c0_53 = arith.constant 0 : index
    %40 = vector.load %arg6[%c0_52, %c0_53] : memref<256x4xf32, #tpu.memory_space<vmem>>, vector<256x4xf32>
    %41 = arith.addf %40, %39 : vector<256x4xf32>
    %c0_54 = arith.constant 0 : index
    %c0_55 = arith.constant 0 : index
    %42 = vector.load %arg6[%c0_54, %c0_55] : memref<256x4xf32, #tpu.memory_space<vmem>>, vector<256x4xf32>
    tpu.vector_store %arg6[%c0_54, %c0_55], %41 {strides = array<i32>} : memref<256x4xf32, #tpu.memory_space<vmem>>, vector<256x4xf32>,
    %c2_56 = arith.constant 2 : index
    %c0_57 = arith.constant 0 : index
    %c0_58 = arith.constant 0 : index
    %43 = vector.load %arg5[%c2_56, %c0_57, %c0_58] : memref<18x18x4xbf16, #tpu.memory_space<vmem>>, vector<16x16x4xbf16>
    %44 = vector.shape_cast %43 : vector<16x16x4xbf16> to vector<256x4xbf16>
    %c24 = arith.constant 24 : index
    %c0_59 = arith.constant 0 : index
    %45 = vector.load %arg2[%c24, %c0_59] : memref<36x4xbf16, #tpu.memory_space<vmem>>, vector<4x4xbf16>
    %cst_60 = arith.constant dense<0.000000e+00> : vector<256x4xf32>
    %46 = tpu.matmul %44, %45, %cst_60 {dimension_numbers = #tpu.dot_dimension_numbers<[1], [0], [0], [1], [0, 0, 1, 1], [], []>} : vector<256x4xbf16>, vector<4x4xbf16>, vector<256x4xf32> -> vector<256x4xf32>
    %c2_61 = arith.constant 2 : index
    %c1_62 = arith.constant 1 : index
    %c0_63 = arith.constant 0 : index
    %47 = vector.load %arg5[%c2_61, %c1_62, %c0_63] : memref<18x18x4xbf16, #tpu.memory_space<vmem>>, vector<16x16x4xbf16>
    %48 = vector.shape_cast %47 : vector<16x16x4xbf16> to vector<256x4xbf16>
    %c28 = arith.constant 28 : index
    %c0_64 = arith.constant 0 : index
    %49 = vector.load %arg2[%c28, %c0_64] : memref<36x4xbf16, #tpu.memory_space<vmem>>, vector<4x4xbf16>
    %cst_65 = arith.constant dense<0.000000e+00> : vector<256x4xf32>
    %50 = tpu.matmul %48, %49, %cst_65 {dimension_numbers = #tpu.dot_dimension_numbers<[1], [0], [0], [1], [0, 0, 1, 1], [], []>} : vector<256x4xbf16>, vector<4x4xbf16>, vector<256x4xf32> -> vector<256x4xf32>
    %51 = arith.addf %46, %50 : vector<256x4xf32>
    %c2_66 = arith.constant 2 : index
    %c2_67 = arith.constant 2 : index
    %c0_68 = arith.constant 0 : index
    %52 = vector.load %arg5[%c2_66, %c2_67, %c0_68] : memref<18x18x4xbf16, #tpu.memory_space<vmem>>, vector<16x16x4xbf16>
    %53 = vector.shape_cast %52 : vector<16x16x4xbf16> to vector<256x4xbf16>
    %c32 = arith.constant 32 : index
    %c0_69 = arith.constant 0 : index
    %54 = vector.load %arg2[%c32, %c0_69] : memref<36x4xbf16, #tpu.memory_space<vmem>>, vector<4x4xbf16>
    %cst_70 = arith.constant dense<0.000000e+00> : vector<256x4xf32>
    %55 = tpu.matmul %53, %54, %cst_70 {dimension_numbers = #tpu.dot_dimension_numbers<[1], [0], [0], [1], [0, 0, 1, 1], [], []>} : vector<256x4xbf16>, vector<4x4xbf16>, vector<256x4xf32> -> vector<256x4xf32>
    %56 = arith.addf %51, %55 : vector<256x4xf32>
    %c0_71 = arith.constant 0 : index
    %c0_72 = arith.constant 0 : index
    %57 = vector.load %arg6[%c0_71, %c0_72] : memref<256x4xf32, #tpu.memory_space<vmem>>, vector<256x4xf32>
    %58 = arith.addf %57, %56 : vector<256x4xf32>
    %c0_73 = arith.constant 0 : index
    %c0_74 = arith.constant 0 : index
    %59 = vector.load %arg6[%c0_73, %c0_74] : memref<256x4xf32, #tpu.memory_space<vmem>>, vector<256x4xf32>
    tpu.vector_store %arg6[%c0_73, %c0_74], %58 {strides = array<i32>} : memref<256x4xf32, #tpu.memory_space<vmem>>, vector<256x4xf32>,
    %c0_75 = arith.constant 0 : index
    %c0_76 = arith.constant 0 : index
    %60 = vector.load %arg6[%c0_75, %c0_76] : memref<256x4xf32, #tpu.memory_space<vmem>>, vector<256x4xf32>
    %cst_77 = arith.constant dense<0.000000e+00> : vector<4xf32>
    %61 = vector.multi_reduction <add>, %60, %cst_77 [0] : vector<256x4xf32> to vector<4xf32>
    %62 = vector.shape_cast %61 : vector<4xf32> to vector<1x4xf32>
    %cst_78 = arith.constant 3.906250e-03 : f32
    %63 = vector.broadcast %cst_78 : f32 to vector<1x4xf32>
    %64 = arith.mulf %62, %63 : vector<1x4xf32>
    %65 = arith.mulf %60, %60 : vector<256x4xf32>
    %cst_79 = arith.constant dense<0.000000e+00> : vector<4xf32>
    %66 = vector.multi_reduction <add>, %65, %cst_79 [0] : vector<256x4xf32> to vector<4xf32>
    %67 = vector.shape_cast %66 : vector<4xf32> to vector<1x4xf32>
    %cst_80 = arith.constant 3.906250e-03 : f32
    %68 = vector.broadcast %cst_80 : f32 to vector<1x4xf32>
    %69 = arith.mulf %67, %68 : vector<1x4xf32>
    %70 = arith.mulf %64, %64 : vector<1x4xf32>
    %71 = arith.subf %69, %70 : vector<1x4xf32>
    %cst_81 = arith.constant 0.000000e+00 : f32
    %72 = vector.broadcast %cst_81 : f32 to vector<1x4xf32>
    %73 = arith.maximumf %71, %72 : vector<1x4xf32>
    %74 = vector.broadcast %64 : vector<1x4xf32> to vector<256x4xf32>
    %75 = arith.subf %60, %74 : vector<256x4xf32>
    %cst_82 = arith.constant 9.99999974E-6 : f32
    %76 = vector.broadcast %cst_82 : f32 to vector<1x4xf32>
    %77 = arith.addf %73, %76 : vector<1x4xf32>
    %78 = math.rsqrt %77 : vector<1x4xf32>
    %79 = vector.broadcast %78 : vector<1x4xf32> to vector<256x4xf32>
    %80 = arith.mulf %75, %79 : vector<256x4xf32>
    %cst_83 = arith.constant 0.000000e+00 : f32
    %81 = vector.broadcast %cst_83 : f32 to vector<256x4xf32>
    %82 = arith.maximumf %80, %81 : vector<256x4xf32>
    %83 = arith.truncf %82 : vector<256x4xf32> to vector<256x4xbf16>
    %84 = vector.shape_cast %83 : vector<256x4xbf16> to vector<16x16x4xbf16>
    %c1_84 = arith.constant 1 : index
    %c1_85 = arith.constant 1 : index
    %c0_86 = arith.constant 0 : index
    %85 = vector.load %arg5[%c1_84, %c1_85, %c0_86] : memref<18x18x4xbf16, #tpu.memory_space<vmem>>, vector<16x16x4xbf16>
    tpu.vector_store %arg5[%c1_84, %c1_85, %c0_86], %84 {strides = array<i32>} : memref<18x18x4xbf16, #tpu.memory_space<vmem>>, vector<16x16x4xbf16>,
    %86 = vector.extract_strided_slice %84 {offsets = [1, 0, 0], sizes = [1, 16, 4], strides = [1, 1, 1]} : vector<16x16x4xbf16> to vector<1x16x4xbf16>
    %c0_87 = arith.constant 0 : index
    %c1_88 = arith.constant 1 : index
    %c0_89 = arith.constant 0 : index
    %87 = vector.load %arg5[%c0_87, %c1_88, %c0_89] : memref<18x18x4xbf16, #tpu.memory_space<vmem>>, vector<1x16x4xbf16>
    tpu.vector_store %arg5[%c0_87, %c1_88, %c0_89], %86 {strides = array<i32>} : memref<18x18x4xbf16, #tpu.memory_space<vmem>>, vector<1x16x4xbf16>,
    %88 = vector.extract_strided_slice %84 {offsets = [14, 0, 0], sizes = [1, 16, 4], strides = [1, 1, 1]} : vector<16x16x4xbf16> to vector<1x16x4xbf16>
    %c17_90 = arith.constant 17 : index
    %c1_91 = arith.constant 1 : index
    %c0_92 = arith.constant 0 : index
    %89 = vector.load %arg5[%c17_90, %c1_91, %c0_92] : memref<18x18x4xbf16, #tpu.memory_space<vmem>>, vector<1x16x4xbf16>
    tpu.vector_store %arg5[%c17_90, %c1_91, %c0_92], %88 {strides = array<i32>} : memref<18x18x4xbf16, #tpu.memory_space<vmem>>, vector<1x16x4xbf16>,
    %c0_93 = arith.constant 0 : index
    %c2_94 = arith.constant 2 : index
    %c0_95 = arith.constant 0 : index
    %90 = vector.load %arg5[%c0_93, %c2_94, %c0_95] : memref<18x18x4xbf16, #tpu.memory_space<vmem>>, vector<18x1x4xbf16>
    %c0_96 = arith.constant 0 : index
    %c0_97 = arith.constant 0 : index
    %c0_98 = arith.constant 0 : index
    %91 = vector.load %arg5[%c0_96, %c0_97, %c0_98] : memref<18x18x4xbf16, #tpu.memory_space<vmem>>, vector<18x1x4xbf16>
    tpu.vector_store %arg5[%c0_96, %c0_97, %c0_98], %90 {strides = array<i32>} : memref<18x18x4xbf16, #tpu.memory_space<vmem>>, vector<18x1x4xbf16>,
    %c0_99 = arith.constant 0 : index
    %c15_100 = arith.constant 15 : index
    %c0_101 = arith.constant 0 : index
    %92 = vector.load %arg5[%c0_99, %c15_100, %c0_101] : memref<18x18x4xbf16, #tpu.memory_space<vmem>>, vector<18x1x4xbf16>
    %c0_102 = arith.constant 0 : index
    %c17_103 = arith.constant 17 : index
    %c0_104 = arith.constant 0 : index
    %93 = vector.load %arg5[%c0_102, %c17_103, %c0_104] : memref<18x18x4xbf16, #tpu.memory_space<vmem>>, vector<18x1x4xbf16>
    tpu.vector_store %arg5[%c0_102, %c17_103, %c0_104], %92 {strides = array<i32>} : memref<18x18x4xbf16, #tpu.memory_space<vmem>>, vector<18x1x4xbf16>,
    %c0_105 = arith.constant 0 : index
    %c0_106 = arith.constant 0 : index
    %c0_107 = arith.constant 0 : index
    %94 = vector.load %arg5[%c0_105, %c0_106, %c0_107] : memref<18x18x4xbf16, #tpu.memory_space<vmem>>, vector<16x16x4xbf16>
    %95 = vector.shape_cast %94 : vector<16x16x4xbf16> to vector<256x4xbf16>
    %c0_108 = arith.constant 0 : index
    %c0_109 = arith.constant 0 : index
    %96 = vector.load %arg3[%c0_108, %c0_109] : memref<36x4xbf16, #tpu.memory_space<vmem>>, vector<4x4xbf16>
    %cst_110 = arith.constant dense<0.000000e+00> : vector<256x4xf32>
    %97 = tpu.matmul %95, %96, %cst_110 {dimension_numbers = #tpu.dot_dimension_numbers<[1], [0], [0], [1], [0, 0, 1, 1], [], []>} : vector<256x4xbf16>, vector<4x4xbf16>, vector<256x4xf32> -> vector<256x4xf32>
    %c0_111 = arith.constant 0 : index
    %c1_112 = arith.constant 1 : index
    %c0_113 = arith.constant 0 : index
    %98 = vector.load %arg5[%c0_111, %c1_112, %c0_113] : memref<18x18x4xbf16, #tpu.memory_space<vmem>>, vector<16x16x4xbf16>
    %99 = vector.shape_cast %98 : vector<16x16x4xbf16> to vector<256x4xbf16>
    %c4_114 = arith.constant 4 : index
    %c0_115 = arith.constant 0 : index
    %100 = vector.load %arg3[%c4_114, %c0_115] : memref<36x4xbf16, #tpu.memory_space<vmem>>, vector<4x4xbf16>
    %cst_116 = arith.constant dense<0.000000e+00> : vector<256x4xf32>
    %101 = tpu.matmul %99, %100, %cst_116 {dimension_numbers = #tpu.dot_dimension_numbers<[1], [0], [0], [1], [0, 0, 1, 1], [], []>} : vector<256x4xbf16>, vector<4x4xbf16>, vector<256x4xf32> -> vector<256x4xf32>
    %102 = arith.addf %97, %101 : vector<256x4xf32>
    %c0_117 = arith.constant 0 : index
    %c2_118 = arith.constant 2 : index
    %c0_119 = arith.constant 0 : index
    %103 = vector.load %arg5[%c0_117, %c2_118, %c0_119] : memref<18x18x4xbf16, #tpu.memory_space<vmem>>, vector<16x16x4xbf16>
    %104 = vector.shape_cast %103 : vector<16x16x4xbf16> to vector<256x4xbf16>
    %c8_120 = arith.constant 8 : index
    %c0_121 = arith.constant 0 : index
    %105 = vector.load %arg3[%c8_120, %c0_121] : memref<36x4xbf16, #tpu.memory_space<vmem>>, vector<4x4xbf16>
    %cst_122 = arith.constant dense<0.000000e+00> : vector<256x4xf32>
    %106 = tpu.matmul %104, %105, %cst_122 {dimension_numbers = #tpu.dot_dimension_numbers<[1], [0], [0], [1], [0, 0, 1, 1], [], []>} : vector<256x4xbf16>, vector<4x4xbf16>, vector<256x4xf32> -> vector<256x4xf32>
    %107 = arith.addf %102, %106 : vector<256x4xf32>
    %c0_123 = arith.constant 0 : index
    %c0_124 = arith.constant 0 : index
    %108 = vector.load %arg6[%c0_123, %c0_124] : memref<256x4xf32, #tpu.memory_space<vmem>>, vector<256x4xf32>
    tpu.vector_store %arg6[%c0_123, %c0_124], %107 {strides = array<i32>} : memref<256x4xf32, #tpu.memory_space<vmem>>, vector<256x4xf32>,
    %c1_125 = arith.constant 1 : index
    %c0_126 = arith.constant 0 : index
    %c0_127 = arith.constant 0 : index
    %109 = vector.load %arg5[%c1_125, %c0_126, %c0_127] : memref<18x18x4xbf16, #tpu.memory_space<vmem>>, vector<16x16x4xbf16>
    %110 = vector.shape_cast %109 : vector<16x16x4xbf16> to vector<256x4xbf16>
    %c12_128 = arith.constant 12 : index
    %c0_129 = arith.constant 0 : index
    %111 = vector.load %arg3[%c12_128, %c0_129] : memref<36x4xbf16, #tpu.memory_space<vmem>>, vector<4x4xbf16>
    %cst_130 = arith.constant dense<0.000000e+00> : vector<256x4xf32>
    %112 = tpu.matmul %110, %111, %cst_130 {dimension_numbers = #tpu.dot_dimension_numbers<[1], [0], [0], [1], [0, 0, 1, 1], [], []>} : vector<256x4xbf16>, vector<4x4xbf16>, vector<256x4xf32> -> vector<256x4xf32>
    %c1_131 = arith.constant 1 : index
    %c1_132 = arith.constant 1 : index
    %c0_133 = arith.constant 0 : index
    %113 = vector.load %arg5[%c1_131, %c1_132, %c0_133] : memref<18x18x4xbf16, #tpu.memory_space<vmem>>, vector<16x16x4xbf16>
    %114 = vector.shape_cast %113 : vector<16x16x4xbf16> to vector<256x4xbf16>
    %c16_134 = arith.constant 16 : index
    %c0_135 = arith.constant 0 : index
    %115 = vector.load %arg3[%c16_134, %c0_135] : memref<36x4xbf16, #tpu.memory_space<vmem>>, vector<4x4xbf16>
    %cst_136 = arith.constant dense<0.000000e+00> : vector<256x4xf32>
    %116 = tpu.matmul %114, %115, %cst_136 {dimension_numbers = #tpu.dot_dimension_numbers<[1], [0], [0], [1], [0, 0, 1, 1], [], []>} : vector<256x4xbf16>, vector<4x4xbf16>, vector<256x4xf32> -> vector<256x4xf32>
    %117 = arith.addf %112, %116 : vector<256x4xf32>
    %c1_137 = arith.constant 1 : index
    %c2_138 = arith.constant 2 : index
    %c0_139 = arith.constant 0 : index
    %118 = vector.load %arg5[%c1_137, %c2_138, %c0_139] : memref<18x18x4xbf16, #tpu.memory_space<vmem>>, vector<16x16x4xbf16>
    %119 = vector.shape_cast %118 : vector<16x16x4xbf16> to vector<256x4xbf16>
    %c20_140 = arith.constant 20 : index
    %c0_141 = arith.constant 0 : index
    %120 = vector.load %arg3[%c20_140, %c0_141] : memref<36x4xbf16, #tpu.memory_space<vmem>>, vector<4x4xbf16>
    %cst_142 = arith.constant dense<0.000000e+00> : vector<256x4xf32>
    %121 = tpu.matmul %119, %120, %cst_142 {dimension_numbers = #tpu.dot_dimension_numbers<[1], [0], [0], [1], [0, 0, 1, 1], [], []>} : vector<256x4xbf16>, vector<4x4xbf16>, vector<256x4xf32> -> vector<256x4xf32>
    %122 = arith.addf %117, %121 : vector<256x4xf32>
    %c0_143 = arith.constant 0 : index
    %c0_144 = arith.constant 0 : index
    %123 = vector.load %arg6[%c0_143, %c0_144] : memref<256x4xf32, #tpu.memory_space<vmem>>, vector<256x4xf32>
    %124 = arith.addf %123, %122 : vector<256x4xf32>
    %c0_145 = arith.constant 0 : index
    %c0_146 = arith.constant 0 : index
    %125 = vector.load %arg6[%c0_145, %c0_146] : memref<256x4xf32, #tpu.memory_space<vmem>>, vector<256x4xf32>
    tpu.vector_store %arg6[%c0_145, %c0_146], %124 {strides = array<i32>} : memref<256x4xf32, #tpu.memory_space<vmem>>, vector<256x4xf32>,
    %c2_147 = arith.constant 2 : index
    %c0_148 = arith.constant 0 : index
    %c0_149 = arith.constant 0 : index
    %126 = vector.load %arg5[%c2_147, %c0_148, %c0_149] : memref<18x18x4xbf16, #tpu.memory_space<vmem>>, vector<16x16x4xbf16>
    %127 = vector.shape_cast %126 : vector<16x16x4xbf16> to vector<256x4xbf16>
    %c24_150 = arith.constant 24 : index
    %c0_151 = arith.constant 0 : index
    %128 = vector.load %arg3[%c24_150, %c0_151] : memref<36x4xbf16, #tpu.memory_space<vmem>>, vector<4x4xbf16>
    %cst_152 = arith.constant dense<0.000000e+00> : vector<256x4xf32>
    %129 = tpu.matmul %127, %128, %cst_152 {dimension_numbers = #tpu.dot_dimension_numbers<[1], [0], [0], [1], [0, 0, 1, 1], [], []>} : vector<256x4xbf16>, vector<4x4xbf16>, vector<256x4xf32> -> vector<256x4xf32>
    %c2_153 = arith.constant 2 : index
    %c1_154 = arith.constant 1 : index
    %c0_155 = arith.constant 0 : index
    %130 = vector.load %arg5[%c2_153, %c1_154, %c0_155] : memref<18x18x4xbf16, #tpu.memory_space<vmem>>, vector<16x16x4xbf16>
    %131 = vector.shape_cast %130 : vector<16x16x4xbf16> to vector<256x4xbf16>
    %c28_156 = arith.constant 28 : index
    %c0_157 = arith.constant 0 : index
    %132 = vector.load %arg3[%c28_156, %c0_157] : memref<36x4xbf16, #tpu.memory_space<vmem>>, vector<4x4xbf16>
    %cst_158 = arith.constant dense<0.000000e+00> : vector<256x4xf32>
    %133 = tpu.matmul %131, %132, %cst_158 {dimension_numbers = #tpu.dot_dimension_numbers<[1], [0], [0], [1], [0, 0, 1, 1], [], []>} : vector<256x4xbf16>, vector<4x4xbf16>, vector<256x4xf32> -> vector<256x4xf32>
    %134 = arith.addf %129, %133 : vector<256x4xf32>
    %c2_159 = arith.constant 2 : index
    %c2_160 = arith.constant 2 : index
    %c0_161 = arith.constant 0 : index
    %135 = vector.load %arg5[%c2_159, %c2_160, %c0_161] : memref<18x18x4xbf16, #tpu.memory_space<vmem>>, vector<16x16x4xbf16>
    %136 = vector.shape_cast %135 : vector<16x16x4xbf16> to vector<256x4xbf16>
    %c32_162 = arith.constant 32 : index
    %c0_163 = arith.constant 0 : index
    %137 = vector.load %arg3[%c32_162, %c0_163] : memref<36x4xbf16, #tpu.memory_space<vmem>>, vector<4x4xbf16>
    %cst_164 = arith.constant dense<0.000000e+00> : vector<256x4xf32>
    %138 = tpu.matmul %136, %137, %cst_164 {dimension_numbers = #tpu.dot_dimension_numbers<[1], [0], [0], [1], [0, 0, 1, 1], [], []>} : vector<256x4xbf16>, vector<4x4xbf16>, vector<256x4xf32> -> vector<256x4xf32>
    %139 = arith.addf %134, %138 : vector<256x4xf32>
    %c0_165 = arith.constant 0 : index
    %c0_166 = arith.constant 0 : index
    %140 = vector.load %arg6[%c0_165, %c0_166] : memref<256x4xf32, #tpu.memory_space<vmem>>, vector<256x4xf32>
    %141 = arith.addf %140, %139 : vector<256x4xf32>
    %c0_167 = arith.constant 0 : index
    %c0_168 = arith.constant 0 : index
    %142 = vector.load %arg6[%c0_167, %c0_168] : memref<256x4xf32, #tpu.memory_space<vmem>>, vector<256x4xf32>
    tpu.vector_store %arg6[%c0_167, %c0_168], %141 {strides = array<i32>} : memref<256x4xf32, #tpu.memory_space<vmem>>, vector<256x4xf32>,
    %c0_169 = arith.constant 0 : index
    %c0_170 = arith.constant 0 : index
    %143 = vector.load %arg6[%c0_169, %c0_170] : memref<256x4xf32, #tpu.memory_space<vmem>>, vector<256x4xf32>
    %cst_171 = arith.constant dense<0.000000e+00> : vector<4xf32>
    %144 = vector.multi_reduction <add>, %143, %cst_171 [0] : vector<256x4xf32> to vector<4xf32>
    %145 = vector.shape_cast %144 : vector<4xf32> to vector<1x4xf32>
    %cst_172 = arith.constant 3.906250e-03 : f32
    %146 = vector.broadcast %cst_172 : f32 to vector<1x4xf32>
    %147 = arith.mulf %145, %146 : vector<1x4xf32>
    %148 = arith.mulf %143, %143 : vector<256x4xf32>
    %cst_173 = arith.constant dense<0.000000e+00> : vector<4xf32>
    %149 = vector.multi_reduction <add>, %148, %cst_173 [0] : vector<256x4xf32> to vector<4xf32>
    %150 = vector.shape_cast %149 : vector<4xf32> to vector<1x4xf32>
    %cst_174 = arith.constant 3.906250e-03 : f32
    %151 = vector.broadcast %cst_174 : f32 to vector<1x4xf32>
    %152 = arith.mulf %150, %151 : vector<1x4xf32>
    %153 = arith.mulf %147, %147 : vector<1x4xf32>
    %154 = arith.subf %152, %153 : vector<1x4xf32>
    %cst_175 = arith.constant 0.000000e+00 : f32
    %155 = vector.broadcast %cst_175 : f32 to vector<1x4xf32>
    %156 = arith.maximumf %154, %155 : vector<1x4xf32>
    %157 = vector.broadcast %147 : vector<1x4xf32> to vector<256x4xf32>
    %158 = arith.subf %143, %157 : vector<256x4xf32>
    %cst_176 = arith.constant 9.99999974E-6 : f32
    %159 = vector.broadcast %cst_176 : f32 to vector<1x4xf32>
    %160 = arith.addf %156, %159 : vector<1x4xf32>
    %161 = math.rsqrt %160 : vector<1x4xf32>
    %162 = vector.broadcast %161 : vector<1x4xf32> to vector<256x4xf32>
    %163 = arith.mulf %158, %162 : vector<256x4xf32>
    %164 = vector.shape_cast %163 : vector<256x4xf32> to vector<16x16x4xf32>
    %165 = arith.truncf %164 : vector<16x16x4xf32> to vector<16x16x4xbf16>
    %c0_177 = arith.constant 0 : index
    %c0_178 = arith.constant 0 : index
    %c0_179 = arith.constant 0 : index
    %c0_180 = arith.constant 0 : index
    %166 = vector.load %arg4[%c0_177, %c0_178, %c0_179, %c0_180] : memref<1x16x16x4xbf16, #tpu.memory_space<vmem>>, vector<1x16x16x4xbf16>
    %167 = vector.shape_cast %166 : vector<1x16x16x4xbf16> to vector<16x16x4xbf16>
    %168 = vector.shape_cast %165 : vector<16x16x4xbf16> to vector<1x16x16x4xbf16>
    tpu.vector_store %arg4[%c0_177, %c0_178, %c0_179, %c0_180], %168 {strides = array<i32>} : memref<1x16x16x4xbf16, #tpu.memory_space<vmem>>, vector<1x16x16x4xbf16>,
    return
  }
  func.func @transform_0(%arg0: i32) -> (i32, i32, i32, i32) {
    %c0_i32 = arith.constant 0 : i32
    %c0_i32_0 = arith.constant 0 : i32
    %c0_i32_1 = arith.constant 0 : i32
    %c0_i32_2 = arith.constant 0 : i32
    return %arg0, %c0_i32, %c0_i32_0, %c0_i32_1 : i32, i32, i32, i32
  }
  func.func @transform_1(%arg0: i32) -> (i32, i32) {
    %c0_i32 = arith.constant 0 : i32
    %c0_i32_0 = arith.constant 0 : i32
    %c0_i32_1 = arith.constant 0 : i32
    return %c0_i32, %c0_i32_0 : i32, i32
  }
  func.func @transform_2(%arg0: i32) -> (i32, i32) {
    %c0_i32 = arith.constant 0 : i32
    %c0_i32_0 = arith.constant 0 : i32
    %c0_i32_1 = arith.constant 0 : i32
    return %c0_i32, %c0_i32_0 : i32, i32
  }
  func.func @transform_3(%arg0: i32) -> (i32, i32, i32, i32) {
    %c0_i32 = arith.constant 0 : i32
    %c0_i32_0 = arith.constant 0 : i32
    %c0_i32_1 = arith.constant 0 : i32
    %c0_i32_2 = arith.constant 0 : i32
    return %arg0, %c0_i32, %c0_i32_0, %c0_i32_1 : i32, i32, i32, i32
  }
}

</mosaic_0001>

<bundles_post_ra>
// kernel: resnet_block.1
= control target key start
LH: loop header
LB: loop body
LE: loop exit
PB: predicated region body
PF: predicated region fallthrough
CT: control target
= control target key end

     0   :  { %s14157_s12 = smov 0   ;;  %s19362_s0 = inlined_call_operand.vmem [shape: bf16[2,16,16,4], index: 0, kind: input, shape index: {}]   ;;  %s19363_s1 = inlined_call_operand.vmem [shape: bf16[36,4], index: 1, kind: input, shape index: {}]   ;;  %s19364_s2 = inlined_call_operand.vmem [shape: bf16[36,4], index: 2, kind: input, shape index: {}]   ;;  %s19365_s3 = inlined_call_operand.vmem [shape: bf16[2,16,16,4], index: 3, kind: output, shape index: {}]  }
   0x1 LB: > { %s11696_s13 = sadd.s32 4294967295, %s14135_s12   ;;  %p11700_p0 = scmp.ge.s32.totalorder %s14135_s12, 1  ;;  %s14135_s12 = sphi %s14157_s12, %s13_s12  }
   0x2   : > { %p137_p1 = scmp.lt.s32.totalorder %s14135_s12, 3 }
   0x4   : > { %p138_p2 = pnand %p11700_p0, %p137_p1 }
   0x6   : > { %141 = sbr.rel (%p138_p2) target bundleno = 1694 (0x69e), region = 32 }
   0xd   : > { %v13917_v0 = vld [vmem:[%s19363_s1] ss:$0 sps:$4 sm:$0xcc]   ;;  %vm1488_vm0 = vcmask 1041408   ;;  %p161_p3 = scmp.lt.s32.totalorder %s11696_s13, 1  ;;  %vm528_vm3 = vcmask 27648  }
   0xe   : > { %v1438_v1 = vrot.slane %v13917_v0, 2  ;;  %v14175_v3 = vld [vmem:[%s19363_s1] sm:$0x3]  ;;  %vm204_vm1 = vsmask.f32 256  ;;  %vm536_vm5 = vcmask 24576  }
   0xf   : > { %s19779_s13 = smov (!%p161_p3, %s11696_s13), 1  ;;  %vm205_vm2 = vsmask.f32 4368  ;;  %vm529_vm4 = vsmask.f32 7938  ;;  %v19470_v13 = vmov 0  ;;  %vm14211_vm8 = vmand %vm536_vm5, %vm204_vm1 }
  0x10   : > { %13891 = vmatprep.subr.msk.bf16.mxu0 %vm1488_vm0, %v1438_v1  ;;  %v1490_v2 = vsel %vm1488_vm0, %v1438_v1, 0  ;;  %s12523_s18 = sshll.u32 %s19779_s13, 7  ;;  %v2866_v4 = vld [vmem:[%s19363_s1 + $0x8] sm:$0x3]  ;;  %vm14197_vm6 = vmor %vm204_vm1, %vm205_vm2  ;;  %v646_v14 = vld [vmem:[#allocation2] sm:$0xf] }
  0x11   : > { %12896 = vmatpush3.bf16.msra.mxu0 %v1490_v2  ;;  %s14183_s21 = scalar_lea.vmem %s19362_s0, %s12523_s18  ;;  %13894 = vmatprep.subr.msk.bf16.mxu1 %vm1488_vm0, %v2866_v4  ;;  %v19471_v13 = vsel %vm14197_vm6, 4294967295, %v19470_v13  ;;  %v650_v15 = vld [vmem:[#allocation2 + $0x8] sm:$0x1]  ;;  %vm14203_vm7 = vmand %vm528_vm3, %vm529_vm4  ;;  %v19473_v22 = vmov 0  ;;  %v531_v23 = vld [vmem:[#allocation2 + $0xc] sm:$0xf]  ;;  %s19261_s9 = scalar_lea.vmem %s19365_s3, %s12523_s18 }
  0x12   : > { %13892 = vmatprep.subr.msk.bf16.mxu0 %vm1488_vm0, %v14175_v3  ;;  %v174_v5 = vld [vmem:[%s14183_s21 + $0x8] sm:$0xf]  ;;  %v175_v6 = vld [vmem:[%s14183_s21 + $0xc] sm:$0xf]  ;;  %v172_v7 = vld [vmem:[%s14183_s21] sm:$0xf] }
  0x13   : > { %v225_v8 = vshrl.u32 %v174_v5, 16  ;;  %v228_v9 = vshll.u32 %v174_v5, 16  ;;  %v233_v10 = vshrl.u32 %v175_v6, 16  ;;  %v236_v11 = vshll.u32 %v175_v6, 16  ;;  %v173_v12 = vld [vmem:[%s14183_s21 + $0x4] sm:$0xf]  ;;  %vm14248_vm9 = vmand %vm536_vm5, %vm529_vm4 }
  0x14   : > { %19472 = vst [vmem:[#allocation4_spill] sm:$0xff] %v19471_v13  ;;  %v208_v16 = vshrl.u32 %v172_v7, 16  ;;  %v211_v17 = vshll.u32 %v172_v7, 16  ;;  %v216_v18 = vshrl.u32 %v173_v12, 16  ;;  %v219_v19 = vshll.u32 %v173_v12, 16 }
  0x15   : > { %v227_v20 = vrot.slane %v225_v8, 7  ;;  %v235_v21 = vrot.slane %v233_v10, 7  ;;  %v19474_v22 = vsel %vm14203_vm7, 4294967295, %v19473_v22  ;;  %v2964_v24 = vsel %vm1488_vm0, %v2866_v4, 0  ;;  %v176_v25 = vld [vmem:[%s14183_s21 + $0x10] sm:$0xf] }
  0x16   : > { %19475 = vst [vmem:[#allocation5_spill] sm:$0xff] %v19474_v22  ;;  %v19476_v26 = vmov 0  ;;  %v210_v27 = vrot.slane %v208_v16, 7  ;;  %v218_v28 = vrot.slane %v216_v18, 7  ;;  %12998 = vmatpush3.bf16.msra.mxu1 %v2964_v24  ;;  %v541_v29 = vld [vmem:[#allocation2 + $0x18] sm:$0xf] }
  0x17   : > { %v19477_v26 = vsel %vm14211_vm8, 4294967295, %v19476_v26  ;;  %v242_v30 = vshrl.u32 %v176_v25, 16  ;;  %v245_v31 = vshll.u32 %v176_v25, 16  ;;  %v230_v32 = vor.u32 %v228_v9, %v227_v20  ;;  %v538_v36 = vld [vmem:[#allocation2 + $0x14] sm:$0x1] }
  0x18   : > { %19478 = vst [vmem:[#allocation6_spill] sm:$0xff] %v19477_v26  ;;  %v231_v33 = vrot.slane %v227_v20, 4  ;;  %v238_v34 = vor.u32 %v236_v11, %v235_v21  ;;  %v240_v35 = vrot.slane %v235_v21, 4  ;;  %v545_v37 = vld [vmem:[#allocation2 + $0x20] sm:$0x1]  ;;  %v213_v38 = vor.u32 %v211_v17, %v210_v27 }
  0x19   : > { %v214_v39 = vrot.slane %v210_v27, 4  ;;  %v221_v40 = vor.u32 %v219_v19, %v218_v28  ;;  %v223_v41 = vrot.slane %v218_v28, 4  ;;  %v177_v42 = vld [vmem:[%s14183_s21 + $0x14] sm:$0xf]  ;;  %v178_v43 = vld [vmem:[%s14183_s21 + $0x18] sm:$0xf]  ;;  %v647_v45 = vsel %vm14203_vm7, %v230_v32, %v646_v14 }
  0x1a   : > { %v239_v44 = vsel %vm14197_vm6, %v231_v33, %v238_v34  ;;  %v651_v46 = vsel %vm14211_vm8, %v240_v35, %v650_v15  ;;  %v542_v47 = vsel %vm14203_vm7, %v230_v32, %v541_v29  ;;  %v179_v48 = vld [vmem:[%s14183_s21 + $0x1c] sm:$0xf]  ;;  %v180_v49 = vld [vmem:[%s14183_s21 + $0x20] sm:$0xf]  ;;  %648 = vst [vmem:[#allocation2] sm:$0xf] %v647_v45  ;;  %v532_v51 = vsel %vm14203_vm7, %v213_v38, %v531_v23 }
  0x1b   : > { %544 = vst.msk [vmem:[#allocation2 + $0x1c] sm:$0xf] %vm528_vm3, %v239_v44  ;;  %649 = vst.msk [vmem:[#allocation2 + $0x4] sm:$0xf] %vm528_vm3, %v239_v44  ;;  %v222_v50 = vsel %vm14197_vm6, %v214_v39, %v221_v40  ;;  %v539_v52 = vsel %vm14211_vm8, %v223_v41, %v538_v36  ;;  %v546_v53 = vsel %vm14211_vm8, %v240_v35, %v545_v37  ;;  %v244_v54 = vrot.slane %v242_v30, 7 }
  0x1c   : > { %652 = vst [vmem:[#allocation2 + $0x8] sm:$0x1] %v651_v46  ;;  %543 = vst [vmem:[#allocation2 + $0x18] sm:$0xf] %v542_v47  ;;  %v250_v55 = vshrl.u32 %v177_v42, 16  ;;  %v253_v56 = vshll.u32 %v177_v42, 16 }
  0x1d   : > { %533 = vst [vmem:[#allocation2 + $0xc] sm:$0xf] %v532_v51  ;;  %535 = vst.msk [vmem:[#allocation2 + $0x10] sm:$0xf] %vm528_vm3, %v222_v50  ;;  %v259_v57 = vshrl.u32 %v178_v43, 16  ;;  %v262_v60 = vshll.u32 %v178_v43, 16  ;;  %v247_v0 = vor.u32 %v245_v31, %v244_v54 }
  0x1e   : > { %540 = vst [vmem:[#allocation2 + $0x14] sm:$0x1] %v539_v52  ;;  %547 = vst [vmem:[#allocation2 + $0x20] sm:$0x1] %v546_v53  ;;  %v14239_v58 = vld [vmem:[%s14183_s21 + $0x24] sm:$0xf] }
  0x1f   : > { %v548_v59 = vld [vmem:[#allocation2 + $0x24] sm:$0xf]  ;;  %v267_v61 = vshrl.u32 %v179_v48, 16  ;;  %v270_v62 = vshll.u32 %v179_v48, 16  ;;  %v276_v63 = vshrl.u32 %v180_v49, 16  ;;  %v248_v1 = vrot.slane %v244_v54, 4 }
  0x20   : > { %v252_v2 = vrot.slane %v250_v55, 7  ;;  %v552_v4 = vld [vmem:[#allocation2 + $0x2c] sm:$0x1]  ;;  %v261_v5 = vrot.slane %v259_v57, 7  ;;  %v555_v7 = vld [vmem:[#allocation2 + $0x30] sm:$0xf]  ;;  %v549_v14 = vsel %vm14203_vm7, %v247_v0, %v548_v59 }
  0x21   : > { %v269_v6 = vrot.slane %v267_v61, 7  ;;  %v14241_v8 = vrot.slane %v276_v63, 7  ;;  %v279_v9 = vshll.u32 %v180_v49, 16  ;;  %v284_v10 = vshrl.u32 %v14239_v58, 16  ;;  %v559_v16 = vld [vmem:[#allocation2 + $0x38] sm:$0x1] }
  0x22   : > { %v255_v11 = vor.u32 %v253_v56, %v252_v2  ;;  %v257_v12 = vrot.slane %v252_v2, 4  ;;  %v264_v15 = vor.u32 %v262_v60, %v261_v5  ;;  %v19479_v17 = vmov 0  ;;  %550 = vst [vmem:[#allocation2 + $0x24] sm:$0xf] %v549_v14  ;;  %v562_v23 = vld [vmem:[#allocation2 + $0x3c] sm:$0xf] }
  0x23   : > { %v19480_v17 = vsel %vm14248_vm9, 4294967295, %v19479_v17  ;;  %v265_v18 = vrot.slane %v261_v5, 4  ;;  %v272_v19 = vor.u32 %v270_v62, %v269_v6  ;;  %v274_v20 = vrot.slane %v269_v6, 4  ;;  %v661_v24 = vld [vmem:[#allocation2] sm:$0x2] }
  0x24   : > { %19481 = vst [vmem:[#allocation7_spill] sm:$0xff] %v19480_v17  ;;  %v281_v21 = vor.u32 %v279_v9, %v14241_v8  ;;  %v751_v25 = vld [vmem:[#allocation2] sm:$0x1]  ;;  %v805_v27 = vld [vmem:[#allocation2 + $0x4] sm:$0x8]  ;;  %v256_v28 = vsel %vm14197_vm6, %v248_v1, %v255_v11  ;;  %v553_v29 = vsel %vm14211_vm8, %v257_v12, %v552_v4  ;;  %v556_v30 = vsel %vm14203_vm7, %v264_v15, %v555_v7 }
  0x25   : > { %v11705_v31 = vrot.slane %v661_v24, 9  ;;  %v11723_v32 = vrot.slane %v805_v27, 11  ;;  %v896_v33 = vld [vmem:[#allocation2 + $0x8] sm:$0x1]  ;;  %v951_v34 = vld [vmem:[#allocation2 + $0x4] sm:$0xf]  ;;  %v273_v35 = vsel %vm14197_vm6, %v265_v18, %v272_v19  ;;  %v560_v36 = vsel %vm14211_vm8, %v274_v20, %v559_v16 }
  0x26   : > { %551 = vst.msk [vmem:[#allocation2 + $0x28] sm:$0xf] %vm528_vm3, %v256_v28  ;;  %554 = vst [vmem:[#allocation2 + $0x2c] sm:$0x1] %v553_v29  ;;  %vm999_vm10 = vsmask.f32 3328  ;;  %v563_v41 = vsel %vm14203_vm7, %v281_v21, %v562_v23 }
  0x27   : > { %557 = vst [vmem:[#allocation2 + $0x30] sm:$0xf] %v556_v30  ;;  %vm1000_vm11 = vsmask.f32 7440  ;;  %v1012_v37 = vshll.u32 %v951_v34, 16  ;;  %v1016_v38 = vshrl.u32 %v951_v34, 16  ;;  %v752_v42 = vsel %vm14211_vm8, %v11705_v31, %v751_v25 }
  0x28   : > { %v662_v39 = vld [vmem:[#allocation2 + $0xc] sm:$0x2]  ;;  %v754_v40 = vld [vmem:[#allocation2 + $0xc] sm:$0x1]  ;;  %558 = vst.msk [vmem:[#allocation2 + $0x34] sm:$0xf] %vm528_vm3, %v273_v35  ;;  %v897_v43 = vsel %vm14248_vm9, %v11723_v32, %v896_v33  ;;  %vm14300_vm13 = vmor %vm999_vm10, %vm1000_vm11 }
  0x29   : > { %561 = vst [vmem:[#allocation2 + $0x38] sm:$0x1] %v560_v36  ;;  %v11706_v44 = vrot.slane %v662_v39, 9  ;;  %v806_v45 = vld [vmem:[#allocation2 + $0x10] sm:$0x8]  ;;  %v14273_v47 = vsel %vm1488_vm0, %v14175_v3, 0 }
  0x2a   : > { %v899_v46 = vld [vmem:[#allocation2 + $0x14] sm:$0x1]  ;;  %564 = vst [vmem:[#allocation2 + $0x3c] sm:$0xf] %v563_v41  ;;  %753 = vst [vmem:[#allocation2] sm:$0x1] %v752_v42 }
  0x2b   : > { %898 = vst [vmem:[#allocation2 + $0x8] sm:$0x1] %v897_v43  ;;  %v14275_v48 = vrot.slane %v1012_v37, 5  ;;  %v1018_v49 = vrot.slane %v1016_v38, 4  ;;  %v11724_v50 = vrot.slane %v806_v45, 11  ;;  %v286_v52 = vrot.slane %v284_v10, 7 }
  0x2c   : > { %v953_v51 = vld [vmem:[#allocation2 + $0x10] sm:$0xf]  ;;  %v755_v53 = vsel %vm14211_vm8, %v11706_v44, %v754_v40  ;;  %v663_v56 = vld [vmem:[#allocation2 + $0x18] sm:$0x2]  ;;  %v757_v57 = vld [vmem:[#allocation2 + $0x18] sm:$0x1] }
  0x2d   : > { %v1036_v54 = vshll.u32 %v953_v51, 16  ;;  %v1040_v55 = vshrl.u32 %v953_v51, 16  ;;  %v1019_v59 = vor.u32 %v1018_v49, %v14275_v48  ;;  %756 = vst [vmem:[#allocation2 + $0xc] sm:$0x1] %v755_v53  ;;  %v900_v3 = vsel %vm14248_vm9, %v11724_v50, %v899_v46  ;;  %v807_v61 = vld [vmem:[#allocation2 + $0x1c] sm:$0x8] }
  0x2e   : > { %v11707_v60 = vrot.slane %v663_v56, 9  ;;  %v902_v62 = vld [vmem:[#allocation2 + $0x20] sm:$0x1]  ;;  %v287_v63 = vshll.u32 %v14239_v58, 16  ;;  %v566_v0 = vld [vmem:[#allocation2 + $0x44] sm:$0x1] }
  0x2f   : > { %901 = vst [vmem:[#allocation2 + $0x14] sm:$0x1] %v900_v3  ;;  %v14283_v1 = vrot.slane %v1036_v54, 5  ;;  %v1042_v2 = vrot.slane %v1040_v55, 4  ;;  %v11725_v4 = vrot.slane %v807_v61, 11  ;;  %v291_v6 = vrot.slane %v286_v52, 4 }
  0x30   : > { %v955_v5 = vld [vmem:[#allocation2 + $0x1c] sm:$0xf]  ;;  %v758_v7 = vsel %vm14211_vm8, %v11707_v60, %v757_v57  ;;  %v2434_v11 = vld [vmem:[#allocation2 + $0x10] sm:$0xf]  ;;  %v282_v12 = vrot.slane %v14241_v8, 4  ;;  %v289_v24 = vor.u32 %v287_v63, %v286_v52  ;;  %v1020_v28 = vrot.slane %v1019_v59, 4 }
  0x31   : > { %v1060_v9 = vshll.u32 %v955_v5, 16  ;;  %v1064_v10 = vshrl.u32 %v955_v5, 16  ;;  %v1043_v14 = vor.u32 %v1042_v2, %v14283_v1  ;;  %759 = vst [vmem:[#allocation2 + $0x18] sm:$0x1] %v758_v7  ;;  %v903_v58 = vsel %vm14248_vm9, %v11725_v4, %v902_v62  ;;  %v664_v18 = vld [vmem:[#allocation2 + $0x24] sm:$0x2] }
  0x32   : > { %v2492_v15 = vshll.u32 %v2434_v11, 16  ;;  %v2496_v16 = vshrl.u32 %v2434_v11, 16  ;;  %904 = vst [vmem:[#allocation2 + $0x20] sm:$0x1] %v903_v58  ;;  %v11708_v21 = vrot.slane %v664_v18, 9  ;;  %v567_v29 = vsel %vm14211_vm8, %v291_v6, %v566_v0 }
  0x33   : > { %v14291_v19 = vrot.slane %v1060_v9, 5  ;;  %v1066_v20 = vrot.slane %v1064_v10, 4  ;;  %v760_v23 = vld [vmem:[#allocation2 + $0x24] sm:$0x1]  ;;  %v950_v25 = vld [vmem:[#allocation2] sm:$0xf]  ;;  %v290_v41 = vsel %vm14197_vm6, %v282_v12, %v289_v24 }
  0x34   : > { %v983_v27 = vld [vmem:[#allocation2 + $0x8] sm:$0x1]  ;;  %v14293_v8 = vrot.slane %v1043_v14, 4  ;;  %v1003_v30 = vshrl.u32 %v950_v25, 16  ;;  %v1006_v31 = vshll.u32 %v950_v25, 16  ;;  %vm1439_vm12 = vcmask 31744  }
  0x35   : > { %v1022_v32 = vshll.u32 %v983_v27, 16  ;;  %v1067_v33 = vor.u32 %v1066_v20, %v14291_v19  ;;  %v808_v34 = vld [vmem:[#allocation2 + $0x28] sm:$0x8]  ;;  %568 = vst [vmem:[#allocation2 + $0x44] sm:$0x1] %v567_v29  ;;  %v19482_v35 = vmov 0  ;;  %v761_v40 = vsel %vm14211_vm8, %v11708_v21, %v760_v23 }
  0x36   : > { %v19483_v35 = vsel %vm14300_vm13, 4294967295, %v19482_v35  ;;  %v952_v36 = vld [vmem:[#allocation2 + $0xc] sm:$0xf]  ;;  %v14304_v38 = vrot.slane %v2492_v15, 5  ;;  %v2498_v39 = vrot.slane %v2496_v16, 4  ;;  %v1005_v42 = vrot.slane %v1003_v30, 4 }
  0x37   : > { %19484 = vst [vmem:[#allocation8_spill] sm:$0xff] %v19483_v35  ;;  %v2433_v37 = vld [vmem:[#allocation2 + $0xc] sm:$0xf]  ;;  %v1008_v43 = vrot.slane %v1006_v31, 5  ;;  %v1024_v44 = vrot.slane %v1022_v32, 5  ;;  %v1027_v46 = vshrl.u32 %v952_v36, 16 }
  0x38   : > { %v984_v45 = vld [vmem:[#allocation2 + $0x14] sm:$0x1]  ;;  %762 = vst [vmem:[#allocation2 + $0x24] sm:$0x1] %v761_v40  ;;  %565 = vst.msk [vmem:[#allocation2 + $0x40] sm:$0xf] %vm528_vm3, %v290_v41  ;;  %v2499_v15 = vor.u32 %v2498_v39, %v14304_v38 }
  0x39   : > { %v1030_v49 = vshll.u32 %v952_v36, 16  ;;  %v1046_v50 = vshll.u32 %v984_v45, 16  ;;  %v1068_v51 = vrot.slane %v1067_v33, 4  ;;  %v11726_v52 = vrot.slane %v808_v34, 11  ;;  %v954_v56 = vld [vmem:[#allocation2 + $0x18] sm:$0xf] }
  0x3a   : > { %v1009_v53 = vor.u32 %v1008_v43, %v1005_v42  ;;  %v1025_v54 = vsel %vm14300_vm13, %v1020_v28, %v1024_v44  ;;  %v1029_v55 = vrot.slane %v1027_v46, 4  ;;  %v2483_v57 = vshrl.u32 %v2433_v37, 16  ;;  %v985_v60 = vld [vmem:[#allocation2 + $0x20] sm:$0x1]  ;;  %v2466_v2 = vld [vmem:[#allocation2 + $0x14] sm:$0x1] }
  0x3b   : > { %v1032_v59 = vrot.slane %v1030_v49, 5  ;;  %v1048_v3 = vrot.slane %v1046_v50, 5  ;;  %v1051_v61 = vshrl.u32 %v954_v56, 16  ;;  %v1054_v62 = vshll.u32 %v954_v56, 16  ;;  %v905_v11 = vld [vmem:[#allocation2 + $0x2c] sm:$0x1] }
  0x3c   : > { %v1010_v63 = vrot.slane %v1009_v53, 4  ;;  %v1070_v0 = vshll.u32 %v985_v60, 16  ;;  %v2485_v4 = vrot.slane %v2483_v57, 4  ;;  %v2486_v5 = vshll.u32 %v2433_v37, 16  ;;  %v957_v24 = vld [vmem:[#allocation2 + $0x28] sm:$0xf] }
  0x3d   : > { %v1033_v6 = vor.u32 %v1032_v59, %v1029_v55  ;;  %v1049_v7 = vsel %vm14300_vm13, %v14293_v8, %v1048_v3  ;;  %v1053_v9 = vrot.slane %v1051_v61, 4  ;;  %v1056_v10 = vrot.slane %v1054_v62, 5  ;;  %v2435_v37 = vld [vmem:[#allocation2 + $0x18] sm:$0xf]  ;;  %v2436_v43 = vld [vmem:[#allocation2 + $0x1c] sm:$0xf] }
  0x3e   : > { %v1015_v12 = vsel %vm14300_vm13, %v1010_v63, %v14275_v48  ;;  %v1072_v14 = vrot.slane %v1070_v0, 5  ;;  %v2488_v58 = vrot.slane %v2486_v5, 5  ;;  %v2502_v21 = vshll.u32 %v2466_v2, 16  ;;  %v665_v53 = vld [vmem:[#allocation2 + $0x30] sm:$0x2] }
  0x3f   : > { %v11741_v16 = vcombine.low %v1015_v12, %v1025_v54  ;;  %v1034_v18 = vrot.slane %v1033_v6, 4  ;;  %v1057_v20 = vor.u32 %v1056_v10, %v1053_v9  ;;  %v956_v23 = vld [vmem:[#allocation2 + $0x24] sm:$0xf]  ;;  %v2500_v28 = vrot.slane %v2499_v15, 4  ;;  %v763_v59 = vld [vmem:[#allocation2 + $0x30] sm:$0x1] }
  0x40   : > { %v1073_v25 = vsel %vm14300_vm13, %v1068_v51, %v1072_v14  ;;  %v2489_v27 = vor.u32 %v2488_v58, %v2485_v4  ;;  %v906_v8 = vsel %vm14248_vm9, %v11726_v52, %v905_v11  ;;  %v2504_v30 = vrot.slane %v2502_v21, 5  ;;  %v809_v3 = vld [vmem:[#allocation2 + $0x34] sm:$0x8]  ;;  %v908_v62 = vld [vmem:[#allocation2 + $0x38] sm:$0x1] }
  0x41   : > { %12897 = vmatprep.mubr.msk.bf16.mxu0 %vm1439_vm12, %v11741_v16  ;;  %v1039_v48 = vsel %vm14300_vm13, %v1034_v18, %v14283_v1  ;;  %v1058_v29 = vrot.slane %v1057_v20, 4  ;;  %907 = vst [vmem:[#allocation2 + $0x2c] sm:$0x1] %v906_v8  ;;  %v1075_v31 = vshrl.u32 %v956_v23, 16  ;;  %v1078_v34 = vshll.u32 %v956_v23, 16 }
  0x42   : > { %v11742_v32 = vcombine.low %v1039_v48, %v1049_v7  ;;  %v2490_v33 = vrot.slane %v2489_v27, 4  ;;  %v1084_v36 = vshll.u32 %v957_v24, 16  ;;  %v2505_v40 = vsel %vm14300_vm13, %v2500_v28, %v2504_v30  ;;  %v2467_v1 = vld [vmem:[#allocation2 + $0x20] sm:$0x1]  ;;  %v2437_v11 = vld [vmem:[#allocation2 + $0x24] sm:$0xf] }
  0x43   : > { %v1063_v39 = vsel %vm14300_vm13, %v1058_v29, %v14291_v19  ;;  %v1077_v41 = vrot.slane %v1075_v31, 4  ;;  %v1088_v42 = vshrl.u32 %v957_v24, 16  ;;  %v1080_v46 = vrot.slane %v1078_v34, 5  ;;  %v2438_v23 = vld [vmem:[#allocation2 + $0x28] sm:$0xf] }
  0x44   : > { %12898 = vmatmul.mubr.msk.bf16.vlgmr.msra.gmra.mrb[0].mxu0 %vm1439_vm12, %v11742_v32  ;;  %v11743_v44 = vcombine.low %v1063_v39, %v1073_v25  ;;  %v2495_v45 = vsel %vm14300_vm13, %v2490_v33, %v14304_v38  ;;  %v1086_v49 = vrot.slane %v1084_v36, 5  ;;  %v2507_v51 = vshrl.u32 %v2435_v37, 16  ;;  %v666_v8 = vld [vmem:[#allocation2 + $0x3c] sm:$0x2]  ;;  %v810_v33 = vld [vmem:[#allocation2 + $0x40] sm:$0x8] }
  0x45   : > { %12930 = vmatpush3.bf16.msra.mxu0 %v14273_v47  ;;  %v11854_v50 = vcombine.low %v2495_v45, %v2505_v40  ;;  %v1090_v19 = vrot.slane %v1088_v42, 4  ;;  %v2510_v52 = vshll.u32 %v2435_v37, 16  ;;  %v1081_v54 = vor.u32 %v1080_v46, %v1077_v41  ;;  %v959_v47 = vld [vmem:[#allocation2 + $0x34] sm:$0xf]  ;;  %v961_v40 = vld [vmem:[#allocation2 + $0x40] sm:$0xf] }
  0x46   : > { %12901 = vmatprep.mubr.msk.bf16.mxu0 %vm1439_vm12, %v11743_v44  ;;  %v2516_v55 = vshll.u32 %v2436_v43, 16  ;;  %v2520_v56 = vshrl.u32 %v2436_v43, 16  ;;  %v2526_v57 = vshll.u32 %v2467_v1, 16  ;;  %v2509_v60 = vrot.slane %v2507_v51, 4  ;;  %v766_v44 = vld [vmem:[#allocation2 + $0x3c] sm:$0x1] }
  0x47   : > { %12999 = vmatprep.mubr.msk.bf16.mxu1 %vm1439_vm12, %v11854_v50  ;;  %v1091_v38 = vor.u32 %v1090_v19, %v1086_v49  ;;  %v2512_v61 = vrot.slane %v2510_v52, 5  ;;  %v1082_v0 = vrot.slane %v1081_v54, 4  ;;  %v11709_v10 = vrot.slane %v665_v53, 9  ;;  %v911_v45 = vld [vmem:[#allocation2 + $0x44] sm:$0x1] }
  0x48   : > { %v986_v63 = vld [vmem:[#allocation2 + $0x2c] sm:$0x1]  ;;  %v2518_v2 = vrot.slane %v2516_v55, 5  ;;  %v2522_v4 = vrot.slane %v2520_v56, 4  ;;  %v2528_v5 = vrot.slane %v2526_v57, 5  ;;  %v11727_v58 = vrot.slane %v809_v3, 11 }
  0x49   : > { %v1092_v6 = vrot.slane %v1091_v38, 4  ;;  %v1094_v7 = vshll.u32 %v986_v63, 16  ;;  %v2513_v9 = vor.u32 %v2512_v61, %v2509_v60  ;;  %v1087_v12 = vsel %vm14300_vm13, %v1082_v0, %v1086_v49  ;;  %v2468_v31 = vld [vmem:[#allocation2 + $0x2c] sm:$0x1]  ;;  %v2440_v3 = vld [vmem:[#allocation2 + $0x34] sm:$0xf] }
  0x4a   : > { %v2523_v14 = vor.u32 %v2522_v4, %v2518_v2  ;;  %v1108_v15 = vshll.u32 %v959_v47, 16  ;;  %v764_v20 = vsel %vm14211_vm8, %v11709_v10, %v763_v59  ;;  %v1112_v21 = vshrl.u32 %v959_v47, 16  ;;  %v14036_v17 = vld [vmem:[#allocation2 + $0x20] sm:$0x1] }
  0x4b   : > { %v1096_v16 = vrot.slane %v1094_v7, 5  ;;  %v2514_v18 = vrot.slane %v2513_v9, 4  ;;  %765 = vst [vmem:[#allocation2 + $0x30] sm:$0x1] %v764_v20  ;;  %v909_v25 = vsel %vm14248_vm9, %v11727_v58, %v908_v62  ;;  %v2531_v28 = vshrl.u32 %v2437_v11, 16 }
  0x4c   : > { %v2524_v24 = vrot.slane %v2523_v14, 4  ;;  %v14346_v27 = vrot.slane %v1108_v15, 5  ;;  %910 = vst [vmem:[#allocation2 + $0x38] sm:$0x1] %v909_v25  ;;  %v1114_v30 = vrot.slane %v1112_v21, 4  ;;  %v2534_v32 = vshll.u32 %v2437_v11, 16 }
  0x4d   : > { %v1097_v48 = vsel %vm14300_vm13, %v1092_v6, %v1096_v16  ;;  %v2519_v29 = vsel %vm14300_vm13, %v2514_v18, %v2518_v2  ;;  %v2533_v37 = vrot.slane %v2531_v28, 4  ;;  %v2540_v39 = vshll.u32 %v2438_v23, 16 }
  0x4e   : > { %v11744_v34 = vcombine.low %v1087_v12, %v1097_v48  ;;  %v2529_v36 = vsel %vm14300_vm13, %v2524_v24, %v2528_v5  ;;  %v1115_v42 = vor.u32 %v1114_v30, %v14346_v27  ;;  %v2536_v43 = vrot.slane %v2534_v32, 5  ;;  %v182_v30 = vld [vmem:[%s14183_s21 + $0x28] sm:$0xf] }
  0x4f   : > { %v11855_v41 = vcombine.low %v2519_v29, %v2529_v36  ;;  %v2544_v1 = vshrl.u32 %v2438_v23, 16  ;;  %v2542_v46 = vrot.slane %v2540_v39, 5  ;;  %v2550_v49 = vshll.u32 %v2468_v31, 16 }
  0x50   : > { %12902 = vmatmul.mubr.msk.bf16.gmra.mrb[4].mxu0 %vm1439_vm12, %v11744_v34  ;;  %v11710_v50 = vrot.slane %v666_v8, 9  ;;  %v11728_v19 = vrot.slane %v810_v33, 11  ;;  %v1116_v51 = vrot.slane %v1115_v42, 4  ;;  %v2537_v52 = vor.u32 %v2536_v43, %v2533_v37 }
  0x51   : > { %13000 = vmatmul.mubr.msk.bf16.vlgmr.msra.gmra.mrb[0].mxu1 %vm1439_vm12, %v11855_v41  ;;  %v2546_v53 = vrot.slane %v2544_v1, 4  ;;  %v1132_v54 = vshll.u32 %v961_v40, 16  ;;  %v2552_v55 = vrot.slane %v2550_v49, 5  ;;  %v1136_v59 = vshrl.u32 %v961_v40, 16 }
  0x52   : > { %v767_v56 = vsel %vm14211_vm8, %v11710_v50, %v766_v44  ;;  %v912_v57 = vsel %vm14248_vm9, %v11728_v19, %v911_v45  ;;  %v958_v38 = vld [vmem:[#allocation2 + $0x30] sm:$0xf]  ;;  %v2538_v60 = vrot.slane %v2537_v52, 4  ;;  %v2564_v21 = vshll.u32 %v2440_v3, 16  ;;  %v183_v44 = vld [vmem:[%s14183_s21 + $0x2c] sm:$0xf] }
  0x53   : > { %v2547_v61 = vor.u32 %v2546_v53, %v2542_v46  ;;  %768 = vst [vmem:[#allocation2 + $0x3c] sm:$0x1] %v767_v56  ;;  %913 = vst [vmem:[#allocation2 + $0x44] sm:$0x1] %v912_v57  ;;  %v14361_v62 = vrot.slane %v1132_v54, 5  ;;  %v1099_v0 = vshrl.u32 %v958_v38, 16 }
  0x54   : > { %v2439_v47 = vld [vmem:[#allocation2 + $0x30] sm:$0xf]  ;;  %v987_v63 = vld [vmem:[#allocation2 + $0x38] sm:$0x1]  ;;  %v1102_v2 = vshll.u32 %v958_v38, 16  ;;  %v1138_v4 = vrot.slane %v1136_v59, 4  ;;  %v2543_v7 = vsel %vm14300_vm13, %v2538_v60, %v2542_v46 }
  0x55   : > { %v2555_v5 = vshrl.u32 %v2439_v47, 16  ;;  %v1118_v6 = vshll.u32 %v987_v63, 16  ;;  %v2548_v9 = vrot.slane %v2547_v61, 4  ;;  %v2558_v10 = vshll.u32 %v2439_v47, 16  ;;  %v2469_v58 = vld [vmem:[#allocation2 + $0x38] sm:$0x1] }
  0x56   : > { %v1101_v11 = vrot.slane %v1099_v0, 4  ;;  %v1104_v12 = vrot.slane %v1102_v2, 5  ;;  %v1139_v14 = vor.u32 %v1138_v4, %v14361_v62  ;;  %v2568_v25 = vshrl.u32 %v2440_v3, 16  ;;  %v569_v3 = vld [vmem:[#allocation2 + $0x48] sm:$0xf] }
  0x57   : > { %v2557_v15 = vrot.slane %v2555_v5, 4  ;;  %v1120_v16 = vrot.slane %v1118_v6, 5  ;;  %v2553_v18 = vsel %vm14300_vm13, %v2548_v9, %v2552_v55  ;;  %v2560_v20 = vrot.slane %v2558_v10, 5  ;;  %v2442_v38 = vld [vmem:[#allocation2 + $0x40] sm:$0xf] }
  0x58   : > { %v1105_v23 = vor.u32 %v1104_v12, %v1101_v11  ;;  %v11856_v24 = vcombine.low %v2543_v7, %v2553_v18  ;;  %v1140_v28 = vrot.slane %v1139_v14, 4  ;;  %v2566_v48 = vrot.slane %v2564_v21, 5  ;;  %v573_v63 = vld [vmem:[#allocation2 + $0x50] sm:$0x1] }
  0x59   : > { %v2561_v8 = vor.u32 %v2560_v20, %v2557_v15  ;;  %v2574_v29 = vshll.u32 %v2469_v58, 16  ;;  %v1121_v32 = vsel %vm14300_vm13, %v1116_v51, %v1120_v16  ;;  %v2570_v36 = vrot.slane %v2568_v25, 4  ;;  %v184_v14 = vld [vmem:[%s14183_s21 + $0x30] sm:$0xf]  ;;  %v185_v20 = vld [vmem:[%s14183_s21 + $0x34] sm:$0xf] }
  0x5a   : > { %v1106_v31 = vrot.slane %v1105_v23, 4  ;;  %13003 = vmatprep.mubr.msk.bf16.mxu1 %vm1439_vm12, %v11856_v24  ;;  %v960_v33 = vld [vmem:[#allocation2 + $0x3c] sm:$0xf]  ;;  %v988_v34 = vld [vmem:[#allocation2 + $0x44] sm:$0x1]  ;;  %v293_v45 = vshrl.u32 %v182_v30, 16 }
  0x5b   : > { %v1123_v37 = vshrl.u32 %v960_v33, 16  ;;  %v1126_v39 = vshll.u32 %v960_v33, 16  ;;  %v1142_v40 = vshll.u32 %v988_v34, 16  ;;  %v2562_v41 = vrot.slane %v2561_v8, 4  ;;  %v2441_v51 = vld [vmem:[#allocation2 + $0x3c] sm:$0xf] }
  0x5c   : > { %v1111_v42 = vsel %vm14300_vm13, %v1106_v31, %v14346_v27  ;;  %v2571_v43 = vor.u32 %v2570_v36, %v2566_v48  ;;  %v2576_v1 = vrot.slane %v2574_v29, 5  ;;  %v295_v54 = vrot.slane %v293_v45, 7  ;;  %v2470_v6 = vld [vmem:[#allocation2 + $0x44] sm:$0x1]  ;;  %v576_v36 = vld [vmem:[#allocation2 + $0x54] sm:$0xf] }
  0x5d   : > { %v11745_v46 = vcombine.low %v1111_v42, %v1121_v32  ;;  %v1125_v49 = vrot.slane %v1123_v37, 4  ;;  %v1128_v50 = vrot.slane %v1126_v39, 5  ;;  %v1144_v19 = vrot.slane %v1142_v40, 5 }
  0x5e   : > { %v2567_v52 = vsel %vm14300_vm13, %v2562_v41, %v2566_v48  ;;  %v2572_v53 = vrot.slane %v2571_v43, 4  ;;  %v296_v55 = vshll.u32 %v182_v30, 16  ;;  %v301_v57 = vshrl.u32 %v183_v44, 16  ;;  %v187_v30 = vld [vmem:[%s14183_s21 + $0x3c] sm:$0xf] }
  0x5f   : > { %12905 = vmatprep.mubr.msk.bf16.mxu0 %vm1439_vm12, %v11745_v46  ;;  %v1129_v56 = vor.u32 %v1128_v50, %v1125_v49  ;;  %v1145_v27 = vsel %vm14300_vm13, %v1140_v28, %v1144_v19  ;;  %v304_v59 = vshll.u32 %v183_v44, 16  ;;  %v299_v47 = vrot.slane %v295_v54, 4  ;;  %v186_v28 = vld [vmem:[%s14183_s21 + $0x38] sm:$0xf]  ;;  %v580_v41 = vld [vmem:[#allocation2 + $0x5c] sm:$0x1] }
  0x60   : > { %v2577_v60 = vsel %vm14300_vm13, %v2572_v53, %v2576_v1  ;;  %v298_v61 = vor.u32 %v296_v55, %v295_v54  ;;  %v2579_v0 = vshrl.u32 %v2441_v51, 16  ;;  %v303_v5 = vrot.slane %v301_v57, 7  ;;  %v583_v46 = vld [vmem:[#allocation2 + $0x60] sm:$0xf] }
  0x61   : > { %v1130_v2 = vrot.slane %v1129_v56, 4  ;;  %v11857_v4 = vcombine.low %v2567_v52, %v2577_v60  ;;  %v2582_v7 = vshll.u32 %v2441_v51, 16  ;;  %v2588_v11 = vshll.u32 %v2442_v38, 16 }
  0x62   : > { %v570_v9 = vsel %vm14203_vm7, %v298_v61, %v569_v3  ;;  %v2581_v10 = vrot.slane %v2579_v0, 4  ;;  %v2592_v12 = vshrl.u32 %v2442_v38, 16  ;;  %v306_v15 = vor.u32 %v304_v59, %v303_v5  ;;  %v587_v0 = vld [vmem:[#allocation2 + $0x68] sm:$0x1] }
  0x63   : > { %v1135_v58 = vsel %vm14300_vm13, %v1130_v2, %v14361_v62  ;;  %13004 = vmatmul.mubr.msk.bf16.gmra.mrb[4].mxu1 %vm1439_vm12, %v11857_v4  ;;  %v308_v16 = vrot.slane %v303_v5, 4  ;;  %571 = vst [vmem:[#allocation2 + $0x48] sm:$0xf] %v570_v9  ;;  %v2584_v18 = vrot.slane %v2582_v7, 5  ;;  %v2590_v23 = vrot.slane %v2588_v11, 5 }
  0x64   : > { %v11746_v21 = vcombine.low %v1135_v58, %v1145_v27  ;;  %v2594_v24 = vrot.slane %v2592_v12, 4  ;;  %v2598_v25 = vshll.u32 %v2470_v6, 16  ;;  %v307_v8 = vsel %vm14197_vm6, %v299_v47, %v306_v15  ;;  %v188_v2 = vld [vmem:[%s14183_s21 + $0x40] sm:$0xf] }
  0x65   : > { %v574_v48 = vsel %vm14211_vm8, %v308_v16, %v573_v63  ;;  %v2585_v62 = vor.u32 %v2584_v18, %v2581_v10  ;;  %v310_v29 = vshrl.u32 %v184_v14, 16  ;;  %572 = vst.msk [vmem:[#allocation2 + $0x4c] sm:$0xf] %vm528_vm3, %v307_v8  ;;  %v313_v33 = vshll.u32 %v184_v14, 16  ;;  %v14426_v8 = vld [vmem:[%s14183_s21 + $0x48] sm:$0xf] }
  0x66   : > { %12906 = vmatmul.mubr.msk.bf16.gmra.mrb[8].mxu0 %vm1439_vm12, %v11746_v21  ;;  %575 = vst [vmem:[#allocation2 + $0x50] sm:$0x1] %v574_v48  ;;  %v2595_v31 = vor.u32 %v2594_v24, %v2590_v23  ;;  %v2600_v32 = vrot.slane %v2598_v25, 5  ;;  %v318_v34 = vshrl.u32 %v185_v20, 16  ;;  %v321_v40 = vshll.u32 %v185_v20, 16 }
  0x67   : > { %v2586_v37 = vrot.slane %v2585_v62, 4  ;;  %v312_v39 = vrot.slane %v310_v29, 7  ;;  %v327_v42 = vshrl.u32 %v186_v28, 16  ;;  %v330_v44 = vshll.u32 %v186_v28, 16  ;;  %v14417_v20 = vld [vmem:[%s14183_s21 + $0x44] sm:$0xf] }
  0x68   : > { %v2596_v43 = vrot.slane %v2595_v31, 4  ;;  %v320_v1 = vrot.slane %v318_v34, 7  ;;  %v335_v45 = vshrl.u32 %v187_v30, 16  ;;  %v338_v63 = vshll.u32 %v187_v30, 16  ;;  %v2108_v31 = vld [vmem:[%s19363_s1 + $0x4] sm:$0x3] }
  0x69   : > { %v2591_v49 = vsel %vm14300_vm13, %v2586_v37, %v2590_v23  ;;  %v315_v50 = vor.u32 %v313_v33, %v312_v39  ;;  %v316_v19 = vrot.slane %v312_v39, 4  ;;  %v329_v51 = vrot.slane %v327_v42, 7  ;;  %13893 = vmatprep.subr.msk.bf16.mxu0 %vm1488_vm0, %v2108_v31 }
  0x6a   : > { %v667_v52 = vld [vmem:[#allocation2 + $0x48] sm:$0x2]  ;;  %v769_v53 = vld [vmem:[#allocation2 + $0x48] sm:$0x1]  ;;  %v2601_v54 = vsel %vm14300_vm13, %v2596_v43, %v2600_v32  ;;  %v323_v55 = vor.u32 %v321_v40, %v320_v1  ;;  %v325_v56 = vrot.slane %v320_v1, 4  ;;  %v337_v27 = vrot.slane %v335_v45, 7 }
  0x6b   : > { %v11711_v57 = vrot.slane %v667_v52, 9  ;;  %v11858_v59 = vcombine.low %v2591_v49, %v2601_v54  ;;  %v577_v3 = vsel %vm14203_vm7, %v315_v50, %v576_v36  ;;  %v332_v38 = vor.u32 %v330_v44, %v329_v51  ;;  %v590_v52 = vld [vmem:[#allocation2 + $0x6c] sm:$0xf] }
  0x6c   : > { %v324_v60 = vsel %vm14197_vm6, %v316_v19, %v323_v55  ;;  %578 = vst [vmem:[#allocation2 + $0x54] sm:$0xf] %v577_v3  ;;  %v581_v61 = vsel %vm14211_vm8, %v325_v56, %v580_v41  ;;  %v333_v47 = vrot.slane %v329_v51, 4  ;;  %v811_v5 = vld [vmem:[#allocation2 + $0x4c] sm:$0x8]  ;;  %v340_v58 = vor.u32 %v338_v63, %v337_v27 }
  0x6d   : > { %v770_v4 = vsel %vm14211_vm8, %v11711_v57, %v769_v53  ;;  %v914_v6 = vld [vmem:[#allocation2 + $0x50] sm:$0x1]  ;;  %v963_v7 = vld [vmem:[#allocation2 + $0x4c] sm:$0xf]  ;;  %13007 = vmatprep.mubr.msk.bf16.mxu1 %vm1439_vm12, %v11858_v59  ;;  %579 = vst.msk [vmem:[#allocation2 + $0x58] sm:$0xf] %vm528_vm3, %v324_v60  ;;  %v584_v9 = vsel %vm14203_vm7, %v332_v38, %v583_v46 }
  0x6e   : > { %582 = vst [vmem:[#allocation2 + $0x5c] sm:$0x1] %v581_v61  ;;  %771 = vst [vmem:[#allocation2 + $0x48] sm:$0x1] %v770_v4  ;;  %v11729_v10 = vrot.slane %v811_v5, 11  ;;  %v1156_v11 = vshll.u32 %v963_v7, 16  ;;  %v341_v28 = vsel %vm14197_vm6, %v333_v47, %v340_v58 }
  0x6f   : > { %v1160_v12 = vshrl.u32 %v963_v7, 16  ;;  %v2444_v14 = vld [vmem:[#allocation2 + $0x4c] sm:$0xf]  ;;  %585 = vst [vmem:[#allocation2 + $0x60] sm:$0xf] %v584_v9  ;;  %v342_v18 = vrot.slane %v337_v27, 4 }
  0x70   : > { %v2612_v15 = vshll.u32 %v2444_v14, 16  ;;  %v2616_v16 = vshrl.u32 %v2444_v14, 16  ;;  %v344_v21 = vshrl.u32 %v188_v2, 16  ;;  %v915_v23 = vsel %vm14248_vm9, %v11729_v10, %v914_v6  ;;  %586 = vst.msk [vmem:[#allocation2 + $0x64] sm:$0xf] %vm528_vm3, %v341_v28 }
  0x71   : > { %v14421_v24 = vrot.slane %v1156_v11, 5  ;;  %v1162_v25 = vrot.slane %v1160_v12, 4  ;;  %916 = vst [vmem:[#allocation2 + $0x50] sm:$0x1] %v915_v23  ;;  %v588_v29 = vsel %vm14211_vm8, %v342_v18, %v587_v0  ;;  %v347_v33 = vshll.u32 %v188_v2, 16 }
  0x72   : > { %v14428_v48 = vrot.slane %v2612_v15, 5  ;;  %v2618_v62 = vrot.slane %v2616_v16, 4  ;;  %v14433_v30 = vrot.slane %v344_v21, 7  ;;  %589 = vst [vmem:[#allocation2 + $0x68] sm:$0x1] %v588_v29  ;;  %v352_v34 = vshrl.u32 %v14417_v20, 16 }
  0x73   : > { %v1163_v32 = vor.u32 %v1162_v25, %v14421_v24  ;;  %v355_v36 = vshll.u32 %v14417_v20, 16  ;;  %v668_v37 = vld [vmem:[#allocation2 + $0x54] sm:$0x2]  ;;  %v772_v39 = vld [vmem:[#allocation2 + $0x54] sm:$0x1]  ;;  %v361_v42 = vshrl.u32 %v14426_v8, 16 }
  0x74   : > { %v2619_v40 = vor.u32 %v2618_v62, %v14428_v48  ;;  %v350_v41 = vrot.slane %v14433_v30, 4  ;;  %v11712_v1 = vrot.slane %v668_v37, 9  ;;  %v812_v44 = vld [vmem:[#allocation2 + $0x58] sm:$0x8]  ;;  %v349_v51 = vor.u32 %v347_v33, %v14433_v30 }
  0x75   : > { %v1164_v43 = vrot.slane %v1163_v32, 4  ;;  %v917_v45 = vld [vmem:[#allocation2 + $0x5c] sm:$0x1]  ;;  %v962_v46 = vld [vmem:[#allocation2 + $0x48] sm:$0xf]  ;;  %v11730_v49 = vrot.slane %v812_v44, 11 }
  0x76   : > { %v965_v50 = vld [vmem:[#allocation2 + $0x58] sm:$0xf]  ;;  %v2620_v19 = vrot.slane %v2619_v40, 4  ;;  %v1147_v53 = vshrl.u32 %v962_v46, 16  ;;  %v1150_v54 = vshll.u32 %v962_v46, 16  ;;  %v773_v55 = vsel %vm14211_vm8, %v11712_v1, %v772_v39 }
  0x77   : > { %v1180_v56 = vshll.u32 %v965_v50, 16  ;;  %v2443_v27 = vld [vmem:[#allocation2 + $0x48] sm:$0xf]  ;;  %774 = vst [vmem:[#allocation2 + $0x54] sm:$0x1] %v773_v55  ;;  %v918_v57 = vsel %vm14248_vm9, %v11730_v49, %v917_v45  ;;  %v1184_v59 = vshrl.u32 %v965_v50, 16  ;;  %v591_v15 = vsel %vm14203_vm7, %v349_v51, %v590_v52 }
  0x78   : > { %v2603_v3 = vshrl.u32 %v2443_v27, 16  ;;  %v2606_v38 = vshll.u32 %v2443_v27, 16  ;;  %v669_v60 = vld [vmem:[#allocation2 + $0x60] sm:$0x2]  ;;  %v989_v61 = vld [vmem:[#allocation2 + $0x50] sm:$0x1] }
  0x79   : > { %v1149_v47 = vrot.slane %v1147_v53, 4  ;;  %v1152_v63 = vrot.slane %v1150_v54, 5  ;;  %919 = vst [vmem:[#allocation2 + $0x5c] sm:$0x1] %v918_v57  ;;  %v14450_v0 = vrot.slane %v1180_v56, 5  ;;  %v11713_v2 = vrot.slane %v669_v60, 9 }
  0x7a   : > { %v1166_v4 = vshll.u32 %v989_v61, 16  ;;  %v1186_v5 = vrot.slane %v1184_v59, 4  ;;  %v2471_v6 = vld [vmem:[#allocation2 + $0x50] sm:$0x1]  ;;  %v2605_v7 = vrot.slane %v2603_v3, 4  ;;  %v2608_v9 = vrot.slane %v2606_v38, 5 }
  0x7b   : > { %v1153_v10 = vor.u32 %v1152_v63, %v1149_v47  ;;  %v2622_v11 = vshll.u32 %v2471_v6, 16  ;;  %v775_v12 = vld [vmem:[#allocation2 + $0x60] sm:$0x1]  ;;  %v813_v14 = vld [vmem:[#allocation2 + $0x64] sm:$0x8]  ;;  %v14452_v58 = vrot.slane %v352_v34, 7 }
  0x7c   : > { %v1168_v16 = vrot.slane %v1166_v4, 5  ;;  %v1187_v18 = vor.u32 %v1186_v5, %v14450_v0  ;;  %v2609_v21 = vor.u32 %v2608_v9, %v2605_v7  ;;  %v776_v23 = vsel %vm14211_vm8, %v11713_v2, %v775_v12  ;;  %v920_v25 = vld [vmem:[#allocation2 + $0x68] sm:$0x1]  ;;  %v967_v28 = vld [vmem:[#allocation2 + $0x64] sm:$0xf] }
  0x7d   : > { %592 = vst [vmem:[#allocation2 + $0x6c] sm:$0xf] %v591_v15  ;;  %v1154_v62 = vrot.slane %v1153_v10, 4  ;;  %v2624_v29 = vrot.slane %v2622_v11, 5  ;;  %777 = vst [vmem:[#allocation2 + $0x60] sm:$0x1] %v776_v23 }
  0x7e   : > { %v11731_v31 = vrot.slane %v813_v14, 11  ;;  %v1204_v32 = vshll.u32 %v967_v28, 16  ;;  %v1169_v33 = vsel %vm14300_vm13, %v1164_v43, %v1168_v16  ;;  %v1188_v34 = vrot.slane %v1187_v18, 4  ;;  %v2446_v40 = vld [vmem:[#allocation2 + $0x58] sm:$0xf] }
  0x7f   : > { %v2610_v37 = vrot.slane %v2609_v21, 4  ;;  %v1208_v39 = vshrl.u32 %v967_v28, 16  ;;  %v1159_v1 = vsel %vm14300_vm13, %v1154_v62, %v14421_v24  ;;  %v964_v44 = vld [vmem:[#allocation2 + $0x54] sm:$0xf]  ;;  %v2625_v45 = vsel %vm14300_vm13, %v2620_v19, %v2624_v29 }
  0x80   : > { %v921_v46 = vsel %vm14248_vm9, %v11731_v31, %v920_v25  ;;  %v14468_v49 = vrot.slane %v1204_v32, 5  ;;  %v2445_v50 = vld [vmem:[#allocation2 + $0x54] sm:$0xf]  ;;  %v11747_v51 = vcombine.low %v1159_v1, %v1169_v33  ;;  %v990_v43 = vld [vmem:[#allocation2 + $0x5c] sm:$0x1]  ;;  %v1171_v52 = vshrl.u32 %v964_v44, 16 }
  0x81   : > { %v1174_v53 = vshll.u32 %v964_v44, 16  ;;  %v2615_v54 = vsel %vm14300_vm13, %v2610_v37, %v14428_v48  ;;  %922 = vst [vmem:[#allocation2 + $0x68] sm:$0x1] %v921_v46  ;;  %v1190_v24 = vshll.u32 %v990_v43, 16  ;;  %v1210_v56 = vrot.slane %v1208_v39, 4 }
  0x82   : > { %v11859_v55 = vcombine.low %v2615_v54, %v2625_v45  ;;  %v2472_v27 = vld [vmem:[#allocation2 + $0x5c] sm:$0x1]  ;;  %v2627_v19 = vshrl.u32 %v2445_v50, 16  ;;  %12909 = vmatprep.mubr.msk.bf16.mxu0 %vm1439_vm12, %v11747_v51  ;;  %v1173_v57 = vrot.slane %v1171_v52, 4  ;;  %v2630_v3 = vshll.u32 %v2445_v50, 16 }
  0x83   : > { %v1176_v59 = vrot.slane %v1174_v53, 5  ;;  %v2636_v38 = vshll.u32 %v2446_v40, 16  ;;  %v1192_v60 = vrot.slane %v1190_v24, 5  ;;  %v1211_v61 = vor.u32 %v1210_v56, %v14468_v49  ;;  %v594_v12 = vld [vmem:[#allocation2 + $0x74] sm:$0x1] }
  0x84   : > { %13008 = vmatmul.mubr.msk.bf16.gmra.mrb[8].mxu1 %vm1439_vm12, %v11859_v55  ;;  %v2629_v47 = vrot.slane %v2627_v19, 4  ;;  %v2640_v63 = vshrl.u32 %v2446_v40, 16  ;;  %v966_v2 = vld [vmem:[#allocation2 + $0x60] sm:$0xf]  ;;  %v2632_v4 = vrot.slane %v2630_v3, 5  ;;  %v2646_v6 = vshll.u32 %v2472_v27, 16 }
  0x85   : > { %v1177_v48 = vor.u32 %v1176_v59, %v1173_v57  ;;  %v2638_v5 = vrot.slane %v2636_v38, 5  ;;  %v1193_v7 = vsel %vm14300_vm13, %v1188_v34, %v1192_v60  ;;  %v1195_v9 = vshrl.u32 %v966_v2, 16  ;;  %v670_v21 = vld [vmem:[#allocation2 + $0x6c] sm:$0x2]  ;;  %v2447_v37 = vld [vmem:[#allocation2 + $0x60] sm:$0xf] }
  0x86   : > { %v1198_v10 = vshll.u32 %v966_v2, 16  ;;  %v1212_v11 = vrot.slane %v1211_v61, 4  ;;  %v2633_v15 = vor.u32 %v2632_v4, %v2629_v47  ;;  %v2642_v16 = vrot.slane %v2640_v63, 4  ;;  %v2448_v39 = vld [vmem:[#allocation2 + $0x64] sm:$0xf] }
  0x87   : > { %v1178_v14 = vrot.slane %v1177_v48, 4  ;;  %v2648_v18 = vrot.slane %v2646_v6, 5  ;;  %v1197_v25 = vrot.slane %v1195_v9, 4  ;;  %v357_v62 = vor.u32 %v355_v36, %v14452_v58  ;;  %v778_v36 = vld [vmem:[#allocation2 + $0x6c] sm:$0x1] }
  0x88   : > { %v991_v23 = vld [vmem:[#allocation2 + $0x68] sm:$0x1]  ;;  %v1200_v28 = vrot.slane %v1198_v10, 5  ;;  %v359_v29 = vrot.slane %v14452_v58, 4  ;;  %v2634_v33 = vrot.slane %v2633_v15, 4  ;;  %v2643_v34 = vor.u32 %v2642_v16, %v2638_v5 }
  0x89   : > { %v1183_v31 = vsel %vm14300_vm13, %v1178_v14, %v14450_v0  ;;  %v1214_v32 = vshll.u32 %v991_v23, 16  ;;  %v358_v44 = vsel %vm14197_vm6, %v350_v41, %v357_v62  ;;  %v11714_v46 = vrot.slane %v670_v21, 9  ;;  %v2473_v50 = vld [vmem:[#allocation2 + $0x68] sm:$0x1]  ;;  %v191_v55 = vld [vmem:[%s14183_s21 + $0x4c] sm:$0xf] }
  0x8a   : > { %v11748_v40 = vcombine.low %v1183_v31, %v1193_v7  ;;  %v1201_v1 = vor.u32 %v1200_v28, %v1197_v25  ;;  %v595_v20 = vsel %vm14211_vm8, %v359_v29, %v594_v12  ;;  %v2639_v0 = vsel %vm14300_vm13, %v2634_v33, %v2638_v5  ;;  %593 = vst.msk [vmem:[#allocation2 + $0x70] sm:$0xf] %vm528_vm3, %v358_v44  ;;  %v14506_v59 = vld [vmem:[%s14183_s21 + $0x50] sm:$0xf]  ;;  %v597_v6 = vld [vmem:[#allocation2 + $0x78] sm:$0xf] }
  0x8b   : > { %v1216_v58 = vrot.slane %v1214_v32, 5  ;;  %v2644_v45 = vrot.slane %v2643_v34, 4  ;;  %596 = vst [vmem:[#allocation2 + $0x74] sm:$0x1] %v595_v20  ;;  %v2651_v41 = vshrl.u32 %v2447_v37, 16  ;;  %v2654_v51 = vshll.u32 %v2447_v37, 16 }
  0x8c   : > { %12910 = vmatmul.mubr.msk.bf16.gmra.mrb[12].mxu0 %vm1439_vm12, %v11748_v40  ;;  %v1202_v30 = vrot.slane %v1201_v1, 4  ;;  %v2660_v43 = vshll.u32 %v2448_v39, 16  ;;  %v779_v54 = vsel %vm14211_vm8, %v11714_v46, %v778_v36  ;;  %v2664_v24 = vshrl.u32 %v2448_v39, 16  ;;  %v601_v40 = vld [vmem:[#allocation2 + $0x80] sm:$0x1] }
  0x8d   : > { %v1217_v52 = vsel %vm14300_vm13, %v1212_v11, %v1216_v58  ;;  %v2649_v53 = vsel %vm14300_vm13, %v2644_v45, %v2648_v18  ;;  %780 = vst [vmem:[#allocation2 + $0x6c] sm:$0x1] %v779_v54  ;;  %v2653_v19 = vrot.slane %v2651_v41, 4  ;;  %v2656_v57 = vrot.slane %v2654_v51, 5 }
  0x8e   : > { %v1207_v56 = vsel %vm14300_vm13, %v1202_v30, %v14468_v49  ;;  %v11860_v27 = vcombine.low %v2639_v0, %v2649_v53  ;;  %v2662_v38 = vrot.slane %v2660_v43, 5  ;;  %v2666_v60 = vrot.slane %v2664_v24, 4 }
  0x8f   : > { %v11749_v3 = vcombine.low %v1207_v56, %v1217_v52  ;;  %v2670_v61 = vshll.u32 %v2473_v50, 16  ;;  %v2657_v47 = vor.u32 %v2656_v57, %v2653_v19  ;;  %v363_v63 = vrot.slane %v361_v42, 7  ;;  %v193_v50 = vld [vmem:[%s14183_s21 + $0x54] sm:$0xf]  ;;  %v604_v57 = vld [vmem:[#allocation2 + $0x84] sm:$0xf] }
  0x90   : > { %13011 = vmatprep.mubr.msk.bf16.mxu1 %vm1439_vm12, %v11860_v27  ;;  %v364_v48 = vshll.u32 %v14426_v8, 16  ;;  %v369_v2 = vshrl.u32 %v191_v55, 16  ;;  %v2667_v49 = vor.u32 %v2666_v60, %v2662_v38  ;;  %v372_v5 = vshll.u32 %v191_v55, 16 }
  0x91   : > { %12913 = vmatprep.mubr.msk.bf16.mxu0 %vm1439_vm12, %v11749_v3  ;;  %v2672_v4 = vrot.slane %v2670_v61, 5  ;;  %v378_v7 = vshrl.u32 %v14506_v59, 16  ;;  %v814_v9 = vld [vmem:[#allocation2 + $0x70] sm:$0x8]  ;;  %v2658_v18 = vrot.slane %v2657_v47, 4  ;;  %v367_v21 = vrot.slane %v363_v63, 4 }
  0x92   : > { %v923_v10 = vld [vmem:[#allocation2 + $0x74] sm:$0x1]  ;;  %v969_v11 = vld [vmem:[#allocation2 + $0x70] sm:$0xf]  ;;  %v366_v12 = vor.u32 %v364_v48, %v363_v63  ;;  %v11732_v14 = vrot.slane %v814_v9, 11  ;;  %v2668_v42 = vrot.slane %v2667_v49, 4 }
  0x93   : > { %v1228_v15 = vshll.u32 %v969_v11, 16  ;;  %v1232_v16 = vshrl.u32 %v969_v11, 16  ;;  %v371_v8 = vrot.slane %v369_v2, 7  ;;  %v2663_v31 = vsel %vm14300_vm13, %v2658_v18, %v2662_v38  ;;  %v2450_v1 = vld [vmem:[#allocation2 + $0x70] sm:$0xf] }
  0x94   : > { %v598_v23 = vsel %vm14203_vm7, %v366_v12, %v597_v6  ;;  %v924_v25 = vsel %vm14248_vm9, %v11732_v14, %v923_v10  ;;  %v968_v28 = vld [vmem:[#allocation2 + $0x6c] sm:$0xf]  ;;  %v2673_v37 = vsel %vm14300_vm13, %v2668_v42, %v2672_v4  ;;  %v2684_v43 = vshll.u32 %v2450_v1, 16 }
  0x95   : > { %v14518_v62 = vrot.slane %v1228_v15, 5  ;;  %v1234_v29 = vrot.slane %v1232_v16, 4  ;;  %599 = vst [vmem:[#allocation2 + $0x78] sm:$0xf] %v598_v23  ;;  %v2449_v32 = vld [vmem:[#allocation2 + $0x6c] sm:$0xf]  ;;  %v374_v39 = vor.u32 %v372_v5, %v371_v8  ;;  %v11861_v20 = vcombine.low %v2663_v31, %v2673_v37 }
  0x96   : > { %925 = vst [vmem:[#allocation2 + $0x74] sm:$0x1] %v924_v25  ;;  %v1219_v33 = vshrl.u32 %v968_v28, 16  ;;  %v1222_v34 = vshll.u32 %v968_v28, 16  ;;  %v376_v36 = vrot.slane %v371_v8, 4  ;;  %v2675_v58 = vshrl.u32 %v2449_v32, 16 }
  0x97   : > { %v1235_v44 = vor.u32 %v1234_v29, %v14518_v62  ;;  %v375_v46 = vsel %vm14197_vm6, %v367_v21, %v374_v39  ;;  %v2678_v30 = vshll.u32 %v2449_v32, 16  ;;  %13012 = vmatmul.mubr.msk.bf16.gmra.mrb[12].mxu1 %vm1439_vm12, %v11861_v20  ;;  %v2688_v54 = vshrl.u32 %v2450_v1, 16  ;;  %v608_v14 = vld [vmem:[#allocation2 + $0x8c] sm:$0x1]  ;;  %v194_v15 = vld [vmem:[%s14183_s21 + $0x58] sm:$0xf] }
  0x98   : > { %v1221_v0 = vrot.slane %v1219_v33, 4  ;;  %v1224_v45 = vrot.slane %v1222_v34, 5  ;;  %600 = vst.msk [vmem:[#allocation2 + $0x7c] sm:$0xf] %vm528_vm3, %v375_v46  ;;  %v602_v41 = vsel %vm14211_vm8, %v376_v36, %v601_v40  ;;  %v2677_v51 = vrot.slane %v2675_v58, 4 }
  0x99   : > { %603 = vst [vmem:[#allocation2 + $0x80] sm:$0x1] %v602_v41  ;;  %v2680_v53 = vrot.slane %v2678_v30, 5  ;;  %v380_v24 = vrot.slane %v378_v7, 7  ;;  %v1236_v55 = vrot.slane %v1235_v44, 4  ;;  %v2686_v56 = vrot.slane %v2684_v43, 5 }
  0x9a   : > { %v1225_v52 = vor.u32 %v1224_v45, %v1221_v0  ;;  %v381_v27 = vshll.u32 %v14506_v59, 16  ;;  %v386_v19 = vshrl.u32 %v193_v50, 16  ;;  %v2690_v47 = vrot.slane %v2688_v54, 4  ;;  %v195_v36 = vld [vmem:[%s14183_s21 + $0x5c] sm:$0xf] }
  0x9b   : > { %v2681_v61 = vor.u32 %v2680_v53, %v2677_v51  ;;  %v389_v4 = vshll.u32 %v193_v50, 16  ;;  %v384_v9 = vrot.slane %v380_v24, 4  ;;  %v395_v39 = vshrl.u32 %v194_v15, 16 }
  0x9c   : > { %v1226_v3 = vrot.slane %v1225_v52, 4  ;;  %v671_v38 = vld [vmem:[#allocation2 + $0x78] sm:$0x2]  ;;  %v781_v60 = vld [vmem:[#allocation2 + $0x78] sm:$0x1]  ;;  %v383_v49 = vor.u32 %v381_v27, %v380_v24  ;;  %v2691_v7 = vor.u32 %v2690_v47, %v2686_v56  ;;  %v388_v11 = vrot.slane %v386_v19, 7 }
  0x9d   : > { %v992_v63 = vld [vmem:[#allocation2 + $0x74] sm:$0x1]  ;;  %v11715_v48 = vrot.slane %v671_v38, 9  ;;  %v2682_v6 = vrot.slane %v2681_v61, 4  ;;  %v397_v51 = vrot.slane %v395_v39, 7  ;;  %v398_v52 = vshll.u32 %v194_v15, 16 }
  0x9e   : > { %v2474_v2 = vld [vmem:[#allocation2 + $0x74] sm:$0x1]  ;;  %v1238_v5 = vshll.u32 %v992_v63, 16  ;;  %v605_v12 = vsel %vm14203_vm7, %v383_v49, %v604_v57  ;;  %v1231_v16 = vsel %vm14300_vm13, %v1226_v3, %v14518_v62  ;;  %v2692_v23 = vrot.slane %v2691_v7, 4  ;;  %v611_v24 = vld [vmem:[#allocation2 + $0x90] sm:$0xf] }
  0x9f   : > { %v782_v59 = vsel %vm14211_vm8, %v11715_v48, %v781_v60  ;;  %v2694_v10 = vshll.u32 %v2474_v2, 16  ;;  %v815_v42 = vld [vmem:[#allocation2 + $0x7c] sm:$0x8]  ;;  %v2687_v8 = vsel %vm14300_vm13, %v2682_v6, %v2686_v56  ;;  %606 = vst [vmem:[#allocation2 + $0x84] sm:$0xf] %v605_v12  ;;  %v391_v33 = vor.u32 %v389_v4, %v388_v11 }
  0xa0   : > { %v1240_v18 = vrot.slane %v1238_v5, 5  ;;  %783 = vst [vmem:[#allocation2 + $0x78] sm:$0x1] %v782_v59  ;;  %v14541_v21 = vld [vmem:[#allocation2 + $0x7c] sm:$0xf]  ;;  %v11733_v25 = vrot.slane %v815_v42, 11  ;;  %v400_v47 = vor.u32 %v398_v52, %v397_v51 }
  0xa1   : > { %v926_v28 = vld [vmem:[#allocation2 + $0x80] sm:$0x1]  ;;  %v1252_v29 = vshll.u32 %v14541_v21, 16  ;;  %v1256_v31 = vshrl.u32 %v14541_v21, 16  ;;  %v2696_v32 = vrot.slane %v2694_v10, 5  ;;  %v393_v34 = vrot.slane %v388_v11, 4 }
  0xa2   : > { %v1241_v62 = vsel %vm14300_vm13, %v1236_v55, %v1240_v18  ;;  %v14549_v37 = vld [vmem:[#allocation2 + $0x7c] sm:$0xf]  ;;  %v927_v1 = vsel %vm14248_vm9, %v11733_v25, %v926_v28  ;;  %v392_v0 = vsel %vm14197_vm6, %v384_v9, %v391_v33  ;;  %v403_v53 = vshrl.u32 %v195_v36, 16  ;;  %v14570_v55 = vld [vmem:[%s14183_s21 + $0x60] sm:$0xf] }
  0xa3   : > { %v11750_v40 = vcombine.low %v1231_v16, %v1241_v62  ;;  %v14553_v44 = vrot.slane %v1252_v29, 5  ;;  %v1258_v20 = vrot.slane %v1256_v31, 4  ;;  %928 = vst [vmem:[#allocation2 + $0x80] sm:$0x1] %v927_v1  ;;  %v2697_v58 = vsel %vm14300_vm13, %v2692_v23, %v2696_v32  ;;  %607 = vst.msk [vmem:[#allocation2 + $0x88] sm:$0xf] %vm528_vm3, %v392_v0 }
  0xa4   : > { %v609_v45 = vsel %vm14211_vm8, %v393_v34, %v608_v14  ;;  %v2708_v46 = vshll.u32 %v14549_v37, 16  ;;  %v11862_v50 = vcombine.low %v2687_v8, %v2697_v58  ;;  %v2712_v41 = vshrl.u32 %v14549_v37, 16 }
  0xa5   : > { %12914 = vmatmul.mubr.msk.bf16.gmra.mrb[16].mxu0 %vm1439_vm12, %v11750_v40  ;;  %v1259_v30 = vor.u32 %v1258_v20, %v14553_v44  ;;  %610 = vst [vmem:[#allocation2 + $0x8c] sm:$0x1] %v609_v45  ;;  %v406_v54 = vshll.u32 %v195_v36, 16  ;;  %v401_v2 = vrot.slane %v397_v51, 4  ;;  %v405_v49 = vrot.slane %v403_v53, 7 }
  0xa6   : > { %v14567_v43 = vrot.slane %v2708_v46, 5  ;;  %13015 = vmatprep.mubr.msk.bf16.mxu1 %vm1439_vm12, %v11862_v50  ;;  %v672_v19 = vld [vmem:[#allocation2 + $0x84] sm:$0x2]  ;;  %v2714_v57 = vrot.slane %v2712_v41, 4  ;;  %v784_v61 = vld [vmem:[#allocation2 + $0x84] sm:$0x1]  ;;  %v612_v15 = vsel %vm14203_vm7, %v400_v47, %v611_v24 }
  0xa7   : > { %v14572_v56 = vld [vmem:[#allocation2 + $0x78] sm:$0xf]  ;;  %v1260_v27 = vrot.slane %v1259_v30, 4  ;;  %v11716_v60 = vrot.slane %v672_v19, 9  ;;  %v412_v4 = vshrl.u32 %v14570_v55, 16  ;;  %v408_v14 = vor.u32 %v406_v54, %v405_v49 }
  0xa8   : > { %v1243_v3 = vshrl.u32 %v14572_v56, 16  ;;  %v1246_v38 = vshll.u32 %v14572_v56, 16  ;;  %v14577_v63 = vld [vmem:[#allocation2 + $0x78] sm:$0xf]  ;;  %v2715_v48 = vor.u32 %v2714_v57, %v14567_v43  ;;  %613 = vst [vmem:[#allocation2 + $0x90] sm:$0xf] %v612_v15 }
  0xa9   : > { %v785_v7 = vsel %vm14211_vm8, %v11716_v60, %v784_v61  ;;  %v2699_v9 = vshrl.u32 %v14577_v63, 16  ;;  %v2702_v11 = vshll.u32 %v14577_v63, 16  ;;  %v409_v32 = vsel %vm14197_vm6, %v401_v2, %v408_v14  ;;  %v615_v40 = vld [vmem:[#allocation2 + $0x98] sm:$0x1] }
  0xaa   : > { %v1245_v5 = vrot.slane %v1243_v3, 4  ;;  %v1248_v6 = vrot.slane %v1246_v38, 5  ;;  %v993_v59 = vld [vmem:[#allocation2 + $0x80] sm:$0x1]  ;;  %786 = vst [vmem:[#allocation2 + $0x84] sm:$0x1] %v785_v7 }
  0xab   : > { %v2475_v10 = vld [vmem:[#allocation2 + $0x80] sm:$0x1]  ;;  %v2716_v12 = vrot.slane %v2715_v48, 4  ;;  %v1262_v18 = vshll.u32 %v993_v59, 16  ;;  %v816_v42 = vld [vmem:[#allocation2 + $0x88] sm:$0x8] }
  0xac   : > { %v1249_v16 = vor.u32 %v1248_v6, %v1245_v5  ;;  %v929_v8 = vld [vmem:[#allocation2 + $0x8c] sm:$0x1]  ;;  %v2701_v23 = vrot.slane %v2699_v9, 4  ;;  %v11734_v25 = vrot.slane %v816_v42, 11  ;;  %v14587_v28 = vld [vmem:[#allocation2 + $0x88] sm:$0xf] }
  0xad   : > { %v2704_v29 = vrot.slane %v2702_v11, 5  ;;  %v2718_v31 = vshll.u32 %v2475_v10, 16  ;;  %v1264_v33 = vrot.slane %v1262_v18, 5  ;;  %v1276_v34 = vshll.u32 %v14587_v28, 16  ;;  %614 = vst.msk [vmem:[#allocation2 + $0x94] sm:$0xf] %vm528_vm3, %v409_v32 }
  0xae   : > { %v1250_v62 = vrot.slane %v1249_v16, 4  ;;  %v1280_v39 = vshrl.u32 %v14587_v28, 16  ;;  %v930_v1 = vsel %vm14248_vm9, %v11734_v25, %v929_v8  ;;  %v410_v58 = vrot.slane %v405_v49, 4  ;;  %v14596_v0 = vld [vmem:[#allocation2 + $0x88] sm:$0xf] }
  0xaf   : > { %v2705_v20 = vor.u32 %v2704_v29, %v2701_v23  ;;  %v2720_v36 = vrot.slane %v2718_v31, 5  ;;  %v1265_v46 = vsel %vm14300_vm13, %v1260_v27, %v1264_v33  ;;  %931 = vst [vmem:[#allocation2 + $0x8c] sm:$0x1] %v930_v1  ;;  %v1278_v30 = vrot.slane %v1276_v34, 5  ;;  %v673_v60 = vld [vmem:[#allocation2 + $0x90] sm:$0x2] }
  0xb0   : > { %v1255_v45 = vsel %vm14300_vm13, %v1250_v62, %v14553_v44  ;;  %v1282_v50 = vrot.slane %v1280_v39, 4  ;;  %v616_v53 = vsel %vm14211_vm8, %v410_v58, %v615_v40  ;;  %v2732_v44 = vshll.u32 %v14596_v0, 16  ;;  %v787_v61 = vld [vmem:[#allocation2 + $0x90] sm:$0x1]  ;;  %v197_v1 = vld [vmem:[%s14183_s21 + $0x64] sm:$0xf] }
  0xb1   : > { %v11751_v41 = vcombine.low %v1255_v45, %v1265_v46  ;;  %v2706_v51 = vrot.slane %v2705_v20, 4  ;;  %v2721_v52 = vsel %vm14300_vm13, %v2716_v12, %v2720_v36  ;;  %v14607_v54 = vld [vmem:[#allocation2 + $0x84] sm:$0xf]  ;;  %617 = vst [vmem:[#allocation2 + $0x98] sm:$0x1] %v616_v53  ;;  %v2736_v27 = vshrl.u32 %v14596_v0, 16 }
  0xb2   : > { %v1283_v24 = vor.u32 %v1282_v50, %v1278_v30  ;;  %v14609_v19 = vld [vmem:[#allocation2 + $0x84] sm:$0xf]  ;;  %v1267_v57 = vshrl.u32 %v14607_v54, 16  ;;  %v1270_v3 = vshll.u32 %v14607_v54, 16  ;;  %v11717_v2 = vrot.slane %v673_v60, 9 }
  0xb3   : > { %12917 = vmatprep.mubr.msk.bf16.mxu0 %vm1439_vm12, %v11751_v41  ;;  %v2711_v38 = vsel %vm14300_vm13, %v2706_v51, %v14567_v43  ;;  %v2723_v49 = vshrl.u32 %v14609_v19, 16  ;;  %v2726_v18 = vshll.u32 %v14609_v19, 16  ;;  %v2734_v25 = vrot.slane %v2732_v44, 5 }
  0xb4   : > { %v1284_v47 = vrot.slane %v1283_v24, 4  ;;  %v11863_v48 = vcombine.low %v2711_v38, %v2721_v52  ;;  %v1269_v5 = vrot.slane %v1267_v57, 4  ;;  %v1272_v6 = vrot.slane %v1270_v3, 5  ;;  %v817_v7 = vld [vmem:[#allocation2 + $0x94] sm:$0x8] }
  0xb5   : > { %v14620_v9 = vld [vmem:[#allocation2 + $0x94] sm:$0xf]  ;;  %v788_v59 = vsel %vm14211_vm8, %v11717_v2, %v787_v61  ;;  %v11735_v10 = vrot.slane %v817_v7, 11  ;;  %v2725_v16 = vrot.slane %v2723_v49, 4  ;;  %v2728_v32 = vrot.slane %v2726_v18, 5 }
  0xb6   : > { %13016 = vmatmul.mubr.msk.bf16.gmra.mrb[16].mxu1 %vm1439_vm12, %v11863_v48  ;;  %v1300_v43 = vshll.u32 %v14620_v9, 16  ;;  %v1304_v11 = vshrl.u32 %v14620_v9, 16  ;;  %v994_v12 = vld [vmem:[#allocation2 + $0x8c] sm:$0x1]  ;;  %v1273_v14 = vor.u32 %v1272_v6, %v1269_v5  ;;  %789 = vst [vmem:[#allocation2 + $0x90] sm:$0x1] %v788_v59 }
  0xb7   : > { %v2476_v15 = vld [vmem:[#allocation2 + $0x8c] sm:$0x1]  ;;  %v1286_v42 = vshll.u32 %v994_v12, 16  ;;  %v2738_v62 = vrot.slane %v2736_v27, 4  ;;  %v414_v20 = vrot.slane %v412_v4, 7  ;;  %v2729_v58 = vor.u32 %v2728_v32, %v2725_v16 }
  0xb8   : > { %v14628_v8 = vrot.slane %v1300_v43, 5  ;;  %v1306_v23 = vrot.slane %v1304_v11, 4  ;;  %v1274_v29 = vrot.slane %v1273_v14, 4  ;;  %v932_v31 = vld [vmem:[#allocation2 + $0x98] sm:$0x1]  ;;  %v2742_v33 = vshll.u32 %v2476_v15, 16 }
  0xb9   : > { %v1288_v34 = vrot.slane %v1286_v42, 5  ;;  %v933_v39 = vsel %vm14248_vm9, %v11735_v10, %v932_v31  ;;  %v2739_v45 = vor.u32 %v2738_v62, %v2734_v25  ;;  %v14638_v50 = vld [vmem:[#allocation2 + $0x94] sm:$0xf]  ;;  %v415_v52 = vshll.u32 %v14570_v55, 16  ;;  %v618_v57 = vld [vmem:[#allocation2 + $0x9c] sm:$0xf] }
  0xba   : > { %v1307_v40 = vor.u32 %v1306_v23, %v14628_v8  ;;  %v1279_v36 = vsel %vm14300_vm13, %v1274_v29, %v1278_v30  ;;  %934 = vst [vmem:[#allocation2 + $0x98] sm:$0x1] %v933_v39  ;;  %v2744_v46 = vrot.slane %v2742_v33, 5  ;;  %v418_v53 = vrot.slane %v414_v20, 4  ;;  %v622_v7 = vld [vmem:[#allocation2 + $0xa4] sm:$0x1] }
  0xbb   : > { %v1289_v41 = vsel %vm14300_vm13, %v1284_v47, %v1288_v34  ;;  %v2730_v44 = vrot.slane %v2729_v58, 4  ;;  %v2740_v27 = vrot.slane %v2739_v45, 4  ;;  %v420_v4 = vshrl.u32 %v197_v1, 16  ;;  %v198_v14 = vld [vmem:[%s14183_s21 + $0x68] sm:$0xf] }
  0xbc   : > { %v1308_v51 = vrot.slane %v1307_v40, 4  ;;  %v11752_v24 = vcombine.low %v1279_v36, %v1289_v41  ;;  %v417_v30 = vor.u32 %v415_v52, %v414_v20  ;;  %v423_v38 = vshll.u32 %v197_v1, 16  ;;  %v199_v62 = vld [vmem:[%s14183_s21 + $0x6c] sm:$0xf] }
  0xbd   : > { %v14643_v3 = vld [vmem:[#allocation2 + $0x90] sm:$0xf]  ;;  %v2756_v61 = vshll.u32 %v14638_v50, 16  ;;  %v2735_v48 = vsel %vm14300_vm13, %v2730_v44, %v2734_v25  ;;  %v2745_v2 = vsel %vm14300_vm13, %v2740_v27, %v2744_v46  ;;  %v422_v5 = vrot.slane %v420_v4, 7 }
  0xbe   : > { %v14645_v60 = vld [vmem:[#allocation2 + $0x90] sm:$0xf]  ;;  %12918 = vmatmul.mubr.msk.bf16.gmra.mrb[20].mxu0 %vm1439_vm12, %v11752_v24  ;;  %v1291_v47 = vshrl.u32 %v14643_v3, 16  ;;  %v1294_v55 = vshll.u32 %v14643_v3, 16  ;;  %v11864_v49 = vcombine.low %v2735_v48, %v2745_v2  ;;  %v619_v6 = vsel %vm14203_vm7, %v417_v30, %v618_v57  ;;  %v625_v24 = vld [vmem:[#allocation2 + $0xa8] sm:$0xf] }
  0xbf   : > { %v2747_v59 = vshrl.u32 %v14645_v60, 16  ;;  %620 = vst [vmem:[#allocation2 + $0x9c] sm:$0xf] %v619_v6  ;;  %v2750_v11 = vshll.u32 %v14645_v60, 16  ;;  %v2758_v12 = vrot.slane %v2756_v61, 5  ;;  %v425_v16 = vor.u32 %v423_v38, %v422_v5 }
  0xc0   : > { %v1293_v10 = vrot.slane %v1291_v47, 4  ;;  %v1296_v43 = vrot.slane %v1294_v55, 5  ;;  %13019 = vmatprep.mubr.msk.bf16.mxu1 %vm1439_vm12, %v11864_v49  ;;  %v427_v18 = vrot.slane %v422_v5, 4  ;;  %v2760_v32 = vshrl.u32 %v14638_v50, 16  ;;  %v200_v57 = vld [vmem:[%s14183_s21 + $0x70] sm:$0xf] }
  0xc1   : > { %v995_v15 = vld [vmem:[#allocation2 + $0x98] sm:$0x1]  ;;  %v2749_v23 = vrot.slane %v2747_v59, 4  ;;  %v2752_v31 = vrot.slane %v2750_v11, 5  ;;  %v426_v33 = vsel %vm14197_vm6, %v418_v53, %v425_v16  ;;  %v429_v40 = vshrl.u32 %v198_v14, 16 }
  0xc2   : > { %v2477_v42 = vld [vmem:[#allocation2 + $0x98] sm:$0x1]  ;;  %v1297_v25 = vor.u32 %v1296_v43, %v1293_v10  ;;  %v1310_v29 = vshll.u32 %v995_v15, 16  ;;  %v623_v34 = vsel %vm14211_vm8, %v427_v18, %v622_v7  ;;  %621 = vst.msk [vmem:[#allocation2 + $0xa0] sm:$0xf] %vm528_vm3, %v426_v33  ;;  %v2762_v58 = vrot.slane %v2760_v32, 4 }
  0xc3   : > { %v2766_v39 = vshll.u32 %v2477_v42, 16  ;;  %624 = vst [vmem:[#allocation2 + $0xa4] sm:$0x1] %v623_v34  ;;  %v2753_v36 = vor.u32 %v2752_v31, %v2749_v23  ;;  %v431_v46 = vrot.slane %v429_v40, 7  ;;  %v432_v41 = vshll.u32 %v198_v14, 16 }
  0xc4   : > { %v1298_v1 = vrot.slane %v1297_v25, 4  ;;  %v1312_v20 = vrot.slane %v1310_v29, 5  ;;  %v437_v52 = vshrl.u32 %v199_v62, 16  ;;  %v2763_v4 = vor.u32 %v2762_v58, %v2758_v12  ;;  %v201_v30 = vld [vmem:[%s14183_s21 + $0x74] sm:$0xf] }
  0xc5   : > { %v2768_v45 = vrot.slane %v2766_v39, 5  ;;  %v2754_v27 = vrot.slane %v2753_v36, 4  ;;  %v434_v55 = vor.u32 %v432_v41, %v431_v46  ;;  %v435_v48 = vrot.slane %v431_v46, 4  ;;  %v202_v41 = vld [vmem:[%s14183_s21 + $0x78] sm:$0xf] }
  0xc6   : > { %v1303_v53 = vsel %vm14300_vm13, %v1298_v1, %v14628_v8  ;;  %v1313_v44 = vsel %vm14300_vm13, %v1308_v51, %v1312_v20  ;;  %v674_v61 = vld [vmem:[#allocation2 + $0x9c] sm:$0x2]  ;;  %v790_v47 = vld [vmem:[#allocation2 + $0x9c] sm:$0x1]  ;;  %v439_v2 = vrot.slane %v437_v52, 7  ;;  %v2764_v6 = vrot.slane %v2763_v4, 4 }
  0xc7   : > { %v11753_v38 = vcombine.low %v1303_v53, %v1313_v44  ;;  %v11718_v49 = vrot.slane %v674_v61, 9  ;;  %v2759_v5 = vsel %vm14300_vm13, %v2754_v27, %v2758_v12  ;;  %v440_v7 = vshll.u32 %v199_v62, 16  ;;  %v629_v8 = vld [vmem:[#allocation2 + $0xb0] sm:$0x1]  ;;  %v632_v20 = vld [vmem:[#allocation2 + $0xb4] sm:$0xf] }
  0xc8   : > { %v444_v51 = vrot.slane %v439_v2, 4  ;;  %v626_v59 = vsel %vm14203_vm7, %v434_v55, %v625_v24  ;;  %v446_v10 = vshrl.u32 %v200_v57, 16  ;;  %v449_v43 = vshll.u32 %v200_v57, 16  ;;  %v636_v27 = vld [vmem:[#allocation2 + $0xbc] sm:$0x1] }
  0xc9   : > { %12921 = vmatprep.mubr.msk.bf16.mxu0 %vm1439_vm12, %v11753_v38  ;;  %v791_v11 = vsel %vm14211_vm8, %v11718_v49, %v790_v47  ;;  %v2769_v14 = vsel %vm14300_vm13, %v2764_v6, %v2768_v45  ;;  %v442_v15 = vor.u32 %v440_v7, %v439_v2  ;;  %627 = vst [vmem:[#allocation2 + $0xa8] sm:$0xf] %v626_v59  ;;  %v454_v12 = vshrl.u32 %v201_v30, 16  ;;  %v818_v16 = vld [vmem:[#allocation2 + $0xa0] sm:$0x8] }
  0xca   : > { %792 = vst [vmem:[#allocation2 + $0x9c] sm:$0x1] %v791_v11  ;;  %v935_v18 = vld [vmem:[#allocation2 + $0xa4] sm:$0x1]  ;;  %v14684_v42 = vld [vmem:[#allocation2 + $0xa0] sm:$0xf]  ;;  %v11865_v23 = vcombine.low %v2759_v5, %v2769_v14  ;;  %v630_v25 = vsel %vm14211_vm8, %v444_v51, %v629_v8 }
  0xcb   : > { %v11736_v29 = vrot.slane %v818_v16, 11  ;;  %v1324_v31 = vshll.u32 %v14684_v42, 16  ;;  %v1328_v32 = vshrl.u32 %v14684_v42, 16  ;;  %v443_v62 = vsel %vm14197_vm6, %v435_v48, %v442_v15  ;;  %631 = vst [vmem:[#allocation2 + $0xb0] sm:$0x1] %v630_v25 }
  0xcc   : > { %v14692_v33 = vld [vmem:[#allocation2 + $0xa0] sm:$0xf]  ;;  %13020 = vmatmul.mubr.msk.bf16.gmra.mrb[20].mxu1 %vm1439_vm12, %v11865_v23  ;;  %628 = vst.msk [vmem:[#allocation2 + $0xac] sm:$0xf] %vm528_vm3, %v443_v62  ;;  %v448_v40 = vrot.slane %v446_v10, 7  ;;  %v14698_v1 = vrot.slane %v454_v12, 7 }
  0xcd   : > { %v2780_v34 = vshll.u32 %v14692_v33, 16  ;;  %v2784_v39 = vshrl.u32 %v14692_v33, 16  ;;  %v936_v36 = vsel %vm14248_vm9, %v11736_v29, %v935_v18  ;;  %v14702_v58 = vrot.slane %v1324_v31, 5  ;;  %v639_v25 = vld [vmem:[#allocation2 + $0xc0] sm:$0xf] }
  0xce   : > { %19485 = vst [vmem:[#allocation9_spill] sm:$0xff] %v14698_v1  ;;  %v1330_v45 = vrot.slane %v1328_v32, 4  ;;  %v457_v46 = vshll.u32 %v201_v30, 16  ;;  %937 = vst [vmem:[#allocation2 + $0xa4] sm:$0x1] %v936_v36  ;;  %v14707_v53 = vor.u32 %v449_v43, %v448_v40  ;;  %v452_v44 = vrot.slane %v448_v40, 4 }
  0xcf   : > { %v14705_v52 = vrot.slane %v2780_v34, 5  ;;  %v2786_v24 = vrot.slane %v2784_v39, 4  ;;  %v19366_v38 = vrot.slane %v14698_v1, 4  ;;  %v463_v48 = vshrl.u32 %v202_v41, 16 }
  0xd0   : > { %19486 = vst [vmem:[#allocation10_spill] sm:$0xff] %v14707_v53  ;;  %v1331_v4 = vor.u32 %v1330_v45, %v14702_v58  ;;  %v459_v57 = vor.u32 %v457_v46, %v14698_v1  ;;  %v675_v61 = vld [vmem:[#allocation2 + $0xa8] sm:$0x2]  ;;  %v793_v47 = vld [vmem:[#allocation2 + $0xa8] sm:$0x1]  ;;  %v633_v30 = vsel %vm14203_vm7, %v14707_v53, %v632_v20  ;;  %v466_v2 = vshll.u32 %v202_v41, 16 }
  0xd1   : > { %v2787_v55 = vor.u32 %v2786_v24, %v14705_v52  ;;  %v14716_v49 = vld [vmem:[#allocation2 + $0x9c] sm:$0xf]  ;;  %v11719_v6 = vrot.slane %v675_v61, 9  ;;  %634 = vst [vmem:[#allocation2 + $0xb4] sm:$0xf] %v633_v30  ;;  %v637_v51 = vsel %vm14211_vm8, %v19366_v38, %v636_v27  ;;  %v14736_v23 = vrot.slane %v463_v48, 7 }
  0xd2   : > { %v1332_v5 = vrot.slane %v1331_v4, 4  ;;  %v14718_v7 = vld [vmem:[#allocation2 + $0x9c] sm:$0xf]  ;;  %v460_v8 = vsel %vm14197_vm6, %v452_v44, %v459_v57  ;;  %v1315_v59 = vshrl.u32 %v14716_v49, 16  ;;  %v1318_v10 = vshll.u32 %v14716_v49, 16 }
  0xd3   : > { %v938_v43 = vld [vmem:[#allocation2 + $0xb0] sm:$0x1]  ;;  %v2771_v11 = vshrl.u32 %v14718_v7, 16  ;;  %v2774_v14 = vshll.u32 %v14718_v7, 16  ;;  %635 = vst.msk [vmem:[#allocation2 + $0xb8] sm:$0xf] %vm528_vm3, %v460_v8  ;;  %v794_v15 = vsel %vm14211_vm8, %v11719_v6, %v793_v47  ;;  %v468_v45 = vor.u32 %v466_v2, %v14736_v23 }
  0xd4   : > { %638 = vst [vmem:[#allocation2 + $0xbc] sm:$0x1] %v637_v51  ;;  %657 = vst.msk [vmem:[#allocation2 + $0xd0] sm:$0xf] %vm528_vm3, %v460_v8  ;;  %v819_v12 = vld [vmem:[#allocation2 + $0xac] sm:$0x8]  ;;  %v11787_v26 = vcombine.low %v14716_v49, %v14684_v42 }
  0xd5   : > { %v14734_v16 = vld [vmem:[#allocation2 + $0xac] sm:$0xf]  ;;  %v2788_v18 = vrot.slane %v2787_v55, 4  ;;  %v1317_v29 = vrot.slane %v1315_v59, 4  ;;  %v1320_v31 = vrot.slane %v1318_v10, 5  ;;  %v11737_v32 = vrot.slane %v819_v12, 11 }
  0xd6   : > { %19487 = vst [vmem:[#allocation11_spill] sm:$0xff] %v14734_v16  ;;  %795 = vst [vmem:[#allocation2 + $0xa8] sm:$0x1] %v794_v15  ;;  %v1348_v62 = vshll.u32 %v14734_v16, 16  ;;  %v14739_v34 = vld [vmem:[#allocation2 + $0xac] sm:$0xf]  ;;  %v640_v2 = vsel %vm14203_vm7, %v468_v45, %v639_v25 }
  0xd7   : > { %v14741_v39 = vld [vmem:[#allocation2 + $0xa4] sm:$0x1]  ;;  %v1352_v40 = vshrl.u32 %v14734_v16, 16  ;;  %v2773_v36 = vrot.slane %v2771_v11, 4  ;;  %v1321_v46 = vor.u32 %v1320_v31, %v1317_v29  ;;  %v939_v24 = vsel %vm14248_vm9, %v11737_v32, %v938_v43  ;;  %641 = vst [vmem:[#allocation2 + $0xc0] sm:$0xf] %v640_v2 }
  0xd8   : > { %19488 = vst [vmem:[#allocation12_spill] sm:$0xff] %v14741_v39  ;;  %v14744_v20 = vld [vmem:[#allocation2 + $0xa4] sm:$0x1]  ;;  %v1334_v41 = vshll.u32 %v14741_v39, 16  ;;  %v14750_v44 = vrot.slane %v1348_v62, 5  ;;  %v2776_v4 = vrot.slane %v2774_v14, 5 }
  0xd9   : > { %19489 = vst [vmem:[#allocation13_spill] sm:$0xff] %v14744_v20  ;;  %940 = vst [vmem:[#allocation2 + $0xb0] sm:$0x1] %v939_v24  ;;  %v1354_v27 = vrot.slane %v1352_v40, 4  ;;  %v2790_v57 = vshll.u32 %v14744_v20, 16  ;;  %v2804_v61 = vshll.u32 %v14739_v34, 16 }
  0xda   : > { %v1322_v47 = vrot.slane %v1321_v46, 4  ;;  %v1336_v55 = vrot.slane %v1334_v41, 5  ;;  %v676_v30 = vld [vmem:[#allocation2 + $0xb4] sm:$0x2]  ;;  %v796_v48 = vld [vmem:[#allocation2 + $0xb4] sm:$0x1]  ;;  %v2777_v8 = vor.u32 %v2776_v4, %v2773_v36 }
  0xdb   : > { %v1355_v6 = vor.u32 %v1354_v27, %v14750_v44  ;;  %v2792_v51 = vrot.slane %v2790_v57, 5  ;;  %v11720_v59 = vrot.slane %v676_v30, 9  ;;  %v820_v10 = vld [vmem:[#allocation2 + $0xb8] sm:$0x8]  ;;  %v941_v43 = vld [vmem:[#allocation2 + $0xbc] sm:$0x1] }
  0xdc   : > { %v1327_v11 = vsel %vm14300_vm13, %v1322_v47, %v14702_v58  ;;  %v1337_v14 = vsel %vm14300_vm13, %v1332_v5, %v1336_v55  ;;  %v11738_v15 = vrot.slane %v820_v10, 11  ;;  %v14762_v12 = vld [vmem:[#allocation2 + $0xb8] sm:$0xf]  ;;  %v14764_v29 = vrot.slane %v2804_v61, 5 }
  0xdd   : > { %v11754_v25 = vcombine.low %v1327_v11, %v1337_v14  ;;  %v14766_v31 = vld [vmem:[#allocation2 + $0xa8] sm:$0xf]  ;;  %v1356_v32 = vrot.slane %v1355_v6, 4  ;;  %v2778_v62 = vrot.slane %v2777_v8, 4  ;;  %v2793_v40 = vsel %vm14300_vm13, %v2788_v18, %v2792_v51  ;;  %v14785_v4 = vld [vmem:[#allocation2 + $0xb8] sm:$0xf] }
  0xde   : > { %v14770_v36 = vld [vmem:[#allocation2 + $0xa8] sm:$0xf]  ;;  %v1339_v58 = vshrl.u32 %v14766_v31, 16  ;;  %v1342_v45 = vshll.u32 %v14766_v31, 16  ;;  %v797_v5 = vsel %vm14211_vm8, %v11720_v59, %v796_v48  ;;  %v942_v46 = vsel %vm14248_vm9, %v11738_v15, %v941_v43  ;;  %v799_v22 = vld [vmem:[#allocation2 + $0xc0] sm:$0x1] }
  0xdf   : > { %12922 = vmatmul.mubr.msk.bf16.gmra.mrb[24].mxu0 %vm1439_vm12, %v11754_v25  ;;  %v2783_v41 = vsel %vm14300_vm13, %v2778_v62, %v14705_v52  ;;  %798 = vst [vmem:[#allocation2 + $0xb4] sm:$0x1] %v797_v5  ;;  %943 = vst [vmem:[#allocation2 + $0xbc] sm:$0x1] %v942_v46  ;;  %v1372_v18 = vshll.u32 %v14762_v12, 16  ;;  %v1376_v24 = vshrl.u32 %v14762_v12, 16 }
  0xe0   : > { %v2795_v27 = vshrl.u32 %v14770_v36, 16  ;;  %v14787_v57 = vld [vmem:[#allocation2 + $0xb0] sm:$0x1]  ;;  %v1341_v61 = vrot.slane %v1339_v58, 4  ;;  %v1344_v47 = vrot.slane %v1342_v45, 5  ;;  %v11866_v55 = vcombine.low %v2783_v41, %v2793_v40 }
  0xe1   : > { %19490 = vst [vmem:[#allocation14_spill] sm:$0xff] %v14787_v57  ;;  %v14789_v30 = vld [vmem:[#allocation2 + $0xb0] sm:$0x1]  ;;  %v1358_v48 = vshll.u32 %v14787_v57, 16  ;;  %v14792_v52 = vrot.slane %v1372_v18, 5  ;;  %v1378_v2 = vrot.slane %v1376_v24, 4 }
  0xe2   : > { %19491 = vst [vmem:[#allocation15_spill] sm:$0xff] %v14789_v30  ;;  %v2797_v6 = vrot.slane %v2795_v27, 4  ;;  %v1345_v8 = vor.u32 %v1344_v47, %v1341_v61  ;;  %13023 = vmatprep.mubr.msk.bf16.mxu1 %vm1439_vm12, %v11866_v55  ;;  %v2798_v51 = vshll.u32 %v14770_v36, 16  ;;  %v2808_v59 = vshrl.u32 %v14739_v34, 16  ;;  %v3423_v57 = vld [vmem:[#allocation2 + $0xc] sm:$0xe] }
  0xe3   : > { %v2814_v10 = vshll.u32 %v14789_v30, 16  ;;  %v1360_v43 = vrot.slane %v1358_v48, 5  ;;  %v1379_v11 = vor.u32 %v1378_v2, %v14792_v52  ;;  %v2828_v14 = vshll.u32 %v14785_v4, 16 }
  0xe4   : > { %v2832_v15 = vshrl.u32 %v14785_v4, 16  ;;  %v1346_v25 = vrot.slane %v1345_v8, 4  ;;  %v2800_v62 = vrot.slane %v2798_v51, 5  ;;  %v2810_v40 = vrot.slane %v2808_v59, 4 }
  0xe5   : > { %v2816_v58 = vrot.slane %v2814_v10, 5  ;;  %v1361_v45 = vsel %vm14300_vm13, %v1356_v32, %v1360_v43  ;;  %v1380_v5 = vrot.slane %v1379_v11, 4  ;;  %v2830_v46 = vrot.slane %v2828_v14, 5  ;;  %v203_v43 = vld [vmem:[%s14183_s21 + $0x7c] sm:$0xf] }
  0xe6   : > { %v2834_v41 = vrot.slane %v2832_v15, 4  ;;  %v1351_v18 = vsel %vm14300_vm13, %v1346_v25, %v14750_v44  ;;  %v14806_v24 = vld [vmem:[#allocation2 + $0xb4] sm:$0xf]  ;;  %v14808_v27 = vld [vmem:[#allocation2 + $0xbc] sm:$0x1]  ;;  %v2801_v61 = vor.u32 %v2800_v62, %v2797_v6  ;;  %v2811_v47 = vor.u32 %v2810_v40, %v14764_v29 }
  0xe7   : > { %19492 = vst [vmem:[#allocation16_spill] sm:$0xff] %v14808_v27  ;;  %v14811_v55 = vld [vmem:[#allocation2 + $0xb4] sm:$0xf]  ;;  %v11755_v48 = vcombine.low %v1351_v18, %v1361_v45  ;;  %v1363_v32 = vshrl.u32 %v14806_v24, 16  ;;  %v1366_v2 = vshll.u32 %v14806_v24, 16  ;;  %v1382_v8 = vshll.u32 %v14808_v27, 16 }
  0xe8   : > { %v13918_v44 = vld [vmem:[%s19363_s1 + $0x4] ss:$0 sps:$4 sm:$0xcc]   ;;  %v2802_v51 = vrot.slane %v2801_v61, 4  ;;  %v2812_v59 = vrot.slane %v2811_v47, 4  ;;  %v2819_v10 = vshrl.u32 %v14811_v55, 16  ;;  %v2835_v62 = vor.u32 %v2834_v41, %v2830_v46 }
  0xe9   : > { %v2822_v6 = vshll.u32 %v14811_v55, 16  ;;  %12925 = vmatprep.mubr.msk.bf16.mxu0 %vm1439_vm12, %v11755_v48  ;;  %v1365_v11 = vrot.slane %v1363_v32, 4  ;;  %v1368_v14 = vrot.slane %v1366_v2, 5  ;;  %v1384_v15 = vrot.slane %v1382_v8, 5  ;;  %v14823_v25 = vld [vmem:[#allocation2 + $0xbc] sm:$0x1] }
  0xea   : > { %19493 = vst [vmem:[#allocation17_spill] sm:$0xff] %v14823_v25  ;;  %v2807_v40 = vsel %vm14300_vm13, %v2802_v51, %v14764_v29  ;;  %v2817_v45 = vsel %vm14300_vm13, %v2812_v59, %v2816_v58  ;;  %v2821_v18 = vrot.slane %v2819_v10, 4  ;;  %v677_v47 = vld [vmem:[#allocation2 + $0xc0] sm:$0x2]  ;;  %v2836_v8 = vrot.slane %v2835_v62, 4 }
  0xeb   : > { %v2824_v61 = vrot.slane %v2822_v6, 5  ;;  %v1369_v38 = vor.u32 %v1368_v14, %v1365_v11  ;;  %v1385_v48 = vsel %vm14300_vm13, %v1380_v5, %v1384_v15  ;;  %v11867_v32 = vcombine.low %v2807_v40, %v2817_v45  ;;  %v14838_v14 = vld [vmem:[#allocation2 + $0x4] sm:$0xf]  ;;  %v13995_v15 = vld [vmem:[#allocation2] sm:$0xf] }
  0xec   : > { %v2838_v1 = vshll.u32 %v14823_v25, 16  ;;  %v471_v41 = vshrl.u32 %v203_v43, 16  ;;  %v474_v29 = vshll.u32 %v203_v43, 16  ;;  %v11721_v51 = vrot.slane %v677_v47, 9 }
  0xed   : > { %v2825_v2 = vor.u32 %v2824_v61, %v2821_v18  ;;  %v1370_v53 = vrot.slane %v1369_v38, 4  ;;  %13024 = vmatmul.mubr.msk.bf16.gmra.mrb[24].mxu1 %vm1439_vm12, %v11867_v32  ;;  %v3210_v58 = vrot.slane %v13918_v44, 2  ;;  %v469_v6 = vrot.slane %v14736_v23, 4  ;;  %v14865_v61 = vld [vmem:[%s19363_s1 + $0xc] ss:$0 sps:$4 sm:$0xcc]  }
  0xee   : > { %v2840_v10 = vrot.slane %v2838_v1, 5  ;;  %v473_v11 = vrot.slane %v471_v41, 7  ;;  %v11774_v62 = vcombine.low %v13995_v15, %v14838_v14  ;;  %v800_v38 = vsel %vm14211_vm8, %v11721_v51, %v799_v22  ;;  %v14852_v22 = vld [vmem:[%s19363_s1 + $0x8] ss:$0 sps:$4 sm:$0xcc]  }
  0xef   : > { %v2826_v59 = vrot.slane %v2825_v2, 4  ;;  %v1375_v5 = vsel %vm14300_vm13, %v1370_v53, %v14792_v52  ;;  %13895 = vmatprep.subr.msk.bf16.mxu1 %vm1488_vm0, %v3210_v58  ;;  %v3260_v44 = vsel %vm1488_vm0, %v3210_v58, 0  ;;  %v643_v52 = vld [vmem:[#allocation2 + $0xc8] sm:$0x1]  ;;  %801 = vst [vmem:[#allocation2 + $0xc0] sm:$0x1] %v800_v38 }
  0xf0   : > { %v11756_v1 = vcombine.low %v1375_v5, %v1385_v48  ;;  %v2841_v43 = vsel %vm14300_vm13, %v2836_v8, %v2840_v10  ;;  %v476_v53 = vor.u32 %v474_v29, %v473_v11  ;;  %13032 = vmatpush3.bf16.msra.mxu1 %v3260_v44  ;;  %v478_v45 = vrot.slane %v473_v11, 4  ;;  %v14868_v48 = vld [vmem:[#allocation2 + $0x10] sm:$0xf]  ;;  %v13997_v32 = vld [vmem:[#allocation2 + $0xc] sm:$0xf] }
  0xf1   : > { %v2831_v23 = vsel %vm14300_vm13, %v2826_v59, %v2830_v46  ;;  %v3635_v47 = vrot.slane %v14852_v22, 2  ;;  %v11775_v2 = vcombine.low %v13997_v32, %v14868_v48  ;;  %v14873_v41 = vld [vmem:[#allocation2 + $0x1c] sm:$0xf]  ;;  %v13999_v29 = vld [vmem:[#allocation2 + $0x18] sm:$0xf]  ;;  %v19371_v11 = vrot.slane %v14865_v61, 2 }
  0xf2   : > { %v11868_v40 = vcombine.low %v2831_v23, %v2841_v43  ;;  %12926 = vmatmul.mubr.msk.bf16.gmra.mrb[28].mxu0 %vm1439_vm12, %v11756_v1  ;;  %v477_v18 = vsel %vm14197_vm6, %v469_v6, %v476_v53  ;;  %v644_v46 = vsel %vm14211_vm8, %v478_v45, %v643_v52  ;;  %v11776_v51 = vcombine.low %v13999_v29, %v14873_v41  ;;  %v14000_v58 = vld [vmem:[%s19363_s1 + $0x4] sm:$0x3]  ;;  %v14900_v32 = vld [vmem:[#allocation2 + $0x34] sm:$0xf] }
  0xf3   : > { %12931 = vmatprep.mubr.msk.bf16.mxu0 %vm1439_vm12, %v11774_v62  ;;  %642 = vst.msk [vmem:[#allocation2 + $0xc4] sm:$0xf] %vm528_vm3, %v477_v18  ;;  %645 = vst [vmem:[#allocation2 + $0xc8] sm:$0x1] %v644_v46  ;;  %13896 = vmatprep.subr.msk.bf16.mxu1 %vm1488_vm0, %v3635_v47  ;;  %v2206_v59 = vsel %vm1488_vm0, %v14000_v58, 0  ;;  %vm1993_vm14 = vcmask 1042432  }
  0xf4   : > { %13027 = vmatprep.mubr.msk.bf16.mxu1 %vm1439_vm12, %v11868_v40  ;;  %v14001_v45 = vld [vmem:[#allocation2 + $0x24] sm:$0xf]  ;;  %v14897_v18 = vld [vmem:[#allocation2 + $0x28] sm:$0xf]  ;;  %vm1994_vm15 = vcmask 1046532   ;;  %v19495_v35 = vmov 0 }
  0xf5   : > { %v11777_v46 = vcombine.low %v14001_v45, %v14897_v18  ;;  %vm14997_vm1 = vmor %vm1993_vm14, %vm1994_vm15  ;;  %v2015_v20 = vrot.slane %v14036_v17, 5 }
  0xf6   : > { %v14871_v8 = vld [vmem:[#allocation2 + $0xc0] sm:$0xf]  ;;  %v19496_v35 = vsel %vm14997_vm1, 4294967295, %v19495_v35 }
  0xf7   : > { %v2843_v10 = vshrl.u32 %v14871_v8, 16  ;;  %v2846_v6 = vshll.u32 %v14871_v8, 16  ;;  %19497 = vst [vmem:[#allocation19_spill] sm:$0xff] %v19496_v35 }
  0xf9   : > { %v2845_v23 = vrot.slane %v2843_v10, 4  ;;  %v2848_v43 = vrot.slane %v2846_v6, 5 }
  0xfa   : > { %12932 = vmatmul.mubr.msk.bf16.vlgmr.msra.gmra.mrb[0].mxu0 %vm1439_vm12, %v11775_v2  ;;  %v821_v5 = vld [vmem:[#allocation2 + $0xc4] sm:$0x8]  ;;  %v944_v38 = vld [vmem:[#allocation2 + $0xc8] sm:$0x1]  ;;  %v14004_v2 = vld [vmem:[#allocation2 + $0x30] sm:$0xf] }
  0xfb   : > { %v14887_v15 = vld [vmem:[#allocation2 + $0xc4] sm:$0xf]  ;;  %12964 = vmatpush3.bf16.msra.mxu0 %v2206_v59  ;;  %v11739_v62 = vrot.slane %v821_v5, 11  ;;  %12935 = vmatprep.mubr.msk.bf16.mxu0 %vm1439_vm12, %v11776_v51  ;;  %v11778_v29 = vcombine.low %v14004_v2, %v14900_v32  ;;  %v2849_v51 = vor.u32 %v2848_v43, %v2845_v23  ;;  %v14010_v2 = vld [vmem:[#allocation2 + $0xc] sm:$0xf] }
  0xfc   : > { %v2852_v44 = vshll.u32 %v14887_v15, 16  ;;  %v2856_v1 = vshrl.u32 %v14887_v15, 16  ;;  %13897 = vmatprep.subr.msk.bf16.mxu0 %vm1488_vm0, %v19371_v11  ;;  %v14981_v11 = vld [vmem:[#allocation2 + $0x6c] sm:$0xf] }
  0xfd   : > { %v945_v53 = vsel %vm14248_vm9, %v11739_v62, %v944_v38  ;;  %v2850_v59 = vrot.slane %v2849_v51, 4  ;;  %v14908_v62 = vld [vmem:[#allocation2 + $0x40] sm:$0xf]  ;;  %v14006_v38 = vld [vmem:[#allocation2 + $0x3c] sm:$0xf] }
  0xfe   : > { %946 = vst [vmem:[#allocation2 + $0xc8] sm:$0x1] %v945_v53  ;;  %v2854_v52 = vrot.slane %v2852_v44, 5  ;;  %v2858_v40 = vrot.slane %v2856_v1, 4  ;;  %v11779_v44 = vcombine.low %v14006_v38, %v14908_v62  ;;  %v14911_v1 = vld [vmem:[#allocation2 + $0x4c] sm:$0xf] }
  0xff   : > { %v14008_v53 = vld [vmem:[#allocation2 + $0x48] sm:$0xf] }
 0x100   : > { %v2859_v58 = vor.u32 %v2858_v40, %v2854_v52  ;;  %v11780_v23 = vcombine.low %v14008_v53, %v14911_v1  ;;  %v2855_v43 = vsel %vm14300_vm13, %v2850_v59, %v2854_v52  ;;  %v14012_v52 = vld [vmem:[#allocation2 + $0x54] sm:$0xf]  ;;  %v14015_v53 = vld [vmem:[#allocation2 + $0x18] sm:$0xf] }
 0x102   : > { %12936 = vmatmul.mubr.msk.bf16.gmra.mrb[4].mxu0 %vm1439_vm12, %v11777_v46  ;;  %v2860_v6 = vrot.slane %v2859_v58, 4  ;;  %v14918_v46 = vld [vmem:[#allocation2 + $0x10] sm:$0xf]  ;;  %v14925_v58 = vld [vmem:[#allocation2 + $0x58] sm:$0xf] }
 0x103   : > { %12939 = vmatprep.mubr.msk.bf16.mxu0 %vm1439_vm12, %v11778_v29  ;;  %v11886_v29 = vcombine.low %v14010_v2, %v14918_v46  ;;  %v11781_v59 = vcombine.low %v14012_v52, %v14925_v58  ;;  %v3685_v2 = vsel %vm1488_vm0, %v3635_v47, 0  ;;  %v14952_v47 = vld [vmem:[#allocation2 + $0x40] sm:$0xf]  ;;  %v3473_v49 = vrot.slane %v14918_v46, 5 }
 0x104   : > { %v11919_v46 = vrot.slane %v3423_v57, 9 }
 0x105   : > { %v14905_v10 = vld [vmem:[#allocation2 + $0xc8] sm:$0x1] }
 0x106   : > { %19494 = vst [vmem:[#allocation18_spill] sm:$0xff] %v14905_v10  ;;  %v2862_v5 = vshll.u32 %v14905_v10, 16 }
 0x108   : > { %v2864_v40 = vrot.slane %v2862_v5, 5  ;;  %v14014_v5 = vld [vmem:[#allocation2 + $0x60] sm:$0xf] }
 0x10a   : > { %v2865_v45 = vsel %vm14300_vm13, %v2860_v6, %v2864_v40  ;;  %12940 = vmatmul.mubr.msk.bf16.gmra.mrb[8].mxu0 %vm1439_vm12, %v11779_v44  ;;  %v14928_v6 = vld [vmem:[#allocation2 + $0x64] sm:$0xf]  ;;  %v14931_v40 = vld [vmem:[#allocation2 + $0x1c] sm:$0xf] }
 0x10b   : > { %v11869_v51 = vcombine.low %v2855_v43, %v2865_v45  ;;  %12943 = vmatprep.mubr.msk.bf16.mxu0 %vm1439_vm12, %v11780_v23  ;;  %v11782_v38 = vcombine.low %v14014_v5, %v14928_v6  ;;  %v11887_v44 = vcombine.low %v14015_v53, %v14931_v40  ;;  %v14017_v23 = vld [vmem:[#allocation2 + $0x24] sm:$0xf]  ;;  %v14934_v43 = vld [vmem:[#allocation2 + $0x28] sm:$0xf]  ;;  %v11784_v5 = vcombine.low %v14572_v56, %v14541_v21  ;;  %v14023_v53 = vld [vmem:[#allocation2 + $0x3c] sm:$0xf] }
 0x10c   : > { %v11888_v45 = vcombine.low %v14017_v23, %v14934_v43  ;;  %v11785_v21 = vcombine.low %v14607_v54, %v14587_v28  ;;  %v14025_v56 = vld [vmem:[#allocation2 + $0x14] sm:$0x1]  ;;  %v14969_v28 = vld [vmem:[#allocation2 + $0x4c] sm:$0xf]  ;;  %v14028_v54 = vld [vmem:[#allocation2 + $0x48] sm:$0xf] }
 0x10d   : > { %13028 = vmatmul.mubr.msk.bf16.gmra.mrb[28].mxu1 %vm1439_vm12, %v11869_v51  ;;  %v14020_v51 = vld [vmem:[#allocation2 + $0x6c] sm:$0xf]  ;;  %v2008_v23 = vrot.slane %v14025_v56, 5  ;;  %v14977_v56 = vld [vmem:[#allocation2 + $0x64] sm:$0xf] }
 0x10e   : > { %13033 = vmatprep.mubr.msk.bf16.mxu1 %vm1439_vm12, %v11886_v29  ;;  %v14944_v29 = vld [vmem:[#allocation2 + $0x70] sm:$0xf] }
 0x10f   : > { %v11783_v52 = vcombine.low %v14020_v51, %v14944_v29  ;;  %v1998_v51 = vrot.slane %v14838_v14, 5 }
 0x111   : > { %v2000_v13 = vrot.slane %v1998_v51, 4 }
 0x112   : > { %12944 = vmatmul.mubr.msk.bf16.gmra.mrb[12].mxu0 %vm1439_vm12, %v11781_v59  ;;  %v14949_v59 = vld [vmem:[#allocation2 + $0x34] sm:$0xf] }
 0x113   : > { %12947 = vmatprep.mubr.msk.bf16.mxu0 %vm1439_vm12, %v11782_v38  ;;  %v14022_v38 = vld [vmem:[#allocation2 + $0x30] sm:$0xf] }
 0x114   : > { %v11889_v22 = vcombine.low %v14022_v38, %v14949_v59  ;;  %v2005_v38 = vrot.slane %v14868_v48, 5  ;;  %v14975_v48 = vld [vmem:[#allocation2 + $0x60] sm:$0xf] }
 0x115   : > { %13034 = vmatmul.mubr.msk.bf16.vlgmr.msra.gmra.mrb[0].mxu1 %vm1439_vm12, %v11887_v44  ;;  %v11890_v44 = vcombine.low %v14023_v53, %v14952_v47  ;;  %v2012_v53 = vrot.slane %v14873_v41, 5  ;;  %v14983_v41 = vld [vmem:[#allocation2 + $0x70] sm:$0xf] }
 0x116   : > { %13037 = vmatprep.mubr.msk.bf16.mxu1 %vm1439_vm12, %v11888_v45  ;;  %13066 = vmatpush3.bf16.msra.mxu1 %v3685_v2  ;;  %v11786_v45 = vcombine.low %v14643_v3, %v14620_v9  ;;  %v1945_v2 = vld [vmem:[#allocation2] sm:$0xe]  ;;  %v14972_v9 = vld [vmem:[#allocation2 + $0x58] sm:$0xf]  ;;  %v14030_v3 = vld [vmem:[#allocation2 + $0x54] sm:$0xf] }
 0x117   : > { %v11892_v14 = vcombine.low %v14030_v3, %v14972_v9  ;;  %v2007_v3 = vrot.slane %v2005_v38, 4  ;;  %v2014_v27 = vrot.slane %v2012_v53, 4 }
 0x11a   : > { %12948 = vmatmul.mubr.msk.bf16.gmra.mrb[16].mxu0 %vm1439_vm12, %v11783_v52  ;;  %v14965_v52 = vld [vmem:[#allocation2 + $0x20] sm:$0x1] }
 0x11b   : > { %12951 = vmatprep.mubr.msk.bf16.mxu0 %vm1439_vm12, %v11784_v5  ;;  %v11806_v5 = vrot.slane %v1945_v2, 9  ;;  %v11788_v2 = vcombine.low %v14766_v31, %v14734_v16  ;;  %v3480_v31 = vrot.slane %v14931_v40, 5  ;;  %v15038_v40 = vsel %vm14997_vm1, %v2014_v27, %v2015_v20 }
 0x11d   : > { %13038 = vmatmul.mubr.msk.bf16.gmra.mrb[4].mxu1 %vm1439_vm12, %v11889_v22  ;;  %v1946_v22 = vld [vmem:[#allocation2 + $0xc] sm:$0xe]  ;;  %v3482_v27 = vrot.slane %v3480_v31, 4 }
 0x11e   : > { %13041 = vmatprep.mubr.msk.bf16.mxu1 %vm1439_vm12, %v11890_v44  ;;  %v11891_v44 = vcombine.low %v14028_v54, %v14969_v28  ;;  %v1947_v54 = vld [vmem:[#allocation2 + $0x18] sm:$0xe]  ;;  %v11807_v25 = vrot.slane %v1946_v22, 9  ;;  %v2019_v22 = vrot.slane %v14897_v18, 5 }
 0x11f   : > { %v11808_v30 = vrot.slane %v1947_v54, 9  ;;  %v1948_v54 = vld [vmem:[#allocation2 + $0x24] sm:$0xe] }
 0x120   : > { %v15026_v18 = vsel %vm14997_vm1, %v11807_v25, %v2005_v38  ;;  %v11809_v17 = vrot.slane %v1948_v54, 9  ;;  %v2021_v39 = vrot.slane %v2019_v22, 4  ;;  %v14038_v25 = vld [vmem:[#allocation2 + $0x2c] sm:$0x1]  ;;  %v15061_v54 = vsel %vm14997_vm1, %v11919_v46, %v3473_v49 }
 0x121   : > { %v2022_v38 = vrot.slane %v14038_v25, 5  ;;  %v2033_v25 = vrot.slane %v14908_v62, 5  ;;  %v3494_v62 = vrot.slane %v14949_v59, 5 }
 0x122   : > { %12952 = vmatmul.mubr.msk.bf16.gmra.mrb[20].mxu0 %vm1439_vm12, %v11785_v21  ;;  %v14035_v21 = vld [vmem:[#allocation2 + $0x8] sm:$0x1] }
 0x123   : > { %12955 = vmatprep.mubr.msk.bf16.mxu0 %vm1439_vm12, %v11786_v45  ;;  %v2001_v10 = vrot.slane %v14035_v21, 5  ;;  %v3424_v45 = vld [vmem:[#allocation2 + $0x18] sm:$0xe] }
 0x124   : > { %v11920_v16 = vrot.slane %v3424_v45, 9  ;;  %v2026_v45 = vrot.slane %v14900_v32, 5  ;;  %v19499_v32 = vcombine.low %v14975_v48, %v14977_v56  ;;  %v19500_v48 = vcombine.low %v14981_v11, %v14983_v41 }
 0x125   : > { %13042 = vmatmul.mubr.msk.bf16.gmra.mrb[8].mxu1 %vm1439_vm12, %v11891_v44  ;;  %v15017_v44 = vsel %vm14997_vm1, %v11806_v5, %v1998_v51  ;;  %v15022_v21 = vsel %vm14997_vm1, %v2000_v13, %v2001_v10  ;;  %v15034_v51 = vsel %vm14997_vm1, %v11808_v30, %v2012_v53  ;;  %v3475_v5 = vrot.slane %v3473_v49, 4  ;;  %v14037_v13 = vld [vmem:[#allocation2 + $0x14] sm:$0x1] }
 0x126   : > { %13045 = vmatprep.mubr.msk.bf16.mxu1 %vm1439_vm12, %v11892_v14  ;;  %v15030_v14 = vsel %vm14997_vm1, %v2007_v3, %v2008_v23  ;;  %v3476_v10 = vrot.slane %v14037_v13, 5  ;;  %v11822_v57 = vcombine.low %v15017_v44, %v15022_v21  ;;  %v19498_v23 = vrot.slane %v14865_v61, 2  ;;  %v1949_v3 = vld [vmem:[#allocation2 + $0x30] sm:$0xe]  ;;  %v3425_v21 = vld [vmem:[#allocation2 + $0x24] sm:$0xe] }
 0x127   : > { %v3487_v44 = vrot.slane %v14934_v43, 5  ;;  %v1950_v13 = vld [vmem:[#allocation2 + $0x3c] sm:$0xe]  ;;  %v15074_v43 = vsel %vm14997_vm1, %v11809_v17, %v2019_v22  ;;  %v15078_v49 = vsel %vm14997_vm1, %v2021_v39, %v2022_v38  ;;  %v15082_v46 = vsel %vm14997_vm1, %v11920_v16, %v3480_v31  ;;  %v14039_v17 = vld [vmem:[#allocation2 + $0x38] sm:$0x1] }
 0x128   : > { %v15048_v20 = vsel %vm1488_vm0, %v19498_v23, 0  ;;  %v11810_v39 = vrot.slane %v1949_v3, 9  ;;  %v2029_v38 = vrot.slane %v14039_v17, 5  ;;  %v11921_v23 = vrot.slane %v3425_v21, 9  ;;  %v14042_v3 = vld [vmem:[#allocation2 + $0x38] sm:$0x1] }
 0x129   : > { %v2028_v16 = vrot.slane %v2026_v45, 4  ;;  %v3489_v31 = vrot.slane %v3487_v44, 4  ;;  %v11811_v59 = vrot.slane %v1950_v13, 9  ;;  %v2035_v30 = vrot.slane %v2033_v25, 4  ;;  %v1951_v17 = vld [vmem:[#allocation2 + $0x48] sm:$0xe] }
 0x12a   : > { %12956 = vmatmul.mubr.msk.bf16.gmra.mrb[24].mxu0 %vm1439_vm12, %v11787_v26  ;;  %v3497_v53 = vrot.slane %v14042_v3, 5  ;;  %v2040_v21 = vrot.slane %v14911_v1, 5  ;;  %v3427_v3 = vld [vmem:[#allocation2 + $0x3c] sm:$0xe]  ;;  %v3501_v11 = vrot.slane %v14952_v47, 5 }
 0x12b   : > { %12959 = vmatprep.mubr.msk.bf16.mxu0 %vm1439_vm12, %v11788_v2  ;;  %v15065_v2 = vsel %vm14997_vm1, %v3475_v5, %v3476_v10  ;;  %v3426_v5 = vld [vmem:[#allocation2 + $0x30] sm:$0xe]  ;;  %v19501_v10 = vrot.slane %v14965_v52, 5  ;;  %v1952_v1 = vld [vmem:[#allocation2 + $0x54] sm:$0xe] }
 0x12c   : > { %v11922_v52 = vrot.slane %v3426_v5, 9  ;;  %v15108_v5 = vsel %vm14997_vm1, %v11810_v39, %v2026_v45  ;;  %v15126_v45 = vsel %vm14997_vm1, %v11811_v59, %v2033_v25  ;;  %v11812_v39 = vrot.slane %v1951_v17, 9  ;;  %v14044_v59 = vld [vmem:[#allocation2 + $0x44] sm:$0x1]  ;;  %v14045_v17 = vld [vmem:[#allocation2 + $0x5c] sm:$0x1] }
 0x12d   : > { %13046 = vmatmul.mubr.msk.bf16.gmra.mrb[12].mxu1 %vm1439_vm12, %v19499_v32  ;;  %v15093_v22 = vsel %vm14997_vm1, %v3482_v27, %v19501_v10  ;;  %v14040_v32 = vld [vmem:[#allocation2 + $0x2c] sm:$0x1]  ;;  %v11825_v27 = vcombine.low %v15074_v43, %v15078_v49  ;;  %v3496_v10 = vrot.slane %v3494_v62, 4  ;;  %v14052_v13 = vld [vmem:[#allocation2 + $0x80] sm:$0x1] }
 0x12e   : > { %13049 = vmatprep.mubr.msk.bf16.mxu1 %vm1439_vm12, %v19500_v48  ;;  %v3490_v26 = vrot.slane %v14040_v32, 5  ;;  %v14041_v48 = vld [vmem:[#allocation2 + $0x44] sm:$0x1]  ;;  %v19502_v32 = vcombine.low %v14806_v24, %v14762_v12  ;;  %v15118_v24 = vsel %vm14997_vm1, %v2028_v16, %v2029_v38  ;;  %v14043_v38 = vld [vmem:[#allocation2 + $0x50] sm:$0x1]  ;;  %v11923_v16 = vrot.slane %v3427_v3, 9 }
 0x12f   : > { %v2036_v61 = vrot.slane %v14041_v48, 5  ;;  %v15112_v48 = vsel %vm14997_vm1, %v11921_v23, %v3487_v44  ;;  %v2047_v44 = vrot.slane %v14925_v58, 5  ;;  %v2043_v23 = vrot.slane %v14043_v38, 5 }
 0x130   : > { %v15143_v25 = vsel %vm14997_vm1, %v3496_v10, %v3497_v53  ;;  %v2042_v58 = vrot.slane %v2040_v21, 4  ;;  %v2050_v3 = vrot.slane %v14045_v17, 5  ;;  %v2061_v53 = vrot.slane %v14944_v29, 5 }
 0x131   : > { %v15131_v47 = vsel %vm14997_vm1, %v2035_v30, %v2036_v61  ;;  %v11813_v30 = vrot.slane %v1952_v1, 9  ;;  %v19504_v61 = vcombine.low %v14609_v19, %v14596_v0  ;;  %v2049_v10 = vrot.slane %v2047_v44, 4  ;;  %v1953_v1 = vld [vmem:[#allocation2 + $0x60] sm:$0xe] }
 0x132   : > { %12960 = vmatmul.mubr.msk.bf16.gmra.mrb[28].mxu0 %vm1439_vm12, %v19502_v32  ;;  %v15122_v32 = vsel %vm14997_vm1, %v3489_v31, %v3490_v26  ;;  %v19503_v26 = vcombine.low %v14577_v63, %v14549_v37  ;;  %v3503_v31 = vrot.slane %v3501_v11, 4  ;;  %v3504_v37 = vrot.slane %v14044_v59, 5  ;;  %v3428_v63 = vld [vmem:[#allocation2 + $0x48] sm:$0xe] }
 0x133   : > { %12965 = vmatprep.mubr.msk.bf16.mxu0 %vm1439_vm12, %v11822_v57  ;;  %v15135_v57 = vsel %vm14997_vm1, %v11922_v52, %v3494_v62  ;;  %v11826_v62 = vcombine.low %v15108_v5, %v15118_v24  ;;  %v3508_v52 = vrot.slane %v14969_v28, 5  ;;  %v2054_v0 = vrot.slane %v14928_v6, 5  ;;  %v3429_v28 = vld [vmem:[#allocation2 + $0x54] sm:$0xe]  ;;  %v1957_v24 = vld [vmem:[#allocation2 + $0x90] sm:$0xe] }
 0x134   : > { %v11827_v19 = vcombine.low %v15126_v45, %v15131_v47  ;;  %v15166_v59 = vsel %vm14997_vm1, %v2042_v58, %v2043_v23  ;;  %v15170_v6 = vsel %vm14997_vm1, %v11923_v16, %v3501_v11  ;;  %v15174_v17 = vsel %vm14997_vm1, %v11813_v30, %v2047_v44  ;;  %v14046_v23 = vld [vmem:[#allocation2 + $0x50] sm:$0x1]  ;;  %v14047_v30 = vld [vmem:[#allocation2 + $0x68] sm:$0x1] }
 0x135   : > { %13050 = vmatmul.mubr.msk.bf16.gmra.mrb[16].mxu1 %vm1439_vm12, %v19503_v26  ;;  %v15161_v26 = vsel %vm14997_vm1, %v11812_v39, %v2040_v21  ;;  %v11924_v38 = vrot.slane %v3428_v63, 9  ;;  %v15179_v21 = vld [vmem:[%s19363_s1 + $0xc] sm:$0x3]  ;;  %v15187_v39 = vsel %vm14997_vm1, %v3503_v31, %v3504_v37  ;;  %v3510_v11 = vrot.slane %v3508_v52, 4 }
 0x136   : > { %13053 = vmatprep.mubr.msk.bf16.mxu1 %vm1439_vm12, %v19504_v61  ;;  %v3515_v61 = vrot.slane %v14972_v9, 5  ;;  %v19505_v9 = vcombine.low %v15026_v18, %v15030_v14  ;;  %v3511_v58 = vrot.slane %v14046_v23, 5  ;;  %v11814_v44 = vrot.slane %v1953_v1, 9  ;;  %v1954_v37 = vld [vmem:[#allocation2 + $0x6c] sm:$0xe] }
 0x137   : > { %v19506_v16 = vcombine.low %v15034_v51, %v15038_v40  ;;  %v15196_v18 = vsel %vm14997_vm1, %v2049_v10, %v2050_v3  ;;  %v2056_v14 = vrot.slane %v2054_v0, 4  ;;  %v2057_v63 = vrot.slane %v14047_v30, 5  ;;  %v14048_v23 = vld [vmem:[#allocation2 + $0x5c] sm:$0x1]  ;;  %v3430_v3 = vld [vmem:[#allocation2 + $0x60] sm:$0xe] }
 0x138   : > { %v11925_v31 = vrot.slane %v3429_v28, 9  ;;  %v3517_v1 = vrot.slane %v3515_v61, 4  ;;  %v19507_v51 = vcombine.low %v14645_v60, %v14638_v50  ;;  %v15211_v10 = vsel %vm14997_vm1, %v11924_v38, %v3508_v52 }
 0x139   : > { %v3522_v28 = vrot.slane %v14977_v56, 5  ;;  %v19508_v30 = vcombine.low %v14718_v7, %v14692_v33  ;;  %v15222_v60 = vsel %vm14997_vm1, %v3510_v11, %v3511_v58  ;;  %v15226_v52 = vsel %vm14997_vm1, %v11814_v44, %v2054_v0  ;;  %v1955_v56 = vld [vmem:[#allocation2 + $0x78] sm:$0xe]  ;;  %v14050_v7 = vld [vmem:[#allocation2 + $0x74] sm:$0x1] }
 0x13a   : > { %12966 = vmatmul.mubr.msk.bf16.vlgmr.msra.gmra.mrb[0].mxu0 %vm1439_vm12, %v19505_v9  ;;  %v11828_v9 = vcombine.low %v15161_v26, %v15166_v59  ;;  %v11815_v38 = vrot.slane %v1954_v37, 9  ;;  %v15234_v33 = vsel %vm14997_vm1, %v11925_v31, %v3515_v61  ;;  %v3529_v11 = vrot.slane %v14983_v41, 5  ;;  %v14051_v37 = vld [vmem:[#allocation2 + $0x68] sm:$0x1]  ;;  %v14062_v26 = vld [vmem:[#allocation2 + $0x8c] sm:$0x1] }
 0x13b   : > { %13100 = vmatpush3.bf16.msra.mxu0 %v15048_v20  ;;  %12969 = vmatprep.mubr.msk.bf16.mxu0 %vm1439_vm12, %v19506_v16  ;;  %v3518_v20 = vrot.slane %v14048_v23, 5  ;;  %v14049_v16 = vld [vmem:[#allocation2 + $0x7c] sm:$0xf]  ;;  %v15230_v23 = vsel %vm14997_vm1, %v2056_v14, %v2057_v63  ;;  %v2063_v0 = vrot.slane %v2061_v53, 4  ;;  %v11926_v44 = vrot.slane %v3430_v3, 9 }
 0x13c   : > { %13898 = vmatprep.subr.msk.bf16.mxu0 %vm1488_vm0, %v15179_v21  ;;  %v2068_v29 = vrot.slane %v14049_v16, 5  ;;  %v3431_v16 = vld [vmem:[#allocation2 + $0x6c] sm:$0xe]  ;;  %v3524_v40 = vrot.slane %v3522_v28, 4  ;;  %v11816_v14 = vrot.slane %v1955_v56, 9  ;;  %v2071_v50 = vrot.slane %v14052_v13, 5 }
 0x13d   : > { %13054 = vmatmul.mubr.msk.bf16.gmra.mrb[20].mxu1 %vm1439_vm12, %v19507_v51  ;;  %v2064_v51 = vrot.slane %v14050_v7, 5  ;;  %v15239_v58 = vsel %vm14997_vm1, %v3517_v1, %v3518_v20  ;;  %v11830_v61 = vcombine.low %v15226_v52, %v15230_v23  ;;  %v11927_v31 = vrot.slane %v3431_v16, 9  ;;  %v1956_v1 = vld [vmem:[#allocation2 + $0x84] sm:$0xe]  ;;  %v14053_v20 = vld [vmem:[#allocation2 + $0x88] sm:$0xf] }
 0x13e   : > { %13057 = vmatprep.mubr.msk.bf16.mxu1 %vm1439_vm12, %v19508_v30  ;;  %v3525_v30 = vrot.slane %v14051_v37, 5  ;;  %v2070_v63 = vrot.slane %v2068_v29, 4  ;;  %v2075_v3 = vrot.slane %v14053_v20, 5  ;;  %v15255_v43 = vsel %vm14997_vm1, %v11815_v38, %v2061_v53  ;;  %v3432_v56 = vld [vmem:[#allocation2 + $0x78] sm:$0xe] }
 0x13f   : > { %v3531_v49 = vrot.slane %v3529_v11, 4  ;;  %v14055_v7 = vld [vmem:[#allocation2 + $0x7c] sm:$0xf]  ;;  %v15261_v20 = vsel %vm14997_vm1, %v2063_v0, %v2064_v51  ;;  %v15265_v5 = vsel %vm14997_vm1, %v11926_v44, %v3522_v28  ;;  %v19509_v38 = vcombine.low %v14770_v36, %v14739_v34 }
 0x140   : > { %v3536_v37 = vrot.slane %v14055_v7, 5  ;;  %v15277_v51 = vsel %vm14997_vm1, %v11816_v14, %v2068_v29  ;;  %v15281_v28 = vsel %vm14997_vm1, %v2070_v63, %v2071_v50  ;;  %v11817_v0 = vrot.slane %v1956_v1, 9  ;;  %v14058_v14 = vld [vmem:[#allocation2 + $0x80] sm:$0x1] }
 0x141   : > { %v19510_v44 = vcombine.low %v14811_v55, %v14785_v4  ;;  %v15289_v36 = vsel %vm14997_vm1, %v11927_v31, %v3529_v11  ;;  %v3539_v63 = vrot.slane %v14058_v14, 5  ;;  %v11818_v1 = vrot.slane %v1957_v24, 9  ;;  %v3433_v11 = vld [vmem:[#allocation2 + $0x84] sm:$0xe]  ;;  %v14060_v31 = vld [vmem:[#allocation2 + $0x88] sm:$0xf] }
 0x142   : > { %12970 = vmatmul.mubr.msk.bf16.gmra.mrb[4].mxu0 %vm1439_vm12, %v11825_v27  ;;  %v14054_v27 = vld [vmem:[#allocation2 + $0x74] sm:$0x1]  ;;  %v3538_v50 = vrot.slane %v3536_v37, 4  ;;  %v3543_v41 = vrot.slane %v14060_v31, 5  ;;  %v1958_v24 = vld [vmem:[#allocation2 + $0x9c] sm:$0xe]  ;;  %v19522_v52 = vcombine.low %v15082_v46, %v15093_v22 }
 0x143   : > { %12973 = vmatprep.mubr.msk.bf16.mxu0 %vm1439_vm12, %v11826_v62  ;;  %v3532_v13 = vrot.slane %v14054_v27, 5  ;;  %v14056_v62 = vld [vmem:[#allocation2 + $0x94] sm:$0xf]  ;;  %v15273_v27 = vsel %vm14997_vm1, %v3524_v40, %v3525_v30  ;;  %v2077_v40 = vrot.slane %v2075_v3, 4  ;;  %v14057_v30 = vld [vmem:[#allocation2 + $0x8c] sm:$0x1] }
 0x144   : > { %v2082_v53 = vrot.slane %v14056_v62, 5  ;;  %v2078_v7 = vrot.slane %v14057_v30, 5  ;;  %v11928_v62 = vrot.slane %v3432_v56, 9  ;;  %v2089_v30 = vrot.slane %v14684_v42, 5 }
 0x145   : > { %13058 = vmatmul.mubr.msk.bf16.gmra.mrb[24].mxu1 %vm1439_vm12, %v19509_v38  ;;  %v15293_v29 = vsel %vm14997_vm1, %v3531_v49, %v3532_v13  ;;  %v15303_v13 = vsel %vm14997_vm1, %v11817_v0, %v2075_v3  ;;  %v3434_v3 = vld [vmem:[#allocation2 + $0x90] sm:$0xe]  ;;  %v14061_v0 = vld [vmem:[#allocation2 + $0x94] sm:$0xf]  ;;  %v15326_v42 = vsel %vm14997_vm1, %v3538_v50, %v3539_v63  ;;  %v11929_v47 = vrot.slane %v3433_v11, 9 }
 0x146   : > { %13061 = vmatprep.mubr.msk.bf16.mxu1 %vm1439_vm12, %v19510_v44  ;;  %v2084_v38 = vrot.slane %v2082_v53, 4  ;;  %v14059_v44 = vld [vmem:[#allocation2 + $0x98] sm:$0x1]  ;;  %v15318_v31 = vsel %vm14997_vm1, %v11928_v62, %v3536_v37  ;;  %v3550_v56 = vrot.slane %v14061_v0, 5  ;;  %v15330_v45 = vsel %vm14997_vm1, %v11818_v1, %v2082_v53  ;;  %v19511_v37 = vld [vmem:[#allocation11_spill] sm:$0xff]  ;;  %v19515_v53 = vld [vmem:[#allocation14_spill] sm:$0xff] }
 0x147   : > { %v2085_v16 = vrot.slane %v14059_v44, 5  ;;  %v15314_v44 = vsel %vm14997_vm1, %v2077_v40, %v2078_v7  ;;  %v2096_v40 = vrot.slane %v19511_v37, 5  ;;  %v3545_v62 = vrot.slane %v3543_v41, 4  ;;  %v19513_v1 = vld [vmem:[#allocation12_spill] sm:$0xff] }
 0x148   : > { %v3546_v59 = vrot.slane %v14062_v26, 5  ;;  %v19512_v50 = vcombine.low %v14871_v8, %v14887_v15  ;;  %v2091_v63 = vrot.slane %v2089_v30, 4  ;;  %v2092_v11 = vrot.slane %v19513_v1, 5  ;;  %v14063_v37 = vld [vmem:[#allocation2 + $0x98] sm:$0x1] }
 0x149   : > { %v15335_v7 = vsel %vm14997_vm1, %v2084_v38, %v2085_v16  ;;  %v11930_v0 = vrot.slane %v3434_v3, 9  ;;  %v19514_v16 = vcombine.low %v15061_v54, %v15065_v2  ;;  %v3553_v8 = vrot.slane %v14063_v37, 5  ;;  %v3435_v1 = vld [vmem:[#allocation2 + $0x9c] sm:$0xe]  ;;  %v14064_v3 = vld [vmem:[#allocation2 + $0xa0] sm:$0xf] }
 0x14a   : > { %12974 = vmatmul.mubr.msk.bf16.gmra.mrb[8].mxu0 %vm1439_vm12, %v11827_v19  ;;  %v1959_v19 = vld [vmem:[#allocation2 + $0xa8] sm:$0xe]  ;;  %v2098_v14 = vrot.slane %v2096_v40, 4  ;;  %v2099_v49 = vrot.slane %v19515_v53, 5  ;;  %v3557_v55 = vrot.slane %v14064_v3, 5  ;;  %v15355_v54 = vsel %vm14997_vm1, %v11929_v47, %v3543_v41 }
 0x14b   : > { %12977 = vmatprep.mubr.msk.bf16.mxu0 %vm1439_vm12, %v11828_v9  ;;  %v11819_v9 = vrot.slane %v1958_v24, 9  ;;  %v3552_v24 = vrot.slane %v3550_v56, 4  ;;  %v11820_v26 = vrot.slane %v1959_v19, 9  ;;  %v15359_v2 = vsel %vm14997_vm1, %v3545_v62, %v3546_v59  ;;  %v3436_v41 = vld [vmem:[#allocation2 + $0xa8] sm:$0xe] }
 0x14c   : > { %v2103_v37 = vrot.slane %v14762_v12, 5  ;;  %v15368_v53 = vsel %vm14997_vm1, %v2091_v63, %v2092_v11  ;;  %v15372_v3 = vsel %vm14997_vm1, %v11930_v0, %v3550_v56  ;;  %v3564_v47 = vrot.slane %v14739_v34, 5  ;;  %v3437_v62 = vld [vmem:[#allocation2 + $0xb4] sm:$0xe]  ;;  %v19517_v63 = vld [vmem:[#allocation13_spill] sm:$0xff]  ;;  %v19519_v0 = vld [vmem:[#allocation16_spill] sm:$0xff] }
 0x14d   : > { %13062 = vmatmul.mubr.msk.bf16.gmra.mrb[28].mxu1 %vm1439_vm12, %v19512_v50  ;;  %v15363_v19 = vsel %vm14997_vm1, %v11819_v9, %v2089_v30  ;;  %v3571_v59 = vrot.slane %v14785_v4, 5  ;;  %v19516_v30 = vcombine.low %v15174_v17, %v15196_v18  ;;  %v15382_v12 = vsel %vm14997_vm1, %v3552_v24, %v3553_v8  ;;  %v15389_v34 = vld [vmem:[#allocation2 + $0x18] sm:$0xf] }
 0x14e   : > { %13067 = vmatprep.mubr.msk.bf16.mxu1 %vm1439_vm12, %v19514_v16  ;;  %v1960_v16 = vld [vmem:[#allocation2 + $0xb4] sm:$0xe]  ;;  %v15386_v9 = vsel %vm14997_vm1, %v11820_v26, %v2096_v40  ;;  %v11931_v56 = vrot.slane %v3435_v1, 9  ;;  %v3560_v11 = vrot.slane %v19517_v63, 5  ;;  %19518 = vst [vmem:[#allocation11_spill] sm:$0xff] %v15389_v34  ;;  %v15397_v4 = vsel %vm14997_vm1, %v2098_v14, %v2099_v49  ;;  %v19523_v49 = vld [vmem:[#allocation17_spill] sm:$0xff] }
 0x14f   : > { %v3559_v17 = vrot.slane %v3557_v55, 4  ;;  %v11821_v18 = vrot.slane %v1960_v16, 9  ;;  %v2106_v24 = vrot.slane %v19519_v0, 5  ;;  %v15400_v40 = vld [vmem:[#allocation2 + $0x1c] sm:$0xf]  ;;  %v2105_v8 = vrot.slane %v2103_v37, 4 }
 0x150   : > { %19520 = vst [vmem:[#allocation12_spill] sm:$0xff] %v15400_v40  ;;  %v11932_v26 = vrot.slane %v3436_v41, 9  ;;  %v19521_v1 = vld [vmem:[#allocation15_spill] sm:$0xff]  ;;  %v11933_v63 = vrot.slane %v3437_v62, 9  ;;  %v3566_v23 = vrot.slane %v3564_v47, 4  ;;  %v3574_v14 = vrot.slane %v19523_v49, 5 }
 0x151   : > { %v4027_v16 = vshrl.u32 %v15389_v34, 16  ;;  %v19524_v0 = vcombine.low %v15112_v48, %v15122_v32  ;;  %v4030_v62 = vshll.u32 %v15389_v34, 16  ;;  %v4036_v46 = vshll.u32 %v15400_v40, 16  ;;  %v15428_v49 = vld [vmem:[#allocation2 + $0x20] sm:$0x1] }
 0x152   : > { %12978 = vmatmul.mubr.msk.bf16.gmra.mrb[12].mxu0 %vm1439_vm12, %v19516_v30  ;;  %v3567_v30 = vrot.slane %v19521_v1, 5  ;;  %v4040_v22 = vshrl.u32 %v15400_v40, 16  ;;  %v15426_v32 = vsel %vm14997_vm1, %v11931_v56, %v3557_v55  ;;  %19525 = vst [vmem:[#allocation14_spill] sm:$0xff] %v15428_v49  ;;  %v15436_v41 = vsel %vm14997_vm1, %v11821_v18, %v2103_v37  ;;  %v15446_v55 = vld [vmem:[#allocation2 + $0x24] sm:$0xf] }
 0x153   : > { %12981 = vmatprep.mubr.msk.bf16.mxu0 %vm1439_vm12, %v11830_v61  ;;  %v3573_v61 = vrot.slane %v3571_v59, 4  ;;  %v15444_v38 = vsel %vm14997_vm1, %v11932_v26, %v3564_v47  ;;  %19526 = vst [vmem:[#allocation13_spill] sm:$0xff] %v15446_v55  ;;  %v15460_v18 = vld [vmem:[#allocation2 + $0x28] sm:$0xf]  ;;  %v19529_v47 = vcombine.low %v15255_v43, %v15261_v20  ;;  %v15468_v26 = vrot.slane %v4036_v46, 5 }
 0x154   : > { %v15450_v56 = vsel %vm14997_vm1, %v3566_v23, %v3567_v30  ;;  %19527 = vst [vmem:[#allocation16_spill] sm:$0xff] %v15460_v18  ;;  %v4042_v30 = vrot.slane %v4040_v22, 4  ;;  %v19531_v23 = vcombine.low %v15277_v51, %v15281_v28  ;;  %v15481_v20 = vld [vmem:[#allocation2 + $0xc0] sm:$0xe]  ;;  %v4060_v28 = vshll.u32 %v15460_v18, 16 }
 0x155   : > { %13068 = vmatmul.mubr.msk.bf16.vlgmr.msra.gmra.mrb[0].mxu1 %vm1439_vm12, %v19522_v52  ;;  %v15440_v52 = vsel %vm14997_vm1, %v2105_v8, %v2106_v24  ;;  %v15458_v37 = vsel %vm14997_vm1, %v3573_v61, %v3574_v14  ;;  %v15462_v24 = vld [vmem:[#allocation2 + $0x30] sm:$0xf]  ;;  %v4032_v8 = vrot.slane %v4030_v62, 5  ;;  %v4051_v14 = vshrl.u32 %v15446_v55, 16  ;;  %v15491_v22 = vld [vmem:[#allocation2 + $0x3c] sm:$0xf] }
 0x156   : > { %13071 = vmatprep.mubr.msk.bf16.mxu1 %vm1439_vm12, %v19524_v0  ;;  %v15432_v0 = vsel %vm14997_vm1, %v3559_v17, %v3560_v11  ;;  %v15454_v11 = vsel %vm14997_vm1, %v11933_v63, %v3571_v59  ;;  %v4029_v17 = vrot.slane %v4027_v16, 4  ;;  %19528 = vst [vmem:[#allocation15_spill] sm:$0xff] %v15462_v24  ;;  %v4046_v59 = vshll.u32 %v15428_v49, 16  ;;  %v15471_v63 = vld [vmem:[#allocation2 + $0x34] sm:$0xf]  ;;  %19532 = vst [vmem:[#allocation20_spill] sm:$0xff] %v15491_v22 }
 0x157   : > { %19530 = vst [vmem:[#allocation17_spill] sm:$0xff] %v15471_v63  ;;  %v4054_v16 = vshll.u32 %v15446_v55, 16  ;;  %v4064_v46 = vshrl.u32 %v15460_v18, 16  ;;  %v4078_v61 = vshll.u32 %v15462_v24, 16  ;;  %v4084_v62 = vshll.u32 %v15471_v63, 16 }
 0x158   : > { %v4088_v43 = vshrl.u32 %v15471_v63, 16  ;;  %v15501_v51 = vld [vmem:[#allocation2 + $0x40] sm:$0xf]  ;;  %v19534_v48 = vcombine.low %v15170_v6, %v15187_v39  ;;  %v4033_v1 = vor.u32 %v4032_v8, %v4029_v17  ;;  %v4053_v50 = vrot.slane %v4051_v14, 4  ;;  %v15513_v55 = vld [vmem:[#allocation2 + $0x2c] sm:$0x1] }
 0x159   : > { %v4056_v49 = vrot.slane %v4054_v16, 5  ;;  %v4102_v63 = vshll.u32 %v15491_v22, 16  ;;  %19535 = vst [vmem:[#allocation21_spill] sm:$0xff] %v15513_v55  ;;  %v15515_v18 = vrot.slane %v4060_v28, 5  ;;  %v4066_v6 = vrot.slane %v4064_v46, 4 }
 0x15a   : > { %12982 = vmatmul.mubr.msk.bf16.gmra.mrb[16].mxu0 %vm1439_vm12, %v19529_v47  ;;  %v19533_v47 = vcombine.low %v15135_v57, %v15143_v25  ;;  %v4043_v57 = vor.u32 %v4042_v30, %v15468_v26  ;;  %v15508_v25 = vrot.slane %v4046_v59, 5  ;;  %v4108_v39 = vshll.u32 %v15501_v51, 16  ;;  %v15529_v40 = vld [vmem:[#allocation2 + $0x38] sm:$0x1] }
 0x15b   : > { %12985 = vmatprep.mubr.msk.bf16.mxu0 %vm1439_vm12, %v19531_v23  ;;  %v4075_v23 = vshrl.u32 %v15462_v24, 16  ;;  %v4099_v24 = vshrl.u32 %v15491_v22, 16  ;;  %v4080_v8 = vrot.slane %v4078_v61, 5  ;;  %v15519_v30 = vrot.slane %v4084_v62, 5  ;;  %v19538_v22 = vld [vmem:[#allocation18_spill] sm:$0xff] }
 0x15c   : > { %v4090_v59 = vrot.slane %v4088_v43, 4  ;;  %v19537_v14 = vcombine.low %v15303_v13, %v15314_v44  ;;  %v4034_v16 = vrot.slane %v4033_v1, 4  ;;  %v4044_v28 = vrot.slane %v4043_v57, 4  ;;  %19539 = vst [vmem:[#allocation18_spill] sm:$0xff] %v15529_v40  ;;  %v15536_v44 = vld [vmem:[#allocation2 + $0x4c] sm:$0xf] }
 0x15d   : > { %13072 = vmatmul.mubr.msk.bf16.gmra.mrb[4].mxu1 %vm1439_vm12, %v19533_v47  ;;  %v11934_v47 = vrot.slane %v15481_v20, 9  ;;  %v4077_v17 = vrot.slane %v4075_v23, 4  ;;  %v15521_v20 = vld [vmem:[#allocation2 + $0x48] sm:$0xf]  ;;  %v3578_v46 = vrot.slane %v14887_v15, 5  ;;  %v3581_v34 = vrot.slane %v19538_v22, 5 }
 0x15e   : > { %13075 = vmatprep.mubr.msk.bf16.mxu1 %vm1439_vm12, %v19534_v48  ;;  %v4112_v48 = vshrl.u32 %v15501_v51, 16  ;;  %19536 = vst [vmem:[#allocation22_spill] sm:$0xff] %v15521_v20  ;;  %v19540_v61 = vcombine.low %v15330_v45, %v15335_v7  ;;  %v4057_v43 = vor.u32 %v4056_v49, %v4053_v50  ;;  %v4070_v62 = vshll.u32 %v15513_v55, 16  ;;  %19541 = vst [vmem:[#allocation23_spill] sm:$0xff] %v15536_v44  ;;  %v15538_v1 = vld [vmem:[#allocation2 + $0x44] sm:$0x1] }
 0x15f   : > { %v4101_v23 = vrot.slane %v4099_v24, 4  ;;  %v4104_v13 = vrot.slane %v4102_v63, 5  ;;  %v15540_v57 = vrot.slane %v4108_v39, 5  ;;  %v4123_v22 = vshrl.u32 %v15521_v20, 16 }
 0x160   : > { %v4114_v15 = vrot.slane %v4112_v48, 4  ;;  %v19542_v45 = vcombine.low %v15211_v10, %v15222_v60  ;;  %v4067_v7 = vor.u32 %v4066_v6, %v15515_v18  ;;  %v4081_v50 = vor.u32 %v4080_v8, %v4077_v17 }
 0x161   : > { %v4091_v49 = vor.u32 %v4090_v59, %v15519_v30  ;;  %v4094_v24 = vshll.u32 %v15529_v40, 16  ;;  %v19543_v63 = vcombine.low %v15234_v33, %v15239_v58  ;;  %v4039_v48 = vsel %vm14300_vm13, %v4034_v16, %v15468_v26 }
 0x162   : > { %12986 = vmatmul.mubr.msk.bf16.gmra.mrb[20].mxu0 %vm1439_vm12, %v19537_v14  ;;  %v4126_v14 = vshll.u32 %v15521_v20, 16  ;;  %v4132_v10 = vshll.u32 %v15536_v44, 16  ;;  %v4136_v60 = vshrl.u32 %v15536_v44, 16  ;;  %v4049_v6 = vsel %vm14300_vm13, %v4044_v28, %v15508_v25  ;;  %v15565_v20 = vld [vmem:[#allocation2 + $0x54] sm:$0xf] }
 0x163   : > { %12989 = vmatprep.mubr.msk.bf16.mxu0 %vm1439_vm12, %v19540_v61  ;;  %v3580_v61 = vrot.slane %v3578_v46, 4  ;;  %v4058_v17 = vrot.slane %v4057_v43, 4  ;;  %v4105_v8 = vor.u32 %v4104_v13, %v4101_v23  ;;  %v4118_v59 = vshll.u32 %v15538_v1, 16  ;;  %v15579_v43 = vld [vmem:[#allocation2 + $0x50] sm:$0x1] }
 0x164   : > { %v4072_v33 = vrot.slane %v4070_v62, 5  ;;  %v4115_v58 = vor.u32 %v4114_v15, %v15540_v57  ;;  %v4068_v40 = vrot.slane %v4067_v7, 4  ;;  %v4082_v26 = vrot.slane %v4081_v50, 4  ;;  %v15583_v13 = vld [vmem:[#allocation2 + $0x58] sm:$0xf] }
 0x165   : > { %13076 = vmatmul.mubr.msk.bf16.gmra.mrb[8].mxu1 %vm1439_vm12, %v19542_v45  ;;  %v4125_v45 = vrot.slane %v4123_v22, 4  ;;  %v4092_v16 = vrot.slane %v4091_v49, 4  ;;  %v4096_v55 = vrot.slane %v4094_v24, 5  ;;  %v19545_v44 = vcombine.low %v15363_v19, %v15368_v53  ;;  %v654_v15 = vld [vmem:[#allocation2 + $0xcc] sm:$0xf] }
 0x166   : > { %13079 = vmatprep.mubr.msk.bf16.mxu1 %vm1439_vm12, %v19543_v63  ;;  %v4128_v63 = vrot.slane %v4126_v14, 5  ;;  %v15573_v25 = vsel %vm14997_vm1, %v11934_v47, %v3578_v46  ;;  %v15577_v28 = vsel %vm14997_vm1, %v3580_v61, %v3581_v34  ;;  %v15581_v62 = vrot.slane %v4132_v10, 5  ;;  %v658_v49 = vld [vmem:[#allocation2 + $0xd4] sm:$0x1]  ;;  %v15615_v10 = vld [vmem:[#allocation2 + $0x64] sm:$0xf] }
 0x167   : > { %v4138_v23 = vrot.slane %v4136_v60, 4  ;;  %v19546_v19 = vcombine.low %v15386_v9, %v15397_v4  ;;  %v11968_v53 = vcombine.low %v4039_v48, %v4049_v6  ;;  %v4063_v47 = vsel %vm14300_vm13, %v4058_v17, %v15515_v18  ;;  %v19549_v60 = vld [vmem:[#allocation10_spill] sm:$0xff]  ;;  %v19551_v17 = vld [vmem:[#allocation9_spill] sm:$0xff] }
 0x168   : > { %v4106_v46 = vrot.slane %v4105_v8, 4  ;;  %v4120_v34 = vrot.slane %v4118_v59, 5  ;;  %v4116_v22 = vrot.slane %v4115_v58, 4  ;;  %v4129_v14 = vor.u32 %v4128_v63, %v4125_v45  ;;  %v15633_v63 = vld [vmem:[#allocation2 + $0x5c] sm:$0x1] }
 0x169   : > { %v4147_v7 = vshrl.u32 %v15565_v20, 16  ;;  %v4150_v50 = vshll.u32 %v15565_v20, 16  ;;  %v19547_v9 = vcombine.low %v15265_v5, %v15273_v27  ;;  %v4073_v4 = vsel %vm14300_vm13, %v4068_v40, %v4072_v33 }
 0x16a   : > { %12990 = vmatmul.mubr.msk.bf16.gmra.mrb[24].mxu0 %vm1439_vm12, %v19545_v44  ;;  %v15592_v44 = vld [vmem:[#allocation2 + $0x60] sm:$0xf]  ;;  %v4087_v18 = vsel %vm14300_vm13, %v4082_v26, %v15519_v30  ;;  %v4097_v24 = vsel %vm14300_vm13, %v4092_v16, %v4096_v55  ;;  %v4142_v48 = vshll.u32 %v15579_v43, 16  ;;  %v19548_v61 = vcombine.low %v15289_v36, %v15293_v29 }
 0x16b   : > { %12993 = vmatprep.mubr.msk.bf16.mxu0 %vm1439_vm12, %v19546_v19  ;;  %v4139_v5 = vor.u32 %v4138_v23, %v15581_v62  ;;  %v4156_v27 = vshll.u32 %v15583_v13, 16  ;;  %v4160_v40 = vshrl.u32 %v15583_v13, 16  ;;  %v655_v6 = vsel %vm14203_vm7, %v19549_v60, %v654_v15  ;;  %v822_v15 = vld [vmem:[#allocation2 + $0xd0] sm:$0x8] }
 0x16c   : > { %v4111_v55 = vsel %vm14300_vm13, %v4106_v46, %v15540_v57  ;;  %v4171_v36 = vshrl.u32 %v15592_v44, 16  ;;  %v4174_v29 = vshll.u32 %v15592_v44, 16  ;;  %656 = vst [vmem:[#allocation2 + $0xcc] sm:$0xf] %v655_v6  ;;  %v19552_v8 = vrot.slane %v19551_v17, 4 }
 0x16d   : > { %13080 = vmatmul.mubr.msk.bf16.gmra.mrb[12].mxu1 %vm1439_vm12, %v19547_v9  ;;  %v4121_v58 = vsel %vm14300_vm13, %v4116_v22, %v4120_v34  ;;  %v15631_v45 = vrot.slane %v4129_v14, 4  ;;  %v4149_v26 = vrot.slane %v4147_v7, 4  ;;  %v4152_v16 = vrot.slane %v4150_v50, 5  ;;  %v15649_v7 = vld [vmem:[#allocation2 + $0x6c] sm:$0xf] }
 0x16e   : > { %13083 = vmatprep.mubr.msk.bf16.mxu1 %vm1439_vm12, %v19548_v61  ;;  %v659_v33 = vsel %vm14211_vm8, %v19552_v8, %v658_v49  ;;  %v11969_v57 = vcombine.low %v4063_v47, %v4073_v4  ;;  %v4804_v23 = vsel %vm1488_vm0, %v15179_v21, 0  ;;  %v4180_v19 = vshll.u32 %v15615_v10, 16  ;;  %v15654_v61 = vld [vmem:[#allocation2 + $0x70] sm:$0xf]  ;;  %v15673_v6 = vld [vmem:[#allocation2 + $0x7c] sm:$0xf] }
 0x16f   : > { %660 = vst [vmem:[#allocation2 + $0xd4] sm:$0x1] %v659_v33  ;;  %v4184_v46 = vshrl.u32 %v15615_v10, 16  ;;  %v19554_v49 = vcombine.low %v15436_v41, %v15440_v52  ;;  %v15643_v34 = vrot.slane %v4139_v5, 4  ;;  %v15645_v22 = vrot.slane %v4142_v48, 5 }
 0x170   : > { %v15647_v14 = vrot.slane %v4156_v27, 5  ;;  %v4162_v47 = vrot.slane %v4160_v40, 4  ;;  %v11970_v21 = vcombine.low %v4087_v18, %v4097_v24  ;;  %v15652_v50 = vcombine.low %v4111_v55, %v4121_v58  ;;  %v15661_v5 = vld [vmem:[#allocation2 + $0x68] sm:$0x1]  ;;  %v15663_v27 = vld [vmem:[#allocation2 + $0x78] sm:$0xf] }
 0x171   : > { %v4173_v9 = vrot.slane %v4171_v36, 4  ;;  %v4176_v4 = vrot.slane %v4174_v29, 5  ;;  %v4135_v41 = vsel %vm14300_vm13, %v15631_v45, %v15581_v62  ;;  %v4153_v52 = vor.u32 %v4152_v16, %v4149_v26 }
 0x172   : > { %12994 = vmatmul.mubr.msk.bf16.gmra.mrb[28].mxu0 %vm1439_vm12, %v19554_v49  ;;  %v4166_v48 = vshll.u32 %v15633_v63, 16  ;;  %v19555_v18 = vcombine.low %v15318_v31, %v15326_v42  ;;  %v15669_v24 = vrot.slane %v4180_v19, 5  ;;  %v4186_v40 = vrot.slane %v4184_v46, 4  ;;  %v15693_v46 = vld [vmem:[#allocation2 + $0x84] sm:$0xf] }
 0x173   : > { %13101 = vmatprep.mubr.msk.bf16.mxu0 %vm1439_vm12, %v11968_v53  ;;  %v11740_v53 = vrot.slane %v822_v15, 11  ;;  %v4195_v60 = vshrl.u32 %v15649_v7, 16  ;;  %v4198_v62 = vshll.u32 %v15649_v7, 16  ;;  %v19556_v55 = vcombine.low %v15355_v54, %v15359_v2  ;;  %v678_v17 = vld [vmem:[#allocation2 + $0xcc] sm:$0x2] }
 0x174   : > { %v4145_v31 = vsel %vm14300_vm13, %v15643_v34, %v15645_v22  ;;  %v4163_v42 = vor.u32 %v4162_v47, %v15647_v14  ;;  %v4204_v36 = vshll.u32 %v15654_v61, 16  ;;  %v4208_v29 = vshrl.u32 %v15654_v61, 16  ;;  %v802_v8 = vld [vmem:[#allocation2 + $0xcc] sm:$0x1] }
 0x175   : > { %13084 = vmatmul.mubr.msk.bf16.gmra.mrb[16].mxu1 %vm1439_vm12, %v19555_v18  ;;  %v4177_v33 = vor.u32 %v4176_v4, %v4173_v9  ;;  %v4219_v58 = vshrl.u32 %v15663_v27, 16  ;;  %v4222_v54 = vshll.u32 %v15663_v27, 16  ;;  %v11722_v2 = vrot.slane %v678_v17, 9  ;;  %v15698_v9 = vld [vmem:[#allocation2 + $0x88] sm:$0xf] }
 0x176   : > { %13087 = vmatprep.mubr.msk.bf16.mxu1 %vm1439_vm12, %v19556_v55  ;;  %v947_v45 = vld [vmem:[#allocation2 + $0xd4] sm:$0x1]  ;;  %v15688_v26 = vrot.slane %v4153_v52, 4  ;;  %v15690_v16 = vrot.slane %v4166_v48, 5  ;;  %v4190_v19 = vshll.u32 %v15661_v5, 16  ;;  %v4187_v34 = vor.u32 %v4186_v40, %v15669_v24 }
 0x177   : > { %v948_v49 = vsel %vm14248_vm9, %v11740_v53, %v947_v45  ;;  %v4197_v22 = vrot.slane %v4195_v60, 4  ;;  %v4200_v47 = vrot.slane %v4198_v62, 5  ;;  %v803_v4 = vsel %vm14211_vm8, %v11722_v2, %v802_v8  ;;  %v15705_v52 = vld [vmem:[%s19363_s1 + $0x10] sm:$0x3]  ;;  %v15708_v48 = vld [vmem:[#allocation2 + $0x74] sm:$0x1] }
 0x178   : > { %949 = vst [vmem:[#allocation2 + $0xd4] sm:$0x1] %v948_v49  ;;  %v15710_v53 = vrot.slane %v4204_v36, 5  ;;  %v4210_v18 = vrot.slane %v4208_v29, 4  ;;  %v4228_v40 = vshll.u32 %v15673_v6, 16  ;;  %v4232_v60 = vshrl.u32 %v15673_v6, 16 }
 0x179   : > { %804 = vst [vmem:[#allocation2 + $0xcc] sm:$0x1] %v803_v4  ;;  %v4164_v62 = vrot.slane %v4163_v42, 4  ;;  %v4178_v55 = vrot.slane %v4177_v33, 4  ;;  %v4221_v17 = vrot.slane %v4219_v58, 4  ;;  %v4224_v8 = vrot.slane %v4222_v54, 5 }
 0x17a   : > { %13102 = vmatmul.mubr.msk.bf16.vlgmr.msra.gmra.mrb[32].mxu0 %vm1439_vm12, %v11969_v57  ;;  %v4243_v2 = vshrl.u32 %v15693_v46, 16  ;;  %v4246_v57 = vshll.u32 %v15693_v46, 16  ;;  %v4252_v36 = vshll.u32 %v15698_v9, 16  ;;  %v4256_v29 = vshrl.u32 %v15698_v9, 16  ;;  %v15731_v4 = vld [vmem:[#allocation2 + $0x80] sm:$0x1] }
 0x17b   : > { %13134 = vmatpush3.bf16.msra.mxu0 %v4804_v23  ;;  %13105 = vmatprep.mubr.msk.bf16.mxu0 %vm1439_vm12, %v11970_v21  ;;  %v19558_v23 = vcombine.low %v15372_v3, %v15382_v12  ;;  %v4188_v21 = vrot.slane %v4187_v34, 4  ;;  %v4192_v42 = vrot.slane %v4190_v19, 5  ;;  %v4201_v33 = vor.u32 %v4200_v47, %v4197_v22  ;;  %19560 = vst [vmem:[#allocation10_spill] sm:$0xff] %v15731_v4 }
 0x17c   : > { %13899 = vmatprep.subr.msk.bf16.mxu0 %vm1488_vm0, %v15705_v52  ;;  %v4214_v58 = vshll.u32 %v15708_v48, 16  ;;  %v19559_v54 = vcombine.low %v15426_v32, %v15432_v0  ;;  %v11972_v45 = vcombine.low %v4135_v41, %v4145_v31  ;;  %v4211_v49 = vor.u32 %v4210_v18, %v15710_v53  ;;  %v15745_v41 = vld [vmem:[#allocation2 + $0x90] sm:$0xf]  ;;  %v15749_v18 = vld [vmem:[#allocation2 + $0x94] sm:$0xf] }
 0x17d   : > { %13088 = vmatmul.mubr.msk.bf16.gmra.mrb[20].mxu1 %vm1439_vm12, %v19558_v23  ;;  %v15733_v15 = vrot.slane %v4228_v40, 5  ;;  %v4234_v3 = vrot.slane %v4232_v60, 4  ;;  %v4159_v12 = vsel %vm14300_vm13, %v15688_v26, %v15647_v14  ;;  %v4169_v19 = vsel %vm14300_vm13, %v4164_v62, %v15690_v16  ;;  %v15754_v60 = vld [vmem:[#allocation2 + $0x8c] sm:$0x1] }
 0x17e   : > { %13091 = vmatprep.mubr.msk.bf16.mxu1 %vm1439_vm12, %v19559_v54  ;;  %v4183_v32 = vsel %vm14300_vm13, %v4178_v55, %v15669_v24  ;;  %v4225_v0 = vor.u32 %v4224_v8, %v4221_v17  ;;  %v4245_v31 = vrot.slane %v4243_v2, 4  ;;  %v4248_v34 = vrot.slane %v4246_v57, 5  ;;  %19561 = vst [vmem:[#allocation9_spill] sm:$0xff] %v15754_v60  ;;  %v15777_v54 = vld [vmem:[#allocation2 + $0x98] sm:$0x1] }
 0x17f   : > { %v15747_v22 = vrot.slane %v4252_v36, 5  ;;  %v4258_v47 = vrot.slane %v4256_v29, 4  ;;  %v4193_v14 = vsel %vm14300_vm13, %v4188_v21, %v4192_v42  ;;  %v4202_v26 = vrot.slane %v4201_v33, 4  ;;  %v15768_v21 = vld [vmem:[#allocation2 + $0x9c] sm:$0xf]  ;;  %19563 = vst [vmem:[#allocation24_spill] sm:$0xff] %v15777_v54 }
 0x180   : > { %v4216_v40 = vrot.slane %v4214_v58, 5  ;;  %v4238_v16 = vshll.u32 %v15731_v4, 16  ;;  %v4212_v24 = vrot.slane %v4211_v49, 4  ;;  %v4235_v62 = vor.u32 %v4234_v3, %v15733_v15  ;;  %v15855_v4 = vld [vmem:[#allocation2 + $0xcc] sm:$0xf] }
 0x181   : > { %v4267_v55 = vshrl.u32 %v15745_v41, 16  ;;  %v4270_v17 = vshll.u32 %v15745_v41, 16  ;;  %v11950_v8 = vcombine.low %v15573_v25, %v15577_v28  ;;  %v4276_v2 = vshll.u32 %v15749_v18, 16 }
 0x182   : > { %13106 = vmatmul.mubr.msk.bf16.gmra.mrb[36].mxu0 %vm1439_vm12, %v15652_v50  ;;  %v4280_v57 = vshrl.u32 %v15749_v18, 16  ;;  %v4226_v36 = vrot.slane %v4225_v0, 4  ;;  %v4249_v29 = vor.u32 %v4248_v34, %v4245_v31  ;;  %v4259_v50 = vor.u32 %v4258_v47, %v15747_v22  ;;  %v15793_v34 = vld [vmem:[#allocation2 + $0xac] sm:$0xf] }
 0x183   : > { %13109 = vmatprep.mubr.msk.bf16.mxu0 %vm1439_vm12, %v11972_v45  ;;  %v4262_v23 = vshll.u32 %v15754_v60, 16  ;;  %v19562_v42 = vcombine.low %v15444_v38, %v15450_v56  ;;  %v11973_v25 = vcombine.low %v4159_v12, %v4169_v19  ;;  %v11974_v28 = vcombine.low %v4183_v32, %v4193_v14  ;;  %v15779_v45 = vld [vmem:[#allocation2 + $0xa0] sm:$0xf]  ;;  %v15787_v19 = vld [vmem:[#allocation2 + $0xa8] sm:$0xf] }
 0x184   : > { %v4207_v33 = vsel %vm14300_vm13, %v4202_v26, %v15710_v53  ;;  %v4240_v58 = vrot.slane %v4238_v16, 5  ;;  %v19564_v49 = vcombine.low %v15454_v11, %v15458_v37  ;;  %v4217_v38 = vsel %vm14300_vm13, %v4212_v24, %v4216_v40 }
 0x185   : > { %13092 = vmatmul.mubr.msk.bf16.gmra.mrb[24].mxu1 %vm1439_vm12, %v19562_v42  ;;  %v4236_v56 = vrot.slane %v4235_v62, 4  ;;  %v4269_v3 = vrot.slane %v4267_v55, 4  ;;  %v4272_v12 = vrot.slane %v4270_v17, 5  ;;  %v15789_v32 = vrot.slane %v4276_v2, 5 }
 0x186   : > { %13095 = vmatprep.mubr.msk.bf16.mxu1 %vm1439_vm12, %v19564_v49  ;;  %v4282_v53 = vrot.slane %v4280_v57, 4  ;;  %v4291_v0 = vshrl.u32 %v15768_v21, 16  ;;  %v4294_v31 = vshll.u32 %v15768_v21, 16  ;;  %v4231_v11 = vsel %vm14300_vm13, %v4226_v36, %v15733_v15  ;;  %v15820_v49 = vld [vmem:[#allocation2 + $0xb0] sm:$0x1] }
 0x187   : > { %v4250_v37 = vrot.slane %v4249_v29, 4  ;;  %v4260_v47 = vrot.slane %v4259_v50, 4  ;;  %v4264_v14 = vrot.slane %v4262_v23, 5  ;;  %v4300_v26 = vshll.u32 %v15779_v45, 16  ;;  %19566 = vst [vmem:[#allocation26_spill] sm:$0xff] %v15820_v49 }
 0x188   : > { %v4304_v40 = vshrl.u32 %v15779_v45, 16  ;;  %v4315_v16 = vshrl.u32 %v15787_v19, 16  ;;  %v4318_v24 = vshll.u32 %v15787_v19, 16  ;;  %v4241_v62 = vsel %vm14300_vm13, %v4236_v56, %v4240_v58 }
 0x189   : > { %v4286_v55 = vshll.u32 %v15777_v54, 16  ;;  %v4324_v15 = vshll.u32 %v15793_v34, 16  ;;  %v4328_v17 = vshrl.u32 %v15793_v34, 16  ;;  %v4273_v2 = vor.u32 %v4272_v12, %v4269_v3 }
 0x18a   : > { %13110 = vmatmul.mubr.msk.bf16.gmra.mrb[40].mxu0 %vm1439_vm12, %v11973_v25  ;;  %v4283_v57 = vor.u32 %v4282_v53, %v15789_v32  ;;  %v4293_v36 = vrot.slane %v4291_v0, 4  ;;  %v4296_v29 = vrot.slane %v4294_v31, 5  ;;  %v11975_v50 = vcombine.low %v4207_v33, %v4217_v38  ;;  %v15815_v25 = vld [vmem:[#allocation2 + $0xa4] sm:$0x1] }
 0x18b   : > { %13113 = vmatprep.mubr.msk.bf16.mxu0 %vm1439_vm12, %v11974_v28  ;;  %v4255_v23 = vsel %vm14300_vm13, %v4250_v37, %v15747_v22  ;;  %v4265_v42 = vsel %vm14300_vm13, %v4260_v47, %v4264_v14  ;;  %19565 = vst [vmem:[#allocation25_spill] sm:$0xff] %v15815_v25  ;;  %v15818_v58 = vrot.slane %v4300_v26, 5  ;;  %v4306_v28 = vrot.slane %v4304_v40, 4  ;;  %v15824_v22 = vld [vmem:[#allocation2 + $0xb4] sm:$0xf] }
 0x18c   : > { %v4317_v56 = vrot.slane %v4315_v16, 4  ;;  %v4320_v3 = vrot.slane %v4318_v24, 5  ;;  %v11976_v12 = vcombine.low %v4231_v11, %v4241_v62  ;;  %v4288_v33 = vrot.slane %v4286_v55, 5  ;;  %v15832_v24 = vld [vmem:[#allocation2 + $0xc0] sm:$0xf] }
 0x18d   : > { %13096 = vmatmul.mubr.msk.bf16.gmra.mrb[28].mxu1 %vm1439_vm12, %v11950_v8  ;;  %v15822_v38 = vrot.slane %v4324_v15, 5  ;;  %v4330_v53 = vrot.slane %v4328_v17, 4  ;;  %v4274_v0 = vrot.slane %v4273_v2, 4  ;;  %v4284_v31 = vrot.slane %v4283_v57, 4  ;;  %v15827_v8 = vld [vmem:[#allocation2 + $0xb8] sm:$0xf] }
 0x18e   : > { %v4297_v37 = vor.u32 %v4296_v29, %v4293_v36  ;;  %v4310_v47 = vshll.u32 %v15815_v25, 16  ;;  %v11977_v14 = vcombine.low %v4255_v23, %v4265_v42  ;;  %v4307_v26 = vor.u32 %v4306_v28, %v15818_v58  ;;  %v15834_v62 = vld [vmem:[#allocation2 + $0xc4] sm:$0xf] }
 0x18f   : > { %v4321_v40 = vor.u32 %v4320_v3, %v4317_v56  ;;  %v4334_v16 = vshll.u32 %v15820_v49, 16  ;;  %v4339_v11 = vshrl.u32 %v15824_v22, 16  ;;  %v4331_v55 = vor.u32 %v4330_v53, %v15822_v38  ;;  %v15851_v49 = vld [vmem:[#allocation2 + $0xbc] sm:$0x1] }
 0x190   : > { %v4342_v15 = vshll.u32 %v15824_v22, 16  ;;  %v4348_v17 = vshll.u32 %v15827_v8, 16  ;;  %v4352_v2 = vshrl.u32 %v15827_v8, 16  ;;  %v4279_v57 = vsel %vm14300_vm13, %v4274_v0, %v15789_v32  ;;  %19567 = vst [vmem:[#allocation27_spill] sm:$0xff] %v15851_v49 }
 0x191   : > { %v4289_v36 = vsel %vm14300_vm13, %v4284_v31, %v4288_v33  ;;  %v4298_v29 = vrot.slane %v4297_v37, 4  ;;  %v4312_v23 = vrot.slane %v4310_v47, 5  ;;  %v4366_v42 = vshll.u32 %v15832_v24, 16  ;;  %v15853_v37 = vld [vmem:[#allocation2 + $0xd0] sm:$0xf] }
 0x192   : > { %13114 = vmatmul.mubr.msk.bf16.gmra.mrb[44].mxu0 %vm1439_vm12, %v11975_v50  ;;  %v4363_v50 = vshrl.u32 %v15832_v24, 16  ;;  %v4372_v28 = vshll.u32 %v15834_v62, 16  ;;  %v4376_v56 = vshrl.u32 %v15834_v62, 16  ;;  %v4308_v3 = vrot.slane %v4307_v26, 4 }
 0x193   : > { %13117 = vmatprep.mubr.msk.bf16.mxu0 %vm1439_vm12, %v11976_v12  ;;  %v4322_v53 = vrot.slane %v4321_v40, 4  ;;  %v4336_v12 = vrot.slane %v4334_v16, 5  ;;  %v4341_v30 = vrot.slane %v4339_v11, 4  ;;  %v4332_v59 = vrot.slane %v4331_v55, 4  ;;  %v15863_v11 = vld [vmem:[#allocation2 + $0xc8] sm:$0x1] }
 0x194   : > { %v4344_v32 = vrot.slane %v4342_v15, 5  ;;  %v4350_v0 = vrot.slane %v4348_v17, 5  ;;  %v4354_v33 = vrot.slane %v4352_v2, 4  ;;  %v11978_v31 = vcombine.low %v4279_v57, %v4289_v36 }
 0x195   : > { %v4365_v47 = vrot.slane %v4363_v50, 4  ;;  %v4368_v25 = vrot.slane %v4366_v42, 5  ;;  %v4374_v54 = vrot.slane %v4372_v28, 5  ;;  %v4378_v60 = vrot.slane %v4376_v56, 4 }
 0x196   : > { %v4303_v26 = vsel %vm14300_vm13, %v4298_v29, %v15818_v58  ;;  %v4313_v40 = vsel %vm14300_vm13, %v4308_v3, %v4312_v23  ;;  %v4358_v16 = vshll.u32 %v15851_v49, 16  ;;  %v4327_v55 = vsel %vm14300_vm13, %v4322_v53, %v15822_v38  ;;  %v15877_v49 = vld [vmem:[#allocation2 + $0xd4] sm:$0x1] }
 0x197   : > { %v4337_v15 = vsel %vm14300_vm13, %v4332_v59, %v4336_v12  ;;  %v4345_v17 = vor.u32 %v4344_v32, %v4341_v30  ;;  %v4355_v2 = vor.u32 %v4354_v33, %v4350_v0  ;;  %v4387_v58 = vshrl.u32 %v15855_v4, 16 }
 0x198   : > { %v4390_v57 = vshll.u32 %v15855_v4, 16  ;;  %v4396_v36 = vshll.u32 %v15853_v37, 16  ;;  %v4400_v29 = vshrl.u32 %v15853_v37, 16  ;;  %v4379_v23 = vor.u32 %v4378_v60, %v4374_v54 }
 0x199   : > { %v4382_v50 = vshll.u32 %v15863_v11, 16  ;;  %v11979_v38 = vcombine.low %v4303_v26, %v4313_v40  ;;  %v11980_v42 = vcombine.low %v4327_v55, %v4337_v15  ;;  %v4346_v28 = vrot.slane %v4345_v17, 4 }
 0x19a   : > { %13118 = vmatmul.mubr.msk.bf16.gmra.mrb[48].mxu0 %vm1439_vm12, %v11977_v14  ;;  %v4369_v14 = vor.u32 %v4368_v25, %v4365_v47  ;;  %v4356_v59 = vrot.slane %v4355_v2, 4  ;;  %v4360_v30 = vrot.slane %v4358_v16, 5  ;;  %v4389_v56 = vrot.slane %v4387_v58, 4 }
 0x19b   : > { %13121 = vmatprep.mubr.msk.bf16.mxu0 %vm1439_vm12, %v11978_v31  ;;  %v4392_v3 = vrot.slane %v4390_v57, 5  ;;  %v4398_v53 = vrot.slane %v4396_v36, 5  ;;  %v4402_v12 = vrot.slane %v4400_v29, 4  ;;  %v4380_v33 = vrot.slane %v4379_v23, 4 }
 0x19c   : > { %v4370_v32 = vrot.slane %v4369_v14, 4  ;;  %v4384_v31 = vrot.slane %v4382_v50, 5  ;;  %v4351_v60 = vsel %vm14300_vm13, %v4346_v28, %v4350_v0  ;;  %v4361_v25 = vsel %vm14300_vm13, %v4356_v59, %v4360_v30  ;;  %v19569_v14 = vld [vmem:[#allocation11_spill] sm:$0xff]  ;;  %v19570_v50 = vld [vmem:[#allocation16_spill] sm:$0xff]  ;;  %v19572_v28 = vld [vmem:[#allocation17_spill] sm:$0xff] }
 0x19d   : > { %v4393_v47 = vor.u32 %v4392_v3, %v4389_v56  ;;  %v4403_v26 = vor.u32 %v4402_v12, %v4398_v53  ;;  %v4406_v40 = vshll.u32 %v15877_v49, 16  ;;  %v11981_v15 = vcombine.low %v4351_v60, %v4361_v25  ;;  %v19573_v59 = vld [vmem:[#allocation15_spill] sm:$0xff]  ;;  %v19574_v3 = vld [vmem:[#allocation20_spill] sm:$0xff] }
 0x19e   : > { %v4375_v16 = vsel %vm14300_vm13, %v4370_v32, %v4374_v54  ;;  %v4385_v55 = vsel %vm14300_vm13, %v4380_v33, %v4384_v31  ;;  %v19568_v54 = vld [vmem:[#allocation12_spill] sm:$0xff]  ;;  %v12003_v30 = vcombine.low %v19573_v59, %v19572_v28  ;;  %v5225_v56 = vsel %vm1488_vm0, %v15705_v52, 0  ;;  %v19575_v12 = vld [vmem:[#allocation23_spill] sm:$0xff]  ;;  %v19576_v32 = vld [vmem:[#allocation22_spill] sm:$0xff] }
 0x19f   : > { %v11982_v17 = vcombine.low %v4375_v16, %v4385_v55  ;;  %v4394_v2 = vrot.slane %v4393_v47, 4  ;;  %v4404_v58 = vrot.slane %v4403_v26, 4  ;;  %v4408_v0 = vrot.slane %v4406_v40, 5  ;;  %v19577_v55 = vld [vmem:[#allocation14_spill] sm:$0xff] }
 0x1a0   : > { %v12001_v23 = vcombine.low %v19569_v14, %v19568_v54  ;;  %v12005_v33 = vcombine.low %v19576_v32, %v19575_v12  ;;  %v12006_v31 = vcombine.low %v15565_v20, %v15583_v13  ;;  %v12007_v52 = vcombine.low %v15592_v44, %v15615_v10 }
 0x1a1   : > { %v4399_v57 = vsel %vm14300_vm13, %v4394_v2, %v4398_v53  ;;  %v4409_v36 = vsel %vm14300_vm13, %v4404_v58, %v4408_v0  ;;  %v12004_v53 = vcombine.low %v19574_v3, %v15501_v51  ;;  %v12008_v60 = vcombine.low %v15649_v7, %v15654_v61 }
 0x1a2   : > { %13122 = vmatmul.mubr.msk.bf16.gmra.mrb[52].mxu0 %vm1439_vm12, %v11979_v38  ;;  %v11983_v29 = vcombine.low %v4399_v57, %v4409_v36  ;;  %v19571_v38 = vld [vmem:[#allocation13_spill] sm:$0xff]  ;;  %v12009_v25 = vcombine.low %v15663_v27, %v15673_v6  ;;  %v12010_v20 = vcombine.low %v15693_v46, %v15698_v9  ;;  %v12011_v44 = vcombine.low %v15745_v41, %v15749_v18  ;;  %v4967_v46 = vld [vmem:[#allocation2 + $0x18] sm:$0xe] }
 0x1a3   : > { %13125 = vmatprep.mubr.msk.bf16.mxu0 %vm1439_vm12, %v11980_v42  ;;  %v12002_v42 = vcombine.low %v19571_v38, %v19570_v50  ;;  %v12012_v7 = vcombine.low %v15768_v21, %v15779_v45  ;;  %v12013_v27 = vcombine.low %v15787_v19, %v15793_v34  ;;  %v5017_v47 = vrot.slane %v19568_v54, 5 }
 0x1a4   : > { %v12014_v41 = vcombine.low %v15824_v22, %v15827_v8  ;;  %v12015_v26 = vcombine.low %v15832_v24, %v15834_v62  ;;  %v12033_v40 = vrot.slane %v4967_v46, 9  ;;  %v5020_v21 = vrot.slane %v19577_v55, 5  ;;  %v4968_v22 = vld [vmem:[#allocation2 + $0x24] sm:$0xe]  ;;  %v4969_v24 = vld [vmem:[#allocation2 + $0x30] sm:$0xe] }
 0x1a5   : > { %v5019_v16 = vrot.slane %v5017_v47, 4  ;;  %v5024_v19 = vrot.slane %v19570_v50, 5  ;;  %v5031_v2 = vrot.slane %v19572_v28, 5  ;;  %v12016_v58 = vcombine.low %v15855_v4, %v15853_v37  ;;  %v19579_v50 = vld [vmem:[#allocation18_spill] sm:$0xff]  ;;  %v4973_v46 = vld [vmem:[#allocation2 + $0x60] sm:$0xe] }
 0x1a6   : > { %v12034_v57 = vrot.slane %v4968_v22, 9  ;;  %v12035_v14 = vrot.slane %v4969_v24, 9  ;;  %v5034_v38 = vrot.slane %v19579_v50, 5  ;;  %v5038_v4 = vrot.slane %v15501_v51, 5  ;;  %v4975_v24 = vld [vmem:[#allocation2 + $0x78] sm:$0xe] }
 0x1a7   : > { %v5026_v36 = vrot.slane %v5024_v19, 4  ;;  %v5045_v3 = vrot.slane %v19575_v12, 5  ;;  %v5048_v51 = vrot.slane %v15579_v43, 5  ;;  %v5059_v43 = vrot.slane %v15615_v10, 5 }
 0x1a8   : > { %v5032_v59 = vsel %vm14997_vm1, %v12035_v14, %v5031_v2  ;;  %v5055_v55 = vrot.slane %v15633_v63, 5 }
 0x1aa   : > { %13126 = vmatmul.mubr.msk.bf16.gmra.mrb[56].mxu0 %vm1439_vm12, %v11981_v15  ;;  %v5018_v15 = vsel %vm14997_vm1, %v12033_v40, %v5017_v47  ;;  %v4972_v47 = vld [vmem:[#allocation2 + $0x54] sm:$0xe] }
 0x1ab   : > { %13129 = vmatprep.mubr.msk.bf16.mxu0 %vm1439_vm12, %v11982_v17  ;;  %v5021_v17 = vsel %vm14997_vm1, %v5019_v16, %v5020_v21  ;;  %v12038_v40 = vrot.slane %v4972_v47, 9  ;;  %v12039_v21 = vrot.slane %v4973_v46, 9  ;;  %v4978_v47 = vld [vmem:[#allocation2 + $0x9c] sm:$0xe] }
 0x1ac   : > { %v12049_v0 = vcombine.low %v5018_v15, %v5021_v17  ;;  %v5066_v17 = vrot.slane %v15654_v61, 5 }
 0x1ad   : > { %v5060_v22 = vsel %vm14997_vm1, %v12039_v21, %v5059_v43 }
 0x1b2   : > { %13130 = vmatmul.mubr.msk.bf16.gmra.mrb[60].mxu0 %vm1439_vm12, %v11983_v29  ;;  %v19578_v29 = vld [vmem:[#allocation21_spill] sm:$0xff] }
 0x1b3   : > { %13135 = vmatprep.mubr.msk.bf16.mxu0 %vm1439_vm12, %v12001_v23  ;;  %v5027_v54 = vrot.slane %v19578_v29, 5  ;;  %v5033_v23 = vrot.slane %v5031_v2, 4  ;;  %v4974_v2 = vld [vmem:[#allocation2 + $0x6c] sm:$0xe]  ;;  %v5069_v29 = vrot.slane %v15708_v48, 5 }
 0x1b5   : > { %v5028_v28 = vsel %vm14997_vm1, %v5026_v36, %v5027_v54  ;;  %v5068_v36 = vrot.slane %v5066_v17, 4  ;;  %v12041_v54 = vrot.slane %v4975_v24, 9 }
 0x1ba   : > { %13136 = vmatmul.mubr.msk.bf16.vlgmr.msra.gmra.mrb[32].mxu0 %vm1439_vm12, %v12002_v42  ;;  %v5025_v42 = vsel %vm14997_vm1, %v12034_v57, %v5024_v19  ;;  %v5061_v19 = vrot.slane %v5059_v43, 4  ;;  %v12040_v57 = vrot.slane %v4974_v2, 9  ;;  %v5101_v43 = vrot.slane %v15793_v34, 5  ;;  %v19584_v34 = vld [vmem:[#allocation26_spill] sm:$0xff] }
 0x1bb   : > { %13168 = vmatpush3.bf16.msra.mxu0 %v5225_v56  ;;  %13139 = vmatprep.mubr.msk.bf16.mxu0 %vm1439_vm12, %v12003_v30  ;;  %v5035_v30 = vsel %vm14997_vm1, %v5033_v23, %v5034_v38  ;;  %v4970_v56 = vld [vmem:[#allocation2 + $0x3c] sm:$0xe]  ;;  %v12050_v32 = vcombine.low %v5025_v42, %v5028_v28  ;;  %v19580_v23 = vld [vmem:[#allocation10_spill] sm:$0xff]  ;;  %v5080_v38 = vrot.slane %v15698_v9, 5  ;;  %v4976_v28 = vld [vmem:[#allocation2 + $0x84] sm:$0xe] }
 0x1bc   : > { %v5076_v61 = vrot.slane %v19580_v23, 5  ;;  %v5067_v50 = vsel %vm14997_vm1, %v12040_v57, %v5066_v17  ;;  %v12042_v9 = vrot.slane %v4976_v28, 9  ;;  %v5103_v17 = vrot.slane %v5101_v43, 4 }
 0x1bd   : > { %v5115_v57 = vrot.slane %v15834_v62, 5  ;;  %v5118_v62 = vrot.slane %v15863_v11, 5 }
 0x1bf   : > { %v5117_v28 = vrot.slane %v5115_v57, 4 }
 0x1c1   : > { %v5119_v11 = vsel %vm14997_vm1, %v5117_v28, %v5118_v62 }
 0x1c2   : > { %13140 = vmatmul.mubr.msk.bf16.gmra.mrb[36].mxu0 %vm1439_vm12, %v12004_v53  ;;  %v4971_v53 = vld [vmem:[#allocation2 + $0x48] sm:$0xe] }
 0x1c3   : > { %13143 = vmatprep.mubr.msk.bf16.mxu0 %vm1439_vm12, %v12005_v33  ;;  %v12051_v33 = vcombine.low %v5032_v59, %v5035_v30  ;;  %v4977_v30 = vld [vmem:[#allocation2 + $0x90] sm:$0xe] }
 0x1ca   : > { %13144 = vmatmul.mubr.msk.bf16.gmra.mrb[40].mxu0 %vm1439_vm12, %v12006_v31  ;;  %v12036_v31 = vrot.slane %v4970_v56, 9 }
 0x1cb   : > { %13147 = vmatprep.mubr.msk.bf16.mxu0 %vm1439_vm12, %v12007_v52  ;;  %v5040_v52 = vrot.slane %v5038_v4, 4 }
 0x1d2   : > { %13148 = vmatmul.mubr.msk.bf16.gmra.mrb[44].mxu0 %vm1439_vm12, %v12008_v60  ;;  %v5041_v60 = vrot.slane %v15538_v1, 5 }
 0x1d3   : > { %13151 = vmatprep.mubr.msk.bf16.mxu0 %vm1439_vm12, %v12009_v25  ;;  %v12037_v25 = vrot.slane %v4971_v53, 9 }
 0x1d4   : > { %v5042_v12 = vsel %vm14997_vm1, %v5040_v52, %v5041_v60 }
 0x1da   : > { %13152 = vmatmul.mubr.msk.bf16.gmra.mrb[48].mxu0 %vm1439_vm12, %v12010_v20  ;;  %v5047_v20 = vrot.slane %v5045_v3, 4 }
 0x1db   : > { %13155 = vmatprep.mubr.msk.bf16.mxu0 %vm1439_vm12, %v12011_v44  ;;  %v5039_v44 = vsel %vm14997_vm1, %v12036_v31, %v5038_v4  ;;  %v5087_v4 = vrot.slane %v15749_v18, 5  ;;  %v19581_v31 = vld [vmem:[#allocation9_spill] sm:$0xff]  ;;  %v19582_v18 = vld [vmem:[#allocation24_spill] sm:$0xff] }
 0x1dc   : > { %v5049_v1 = vsel %vm14997_vm1, %v5047_v20, %v5048_v51  ;;  %v5083_v52 = vrot.slane %v19581_v31, 5  ;;  %v5090_v51 = vrot.slane %v19582_v18, 5 }
 0x1dd   : > { %v5089_v20 = vrot.slane %v5087_v4, 4 }
 0x1e2   : > { %13156 = vmatmul.mubr.msk.bf16.gmra.mrb[52].mxu0 %vm1439_vm12, %v12012_v7  ;;  %v5052_v7 = vrot.slane %v15583_v13, 5  ;;  %v5062_v13 = vrot.slane %v15661_v5, 5  ;;  %v5073_v5 = vrot.slane %v15673_v6, 5  ;;  %v5070_v6 = vsel %vm14997_vm1, %v5068_v36, %v5069_v29  ;;  %v4981_v29 = vld [vmem:[#allocation2 + $0xc0] sm:$0xe] }
 0x1e3   : > { %13159 = vmatprep.mubr.msk.bf16.mxu0 %vm1439_vm12, %v12013_v27  ;;  %v5046_v27 = vsel %vm14997_vm1, %v12037_v25, %v5045_v3  ;;  %v12056_v3 = vcombine.low %v5067_v50, %v5070_v6  ;;  %v12043_v25 = vrot.slane %v4977_v30, 9  ;;  %v19585_v6 = vld [vmem:[#allocation27_spill] sm:$0xff]  ;;  %v5122_v30 = vrot.slane %v15853_v37, 5 }
 0x1e4   : > { %v5054_v16 = vrot.slane %v5052_v7, 4  ;;  %v5053_v15 = vsel %vm14997_vm1, %v12038_v40, %v5052_v7  ;;  %v5063_v63 = vsel %vm14997_vm1, %v5061_v19, %v5062_v13  ;;  %v5075_v14 = vrot.slane %v5073_v5, 4  ;;  %v19583_v19 = vld [vmem:[#allocation25_spill] sm:$0xff] }
 0x1e5   : > { %v5074_v42 = vsel %vm14997_vm1, %v12041_v54, %v5073_v5  ;;  %v5094_v7 = vrot.slane %v15779_v45, 5  ;;  %v12044_v45 = vrot.slane %v4978_v47, 9  ;;  %v5097_v13 = vrot.slane %v19583_v19, 5 }
 0x1e6   : > { %v5056_v10 = vsel %vm14997_vm1, %v5054_v16, %v5055_v55  ;;  %v5077_v48 = vsel %vm14997_vm1, %v5075_v14, %v5076_v61  ;;  %v5108_v5 = vrot.slane %v15827_v8, 5  ;;  %v5124_v37 = vrot.slane %v5122_v30, 4 }
 0x1e7   : > { %v5096_v21 = vrot.slane %v5094_v7, 4 }
 0x1e8   : > { %v5110_v50 = vrot.slane %v5108_v5, 4 }
 0x1e9   : > { %v5098_v2 = vsel %vm14997_vm1, %v5096_v21, %v5097_v13 }
 0x1ea   : > { %13160 = vmatmul.mubr.msk.bf16.gmra.mrb[56].mxu0 %vm1439_vm12, %v12014_v41  ;;  %v12052_v41 = vcombine.low %v5039_v44, %v5042_v12  ;;  %v5081_v44 = vsel %vm14997_vm1, %v12042_v9, %v5080_v38 }
 0x1eb   : > { %13163 = vmatprep.mubr.msk.bf16.mxu0 %vm1439_vm12, %v12015_v26  ;;  %v12053_v26 = vcombine.low %v5046_v27, %v5049_v1  ;;  %v5088_v27 = vsel %vm14997_vm1, %v12043_v25, %v5087_v4  ;;  %v5091_v1 = vsel %vm14997_vm1, %v5089_v20, %v5090_v51  ;;  %v5125_v20 = vrot.slane %v15877_v49, 5 }
 0x1ec   : > { %v12059_v55 = vcombine.low %v5088_v27, %v5091_v1 }
 0x1f2   : > { %13164 = vmatmul.mubr.msk.bf16.gmra.mrb[60].mxu0 %vm1439_vm12, %v12016_v58  ;;  %v12054_v58 = vcombine.low %v5053_v15, %v5056_v10 }
 0x1f3   : > { %13169 = vmatprep.mubr.msk.bf16.mxu0 %vm1439_vm12, %v12049_v0  ;;  %v12055_v0 = vcombine.low %v5060_v22, %v5063_v63  ;;  %v5104_v22 = vrot.slane %v19584_v34, 5  ;;  %v5095_v63 = vsel %vm14997_vm1, %v12044_v45, %v5094_v7 }
 0x1f4   : > { %v12060_v14 = vcombine.low %v5095_v63, %v5098_v2 }
 0x1fa   : > { %13170 = vmatmul.mubr.msk.bf16.vlgmr.msra.gmra.mrb[32].mxu0 %vm1439_vm12, %v12050_v32  ;;  %v12057_v32 = vcombine.low %v5074_v42, %v5077_v48  ;;  %v12047_v48 = vrot.slane %v4981_v29, 9 }
 0x1fb   : > { %13173 = vmatprep.mubr.msk.bf16.mxu0 %vm1439_vm12, %v12051_v33  ;;  %v5082_v33 = vrot.slane %v5080_v38, 4  ;;  %v5111_v38 = vrot.slane %v19585_v6, 5 }
 0x1fd   : > { %v5084_v12 = vsel %vm14997_vm1, %v5082_v33, %v5083_v52 }
 0x1fe   : > { %v12058_v40 = vcombine.low %v5081_v44, %v5084_v12 }
 0x202   : > { %13174 = vmatmul.mubr.msk.bf16.gmra.mrb[36].mxu0 %vm1439_vm12, %v12052_v41  ;;  %v4979_v41 = vld [vmem:[#allocation2 + $0xa8] sm:$0xe] }
 0x203   : > { %13177 = vmatprep.mubr.msk.bf16.mxu0 %vm1439_vm12, %v12053_v26  ;;  %v12045_v10 = vrot.slane %v4979_v41, 9  ;;  %v5126_v41 = vsel %vm14997_vm1, %v5124_v37, %v5125_v20 }
 0x205   : > { %v5102_v24 = vsel %vm14997_vm1, %v12045_v10, %v5101_v43 }
 0x20a   : > { %13178 = vmatmul.mubr.msk.bf16.gmra.mrb[40].mxu0 %vm1439_vm12, %v12054_v58  ;;  %v5105_v58 = vsel %vm14997_vm1, %v5103_v17, %v5104_v22 }
 0x20b   : > { %13181 = vmatprep.mubr.msk.bf16.mxu0 %vm1439_vm12, %v12055_v0  ;;  %v4980_v0 = vld [vmem:[#allocation2 + $0xb4] sm:$0xe]  ;;  %v12061_v61 = vcombine.low %v5102_v24, %v5105_v58 }
 0x20c   : > { %v12046_v8 = vrot.slane %v4980_v0, 9 }
 0x20d   : > { %v12967_v59 = vpop.f32.mrb[0].mxu0 }
 0x20e   : > { %2403 = vst.msk [vmem:[#allocation3 + $0x10] sm:$0xff] %vm1439_vm12, %v12967_v59  ;;  %v2242_v56 = vpop.f32.mrb[1].mxu0  ;;  %v5109_v4 = vsel %vm14997_vm1, %v12046_v8, %v5108_v5  ;;  %v5112_v59 = vsel %vm14997_vm1, %v5110_v50, %v5111_v38 }
 0x20f   : > { %2401 = vst.msk [vmem:[#allocation3] sm:$0xff] %vm1439_vm12, %v2242_v56  ;;  %v12968_v53 = vpop.f32.mrb[2].mxu0  ;;  %v5116_v56 = vsel %vm14997_vm1, %v12047_v48, %v5115_v57  ;;  %v12062_v33 = vcombine.low %v5109_v4, %v5112_v59 }
 0x210   : > { %2404 = vst.msk [vmem:[#allocation3 + $0x18] sm:$0xff] %vm1439_vm12, %v12968_v53  ;;  %v2245_v60 = vpop.f32.mrb[3].mxu0 }
 0x211   : > { %2402 = vst.msk [vmem:[#allocation3 + $0x8] sm:$0xff] %vm1439_vm12, %v2245_v60  ;;  %v12063_v60 = vcombine.low %v5116_v56, %v5119_v11 }
 0x212   : > { %13182 = vmatmul.mubr.msk.bf16.gmra.mrb[44].mxu0 %vm1439_vm12, %v12056_v3  ;;  %v4982_v3 = vld [vmem:[#allocation2 + $0xcc] sm:$0xe] }
 0x213   : > { %13185 = vmatprep.mubr.msk.bf16.mxu0 %vm1439_vm12, %v12057_v32  ;;  %v12048_v25 = vrot.slane %v4982_v3, 9 }
 0x215   : > { %v12971_v46 = vpop.f32.mrb[4].mxu0  ;;  %v3882_v32 = vld [vmem:[#allocation3 + $0x10] sm:$0xff]  ;;  %v5123_v49 = vsel %vm14997_vm1, %v12048_v25, %v5122_v30 }
 0x216   : > { %2407 = vst.msk [vmem:[#allocation3 + $0x30] sm:$0xff] %vm1439_vm12, %v12971_v46  ;;  %v2258_v26 = vpop.f32.mrb[5].mxu0  ;;  %v3880_v31 = vld [vmem:[#allocation3] sm:$0xff]  ;;  %v12064_v45 = vcombine.low %v5123_v49, %v5126_v41 }
 0x217   : > { %2405 = vst.msk [vmem:[#allocation3 + $0x20] sm:$0xff] %vm1439_vm12, %v2258_v26  ;;  %v12972_v16 = vpop.f32.mrb[6].mxu0  ;;  %v3883_v51 = vld [vmem:[#allocation3 + $0x18] sm:$0xff] }
 0x218   : > { %2408 = vst.msk [vmem:[#allocation3 + $0x38] sm:$0xff] %vm1439_vm12, %v12972_v16  ;;  %v2261_v15 = vpop.f32.mrb[7].mxu0  ;;  %v3881_v27 = vld [vmem:[#allocation3 + $0x8] sm:$0xff] }
 0x219   : > { %2406 = vst.msk [vmem:[#allocation3 + $0x28] sm:$0xff] %vm1439_vm12, %v2261_v15 }
 0x21a   : > { %13186 = vmatmul.mubr.msk.bf16.gmra.mrb[48].mxu0 %vm1439_vm12, %v12058_v40 }
 0x21b   : > { %13189 = vmatprep.mubr.msk.bf16.mxu0 %vm1439_vm12, %v12059_v55 }
 0x21d   : > { %v12975_v36 = vpop.f32.mrb[8].mxu0  ;;  %v3886_v16 = vld [vmem:[#allocation3 + $0x30] sm:$0xff] }
 0x21e   : > { %2411 = vst.msk [vmem:[#allocation3 + $0x50] sm:$0xff] %vm1439_vm12, %v12975_v36  ;;  %v2274_v54 = vpop.f32.mrb[9].mxu0  ;;  %v3884_v21 = vld [vmem:[#allocation3 + $0x20] sm:$0xff] }
 0x21f   : > { %2409 = vst.msk [vmem:[#allocation3 + $0x40] sm:$0xff] %vm1439_vm12, %v2274_v54  ;;  %v12976_v23 = vpop.f32.mrb[10].mxu0  ;;  %v3887_v15 = vld [vmem:[#allocation3 + $0x38] sm:$0xff] }
 0x220   : > { %2412 = vst.msk [vmem:[#allocation3 + $0x58] sm:$0xff] %vm1439_vm12, %v12976_v23  ;;  %v2277_v42 = vpop.f32.mrb[11].mxu0  ;;  %v3885_v22 = vld [vmem:[#allocation3 + $0x28] sm:$0xff] }
 0x221   : > { %2410 = vst.msk [vmem:[#allocation3 + $0x48] sm:$0xff] %vm1439_vm12, %v2277_v42 }
 0x222   : > { %13190 = vmatmul.mubr.msk.bf16.gmra.mrb[52].mxu0 %vm1439_vm12, %v12060_v14 }
 0x223   : > { %13193 = vmatprep.mubr.msk.bf16.mxu0 %vm1439_vm12, %v12061_v61 }
 0x225   : > { %v12979_v53 = vpop.f32.mrb[12].mxu0  ;;  %v3890_v57 = vld [vmem:[#allocation3 + $0x50] sm:$0xff] }
 0x226   : > { %2415 = vst.msk [vmem:[#allocation3 + $0x70] sm:$0xff] %vm1439_vm12, %v12979_v53  ;;  %v2290_v9 = vpop.f32.mrb[13].mxu0  ;;  %v3888_v29 = vld [vmem:[#allocation3 + $0x40] sm:$0xff] }
 0x227   : > { %2413 = vst.msk [vmem:[#allocation3 + $0x60] sm:$0xff] %vm1439_vm12, %v2290_v9  ;;  %v12980_v52 = vpop.f32.mrb[14].mxu0  ;;  %v3891_v23 = vld [vmem:[#allocation3 + $0x58] sm:$0xff] }
 0x228   : > { %v13069_v18 = vpop.f32.mrb[0].mxu1  ;;  %2416 = vst.msk [vmem:[#allocation3 + $0x78] sm:$0xff] %vm1439_vm12, %v12980_v52  ;;  %v2293_v44 = vpop.f32.mrb[15].mxu0  ;;  %v3889_v6 = vld [vmem:[#allocation3 + $0x48] sm:$0xff] }
 0x229   : > { %v3914_v12 = vadd.f32 %v13069_v18, %v3882_v32  ;;  %v3721_v7 = vpop.f32.mrb[1].mxu1  ;;  %2414 = vst.msk [vmem:[#allocation3 + $0x68] sm:$0xff] %vm1439_vm12, %v2293_v44 }
 0x22a   : > { %v3912_v1 = vadd.f32 %v3880_v31, %v3721_v7  ;;  %v13070_v47 = vpop.f32.mrb[2].mxu1  ;;  %13194 = vmatmul.mubr.msk.bf16.gmra.mrb[56].mxu0 %vm1439_vm12, %v12062_v33 }
 0x22b   : > { %3946 = vst.msk [vmem:[#allocation3 + $0x10] sm:$0xff] %vm1439_vm12, %v3914_v12  ;;  %v3915_v43 = vadd.f32 %v13070_v47, %v3883_v51  ;;  %v3724_v46 = vpop.f32.mrb[3].mxu1  ;;  %13197 = vmatprep.mubr.msk.bf16.mxu0 %vm1439_vm12, %v12063_v60 }
 0x22c   : > { %3944 = vst.msk [vmem:[#allocation3] sm:$0xff] %vm1439_vm12, %v3912_v1  ;;  %v3913_v26 = vadd.f32 %v3881_v27, %v3724_v46 }
 0x22d   : > { %3947 = vst.msk [vmem:[#allocation3 + $0x18] sm:$0xff] %vm1439_vm12, %v3915_v43  ;;  %v12983_v40 = vpop.f32.mrb[16].mxu0  ;;  %v3894_v59 = vld [vmem:[#allocation3 + $0x70] sm:$0xff] }
 0x22e   : > { %3945 = vst.msk [vmem:[#allocation3 + $0x8] sm:$0xff] %vm1439_vm12, %v3913_v26  ;;  %2419 = vst.msk [vmem:[#allocation3 + $0x90] sm:$0xff] %vm1439_vm12, %v12983_v40  ;;  %v2306_v55 = vpop.f32.mrb[17].mxu0  ;;  %v3892_v56 = vld [vmem:[#allocation3 + $0x60] sm:$0xff] }
 0x22f   : > { %2417 = vst.msk [vmem:[#allocation3 + $0x80] sm:$0xff] %vm1439_vm12, %v2306_v55  ;;  %v12984_v19 = vpop.f32.mrb[18].mxu0  ;;  %v3895_v53 = vld [vmem:[#allocation3 + $0x78] sm:$0xff] }
 0x230   : > { %v13073_v13 = vpop.f32.mrb[4].mxu1  ;;  %2420 = vst.msk [vmem:[#allocation3 + $0x98] sm:$0xff] %vm1439_vm12, %v12984_v19  ;;  %v2309_v10 = vpop.f32.mrb[19].mxu0  ;;  %v3893_v31 = vld [vmem:[#allocation3 + $0x68] sm:$0xff] }
 0x231   : > { %v3918_v17 = vadd.f32 %v13073_v13, %v3886_v16  ;;  %v3737_v34 = vpop.f32.mrb[5].mxu1  ;;  %2418 = vst.msk [vmem:[#allocation3 + $0x88] sm:$0xff] %vm1439_vm12, %v2309_v10 }
 0x232   : > { %v3916_v63 = vadd.f32 %v3884_v21, %v3737_v34  ;;  %v13074_v2 = vpop.f32.mrb[6].mxu1  ;;  %13198 = vmatmul.mubr.msk.bf16.gmra.mrb[60].mxu0 %vm1439_vm12, %v12064_v45 }
 0x233   : > { %3950 = vst.msk [vmem:[#allocation3 + $0x30] sm:$0xff] %vm1439_vm12, %v3918_v17  ;;  %v3919_v5 = vadd.f32 %v13074_v2, %v3887_v15  ;;  %v3740_v24 = vpop.f32.mrb[7].mxu1 }
 0x234   : > { %3948 = vst.msk [vmem:[#allocation3 + $0x20] sm:$0xff] %vm1439_vm12, %v3916_v63  ;;  %v3917_v58 = vadd.f32 %v3885_v22, %v3740_v24 }
 0x235   : > { %3951 = vst.msk [vmem:[#allocation3 + $0x38] sm:$0xff] %vm1439_vm12, %v3919_v5  ;;  %v12987_v0 = vpop.f32.mrb[20].mxu0  ;;  %v3898_v51 = vld [vmem:[#allocation3 + $0x90] sm:$0xff] }
 0x236   : > { %3949 = vst.msk [vmem:[#allocation3 + $0x28] sm:$0xff] %vm1439_vm12, %v3917_v58  ;;  %2423 = vst.msk [vmem:[#allocation3 + $0xb0] sm:$0xff] %vm1439_vm12, %v12987_v0  ;;  %v2322_v36 = vpop.f32.mrb[21].mxu0  ;;  %v3896_v12 = vld [vmem:[#allocation3 + $0x80] sm:$0xff] }
 0x237   : > { %2421 = vst.msk [vmem:[#allocation3 + $0xa0] sm:$0xff] %vm1439_vm12, %v2322_v36  ;;  %v12988_v54 = vpop.f32.mrb[22].mxu0  ;;  %v3899_v1 = vld [vmem:[#allocation3 + $0x98] sm:$0xff] }
 0x238   : > { %v13077_v14 = vpop.f32.mrb[8].mxu1  ;;  %2424 = vst.msk [vmem:[#allocation3 + $0xb8] sm:$0xff] %vm1439_vm12, %v12988_v54  ;;  %v2325_v61 = vpop.f32.mrb[23].mxu0  ;;  %v3897_v49 = vld [vmem:[#allocation3 + $0x88] sm:$0xff] }
 0x239   : > { %v3922_v8 = vadd.f32 %v13077_v14, %v3890_v57  ;;  %v3753_v50 = vpop.f32.mrb[9].mxu1  ;;  %2422 = vst.msk [vmem:[#allocation3 + $0xa8] sm:$0xff] %vm1439_vm12, %v2325_v61 }
 0x23a   : > { %v3920_v38 = vadd.f32 %v3888_v29, %v3753_v50  ;;  %v13078_v42 = vpop.f32.mrb[10].mxu1 }
 0x23b   : > { %3954 = vst.msk [vmem:[#allocation3 + $0x50] sm:$0xff] %vm1439_vm12, %v3922_v8  ;;  %v3923_v48 = vadd.f32 %v13078_v42, %v3891_v23  ;;  %v3756_v28 = vpop.f32.mrb[11].mxu1 }
 0x23c   : > { %3952 = vst.msk [vmem:[#allocation3 + $0x40] sm:$0xff] %vm1439_vm12, %v3920_v38  ;;  %v3921_v62 = vadd.f32 %v3889_v6, %v3756_v28 }
 0x23d   : > { %3955 = vst.msk [vmem:[#allocation3 + $0x58] sm:$0xff] %vm1439_vm12, %v3923_v48  ;;  %v12991_v4 = vpop.f32.mrb[24].mxu0  ;;  %v3902_v45 = vld [vmem:[#allocation3 + $0xb0] sm:$0xff] }
 0x23e   : > { %3953 = vst.msk [vmem:[#allocation3 + $0x48] sm:$0xff] %vm1439_vm12, %v3921_v62  ;;  %2427 = vst.msk [vmem:[#allocation3 + $0xd0] sm:$0xff] %vm1439_vm12, %v12991_v4  ;;  %v2338_v30 = vpop.f32.mrb[25].mxu0  ;;  %v3900_v21 = vld [vmem:[#allocation3 + $0xa0] sm:$0xff] }
 0x23f   : > { %2425 = vst.msk [vmem:[#allocation3 + $0xc0] sm:$0xff] %vm1439_vm12, %v2338_v30  ;;  %v12992_v11 = vpop.f32.mrb[26].mxu0  ;;  %v3903_v13 = vld [vmem:[#allocation3 + $0xb8] sm:$0xff] }
 0x240   : > { %v13081_v3 = vpop.f32.mrb[12].mxu1  ;;  %2428 = vst.msk [vmem:[#allocation3 + $0xd8] sm:$0xff] %vm1439_vm12, %v12992_v11  ;;  %v2341_v32 = vpop.f32.mrb[27].mxu0  ;;  %v3901_v17 = vld [vmem:[#allocation3 + $0xa8] sm:$0xff] }
 0x241   : > { %v3926_v9 = vadd.f32 %v13081_v3, %v3894_v59  ;;  %v3769_v33 = vpop.f32.mrb[13].mxu1  ;;  %2426 = vst.msk [vmem:[#allocation3 + $0xc8] sm:$0xff] %vm1439_vm12, %v2341_v32  ;;  %v5422_v32 = vld [vmem:[#allocation3 + $0x10] sm:$0xff] }
 0x242   : > { %v3924_v52 = vadd.f32 %v3892_v56, %v3769_v33  ;;  %v13082_v60 = vpop.f32.mrb[14].mxu1 }
 0x243   : > { %3958 = vst.msk [vmem:[#allocation3 + $0x70] sm:$0xff] %vm1439_vm12, %v3926_v9  ;;  %v3927_v25 = vadd.f32 %v13082_v60, %v3895_v53  ;;  %v3772_v37 = vpop.f32.mrb[15].mxu1 }
 0x244   : > { %3956 = vst.msk [vmem:[#allocation3 + $0x60] sm:$0xff] %vm1439_vm12, %v3924_v52  ;;  %v3925_v20 = vadd.f32 %v3893_v31, %v3772_v37  ;;  %v5420_v31 = vld [vmem:[#allocation3] sm:$0xff] }
 0x245   : > { %3959 = vst.msk [vmem:[#allocation3 + $0x78] sm:$0xff] %vm1439_vm12, %v3927_v25  ;;  %v12995_v18 = vpop.f32.mrb[28].mxu0  ;;  %v3906_v24 = vld [vmem:[#allocation3 + $0xd0] sm:$0xff]  ;;  %v5423_v25 = vld [vmem:[#allocation3 + $0x18] sm:$0xff] }
 0x246   : > { %3957 = vst.msk [vmem:[#allocation3 + $0x68] sm:$0xff] %vm1439_vm12, %v3925_v20  ;;  %2431 = vst.msk [vmem:[#allocation3 + $0xf0] sm:$0xff] %vm1439_vm12, %v12995_v18  ;;  %v2354_v44 = vpop.f32.mrb[29].mxu0  ;;  %v3904_v58 = vld [vmem:[#allocation3 + $0xc0] sm:$0xff]  ;;  %v5421_v18 = vld [vmem:[#allocation3 + $0x8] sm:$0xff] }
 0x247   : > { %2429 = vst.msk [vmem:[#allocation3 + $0xe0] sm:$0xff] %vm1439_vm12, %v2354_v44  ;;  %v12996_v7 = vpop.f32.mrb[30].mxu0  ;;  %v3907_v57 = vld [vmem:[#allocation3 + $0xd8] sm:$0xff] }
 0x248   : > { %v13085_v27 = vpop.f32.mrb[16].mxu1  ;;  %2432 = vst.msk [vmem:[#allocation3 + $0xf8] sm:$0xff] %vm1439_vm12, %v12996_v7  ;;  %v2357_v47 = vpop.f32.mrb[31].mxu0  ;;  %v3905_v54 = vld [vmem:[#allocation3 + $0xc8] sm:$0xff] }
 0x249   : > { %v3930_v43 = vadd.f32 %v13085_v27, %v3898_v51  ;;  %v3785_v46 = vpop.f32.mrb[17].mxu1  ;;  %2430 = vst.msk [vmem:[#allocation3 + $0xe8] sm:$0xff] %vm1439_vm12, %v2357_v47 }
 0x24a   : > { %v3928_v41 = vadd.f32 %v3896_v12, %v3785_v46  ;;  %v13086_v26 = vpop.f32.mrb[18].mxu1  ;;  %v5426_v12 = vld [vmem:[#allocation3 + $0x30] sm:$0xff]  ;;  %v5427_v46 = vld [vmem:[#allocation3 + $0x38] sm:$0xff] }
 0x24b   : > { %3962 = vst.msk [vmem:[#allocation3 + $0x90] sm:$0xff] %vm1439_vm12, %v3930_v43  ;;  %v3931_v40 = vadd.f32 %v13086_v26, %v3899_v1  ;;  %v3788_v16 = vpop.f32.mrb[19].mxu1  ;;  %v5424_v1 = vld [vmem:[#allocation3 + $0x20] sm:$0xff] }
 0x24c   : > { %3960 = vst.msk [vmem:[#allocation3 + $0x80] sm:$0xff] %vm1439_vm12, %v3928_v41  ;;  %v3929_v55 = vadd.f32 %v3897_v49, %v3788_v16  ;;  %v5425_v16 = vld [vmem:[#allocation3 + $0x28] sm:$0xff] }
 0x24d   : > { %3963 = vst.msk [vmem:[#allocation3 + $0x98] sm:$0xff] %vm1439_vm12, %v3931_v40  ;;  %v3910_v6 = vld [vmem:[#allocation3 + $0xf0] sm:$0xff] }
 0x24e   : > { %3961 = vst.msk [vmem:[#allocation3 + $0x88] sm:$0xff] %vm1439_vm12, %v3929_v55  ;;  %v3908_v38 = vld [vmem:[#allocation3 + $0xe0] sm:$0xff] }
 0x24f   : > { %v3911_v48 = vld [vmem:[#allocation3 + $0xf8] sm:$0xff] }
 0x250   : > { %v13089_v19 = vpop.f32.mrb[20].mxu1  ;;  %v3909_v4 = vld [vmem:[#allocation3 + $0xe8] sm:$0xff] }
 0x251   : > { %v3934_v15 = vadd.f32 %v13089_v19, %v3902_v45  ;;  %v3801_v10 = vpop.f32.mrb[21].mxu1 }
 0x252   : > { %v3932_v34 = vadd.f32 %v3900_v21, %v3801_v10  ;;  %v13090_v22 = vpop.f32.mrb[22].mxu1 }
 0x253   : > { %3966 = vst.msk [vmem:[#allocation3 + $0xb0] sm:$0xff] %vm1439_vm12, %v3934_v15  ;;  %v3935_v63 = vadd.f32 %v13090_v22, %v3903_v13  ;;  %v3804_v2 = vpop.f32.mrb[23].mxu1 }
 0x254   : > { %3964 = vst.msk [vmem:[#allocation3 + $0xa0] sm:$0xff] %vm1439_vm12, %v3932_v34  ;;  %v3933_v5 = vadd.f32 %v3901_v17, %v3804_v2 }
 0x255   : > { %3967 = vst.msk [vmem:[#allocation3 + $0xb8] sm:$0xff] %vm1439_vm12, %v3935_v63 }
 0x256   : > { %3965 = vst.msk [vmem:[#allocation3 + $0xa8] sm:$0xff] %vm1439_vm12, %v3933_v5 }
 0x258   : > { %v13093_v0 = vpop.f32.mrb[24].mxu1 }
 0x259   : > { %v3938_v36 = vadd.f32 %v13093_v0, %v3906_v24  ;;  %v3817_v29 = vpop.f32.mrb[25].mxu1 }
 0x25a   : > { %v3936_v14 = vadd.f32 %v3904_v58, %v3817_v29  ;;  %v13094_v23 = vpop.f32.mrb[26].mxu1  ;;  %v5430_v58 = vld [vmem:[#allocation3 + $0x50] sm:$0xff] }
 0x25b   : > { %3970 = vst.msk [vmem:[#allocation3 + $0xd0] sm:$0xff] %vm1439_vm12, %v3938_v36  ;;  %v3939_v61 = vadd.f32 %v13094_v23, %v3907_v57  ;;  %v3820_v8 = vpop.f32.mrb[27].mxu1 }
 0x25c   : > { %3968 = vst.msk [vmem:[#allocation3 + $0xc0] sm:$0xff] %vm1439_vm12, %v3936_v14  ;;  %v3937_v50 = vadd.f32 %v3905_v54, %v3820_v8  ;;  %v5428_v54 = vld [vmem:[#allocation3 + $0x40] sm:$0xff] }
 0x25d   : > { %3971 = vst.msk [vmem:[#allocation3 + $0xd8] sm:$0xff] %vm1439_vm12, %v3939_v61 }
 0x25e   : > { %3969 = vst.msk [vmem:[#allocation3 + $0xc8] sm:$0xff] %vm1439_vm12, %v3937_v50  ;;  %v5431_v50 = vld [vmem:[#allocation3 + $0x58] sm:$0xff] }
 0x260   : > { %v13097_v42 = vpop.f32.mrb[28].mxu1 }
 0x261   : > { %v3942_v28 = vadd.f32 %v13097_v42, %v3910_v6  ;;  %v3833_v62 = vpop.f32.mrb[29].mxu1 }
 0x262   : > { %v3940_v59 = vadd.f32 %v3908_v38, %v3833_v62  ;;  %v13098_v30 = vpop.f32.mrb[30].mxu1 }
 0x263   : > { %3974 = vst.msk [vmem:[#allocation3 + $0xf0] sm:$0xff] %vm1439_vm12, %v3942_v28  ;;  %v3943_v56 = vadd.f32 %v13098_v30, %v3911_v48  ;;  %v3836_v11 = vpop.f32.mrb[31].mxu1 }
 0x264   : > { %3972 = vst.msk [vmem:[#allocation3 + $0xe0] sm:$0xff] %vm1439_vm12, %v3940_v59  ;;  %v3941_v3 = vadd.f32 %v3909_v4, %v3836_v11  ;;  %v5429_v4 = vld [vmem:[#allocation3 + $0x48] sm:$0xff] }
 0x265   : > { %3975 = vst.msk [vmem:[#allocation3 + $0xf8] sm:$0xff] %vm1439_vm12, %v3943_v56 }
 0x266   : > { %3973 = vst.msk [vmem:[#allocation3 + $0xe8] sm:$0xff] %vm1439_vm12, %v3941_v3 }
 0x2cd   : > { %v13171_v53 = vpop.f32.mrb[32].mxu0 }
 0x2ce   : > { %v5454_v9 = vadd.f32 %v13171_v53, %v5422_v32  ;;  %v5261_v33 = vpop.f32.mrb[33].mxu0 }
 0x2cf   : > { %v5452_v52 = vadd.f32 %v5420_v31, %v5261_v33  ;;  %v13172_v60 = vpop.f32.mrb[34].mxu0 }
 0x2d0   : > { %5486 = vst.msk [vmem:[#allocation3 + $0x10] sm:$0xff] %vm1439_vm12, %v5454_v9  ;;  %v5455_v37 = vadd.f32 %v13172_v60, %v5423_v25  ;;  %v5264_v20 = vpop.f32.mrb[35].mxu0 }
 0x2d1   : > { %5484 = vst.msk [vmem:[#allocation3] sm:$0xff] %vm1439_vm12, %v5452_v52  ;;  %v5453_v51 = vadd.f32 %v5421_v18, %v5264_v20 }
 0x2d2   : > { %5487 = vst.msk [vmem:[#allocation3 + $0x18] sm:$0xff] %vm1439_vm12, %v5455_v37 }
 0x2d3   : > { %5485 = vst.msk [vmem:[#allocation3 + $0x8] sm:$0xff] %vm1439_vm12, %v5453_v51 }
 0x2d5   : > { %v13175_v44 = vpop.f32.mrb[36].mxu0 }
 0x2d6   : > { %v5458_v7 = vadd.f32 %v13175_v44, %v5426_v12  ;;  %v5277_v27 = vpop.f32.mrb[37].mxu0  ;;  %v5434_v12 = vld [vmem:[#allocation3 + $0x70] sm:$0xff] }
 0x2d7   : > { %v5456_v47 = vadd.f32 %v5424_v1, %v5277_v27  ;;  %v13176_v43 = vpop.f32.mrb[38].mxu0  ;;  %v16127_v49 = vld [vmem:[#allocation3 + $0x10] sm:$0xff] }
 0x2d8   : > { %v16129_v41 = vld [vmem:[#allocation3] sm:$0xff]  ;;  %5490 = vst.msk [vmem:[#allocation3 + $0x30] sm:$0xff] %vm1439_vm12, %v5458_v7  ;;  %v5459_v26 = vadd.f32 %v13176_v43, %v5427_v46  ;;  %v5280_v40 = vpop.f32.mrb[39].mxu0  ;;  %v5620_v13 = vmul.f32 %v16127_v49, %v16127_v49  ;;  %v5551_v63 = vsel %vm1439_vm12, %v16127_v49, 0.0 }
 0x2d9   : > { %v5618_v55 = vmul.f32 %v16129_v41, %v16129_v41  ;;  %v16134_v45 = vld [vmem:[#allocation3 + $0x18] sm:$0xff]  ;;  %5488 = vst.msk [vmem:[#allocation3 + $0x20] sm:$0xff] %vm1439_vm12, %v5456_v47  ;;  %v5457_v21 = vadd.f32 %v5425_v16, %v5280_v40  ;;  %v5548_v15 = vsel %vm1439_vm12, %v16129_v41, 0.0  ;;  %v5432_v43 = vld [vmem:[#allocation3 + $0x60] sm:$0xff] }
 0x2da   : > { %v16137_v19 = vld [vmem:[#allocation3 + $0x8] sm:$0xff]  ;;  %5491 = vst.msk [vmem:[#allocation3 + $0x38] sm:$0xff] %vm1439_vm12, %v5459_v26  ;;  %v5621_v34 = vmul.f32 %v16134_v45, %v16134_v45  ;;  %v5653_v14 = vsel %vm1439_vm12, %v5620_v13, 0.0  ;;  %v5553_v23 = vsel %vm1439_vm12, %v16134_v45, 0.0 }
 0x2db   : > { %v5549_v10 = vsel %vm1439_vm12, %v16137_v19, 0.0  ;;  %v5619_v17 = vmul.f32 %v16137_v19, %v16137_v19  ;;  %5489 = vst.msk [vmem:[#allocation3 + $0x28] sm:$0xff] %vm1439_vm12, %v5457_v21  ;;  %v5650_v2 = vsel %vm1439_vm12, %v5618_v55, 0.0 }
 0x2dc   : > { %v5550_v22 = vadd.f32 %v5549_v10, %v5548_v15  ;;  %v5655_v6 = vsel %vm1439_vm12, %v5621_v34, 0.0  ;;  %v5435_v10 = vld [vmem:[#allocation3 + $0x78] sm:$0xff]  ;;  %v5433_v34 = vld [vmem:[#allocation3 + $0x68] sm:$0xff] }
 0x2dd   : > { %v5651_v5 = vsel %vm1439_vm12, %v5619_v17, 0.0  ;;  %v13179_v24 = vpop.f32.mrb[40].mxu0 }
 0x2de   : > { %v5552_v0 = vadd.f32 %v5551_v63, %v5550_v22  ;;  %v5652_v57 = vadd.f32 %v5651_v5, %v5650_v2  ;;  %v5462_v36 = vadd.f32 %v13179_v24, %v5430_v58  ;;  %v5293_v29 = vpop.f32.mrb[41].mxu0 }
 0x2df   : > { %v5460_v61 = vadd.f32 %v5428_v54, %v5293_v29  ;;  %v13180_v8 = vpop.f32.mrb[42].mxu0  ;;  %v16159_v42 = vld [vmem:[#allocation3 + $0x30] sm:$0xff] }
 0x2e0   : > { %v5654_v38 = vadd.f32 %v5653_v14, %v5652_v57  ;;  %v16161_v48 = vld [vmem:[#allocation3 + $0x20] sm:$0xff]  ;;  %v5554_v28 = vadd.f32 %v5553_v23, %v5552_v0  ;;  %5494 = vst.msk [vmem:[#allocation3 + $0x50] sm:$0xff] %vm1439_vm12, %v5462_v36  ;;  %v5296_v62 = vpop.f32.mrb[43].mxu0  ;;  %v5463_v11 = vadd.f32 %v13180_v8, %v5431_v50  ;;  %v5624_v33 = vmul.f32 %v16159_v42, %v16159_v42 }
 0x2e1   : > { %v5555_v59 = vsel %vm1439_vm12, %v16161_v48, 0.0  ;;  %v5622_v30 = vmul.f32 %v16161_v48, %v16161_v48  ;;  %v16168_v56 = vld [vmem:[#allocation3 + $0x38] sm:$0xff]  ;;  %5492 = vst.msk [vmem:[#allocation3 + $0x40] sm:$0xff] %vm1439_vm12, %v5460_v61  ;;  %v5461_v3 = vadd.f32 %v5429_v4, %v5296_v62  ;;  %v5559_v18 = vsel %vm1439_vm12, %v16159_v42, 0.0 }
 0x2e2   : > { %v5556_v53 = vadd.f32 %v5555_v59, %v5554_v28  ;;  %v5656_v32 = vadd.f32 %v5655_v6, %v5654_v38  ;;  %v16171_v9 = vld [vmem:[#allocation3 + $0x28] sm:$0xff]  ;;  %5495 = vst.msk [vmem:[#allocation3 + $0x58] sm:$0xff] %vm1439_vm12, %v5463_v11  ;;  %v5625_v37 = vmul.f32 %v16168_v56, %v16168_v56  ;;  %v5661_v46 = vsel %vm1439_vm12, %v5624_v33, 0.0  ;;  %v5438_v38 = vld [vmem:[#allocation3 + $0x90] sm:$0xff]  ;;  %v5436_v11 = vld [vmem:[#allocation3 + $0x80] sm:$0xff] }
 0x2e3   : > { %v5657_v31 = vsel %vm1439_vm12, %v5622_v30, 0.0  ;;  %v5557_v52 = vsel %vm1439_vm12, %v16171_v9, 0.0  ;;  %v5623_v60 = vmul.f32 %v16171_v9, %v16171_v9  ;;  %5493 = vst.msk [vmem:[#allocation3 + $0x48] sm:$0xff] %vm1439_vm12, %v5461_v3  ;;  %v5561_v26 = vsel %vm1439_vm12, %v16168_v56, 0.0 }
 0x2e4   : > { %v5658_v25 = vadd.f32 %v5657_v31, %v5656_v32  ;;  %v5558_v20 = vadd.f32 %v5557_v52, %v5556_v53  ;;  %v5663_v55 = vsel %vm1439_vm12, %v5625_v37, 0.0  ;;  %v5439_v31 = vld [vmem:[#allocation3 + $0x98] sm:$0xff] }
 0x2e5   : > { %v5659_v51 = vsel %vm1439_vm12, %v5623_v60, 0.0  ;;  %v13183_v44 = vpop.f32.mrb[44].mxu0 }
 0x2e6   : > { %v5560_v7 = vadd.f32 %v5559_v18, %v5558_v20  ;;  %v5660_v27 = vadd.f32 %v5659_v51, %v5658_v25  ;;  %v5466_v1 = vadd.f32 %v13183_v44, %v5434_v12  ;;  %v5309_v47 = vpop.f32.mrb[45].mxu0  ;;  %v5437_v18 = vld [vmem:[#allocation3 + $0x88] sm:$0xff] }
 0x2e7   : > { %v5464_v40 = vadd.f32 %v5432_v43, %v5309_v47  ;;  %v13184_v16 = vpop.f32.mrb[46].mxu0  ;;  %v16194_v22 = vld [vmem:[#allocation3 + $0x50] sm:$0xff] }
 0x2e8   : > { %v5662_v21 = vadd.f32 %v5661_v46, %v5660_v27  ;;  %v16191_v13 = vld [vmem:[#allocation3 + $0x40] sm:$0xff]  ;;  %v5562_v15 = vadd.f32 %v5561_v26, %v5560_v7  ;;  %5498 = vst.msk [vmem:[#allocation3 + $0x70] sm:$0xff] %vm1439_vm12, %v5466_v1  ;;  %v5312_v17 = vpop.f32.mrb[47].mxu0  ;;  %v5467_v5 = vadd.f32 %v13184_v16, %v5435_v10  ;;  %v5628_v14 = vmul.f32 %v16194_v22, %v16194_v22 }
 0x2e9   : > { %v5563_v63 = vsel %vm1439_vm12, %v16191_v13, 0.0  ;;  %v5626_v2 = vmul.f32 %v16191_v13, %v16191_v13  ;;  %5496 = vst.msk [vmem:[#allocation3 + $0x60] sm:$0xff] %vm1439_vm12, %v5464_v40  ;;  %v5465_v24 = vadd.f32 %v5433_v34, %v5312_v17  ;;  %v16204_v29 = vld [vmem:[#allocation3 + $0x58] sm:$0xff]  ;;  %v5567_v50 = vsel %vm1439_vm12, %v16194_v22, 0.0  ;;  %v5442_v34 = vld [vmem:[#allocation3 + $0xb0] sm:$0xff] }
 0x2ea   : > { %v5564_v58 = vadd.f32 %v5563_v63, %v5562_v15  ;;  %v5664_v0 = vadd.f32 %v5663_v55, %v5662_v21  ;;  %v16201_v57 = vld [vmem:[#allocation3 + $0x48] sm:$0xff]  ;;  %5499 = vst.msk [vmem:[#allocation3 + $0x78] sm:$0xff] %vm1439_vm12, %v5467_v5  ;;  %v5629_v28 = vmul.f32 %v16204_v29, %v16204_v29  ;;  %v5569_v3 = vsel %vm1439_vm12, %v16204_v29, 0.0 }
 0x2eb   : > { %v5665_v36 = vsel %vm1439_vm12, %v5626_v2, 0.0  ;;  %v5565_v54 = vsel %vm1439_vm12, %v16201_v57, 0.0  ;;  %5497 = vst.msk [vmem:[#allocation3 + $0x68] sm:$0xff] %vm1439_vm12, %v5465_v24  ;;  %v5627_v8 = vmul.f32 %v16201_v57, %v16201_v57  ;;  %v5669_v52 = vsel %vm1439_vm12, %v5628_v14, 0.0 }
 0x2ec   : > { %v5666_v23 = vadd.f32 %v5665_v36, %v5664_v0  ;;  %v5566_v61 = vadd.f32 %v5565_v54, %v5564_v58  ;;  %v5671_v1 = vsel %vm1439_vm12, %v5629_v28, 0.0  ;;  %v5440_v0 = vld [vmem:[#allocation3 + $0xa0] sm:$0xff] }
 0x2ed   : > { %v13187_v6 = vpop.f32.mrb[48].mxu0  ;;  %v5667_v4 = vsel %vm1439_vm12, %v5627_v8, 0.0 }
 0x2ee   : > { %v5568_v62 = vadd.f32 %v5567_v50, %v5566_v61  ;;  %v5470_v59 = vadd.f32 %v13187_v6, %v5438_v38  ;;  %v5325_v30 = vpop.f32.mrb[49].mxu0  ;;  %v5668_v53 = vadd.f32 %v5667_v4, %v5666_v23  ;;  %v5443_v61 = vld [vmem:[#allocation3 + $0xb8] sm:$0xff] }
 0x2ef   : > { %v5468_v32 = vadd.f32 %v5436_v11, %v5325_v30  ;;  %v13188_v33 = vpop.f32.mrb[50].mxu0  ;;  %v16225_v44 = vld [vmem:[#allocation3 + $0x70] sm:$0xff] }
 0x2f0   : > { %v16222_v60 = vld [vmem:[#allocation3 + $0x60] sm:$0xff]  ;;  %v5570_v25 = vadd.f32 %v5569_v3, %v5568_v62  ;;  %5502 = vst.msk [vmem:[#allocation3 + $0x90] sm:$0xff] %vm1439_vm12, %v5470_v59  ;;  %v5471_v37 = vadd.f32 %v13188_v33, %v5439_v31  ;;  %v5328_v20 = vpop.f32.mrb[51].mxu0  ;;  %v5670_v51 = vadd.f32 %v5669_v52, %v5668_v53  ;;  %v5632_v16 = vmul.f32 %v16225_v44, %v16225_v44  ;;  %v5441_v3 = vld [vmem:[#allocation3 + $0xa8] sm:$0xff] }
 0x2f1   : > { %v5571_v12 = vsel %vm1439_vm12, %v16222_v60, 0.0  ;;  %v5630_v7 = vmul.f32 %v16222_v60, %v16222_v60  ;;  %5500 = vst.msk [vmem:[#allocation3 + $0x80] sm:$0xff] %vm1439_vm12, %v5468_v32  ;;  %v5469_v27 = vadd.f32 %v5437_v18, %v5328_v20  ;;  %v16237_v40 = vld [vmem:[#allocation3 + $0x78] sm:$0xff]  ;;  %v5575_v63 = vsel %vm1439_vm12, %v16225_v44, 0.0 }
 0x2f2   : > { %v5572_v47 = vadd.f32 %v5571_v12, %v5570_v25  ;;  %v16233_v43 = vld [vmem:[#allocation3 + $0x68] sm:$0xff]  ;;  %5503 = vst.msk [vmem:[#allocation3 + $0x98] sm:$0xff] %vm1439_vm12, %v5471_v37  ;;  %v5672_v46 = vadd.f32 %v5671_v1, %v5670_v51  ;;  %v5633_v2 = vmul.f32 %v16237_v40, %v16237_v40  ;;  %v5677_v8 = vsel %vm1439_vm12, %v5632_v16, 0.0  ;;  %v5446_v1 = vld [vmem:[#allocation3 + $0xd0] sm:$0xff] }
 0x2f3   : > { %v5673_v26 = vsel %vm1439_vm12, %v5630_v7, 0.0  ;;  %5501 = vst.msk [vmem:[#allocation3 + $0x88] sm:$0xff] %vm1439_vm12, %v5469_v27  ;;  %v5573_v55 = vsel %vm1439_vm12, %v16233_v43, 0.0  ;;  %v5631_v21 = vmul.f32 %v16233_v43, %v16233_v43  ;;  %v5577_v50 = vsel %vm1439_vm12, %v16237_v40, 0.0 }
 0x2f4   : > { %v5674_v15 = vadd.f32 %v5673_v26, %v5672_v46  ;;  %v5574_v10 = vadd.f32 %v5573_v55, %v5572_v47  ;;  %v5679_v53 = vsel %vm1439_vm12, %v5633_v2, 0.0 }
 0x2f5   : > { %v13191_v17 = vpop.f32.mrb[52].mxu0  ;;  %v5675_v5 = vsel %vm1439_vm12, %v5631_v21, 0.0  ;;  %v5444_v21 = vld [vmem:[#allocation3 + $0xc0] sm:$0xff] }
 0x2f6   : > { %v5474_v24 = vadd.f32 %v13191_v17, %v5442_v34  ;;  %v5341_v58 = vpop.f32.mrb[53].mxu0  ;;  %v5576_v36 = vadd.f32 %v5575_v63, %v5574_v10  ;;  %v5676_v54 = vadd.f32 %v5675_v5, %v5674_v15  ;;  %v5447_v63 = vld [vmem:[#allocation3 + $0xd8] sm:$0xff] }
 0x2f7   : > { %v5472_v14 = vadd.f32 %v5440_v0, %v5341_v58  ;;  %v13192_v23 = vpop.f32.mrb[54].mxu0  ;;  %v16257_v4 = vld [vmem:[#allocation3 + $0x90] sm:$0xff] }
 0x2f8   : > { %v16254_v6 = vld [vmem:[#allocation3 + $0x80] sm:$0xff]  ;;  %5506 = vst.msk [vmem:[#allocation3 + $0xb0] sm:$0xff] %vm1439_vm12, %v5474_v24  ;;  %v5475_v38 = vadd.f32 %v13192_v23, %v5443_v61  ;;  %v5344_v28 = vpop.f32.mrb[55].mxu0  ;;  %v5678_v62 = vadd.f32 %v5677_v8, %v5676_v54  ;;  %v5578_v59 = vadd.f32 %v5577_v50, %v5576_v36  ;;  %v5636_v18 = vmul.f32 %v16257_v4, %v16257_v4  ;;  %v5445_v8 = vld [vmem:[#allocation3 + $0xc8] sm:$0xff] }
 0x2f9   : > { %v5579_v30 = vsel %vm1439_vm12, %v16254_v6, 0.0  ;;  %v5634_v11 = vmul.f32 %v16254_v6, %v16254_v6  ;;  %5504 = vst.msk [vmem:[#allocation3 + $0xa0] sm:$0xff] %vm1439_vm12, %v5472_v14  ;;  %v5473_v33 = vadd.f32 %v5441_v3, %v5344_v28  ;;  %v16269_v37 = vld [vmem:[#allocation3 + $0x98] sm:$0xff]  ;;  %v5583_v47 = vsel %vm1439_vm12, %v16257_v4, 0.0 }
 0x2fa   : > { %v16265_v32 = vld [vmem:[#allocation3 + $0x88] sm:$0xff]  ;;  %5507 = vst.msk [vmem:[#allocation3 + $0xb8] sm:$0xff] %vm1439_vm12, %v5475_v38  ;;  %v5580_v31 = vadd.f32 %v5579_v30, %v5578_v59  ;;  %v5680_v52 = vadd.f32 %v5679_v53, %v5678_v62  ;;  %v5637_v46 = vmul.f32 %v16269_v37, %v16269_v37  ;;  %v5685_v2 = vsel %vm1439_vm12, %v5636_v18, 0.0 }
 0x2fb   : > { %v5681_v25 = vsel %vm1439_vm12, %v5634_v11, 0.0  ;;  %v5581_v20 = vsel %vm1439_vm12, %v16265_v32, 0.0  ;;  %v5635_v51 = vmul.f32 %v16265_v32, %v16265_v32  ;;  %5505 = vst.msk [vmem:[#allocation3 + $0xa8] sm:$0xff] %vm1439_vm12, %v5473_v33  ;;  %v5585_v5 = vsel %vm1439_vm12, %v16269_v37, 0.0 }
 0x2fc   : > { %v5682_v12 = vadd.f32 %v5681_v25, %v5680_v52  ;;  %v5582_v7 = vadd.f32 %v5581_v20, %v5580_v31  ;;  %v5687_v50 = vsel %vm1439_vm12, %v5637_v46, 0.0  ;;  %v5450_v20 = vld [vmem:[#allocation3 + $0xf0] sm:$0xff] }
 0x2fd   : > { %v13195_v27 = vpop.f32.mrb[56].mxu0  ;;  %v5683_v26 = vsel %vm1439_vm12, %v5635_v51, 0.0 }
 0x2fe   : > { %v5478_v16 = vadd.f32 %v13195_v27, %v5446_v1  ;;  %v5357_v55 = vpop.f32.mrb[57].mxu0  ;;  %v5584_v15 = vadd.f32 %v5583_v47, %v5582_v7  ;;  %v5684_v10 = vadd.f32 %v5683_v26, %v5682_v12  ;;  %v5448_v1 = vld [vmem:[#allocation3 + $0xe0] sm:$0xff] }
 0x2ff   : > { %v5476_v17 = vadd.f32 %v5444_v21, %v5357_v55  ;;  %v13196_v34 = vpop.f32.mrb[58].mxu0  ;;  %v16286_v24 = vld [vmem:[#allocation3 + $0xb0] sm:$0xff]  ;;  %v5451_v21 = vld [vmem:[#allocation3 + $0xf8] sm:$0xff] }
 0x300   : > { %v16288_v58 = vld [vmem:[#allocation3 + $0xa0] sm:$0xff]  ;;  %5510 = vst.msk [vmem:[#allocation3 + $0xd0] sm:$0xff] %vm1439_vm12, %v5478_v16  ;;  %v5479_v0 = vadd.f32 %v13196_v34, %v5447_v63  ;;  %v5360_v36 = vpop.f32.mrb[59].mxu0  ;;  %v5686_v54 = vadd.f32 %v5685_v2, %v5684_v10  ;;  %v5586_v14 = vadd.f32 %v5585_v5, %v5584_v15  ;;  %v5640_v28 = vmul.f32 %v16286_v24, %v16286_v24  ;;  %v13938_v63 = vld [vmem:[%s19364_s2] ss:$0 sps:$4 sm:$0xcc]  }
 0x301   : > { %v5587_v23 = vsel %vm1439_vm12, %v16288_v58, 0.0  ;;  %v5638_v61 = vmul.f32 %v16288_v58, %v16288_v58  ;;  %5508 = vst.msk [vmem:[#allocation3 + $0xc0] sm:$0xff] %vm1439_vm12, %v5476_v17  ;;  %v5477_v38 = vadd.f32 %v5445_v8, %v5360_v36  ;;  %v16301_v11 = vld [vmem:[#allocation3 + $0xb8] sm:$0xff]  ;;  %v5591_v18 = vsel %vm1439_vm12, %v16286_v24, 0.0 }
 0x302   : > { %5511 = vst.msk [vmem:[#allocation3 + $0xd8] sm:$0xff] %vm1439_vm12, %v5479_v0  ;;  %v5588_v62 = vadd.f32 %v5587_v23, %v5586_v14  ;;  %v5688_v59 = vadd.f32 %v5687_v50, %v5686_v54  ;;  %v16303_v3 = vld [vmem:[#allocation3 + $0xa8] sm:$0xff]  ;;  %v5641_v51 = vmul.f32 %v16301_v11, %v16301_v11  ;;  %v5693_v47 = vsel %vm1439_vm12, %v5640_v28, 0.0  ;;  %v8559_v23 = vld [vmem:[%s19364_s2 + $0x8] sm:$0x3] }
 0x303   : > { %v5689_v30 = vsel %vm1439_vm12, %v5638_v61, 0.0  ;;  %v5589_v53 = vsel %vm1439_vm12, %v16303_v3, 0.0  ;;  %v5639_v33 = vmul.f32 %v16303_v3, %v16303_v3  ;;  %5509 = vst.msk [vmem:[#allocation3 + $0xc8] sm:$0xff] %vm1439_vm12, %v5477_v38  ;;  %v5593_v15 = vsel %vm1439_vm12, %v16301_v11, 0.0  ;;  %v5449_v14 = vld [vmem:[#allocation3 + $0xe8] sm:$0xff]  ;;  %13903 = vmatprep.subr.msk.bf16.mxu0 %vm1488_vm0, %v8559_v23 }
 0x304   : > { %v5690_v31 = vadd.f32 %v5689_v30, %v5688_v59  ;;  %v5590_v52 = vadd.f32 %v5589_v53, %v5588_v62  ;;  %v5695_v61 = vsel %vm1439_vm12, %v5641_v51, 0.0  ;;  %v7136_v30 = vrot.slane %v13938_v63, 2 }
 0x305   : > { %v13199_v25 = vpop.f32.mrb[60].mxu0  ;;  %v5691_v12 = vsel %vm1439_vm12, %v5639_v33, 0.0 }
 0x306   : > { %v5482_v7 = vadd.f32 %v13199_v25, %v5450_v20  ;;  %v5373_v27 = vpop.f32.mrb[61].mxu0  ;;  %v5592_v46 = vadd.f32 %v5591_v18, %v5590_v52  ;;  %v5692_v26 = vadd.f32 %v5691_v12, %v5690_v31  ;;  %v8657_v52 = vsel %vm1488_vm0, %v8559_v23, 0  ;;  %13900 = vmatprep.subr.msk.bf16.mxu1 %vm1488_vm0, %v7136_v30 }
 0x307   : > { %v5480_v16 = vadd.f32 %v5448_v1, %v5373_v27  ;;  %v13200_v55 = vpop.f32.mrb[62].mxu0  ;;  %v16324_v5 = vld [vmem:[#allocation3 + $0xd0] sm:$0xff]  ;;  %v7186_v18 = vsel %vm1488_vm0, %v7136_v30, 0  ;;  %13304 = vmatpush3.bf16.msra.mxu0 %v8657_v52 }
 0x308   : > { %v16318_v10 = vld [vmem:[#allocation3 + $0xc0] sm:$0xff]  ;;  %5514 = vst.msk [vmem:[#allocation3 + $0xf0] sm:$0xff] %vm1439_vm12, %v5482_v7  ;;  %v5483_v17 = vadd.f32 %v13200_v55, %v5451_v21  ;;  %v5376_v34 = vpop.f32.mrb[63].mxu0  ;;  %v5694_v2 = vadd.f32 %v5693_v47, %v5692_v26  ;;  %v5594_v0 = vadd.f32 %v5593_v15, %v5592_v46  ;;  %v5644_v53 = vmul.f32 %v16324_v5, %v16324_v5 }
 0x309   : > { %v5595_v36 = vsel %vm1439_vm12, %v16318_v10, 0.0  ;;  %v5642_v54 = vmul.f32 %v16318_v10, %v16318_v10  ;;  %5512 = vst.msk [vmem:[#allocation3 + $0xe0] sm:$0xff] %vm1439_vm12, %v5480_v16  ;;  %v5481_v8 = vadd.f32 %v5449_v14, %v5376_v34  ;;  %v16338_v62 = vld [vmem:[#allocation3 + $0xd8] sm:$0xff]  ;;  %v5599_v51 = vsel %vm1439_vm12, %v16324_v5, 0.0  ;;  %13202 = vmatpush3.bf16.msra.mxu1 %v7186_v18 }
 0x30a   : > { %5515 = vst.msk [vmem:[#allocation3 + $0xf8] sm:$0xff] %vm1439_vm12, %v5483_v17  ;;  %v5596_v50 = vadd.f32 %v5595_v36, %v5594_v0  ;;  %v5696_v38 = vadd.f32 %v5695_v61, %v5694_v2  ;;  %v16340_v59 = vld [vmem:[#allocation3 + $0xc8] sm:$0xff]  ;;  %v5645_v12 = vmul.f32 %v16338_v62, %v16338_v62  ;;  %v5701_v47 = vsel %vm1439_vm12, %v5644_v53, 0.0 }
 0x30b   : > { %v5697_v28 = vsel %vm1439_vm12, %v5642_v54, 0.0  ;;  %v5597_v33 = vsel %vm1439_vm12, %v16340_v59, 0.0  ;;  %v5643_v31 = vmul.f32 %v16340_v59, %v16340_v59  ;;  %5513 = vst.msk [vmem:[#allocation3 + $0xe8] sm:$0xff] %vm1439_vm12, %v5481_v8  ;;  %v5601_v46 = vsel %vm1439_vm12, %v16338_v62, 0.0 }
 0x30c   : > { %v5698_v25 = vadd.f32 %v5697_v28, %v5696_v38  ;;  %v5598_v20 = vadd.f32 %v5597_v33, %v5596_v50  ;;  %v5703_v34 = vsel %vm1439_vm12, %v5645_v12, 0.0 }
 0x30d   : > { %v5699_v7 = vsel %vm1439_vm12, %v5643_v31, 0.0 }
 0x30e   : > { %v5600_v27 = vadd.f32 %v5599_v51, %v5598_v20  ;;  %v5700_v1 = vadd.f32 %v5699_v7, %v5698_v25 }
 0x30f   : > { %v16362_v55 = vld [vmem:[#allocation3 + $0xf0] sm:$0xff] }
 0x310   : > { %v16360_v26 = vld [vmem:[#allocation3 + $0xe0] sm:$0xff]  ;;  %v5702_v16 = vadd.f32 %v5701_v47, %v5700_v1  ;;  %v5602_v21 = vadd.f32 %v5601_v46, %v5600_v27  ;;  %v5648_v14 = vmul.f32 %v16362_v55, %v16362_v55  ;;  %v5607_v38 = vsel %vm1439_vm12, %v16362_v55, 0.0 }
 0x311   : > { %v5603_v15 = vsel %vm1439_vm12, %v16360_v26, 0.0  ;;  %v5646_v17 = vmul.f32 %v16360_v26, %v16360_v26  ;;  %v16370_v36 = vld [vmem:[#allocation3 + $0xf8] sm:$0xff] }
 0x312   : > { %v5604_v63 = vadd.f32 %v5603_v15, %v5602_v21  ;;  %v5704_v2 = vadd.f32 %v5703_v34, %v5702_v16  ;;  %v16372_v54 = vld [vmem:[#allocation3 + $0xe8] sm:$0xff]  ;;  %v5649_v28 = vmul.f32 %v16370_v36, %v16370_v36  ;;  %v5709_v31 = vsel %vm1439_vm12, %v5648_v14, 0.0 }
 0x313   : > { %v5705_v0 = vsel %vm1439_vm12, %v5646_v17, 0.0  ;;  %v5605_v23 = vsel %vm1439_vm12, %v16372_v54, 0.0  ;;  %v5647_v61 = vmul.f32 %v16372_v54, %v16372_v54  ;;  %v5609_v52 = vsel %vm1439_vm12, %v16370_v36, 0.0 }
 0x314   : > { %v5706_v8 = vadd.f32 %v5705_v0, %v5704_v2  ;;  %v5606_v50 = vadd.f32 %v5605_v23, %v5604_v63  ;;  %v5711_v18 = vsel %vm1439_vm12, %v5649_v28, 0.0  ;;  %v16394_v0 = vld [vmem:[%s19364_s2] sm:$0x3] }
 0x315   : > { %v5707_v30 = vsel %vm1439_vm12, %v5647_v61, 0.0  ;;  %13901 = vmatprep.subr.msk.bf16.mxu1 %vm1488_vm0, %v16394_v0 }
 0x316   : > { %v5608_v53 = vadd.f32 %v5607_v38, %v5606_v50  ;;  %v5708_v33 = vadd.f32 %v5707_v30, %v5706_v8 }
 0x318   : > { %v5610_v25 = vadd.f32 %v5609_v52, %v5608_v53  ;;  %v5710_v20 = vadd.f32 %v5709_v31, %v5708_v33 }
 0x31a   : > { %v5611_v51 = vrot.slane %v5610_v25, 4  ;;  %v5712_v12 = vadd.f32 %v5711_v18, %v5710_v20 }
 0x31c   : > { %v5612_v7 = vadd.f32 %v5611_v51, %v5610_v25  ;;  %v5713_v27 = vrot.slane %v5712_v12, 4 }
 0x31e   : > { %v5613_v1 = vrot.slane %v5612_v7, 2  ;;  %v5714_v47 = vadd.f32 %v5713_v27, %v5712_v12 }
 0x320   : > { %v5614_v46 = vadd.f32 %v5613_v1, %v5612_v7  ;;  %v5715_v16 = vrot.slane %v5714_v47, 2 }
 0x322   : > { %v5615_v21 = vrot.slane %v5614_v46, 1  ;;  %v5716_v15 = vadd.f32 %v5715_v16, %v5714_v47 }
 0x324   : > { %v5616_v17 = vadd.f32 %v5615_v21, %v5614_v46  ;;  %v5717_v34 = vrot.slane %v5716_v15, 1 }
 0x326   : > { %v16389_v63 = vmul.f32 0.00390625, %v5616_v17  ;;  %v5718_v2 = vadd.f32 %v5717_v34, %v5716_v15 }
 0x328   : > { %v5719_v14 = vmul.f32 0.00390625, %v5718_v2  ;;  %v5720_v23 = vmul.f32 %v16389_v63, %v16389_v63  ;;  %v5751_v38 = vsub.f32 %v16360_v26, %v16389_v63  ;;  %v5752_v28 = vsub.f32 %v16372_v54, %v16389_v63 }
 0x329   : > { %v5723_v30 = vsub.f32 %v16129_v41, %v16389_v63  ;;  %v5724_v53 = vsub.f32 %v16137_v19, %v16389_v63  ;;  %v5725_v33 = vsub.f32 %v16127_v49, %v16389_v63  ;;  %v5726_v31 = vsub.f32 %v16134_v45, %v16389_v63 }
 0x32a   : > { %v5721_v61 = vsub.f32 %v5719_v14, %v5720_v23  ;;  %v5727_v52 = vsub.f32 %v16161_v48, %v16389_v63  ;;  %v5728_v26 = vsub.f32 %v16171_v9, %v16389_v63  ;;  %v5729_v54 = vsub.f32 %v16159_v42, %v16389_v63 }
 0x32b   : > { %v5730_v41 = vsub.f32 %v16168_v56, %v16389_v63  ;;  %v5731_v19 = vsub.f32 %v16191_v13, %v16389_v63  ;;  %v5732_v49 = vsub.f32 %v16201_v57, %v16389_v63  ;;  %v5733_v45 = vsub.f32 %v16194_v22, %v16389_v63 }
 0x32c   : > { %v5722_v8 = vmax.f32 %v5721_v61, 0.0  ;;  %v5734_v48 = vsub.f32 %v16204_v29, %v16389_v63  ;;  %v5735_v9 = vsub.f32 %v16222_v60, %v16389_v63  ;;  %v5736_v42 = vsub.f32 %v16233_v43, %v16389_v63 }
 0x32d   : > { %v5737_v56 = vsub.f32 %v16225_v44, %v16389_v63  ;;  %v5738_v13 = vsub.f32 %v16237_v40, %v16389_v63  ;;  %v5739_v57 = vsub.f32 %v16254_v6, %v16389_v63  ;;  %v5740_v22 = vsub.f32 %v16265_v32, %v16389_v63 }
 0x32e   : > { %v5755_v50 = vadd.f32 1e-05, %v5722_v8  ;;  %v5741_v29 = vsub.f32 %v16257_v4, %v16389_v63  ;;  %v5742_v60 = vsub.f32 %v16269_v37, %v16389_v63  ;;  %v5743_v43 = vsub.f32 %v16288_v58, %v16389_v63 }
 0x32f   : > { %v5744_v44 = vsub.f32 %v16303_v3, %v16389_v63  ;;  %v5745_v40 = vsub.f32 %v16286_v24, %v16389_v63  ;;  %v5746_v6 = vsub.f32 %v16301_v11, %v16389_v63  ;;  %v5747_v32 = vsub.f32 %v16318_v10, %v16389_v63 }
 0x330   : > { %13990 = vrsqrt.f32 %v5755_v50  ;;  %v5748_v4 = vsub.f32 %v16340_v59, %v16389_v63  ;;  %v5749_v37 = vsub.f32 %v16324_v5, %v16389_v63  ;;  %v5750_v58 = vsub.f32 %v16338_v62, %v16389_v63 }
 0x331   : > { %v5753_v3 = vsub.f32 %v16362_v55, %v16389_v63  ;;  %v5754_v24 = vsub.f32 %v16370_v36, %v16389_v63 }
 0x33a   : > { %v13991_v25 = vpop.eup %13990 }
 0x33b   : > { %v5785_v11 = vmul.f32 %v13991_v25, %v5751_v38  ;;  %v5786_v20 = vmul.f32 %v13991_v25, %v5752_v28  ;;  %v16464_v18 = vmul.f32 %v13991_v25, %v5723_v30  ;;  %v16466_v10 = vmul.f32 %v13991_v25, %v5724_v53 }
 0x33c   : > { %v16468_v59 = vmul.f32 %v13991_v25, %v5725_v33  ;;  %v16470_v51 = vmul.f32 %v13991_v25, %v5726_v31  ;;  %v16472_v5 = vmul.f32 %v13991_v25, %v5727_v52  ;;  %v16474_v12 = vmul.f32 %v13991_v25, %v5728_v26 }
 0x33d   : > { %v5817_v62 = vmax.f32 %v5785_v11, 0.0  ;;  %v5818_v7 = vmax.f32 %v5786_v20, 0.0  ;;  %v16476_v55 = vmul.f32 %v13991_v25, %v5729_v54  ;;  %v16478_v27 = vmul.f32 %v13991_v25, %v5730_v41  ;;  %v6339_v54 = vld [vmem:[#allocation2 + $0xbc] sm:$0x1]  ;;  %v6360_v41 = vld [vmem:[#allocation2 + $0xd4] sm:$0x1] }
 0x33e   : > { %v16480_v36 = vmul.f32 %v13991_v25, %v5731_v19  ;;  %v16482_v1 = vmul.f32 %v13991_v25, %v5732_v49  ;;  %v16484_v47 = vmul.f32 %v13991_v25, %v5733_v45  ;;  %v16486_v46 = vmul.f32 %v13991_v25, %v5734_v48 }
 0x33f   : > { %v16488_v16 = vpack.c.bf16 %v5817_v62, %v5817_v62  ;;  %v12554_v21 = vpack.c.bf16 %v5818_v7, %v5818_v7  ;;  %v16490_v15 = vmul.f32 %v13991_v25, %v5735_v9  ;;  %v16492_v17 = vmul.f32 %v13991_v25, %v5736_v42 }
 0x340   : > { %v16494_v34 = vmul.f32 %v13991_v25, %v5737_v56  ;;  %v16496_v63 = vmul.f32 %v13991_v25, %v5738_v13  ;;  %v16498_v2 = vmul.f32 %v13991_v25, %v5739_v57  ;;  %v16500_v14 = vmul.f32 %v13991_v25, %v5740_v22 }
 0x341   : > { %v6156_v23 = vshrl.u32 %v16488_v16, 16  ;;  %v6164_v61 = vshrl.u32 %v12554_v21, 16  ;;  %v6167_v8 = vshll.u32 %v12554_v21, 16  ;;  %v6159_v50 = vshll.u32 %v16488_v16, 16  ;;  %v16791_v16 = vld [vmem:[#allocation2 + $0x48] sm:$0xf] }
 0x342   : > { %v16504_v38 = vmul.f32 %v13991_v25, %v5741_v29  ;;  %v16506_v28 = vmul.f32 %v13991_v25, %v5742_v60  ;;  %v16508_v30 = vmul.f32 %v13991_v25, %v5743_v43  ;;  %v16510_v53 = vmul.f32 %v13991_v25, %v5744_v44  ;;  %v16848_v43 = vld [vmem:[#allocation2] sm:$0xf] }
 0x343   : > { %v16512_v33 = vrot.slane %v6156_v23, 7  ;;  %v6166_v31 = vrot.slane %v6164_v61, 7  ;;  %v16514_v52 = vmul.f32 %v13991_v25, %v5745_v40  ;;  %v16516_v26 = vmul.f32 %v13991_v25, %v5746_v6 }
 0x344   : > { %v16518_v19 = vmul.f32 %v13991_v25, %v5747_v32  ;;  %v16520_v49 = vmul.f32 %v13991_v25, %v5748_v4  ;;  %v16522_v45 = vmul.f32 %v13991_v25, %v5749_v37  ;;  %v16524_v48 = vmul.f32 %v13991_v25, %v5750_v58 }
 0x345   : > { %v6162_v9 = vrot.slane %v16512_v33, 4  ;;  %v6169_v42 = vor.u32 %v6167_v8, %v6166_v31  ;;  %v6171_v56 = vrot.slane %v6166_v31, 4  ;;  %v16527_v13 = vmul.f32 %v13991_v25, %v5753_v3 }
 0x346   : > { %v16529_v57 = vmul.f32 %v13991_v25, %v5754_v24  ;;  %v5789_v22 = vmax.f32 %v16464_v18, 0.0  ;;  %v5790_v29 = vmax.f32 %v16466_v10, 0.0  ;;  %v5791_v60 = vmax.f32 %v16468_v59, 0.0 }
 0x347   : > { %v6170_v44 = vsel %vm14197_vm6, %v6162_v9, %v6169_v42  ;;  %v6340_v6 = vsel %vm14211_vm8, %v6171_v56, %v6339_v54  ;;  %v6361_v32 = vsel %vm14211_vm8, %v6171_v56, %v6360_v41  ;;  %v5792_v4 = vmax.f32 %v16470_v51, 0.0 }
 0x348   : > { %6338 = vst.msk [vmem:[#allocation2 + $0xb8] sm:$0xf] %vm528_vm3, %v6170_v44  ;;  %6341 = vst [vmem:[#allocation2 + $0xbc] sm:$0x1] %v6340_v6  ;;  %v5793_v25 = vmax.f32 %v16472_v5, 0.0  ;;  %v5794_v37 = vmax.f32 %v16474_v12, 0.0  ;;  %v12527_v23 = vpack.c.bf16 %v5791_v60, %v5791_v60 }
 0x349   : > { %6359 = vst.msk [vmem:[#allocation2 + $0xd0] sm:$0xf] %vm528_vm3, %v6170_v44  ;;  %6362 = vst [vmem:[#allocation2 + $0xd4] sm:$0x1] %v6361_v32  ;;  %v5795_v58 = vmax.f32 %v16476_v55, 0.0  ;;  %v5796_v3 = vmax.f32 %v16478_v27, 0.0  ;;  %v12528_v61 = vpack.c.bf16 %v5792_v4, %v5792_v4 }
 0x34a   : > { %v5797_v24 = vmax.f32 %v16480_v36, 0.0  ;;  %v5798_v11 = vmax.f32 %v16482_v1, 0.0  ;;  %v5799_v20 = vmax.f32 %v16484_v47, 0.0  ;;  %v5800_v18 = vmax.f32 %v16486_v46, 0.0 }
 0x34b   : > { %v5801_v10 = vmax.f32 %v16490_v15, 0.0  ;;  %v5802_v59 = vmax.f32 %v16492_v17, 0.0  ;;  %v5803_v51 = vmax.f32 %v16494_v34, 0.0  ;;  %v5804_v5 = vmax.f32 %v16496_v63, 0.0 }
 0x34c   : > { %v5805_v12 = vmax.f32 %v16498_v2, 0.0  ;;  %v5806_v62 = vmax.f32 %v16500_v14, 0.0  ;;  %v5807_v7 = vmax.f32 %v16504_v38, 0.0  ;;  %v5808_v55 = vmax.f32 %v16506_v28, 0.0 }
 0x34d   : > { %v5809_v27 = vmax.f32 %v16508_v30, 0.0  ;;  %v5810_v36 = vmax.f32 %v16510_v53, 0.0  ;;  %v5811_v1 = vmax.f32 %v16514_v52, 0.0  ;;  %v5812_v47 = vmax.f32 %v16516_v26, 0.0 }
 0x34e   : > { %v5813_v46 = vmax.f32 %v16518_v19, 0.0  ;;  %v5814_v21 = vmax.f32 %v16520_v49, 0.0  ;;  %v5815_v15 = vmax.f32 %v16522_v45, 0.0  ;;  %v5816_v17 = vmax.f32 %v16524_v48, 0.0 }
 0x34f   : > { %v5819_v34 = vmax.f32 %v16527_v13, 0.0  ;;  %v5820_v63 = vmax.f32 %v16529_v57, 0.0  ;;  %v12525_v2 = vpack.c.bf16 %v5789_v22, %v5789_v22  ;;  %v12526_v14 = vpack.c.bf16 %v5790_v29, %v5790_v29 }
 0x350   : > { %v12529_v8 = vpack.c.bf16 %v5793_v25, %v5793_v25  ;;  %v12530_v38 = vpack.c.bf16 %v5794_v37, %v5794_v37  ;;  %v16569_v28 = vpack.c.bf16 %v5795_v58, %v5795_v58  ;;  %v16571_v30 = vpack.c.bf16 %v5796_v3, %v5796_v3 }
 0x351   : > { %v16573_v53 = vpack.c.bf16 %v5797_v24, %v5797_v24  ;;  %v16575_v31 = vpack.c.bf16 %v5798_v11, %v5798_v11  ;;  %v16577_v52 = vpack.c.bf16 %v5799_v20, %v5799_v20  ;;  %v16579_v26 = vpack.c.bf16 %v5800_v18, %v5800_v18 }
 0x352   : > { %v16581_v54 = vpack.c.bf16 %v5801_v10, %v5801_v10  ;;  %v16583_v41 = vpack.c.bf16 %v5802_v59, %v5802_v59  ;;  %v16585_v19 = vpack.c.bf16 %v5803_v51, %v5803_v51  ;;  %v16587_v49 = vpack.c.bf16 %v5804_v5, %v5804_v5 }
 0x353   : > { %v16589_v45 = vpack.c.bf16 %v5805_v12, %v5805_v12  ;;  %v16591_v48 = vpack.c.bf16 %v5806_v62, %v5806_v62  ;;  %v16593_v9 = vpack.c.bf16 %v5807_v7, %v5807_v7  ;;  %v16595_v42 = vpack.c.bf16 %v5808_v55, %v5808_v55 }
 0x354   : > { %v16597_v56 = vpack.c.bf16 %v5809_v27, %v5809_v27  ;;  %v16599_v13 = vpack.c.bf16 %v5810_v36, %v5810_v36  ;;  %v16601_v57 = vpack.c.bf16 %v5811_v1, %v5811_v1  ;;  %v16603_v22 = vpack.c.bf16 %v5812_v47, %v5812_v47 }
 0x355   : > { %v16605_v29 = vpack.c.bf16 %v5813_v46, %v5813_v46  ;;  %v16607_v60 = vpack.c.bf16 %v5814_v21, %v5814_v21  ;;  %v16609_v44 = vpack.c.bf16 %v5815_v15, %v5815_v15  ;;  %v16611_v6 = vpack.c.bf16 %v5816_v17, %v5816_v17  ;;  %v16798_v17 = vld [vmem:[#allocation2 + $0x60] sm:$0xf] }
 0x356   : > { %v16613_v32 = vpack.c.bf16 %v5819_v34, %v5819_v34  ;;  %v16615_v4 = vpack.c.bf16 %v5820_v63, %v5820_v63  ;;  %v5918_v25 = vshrl.u32 %v12525_v2, 16  ;;  %v5921_v37 = vshll.u32 %v12525_v2, 16 }
 0x357   : > { %v5926_v58 = vshrl.u32 %v12526_v14, 16  ;;  %v5929_v3 = vshll.u32 %v12526_v14, 16  ;;  %v5935_v24 = vshrl.u32 %v12527_v23, 16  ;;  %v5938_v11 = vshll.u32 %v12527_v23, 16 }
 0x358   : > { %v5943_v20 = vshrl.u32 %v12528_v61, 16  ;;  %v5946_v18 = vshll.u32 %v12528_v61, 16  ;;  %v5920_v10 = vrot.slane %v5918_v25, 7  ;;  %v5952_v51 = vshrl.u32 %v12529_v8, 16 }
 0x359   : > { %v16617_v59 = vrot.slane %v5926_v58, 7  ;;  %v5955_v5 = vshll.u32 %v12529_v8, 16  ;;  %v5937_v12 = vrot.slane %v5935_v24, 7  ;;  %v5960_v7 = vshrl.u32 %v12530_v38, 16 }
 0x35a   : > { %v16619_v62 = vrot.slane %v5943_v20, 7  ;;  %v5963_v55 = vshll.u32 %v12530_v38, 16  ;;  %v16621_v27 = vor.u32 %v5921_v37, %v5920_v10  ;;  %v5924_v36 = vrot.slane %v5920_v10, 4 }
 0x35b   : > { %v5931_v1 = vor.u32 %v5929_v3, %v16617_v59  ;;  %v16625_v46 = vor.u32 %v5938_v11, %v5937_v12  ;;  %v5941_v21 = vrot.slane %v5937_v12, 4  ;;  %v5954_v63 = vrot.slane %v5952_v51, 7 }
 0x35c   : > { %v5948_v15 = vor.u32 %v5946_v18, %v16619_v62  ;;  %v16631_v2 = vrot.slane %v5960_v7, 7  ;;  %v5969_v14 = vshrl.u32 %v16569_v28, 16  ;;  %v5972_v61 = vshll.u32 %v16569_v28, 16 }
 0x35d   : > { %v5932_v34 = vsel %vm14197_vm6, %v5924_v36, %v5931_v1  ;;  %v5977_v8 = vshrl.u32 %v16571_v30, 16  ;;  %v5980_v38 = vshll.u32 %v16571_v30, 16  ;;  %v16640_v25 = vor.u32 %v5955_v5, %v5954_v63 }
 0x35e   : > { %v5949_v23 = vsel %vm14197_vm6, %v5941_v21, %v5948_v15  ;;  %6240 = vst.msk [vmem:[#allocation2 + $0x10] sm:$0xf] %vm528_vm3, %v5932_v34  ;;  %v5958_v37 = vrot.slane %v5954_v63, 4  ;;  %v5965_v58 = vor.u32 %v5963_v55, %v16631_v2  ;;  %v5971_v24 = vrot.slane %v5969_v14, 7 }
 0x35f   : > { %6247 = vst.msk [vmem:[#allocation2 + $0x1c] sm:$0xf] %vm528_vm3, %v5949_v23  ;;  %6352 = vst.msk [vmem:[#allocation2 + $0x4] sm:$0xf] %vm528_vm3, %v5949_v23  ;;  %v16646_v11 = vrot.slane %v5977_v8, 7  ;;  %v5986_v28 = vshrl.u32 %v16573_v53, 16 }
 0x360   : > { %v5989_v30 = vshll.u32 %v16573_v53, 16  ;;  %v5966_v20 = vsel %vm14197_vm6, %v5958_v37, %v5965_v58  ;;  %v5994_v18 = vshrl.u32 %v16575_v31, 16  ;;  %v5997_v10 = vshll.u32 %v16575_v31, 16  ;;  %v6293_v8 = vld [vmem:[#allocation2 + $0x6c] sm:$0xf] }
 0x361   : > { %v6003_v51 = vshrl.u32 %v16577_v52, 16  ;;  %v16655_v5 = vor.u32 %v5972_v61, %v5971_v24  ;;  %v5975_v12 = vrot.slane %v5971_v24, 4  ;;  %v5982_v7 = vor.u32 %v5980_v38, %v16646_v11  ;;  %6254 = vst.msk [vmem:[#allocation2 + $0x28] sm:$0xf] %vm528_vm3, %v5966_v20 }
 0x362   : > { %v5988_v36 = vrot.slane %v5986_v28, 7  ;;  %v16660_v53 = vrot.slane %v5994_v18, 7  ;;  %v6006_v21 = vshll.u32 %v16577_v52, 16  ;;  %v6011_v15 = vshrl.u32 %v16579_v26, 16 }
 0x363   : > { %v6005_v1 = vrot.slane %v6003_v51, 7  ;;  %v5983_v31 = vsel %vm14197_vm6, %v5975_v12, %v5982_v7  ;;  %v6014_v34 = vshll.u32 %v16579_v26, 16  ;;  %v6020_v63 = vshrl.u32 %v16581_v54, 16 }
 0x364   : > { %v16668_v14 = vor.u32 %v5989_v30, %v5988_v36  ;;  %v5992_v23 = vrot.slane %v5988_v36, 4  ;;  %v5999_v61 = vor.u32 %v5997_v10, %v16660_v53  ;;  %6261 = vst.msk [vmem:[#allocation2 + $0x34] sm:$0xf] %vm528_vm3, %v5983_v31  ;;  %v16675_v37 = vrot.slane %v6011_v15, 7 }
 0x365   : > { %v16673_v38 = vor.u32 %v6006_v21, %v6005_v1  ;;  %v6009_v52 = vrot.slane %v6005_v1, 4  ;;  %v6022_v58 = vrot.slane %v6020_v63, 7  ;;  %v6023_v24 = vshll.u32 %v16581_v54, 16 }
 0x366   : > { %v6000_v26 = vsel %vm14197_vm6, %v5992_v23, %v5999_v61  ;;  %v6028_v28 = vshrl.u32 %v16583_v41, 16  ;;  %v6031_v30 = vshll.u32 %v16583_v41, 16  ;;  %v6016_v20 = vor.u32 %v6014_v34, %v16675_v37  ;;  %v6251_v34 = vld [vmem:[#allocation2 + $0x24] sm:$0xf] }
 0x367   : > { %v6026_v10 = vrot.slane %v6022_v58, 4  ;;  %v6037_v51 = vshrl.u32 %v16585_v19, 16  ;;  %6268 = vst.msk [vmem:[#allocation2 + $0x40] sm:$0xf] %vm528_vm3, %v6000_v26  ;;  %v16686_v12 = vor.u32 %v6023_v24, %v6022_v58  ;;  %v6040_v36 = vshll.u32 %v16585_v19, 16 }
 0x368   : > { %v16688_v7 = vrot.slane %v6028_v28, 7  ;;  %v6045_v54 = vshrl.u32 %v16587_v49, 16  ;;  %v6017_v41 = vsel %vm14197_vm6, %v6009_v52, %v6016_v20  ;;  %v6048_v21 = vshll.u32 %v16587_v49, 16  ;;  %v6258_v24 = vld [vmem:[#allocation2 + $0x30] sm:$0xf] }
 0x369   : > { %v6039_v1 = vrot.slane %v6037_v51, 7  ;;  %v6054_v31 = vshrl.u32 %v16589_v45, 16  ;;  %v6057_v23 = vshll.u32 %v16589_v45, 16  ;;  %6275 = vst.msk [vmem:[#allocation2 + $0x4c] sm:$0xf] %vm528_vm3, %v6017_v41  ;;  %v6062_v52 = vshrl.u32 %v16591_v48, 16 }
 0x36a   : > { %v6033_v15 = vor.u32 %v6031_v30, %v16688_v7  ;;  %v16698_v63 = vrot.slane %v6045_v54, 7  ;;  %v6065_v28 = vshll.u32 %v16591_v48, 16  ;;  %v6071_v51 = vshrl.u32 %v16593_v9, 16 }
 0x36b   : > { %v16702_v19 = vor.u32 %v6040_v36, %v6039_v1  ;;  %v6043_v61 = vrot.slane %v6039_v1, 4  ;;  %v6056_v58 = vrot.slane %v6054_v31, 7  ;;  %v16712_v20 = vrot.slane %v6062_v52, 7 }
 0x36c   : > { %v6034_v49 = vsel %vm14197_vm6, %v6026_v10, %v6033_v15  ;;  %v6050_v26 = vor.u32 %v6048_v21, %v16698_v63  ;;  %v6074_v10 = vshll.u32 %v16593_v9, 16  ;;  %v6079_v54 = vshrl.u32 %v16595_v42, 16 }
 0x36d   : > { %v16710_v30 = vor.u32 %v6057_v23, %v6056_v58  ;;  %v6060_v45 = vrot.slane %v6056_v58, 4  ;;  %6282 = vst.msk [vmem:[#allocation2 + $0x58] sm:$0xf] %vm528_vm3, %v6034_v49  ;;  %v6082_v41 = vshll.u32 %v16595_v42, 16  ;;  %v6067_v48 = vor.u32 %v6065_v28, %v16712_v20 }
 0x36e   : > { %v6051_v36 = vsel %vm14197_vm6, %v6043_v61, %v6050_v26  ;;  %v6073_v21 = vrot.slane %v6071_v51, 7  ;;  %v6088_v31 = vshrl.u32 %v16597_v56, 16  ;;  %v16725_v15 = vrot.slane %v6079_v54, 7 }
 0x36f   : > { %6289 = vst.msk [vmem:[#allocation2 + $0x64] sm:$0xf] %vm528_vm3, %v6051_v36  ;;  %v6091_v23 = vshll.u32 %v16597_v56, 16  ;;  %v6096_v61 = vshrl.u32 %v16599_v13, 16  ;;  %v6099_v9 = vshll.u32 %v16599_v13, 16  ;;  %v6068_v42 = vsel %vm14197_vm6, %v6060_v45, %v6067_v48 }
 0x370   : > { %v16732_v58 = vor.u32 %v6074_v10, %v6073_v21  ;;  %v6077_v52 = vrot.slane %v6073_v21, 4  ;;  %v6090_v49 = vrot.slane %v6088_v31, 7  ;;  %v6084_v26 = vor.u32 %v6082_v41, %v16725_v15  ;;  %6296 = vst.msk [vmem:[#allocation2 + $0x70] sm:$0xf] %vm528_vm3, %v6068_v42 }
 0x371   : > { %v16736_v51 = vrot.slane %v6096_v61, 7  ;;  %v6105_v36 = vshrl.u32 %v16601_v57, 16  ;;  %v6108_v54 = vshll.u32 %v16601_v57, 16  ;;  %v6113_v45 = vshrl.u32 %v16603_v22, 16 }
 0x372   : > { %v16740_v56 = vor.u32 %v6091_v23, %v6090_v49  ;;  %v6094_v13 = vrot.slane %v6090_v49, 4  ;;  %v6085_v10 = vsel %vm14197_vm6, %v6077_v52, %v6084_v26  ;;  %v6116_v61 = vshll.u32 %v16603_v22, 16 }
 0x373   : > { %v6101_v41 = vor.u32 %v6099_v9, %v16736_v51  ;;  %v6107_v21 = vrot.slane %v6105_v36, 7  ;;  %v16748_v31 = vrot.slane %v6113_v45, 7  ;;  %v6122_v23 = vshrl.u32 %v16605_v29, 16  ;;  %6303 = vst.msk [vmem:[#allocation2 + $0x7c] sm:$0xf] %vm528_vm3, %v6085_v10 }
 0x374   : > { %v6125_v42 = vshll.u32 %v16605_v29, 16  ;;  %v6130_v9 = vshrl.u32 %v16607_v60, 16  ;;  %v6133_v22 = vshll.u32 %v16607_v60, 16  ;;  %v6139_v10 = vshrl.u32 %v16609_v44, 16  ;;  %v6241_v36 = vld [vmem:[#allocation2 + $0x14] sm:$0x1] }
 0x375   : > { %v6102_v57 = vsel %vm14197_vm6, %v6094_v13, %v6101_v41  ;;  %v16756_v49 = vor.u32 %v6108_v54, %v6107_v21  ;;  %v6111_v52 = vrot.slane %v6107_v21, 4  ;;  %v6118_v26 = vor.u32 %v6116_v61, %v16748_v31  ;;  %v6244_v41 = vld [vmem:[#allocation2 + $0x18] sm:$0xf]  ;;  %v6237_v21 = vld [vmem:[#allocation2 + $0xc] sm:$0xf] }
 0x376   : > { %v6124_v45 = vrot.slane %v6122_v23, 7  ;;  %6310 = vst.msk [vmem:[#allocation2 + $0x88] sm:$0xf] %vm528_vm3, %v6102_v57  ;;  %v16763_v29 = vrot.slane %v6130_v9, 7  ;;  %v6142_v13 = vshll.u32 %v16609_v44, 16  ;;  %v6147_v54 = vshrl.u32 %v16611_v6, 16 }
 0x377   : > { %v6119_v61 = vsel %vm14197_vm6, %v6111_v52, %v6118_v26  ;;  %v6150_v60 = vshll.u32 %v16611_v6, 16  ;;  %v6141_v28 = vrot.slane %v6139_v10, 7  ;;  %v6248_v44 = vld [vmem:[#allocation2 + $0x20] sm:$0x1]  ;;  %v6173_v6 = vshrl.u32 %v16613_v32, 16 }
 0x378   : > { %v16770_v48 = vor.u32 %v6125_v42, %v6124_v45  ;;  %v6128_v23 = vrot.slane %v6124_v45, 4  ;;  %v6135_v57 = vor.u32 %v6133_v22, %v16763_v29  ;;  %v16775_v1 = vrot.slane %v6147_v54, 7  ;;  %6317 = vst.msk [vmem:[#allocation2 + $0x94] sm:$0xf] %vm528_vm3, %v6119_v61  ;;  %v6262_v45 = vld [vmem:[#allocation2 + $0x38] sm:$0x1] }
 0x379   : > { %v16781_v42 = vor.u32 %v6159_v50, %v16512_v33  ;;  %v6176_v52 = vshll.u32 %v16613_v32, 16  ;;  %v6181_v26 = vshrl.u32 %v16615_v4, 16  ;;  %v6255_v22 = vld [vmem:[#allocation2 + $0x2c] sm:$0x1]  ;;  %v6265_v10 = vld [vmem:[#allocation2 + $0x3c] sm:$0xf]  ;;  %v16788_v61 = vor.u32 %v6142_v13, %v6141_v28 }
 0x37a   : > { %v6136_v54 = vsel %vm14197_vm6, %v6128_v23, %v6135_v57  ;;  %v6145_v9 = vrot.slane %v6141_v28, 4  ;;  %v6152_v18 = vor.u32 %v6150_v60, %v16775_v1  ;;  %v6276_v50 = vld [vmem:[#allocation2 + $0x50] sm:$0x1]  ;;  %v6269_v33 = vld [vmem:[#allocation2 + $0x44] sm:$0x1]  ;;  %v6175_v32 = vrot.slane %v6173_v6, 7 }
 0x37b   : > { %v16794_v55 = vrot.slane %v6181_v26, 7  ;;  %v6184_v3 = vshll.u32 %v16615_v4, 16  ;;  %6324 = vst.msk [vmem:[#allocation2 + $0xa0] sm:$0xf] %vm528_vm3, %v6136_v54  ;;  %v6279_v13 = vld [vmem:[#allocation2 + $0x54] sm:$0xf]  ;;  %v6238_v47 = vsel %vm14203_vm7, %v16621_v27, %v6237_v21  ;;  %v6245_v4 = vsel %vm14203_vm7, %v16625_v46, %v6244_v41 }
 0x37c   : > { %v6290_v23 = vld [vmem:[#allocation2 + $0x68] sm:$0x1]  ;;  %v6283_v28 = vld [vmem:[#allocation2 + $0x5c] sm:$0x1]  ;;  %v6153_v60 = vsel %vm14197_vm6, %v6145_v9, %v6152_v18  ;;  %v19589_v6 = vrot.slane %v16617_v59, 4  ;;  %v16814_v35 = vor.u32 %v6176_v52, %v6175_v32  ;;  %v6179_v39 = vrot.slane %v6175_v32, 4 }
 0x37d   : > { %v16812_v54 = vld [vmem:[#allocation2 + $0x78] sm:$0xf]  ;;  %v6186_v18 = vor.u32 %v6184_v3, %v16794_v55  ;;  %v6188_v9 = vrot.slane %v16794_v55, 4  ;;  %6239 = vst [vmem:[#allocation2 + $0xc] sm:$0xf] %v6238_v47  ;;  %v19590_v41 = vrot.slane %v16619_v62, 4  ;;  %v6252_v3 = vsel %vm14203_vm7, %v16640_v25, %v6251_v34 }
 0x37e   : > { %v6242_v26 = vsel %vm14211_vm8, %v19589_v6, %v6241_v36  ;;  %6246 = vst [vmem:[#allocation2 + $0x18] sm:$0xf] %v6245_v4  ;;  %6331 = vst.msk [vmem:[#allocation2 + $0xac] sm:$0xf] %vm528_vm3, %v6153_v60  ;;  %v6304_v59 = vld [vmem:[#allocation2 + $0x80] sm:$0x1]  ;;  %v6259_v32 = vsel %vm14203_vm7, %v16655_v5, %v6258_v24 }
 0x37f   : > { %6243 = vst [vmem:[#allocation2 + $0x14] sm:$0x1] %v6242_v26  ;;  %v6297_v27 = vld [vmem:[#allocation2 + $0x74] sm:$0x1]  ;;  %v16819_v36 = vld [vmem:[#allocation2 + $0x90] sm:$0xf]  ;;  %v6249_v21 = vsel %vm14211_vm8, %v19590_v41, %v6248_v44  ;;  %v6187_v4 = vsel %vm14197_vm6, %v6179_v39, %v6186_v18 }
 0x380   : > { %v19591_v52 = vrot.slane %v16631_v2, 4  ;;  %v6307_v60 = vld [vmem:[#allocation2 + $0x84] sm:$0xf]  ;;  %v6318_v6 = vld [vmem:[#allocation2 + $0x98] sm:$0x1]  ;;  %v19592_v44 = vrot.slane %v16646_v11, 4  ;;  %v6266_v2 = vsel %vm14203_vm7, %v16668_v14, %v6265_v10 }
 0x381   : > { %v6311_v26 = vld [vmem:[#allocation2 + $0x8c] sm:$0x1]  ;;  %6250 = vst [vmem:[#allocation2 + $0x20] sm:$0x1] %v6249_v21  ;;  %v19593_v34 = vrot.slane %v16660_v53, 4  ;;  %v19594_v14 = vrot.slane %v16675_v37, 4 }
 0x382   : > { %v6256_v47 = vsel %vm14211_vm8, %v19591_v52, %v6255_v22  ;;  %v6263_v25 = vsel %vm14211_vm8, %v19592_v44, %v6262_v45  ;;  %6253 = vst [vmem:[#allocation2 + $0x24] sm:$0xf] %v6252_v3  ;;  %6260 = vst [vmem:[#allocation2 + $0x30] sm:$0xf] %v6259_v32  ;;  %v6328_v39 = vld [vmem:[#allocation2 + $0xa8] sm:$0xf]  ;;  %v6273_v45 = vsel %vm14203_vm7, %v16673_v38, %v16791_v16 }
 0x383   : > { %v6270_v5 = vsel %vm14211_vm8, %v19593_v34, %v6269_v33  ;;  %6257 = vst [vmem:[#allocation2 + $0x2c] sm:$0x1] %v6256_v47  ;;  %v6321_v24 = vld [vmem:[#allocation2 + $0x9c] sm:$0xf]  ;;  %v6325_v11 = vld [vmem:[#allocation2 + $0xa4] sm:$0x1]  ;;  %v6277_v53 = vsel %vm14211_vm8, %v19594_v14, %v6276_v50  ;;  %v6280_v22 = vsel %vm14203_vm7, %v16686_v12, %v6279_v13  ;;  %v6287_v50 = vsel %vm14203_vm7, %v16702_v19, %v16798_v17 }
 0x384   : > { %v19595_v10 = vrot.slane %v16688_v7, 4  ;;  %6264 = vst [vmem:[#allocation2 + $0x38] sm:$0x1] %v6263_v25  ;;  %6267 = vst [vmem:[#allocation2 + $0x3c] sm:$0xf] %v6266_v2  ;;  %v19596_v12 = vrot.slane %v16698_v63, 4  ;;  %v6294_v13 = vsel %vm14203_vm7, %v16710_v30, %v6293_v8  ;;  %v6301_v63 = vsel %vm14203_vm7, %v16732_v58, %v16812_v54 }
 0x385   : > { %6271 = vst [vmem:[#allocation2 + $0x44] sm:$0x1] %v6270_v5  ;;  %6345 = vst.msk [vmem:[#allocation2 + $0xc4] sm:$0xf] %vm528_vm3, %v6187_v4  ;;  %v6332_v38 = vld [vmem:[#allocation2 + $0xb0] sm:$0x1]  ;;  %v6308_v30 = vsel %vm14203_vm7, %v16740_v56, %v6307_v60  ;;  %v6350_v60 = vsel %vm14203_vm7, %v16625_v46, %v16848_v43 }
 0x386   : > { %v6284_v33 = vsel %vm14211_vm8, %v19595_v10, %v6283_v28  ;;  %v6342_v16 = vld [vmem:[#allocation2 + $0xc0] sm:$0xf]  ;;  %v6335_v37 = vld [vmem:[#allocation2 + $0xb4] sm:$0xf]  ;;  %v6291_v7 = vsel %vm14211_vm8, %v19596_v12, %v6290_v23  ;;  %v19597_v28 = vrot.slane %v16712_v20, 4  ;;  %v19598_v23 = vrot.slane %v16725_v15, 4 }
 0x387   : > { %6274 = vst [vmem:[#allocation2 + $0x48] sm:$0xf] %v6273_v45  ;;  %6278 = vst [vmem:[#allocation2 + $0x50] sm:$0x1] %v6277_v53  ;;  %v6353_v41 = vld [vmem:[#allocation2 + $0x8] sm:$0x1]  ;;  %v6315_v15 = vsel %vm14203_vm7, %v16756_v49, %v16819_v36  ;;  %v6329_v36 = vsel %vm14203_vm7, %v16788_v61, %v6328_v39  ;;  %v6343_v52 = vsel %vm14203_vm7, %v16814_v35, %v6342_v16 }
 0x388   : > { %v6298_v18 = vsel %vm14211_vm8, %v19597_v28, %v6297_v27  ;;  %6281 = vst [vmem:[#allocation2 + $0x54] sm:$0xf] %v6280_v22  ;;  %6285 = vst [vmem:[#allocation2 + $0x5c] sm:$0x1] %v6284_v33  ;;  %v6356_v17 = vld [vmem:[#allocation2 + $0xcc] sm:$0xf]  ;;  %v6305_v8 = vsel %vm14211_vm8, %v19598_v23, %v6304_v59 }
 0x389   : > { %v6346_v19 = vld [vmem:[#allocation2 + $0xc8] sm:$0x1]  ;;  %v19599_v20 = vrot.slane %v16736_v51, 4  ;;  %6288 = vst [vmem:[#allocation2 + $0x60] sm:$0xf] %v6287_v50  ;;  %v19600_v58 = vrot.slane %v16748_v31, 4  ;;  %v6322_v51 = vsel %vm14203_vm7, %v16770_v48, %v6321_v24 }
 0x38a   : > { %6292 = vst [vmem:[#allocation2 + $0x68] sm:$0x1] %v6291_v7  ;;  %6295 = vst [vmem:[#allocation2 + $0x6c] sm:$0xf] %v6294_v13  ;;  %v19601_v56 = vrot.slane %v16763_v29, 4  ;;  %v19602_v3 = vrot.slane %v16775_v1, 4  ;;  %v6336_v29 = vsel %vm14203_vm7, %v16781_v42, %v6335_v37  ;;  %v6347_v1 = vsel %vm14211_vm8, %v6188_v9, %v6346_v19 }
 0x38b   : > { %v6312_v27 = vsel %vm14211_vm8, %v19599_v20, %v6311_v26  ;;  %6299 = vst [vmem:[#allocation2 + $0x74] sm:$0x1] %v6298_v18  ;;  %v6319_v54 = vsel %vm14211_vm8, %v19600_v58, %v6318_v6  ;;  %6302 = vst [vmem:[#allocation2 + $0x78] sm:$0xf] %v6301_v63  ;;  %v16911_v21 = vld [vmem:[#allocation2 + $0x4] sm:$0x8]  ;;  %v6357_v26 = vsel %vm14203_vm7, %v16781_v42, %v6356_v17 }
 0x38c   : > { %v6326_v59 = vsel %vm14211_vm8, %v19601_v56, %v6325_v11  ;;  %6306 = vst [vmem:[#allocation2 + $0x80] sm:$0x1] %v6305_v8  ;;  %6309 = vst [vmem:[#allocation2 + $0x84] sm:$0xf] %v6308_v30  ;;  %v6652_v49 = vld [vmem:[#allocation2 + $0x4] sm:$0xf]  ;;  %v6333_v48 = vsel %vm14211_vm8, %v19602_v3, %v6332_v38 }
 0x38d   : > { %6313 = vst [vmem:[#allocation2 + $0x8c] sm:$0x1] %v6312_v27  ;;  %v6508_v31 = vld [vmem:[#allocation2 + $0x10] sm:$0x8]  ;;  %6316 = vst [vmem:[#allocation2 + $0x90] sm:$0xf] %v6315_v15 }
 0x38e   : > { %6320 = vst [vmem:[#allocation2 + $0x98] sm:$0x1] %v6319_v54  ;;  %6323 = vst [vmem:[#allocation2 + $0x9c] sm:$0xf] %v6322_v51  ;;  %v6364_v47 = vld [vmem:[#allocation2 + $0xc] sm:$0x2] }
 0x38f   : > { %6327 = vst [vmem:[#allocation2 + $0xa4] sm:$0x1] %v6326_v59  ;;  %v8127_v32 = vld [vmem:[#allocation2 + $0x10] sm:$0xf]  ;;  %v19603_v6 = vrot.slane %v16619_v62, 4  ;;  %v12131_v46 = vrot.slane %v16911_v21, 11 }
 0x390   : > { %v6654_v61 = vld [vmem:[#allocation2 + $0x10] sm:$0xf]  ;;  %6330 = vst [vmem:[#allocation2 + $0xa8] sm:$0xf] %v6329_v36  ;;  %6334 = vst [vmem:[#allocation2 + $0xb0] sm:$0x1] %v6333_v48 }
 0x391   : > { %v6354_v35 = vsel %vm14211_vm8, %v19603_v6, %v6353_v41  ;;  %6337 = vst [vmem:[#allocation2 + $0xb4] sm:$0xf] %v6336_v29  ;;  %6344 = vst [vmem:[#allocation2 + $0xc0] sm:$0xf] %v6343_v52  ;;  %v6509_v55 = vld [vmem:[#allocation2 + $0x1c] sm:$0x8] }
 0x392   : > { %6348 = vst [vmem:[#allocation2 + $0xc8] sm:$0x1] %v6347_v1  ;;  %6351 = vst [vmem:[#allocation2] sm:$0xf] %v6350_v60  ;;  %v6710_v9 = vshll.u32 %v6652_v49, 16  ;;  %v6714_v62 = vshrl.u32 %v6652_v49, 16 }
 0x393   : > { %6355 = vst [vmem:[#allocation2 + $0x8] sm:$0x1] %v6354_v35  ;;  %6358 = vst [vmem:[#allocation2 + $0xcc] sm:$0xf] %v6357_v26  ;;  %v12114_v4 = vrot.slane %v6364_v47, 9  ;;  %v12132_v57 = vrot.slane %v6508_v31, 11 }
 0x394   : > { %v6456_v44 = vld [vmem:[#allocation2 + $0xc] sm:$0x1]  ;;  %v8129_v25 = vld [vmem:[#allocation2 + $0x1c] sm:$0xf]  ;;  %v8185_v42 = vshll.u32 %v8127_v32, 16  ;;  %v8189_v34 = vshrl.u32 %v8127_v32, 16 }
 0x395   : > { %v16942_v2 = vld [vmem:[#allocation2 + $0x1c] sm:$0xf]  ;;  %v6734_v5 = vshll.u32 %v6654_v61, 16  ;;  %v6365_v43 = vld [vmem:[#allocation2 + $0x18] sm:$0x2]  ;;  %v16944_v39 = vrot.slane %v6710_v9, 5  ;;  %v6457_v11 = vsel %vm14211_vm8, %v12114_v4, %v6456_v44 }
 0x396   : > { %v6716_v24 = vrot.slane %v6714_v62, 4  ;;  %v6600_v45 = vld [vmem:[#allocation2 + $0x14] sm:$0x1]  ;;  %v6738_v14 = vshrl.u32 %v6654_v61, 16  ;;  %6458 = vst [vmem:[#allocation2 + $0xc] sm:$0x1] %v6457_v11 }
 0x397   : > { %v6601_v22 = vsel %vm14248_vm9, %v12132_v57, %v6600_v45  ;;  %v16950_v10 = vrot.slane %v8185_v42, 5  ;;  %v8191_v33 = vrot.slane %v8189_v34, 4  ;;  %v16952_v38 = vrot.slane %v6734_v5, 5  ;;  %v6459_v12 = vld [vmem:[#allocation2 + $0x18] sm:$0x1] }
 0x398   : > { %v6717_v16 = vor.u32 %v6716_v24, %v16944_v39  ;;  %6602 = vst [vmem:[#allocation2 + $0x14] sm:$0x1] %v6601_v22  ;;  %v6740_v37 = vrot.slane %v6738_v14, 4  ;;  %v12115_v50 = vrot.slane %v6365_v43, 9  ;;  %v12133_v7 = vrot.slane %v6509_v55, 11 }
 0x399   : > { %v8192_v13 = vor.u32 %v8191_v33, %v16950_v10  ;;  %v6603_v28 = vld [vmem:[#allocation2 + $0x20] sm:$0x1]  ;;  %v8209_v18 = vshll.u32 %v8129_v25, 16  ;;  %v8213_v41 = vshrl.u32 %v8129_v25, 16  ;;  %v6758_v17 = vshll.u32 %v16942_v2, 16 }
 0x39a   : > { %v6741_v19 = vor.u32 %v6740_v37, %v16952_v38  ;;  %v6460_v63 = vsel %vm14211_vm8, %v12115_v50, %v6459_v12  ;;  %v6604_v23 = vsel %vm14248_vm9, %v12133_v7, %v6603_v28  ;;  %v16962_v8 = vld [vmem:[#allocation2 + $0x24] sm:$0x2]  ;;  %v16964_v30 = vld [vmem:[#allocation2 + $0x28] sm:$0x8]  ;;  %v6363_v20 = vld [vmem:[#allocation2] sm:$0x2] }
 0x39b   : > { %v6597_v27 = vld [vmem:[#allocation2 + $0x8] sm:$0x1]  ;;  %v16966_v15 = vrot.slane %v6717_v16, 4  ;;  %v16970_v58 = vsel %vm1488_vm0, %v16394_v0, 0  ;;  %6461 = vst [vmem:[#allocation2 + $0x18] sm:$0x1] %v6460_v63 }
 0x39c   : > { %6605 = vst [vmem:[#allocation2 + $0x20] sm:$0x1] %v6604_v23  ;;  %v12113_v54 = vrot.slane %v6363_v20, 9  ;;  %v6598_v51 = vsel %vm14248_vm9, %v12131_v46, %v6597_v27  ;;  %v8193_v56 = vrot.slane %v8192_v13, 4  ;;  %v16974_v59 = vrot.slane %v6741_v19, 4 }
 0x39d   : > { %v6453_v21 = vld [vmem:[#allocation2] sm:$0x1]  ;;  %6599 = vst [vmem:[#allocation2 + $0x8] sm:$0x1] %v6598_v51  ;;  %v16976_v49 = vrot.slane %v8209_v18, 5  ;;  %v8215_v31 = vrot.slane %v8213_v41, 4 }
 0x39e   : > { %v16978_v36 = vrot.slane %v6758_v17, 5  ;;  %v6762_v3 = vshrl.u32 %v16942_v2, 16  ;;  %v6454_v0 = vsel %vm14211_vm8, %v12113_v54, %v6453_v21  ;;  %v8126_v48 = vld [vmem:[#allocation2 + $0xc] sm:$0xf]  ;;  %v12116_v52 = vrot.slane %v16962_v8, 9 }
 0x39f   : > { %v6653_v29 = vld [vmem:[#allocation2 + $0xc] sm:$0xf]  ;;  %v12134_v47 = vrot.slane %v16964_v30, 11  ;;  %6455 = vst [vmem:[#allocation2] sm:$0x1] %v6454_v0  ;;  %v8176_v61 = vshrl.u32 %v8126_v48, 16  ;;  %v8216_v6 = vor.u32 %v8215_v31, %v16976_v49 }
 0x3a0   : > { %v8159_v32 = vld [vmem:[#allocation2 + $0x14] sm:$0x1]  ;;  %v8179_v1 = vshll.u32 %v8126_v48, 16  ;;  %v6725_v26 = vshrl.u32 %v6653_v29, 16  ;;  %v6728_v55 = vshll.u32 %v6653_v29, 16  ;;  %v6764_v44 = vrot.slane %v6762_v3, 4 }
 0x3a1   : > { %v6685_v60 = vld [vmem:[#allocation2 + $0x14] sm:$0x1]  ;;  %v8195_v35 = vshll.u32 %v8159_v32, 16  ;;  %v8178_v9 = vrot.slane %v8176_v61, 4  ;;  %v8217_v4 = vrot.slane %v8216_v6, 4 }
 0x3a2   : > { %v6744_v46 = vshll.u32 %v6685_v60, 16  ;;  %v8181_v62 = vrot.slane %v8179_v1, 5  ;;  %v6727_v2 = vrot.slane %v6725_v26, 4  ;;  %v6730_v57 = vrot.slane %v6728_v55, 5  ;;  %v8128_v34 = vld [vmem:[#allocation2 + $0x18] sm:$0xf] }
 0x3a3   : > { %v8197_v25 = vrot.slane %v8195_v35, 5  ;;  %v8160_v43 = vld [vmem:[#allocation2 + $0x20] sm:$0x1]  ;;  %v8200_v24 = vshrl.u32 %v8128_v34, 16  ;;  %v8203_v11 = vshll.u32 %v8128_v34, 16  ;;  %v6765_v14 = vor.u32 %v6764_v44, %v16978_v36 }
 0x3a4   : > { %v6746_v42 = vrot.slane %v6744_v46, 5  ;;  %v8182_v5 = vor.u32 %v8181_v62, %v8178_v9  ;;  %v6655_v45 = vld [vmem:[#allocation2 + $0x18] sm:$0xf]  ;;  %v6684_v22 = vld [vmem:[#allocation2 + $0x8] sm:$0x1]  ;;  %v6731_v37 = vor.u32 %v6730_v57, %v6727_v2  ;;  %v8219_v12 = vshll.u32 %v8160_v43, 16 }
 0x3a5   : > { %v8198_v16 = vsel %vm14300_vm13, %v8193_v56, %v8197_v25  ;;  %v6720_v7 = vshll.u32 %v6684_v22, 16  ;;  %v8202_v28 = vrot.slane %v8200_v24, 4  ;;  %v8205_v18 = vrot.slane %v8203_v11, 5  ;;  %v6686_v3 = vld [vmem:[#allocation2 + $0x20] sm:$0x1] }
 0x3a6   : > { %v6747_v50 = vsel %vm14300_vm13, %v16974_v59, %v6746_v42  ;;  %v8183_v13 = vrot.slane %v8182_v5, 4  ;;  %v6651_v41 = vld [vmem:[#allocation2] sm:$0xf]  ;;  %v6732_v17 = vrot.slane %v6731_v37, 4  ;;  %v8221_v19 = vrot.slane %v8219_v12, 5 }
 0x3a7   : > { %v6749_v63 = vshrl.u32 %v6655_v45, 16  ;;  %v6752_v23 = vshll.u32 %v6655_v45, 16  ;;  %v6701_v20 = vshrl.u32 %v6651_v41, 16  ;;  %v6704_v27 = vshll.u32 %v6651_v41, 16  ;;  %v8131_v0 = vld [vmem:[#allocation2 + $0x28] sm:$0xf] }
 0x3a8   : > { %v6722_v54 = vrot.slane %v6720_v7, 5  ;;  %v8188_v51 = vsel %vm14300_vm13, %v8183_v13, %v16950_v10  ;;  %v6737_v59 = vsel %vm14300_vm13, %v6732_v17, %v16952_v38  ;;  %v8206_v21 = vor.u32 %v8205_v18, %v8202_v28  ;;  %v6462_v1 = vld [vmem:[#allocation2 + $0x24] sm:$0x1]  ;;  %v6658_v10 = vld [vmem:[#allocation2 + $0x28] sm:$0xf] }
 0x3a9   : > { %v12262_v56 = vcombine.low %v8188_v51, %v8198_v16  ;;  %v8222_v31 = vsel %vm14300_vm13, %v8217_v4, %v8221_v19  ;;  %v6703_v48 = vrot.slane %v6701_v20, 4  ;;  %v6706_v29 = vrot.slane %v6704_v27, 5  ;;  %v6606_v26 = vld [vmem:[#allocation2 + $0x2c] sm:$0x1]  ;;  %v6367_v2 = vld [vmem:[#allocation2 + $0x30] sm:$0x2] }
 0x3aa   : > { %v6723_v32 = vsel %vm14300_vm13, %v16966_v15, %v6722_v54  ;;  %v12150_v61 = vcombine.low %v6737_v59, %v6747_v50  ;;  %v8207_v60 = vrot.slane %v8206_v21, 4  ;;  %v6751_v6 = vrot.slane %v6749_v63, 4  ;;  %v8133_v24 = vld [vmem:[#allocation2 + $0x34] sm:$0xf]  ;;  %v6465_v7 = vld [vmem:[#allocation2 + $0x30] sm:$0x1] }
 0x3ab   : > { %13305 = vmatprep.mubr.msk.bf16.mxu0 %vm1439_vm12, %v12262_v56  ;;  %v6754_v38 = vrot.slane %v6752_v23, 5  ;;  %v6766_v35 = vrot.slane %v6765_v14, 4  ;;  %v6707_v55 = vor.u32 %v6706_v29, %v6703_v48  ;;  %v6768_v46 = vshll.u32 %v6686_v3, 16  ;;  %v17025_v22 = vld [vmem:[#allocation2 + $0x34] sm:$0xf] }
 0x3ac   : > { %v6463_v9 = vsel %vm14211_vm8, %v12116_v52, %v6462_v1  ;;  %v6607_v15 = vsel %vm14248_vm9, %v12134_v47, %v6606_v26  ;;  %v8212_v62 = vsel %vm14300_vm13, %v8207_v60, %v16976_v49  ;;  %v8233_v44 = vshll.u32 %v8131_v0, 16  ;;  %v6511_v52 = vld [vmem:[#allocation2 + $0x34] sm:$0x8]  ;;  %v6609_v19 = vld [vmem:[#allocation2 + $0x38] sm:$0x1] }
 0x3ad   : > { %v6755_v4 = vor.u32 %v6754_v38, %v6751_v6  ;;  %6464 = vst [vmem:[#allocation2 + $0x24] sm:$0x1] %v6463_v9  ;;  %6608 = vst [vmem:[#allocation2 + $0x2c] sm:$0x1] %v6607_v15  ;;  %v8237_v25 = vshrl.u32 %v8131_v0, 16  ;;  %v6708_v57 = vrot.slane %v6707_v55, 4  ;;  %v12263_v8 = vcombine.low %v8212_v62, %v8222_v31 }
 0x3ae   : > { %v6770_v42 = vrot.slane %v6768_v46, 5  ;;  %v6782_v34 = vshll.u32 %v6658_v10, 16  ;;  %v17015_v30 = vrot.slane %v8233_v44, 5  ;;  %v6786_v47 = vshrl.u32 %v6658_v10, 16  ;;  %v6512_v6 = vld [vmem:[#allocation2 + $0x40] sm:$0x8] }
 0x3af   : > { %v6756_v5 = vrot.slane %v6755_v4, 4  ;;  %v8239_v43 = vrot.slane %v8237_v25, 4  ;;  %v6713_v49 = vsel %vm14300_vm13, %v6708_v57, %v16944_v39  ;;  %13306 = vmatmul.mubr.msk.bf16.vlgmr.msra.gmra.mrb[64].mxu0 %vm1439_vm12, %v12263_v8  ;;  %v12117_v14 = vrot.slane %v6367_v2, 9  ;;  %v6468_v62 = vld [vmem:[#allocation2 + $0x3c] sm:$0x1] }
 0x3b0   : > { %v6771_v11 = vsel %vm14300_vm13, %v6766_v35, %v6770_v42  ;;  %v17023_v45 = vrot.slane %v6782_v34, 5  ;;  %v12149_v16 = vcombine.low %v6713_v49, %v6723_v32  ;;  %v6788_v12 = vrot.slane %v6786_v47, 4  ;;  %v6368_v32 = vld [vmem:[#allocation2 + $0x3c] sm:$0x2]  ;;  %v9116_v33 = vld [vmem:[#allocation2 + $0xc] sm:$0xe] }
 0x3b1   : > { %v6761_v37 = vsel %vm14300_vm13, %v6756_v5, %v16978_v36  ;;  %v8240_v50 = vor.u32 %v8239_v43, %v17015_v30  ;;  %v6466_v13 = vsel %vm14211_vm8, %v12117_v14, %v6465_v7  ;;  %v12135_v28 = vrot.slane %v6511_v52, 11  ;;  %v6612_v43 = vld [vmem:[#allocation2 + $0x44] sm:$0x1] }
 0x3b2   : > { %v12151_v39 = vcombine.low %v6761_v37, %v6771_v11  ;;  %v8257_v18 = vshll.u32 %v8133_v24, 16  ;;  %13203 = vmatprep.mubr.msk.bf16.mxu1 %vm1439_vm12, %v12149_v16  ;;  %v6789_v17 = vor.u32 %v6788_v12, %v17023_v45  ;;  %6467 = vst [vmem:[#allocation2 + $0x30] sm:$0x1] %v6466_v13  ;;  %v8261_v63 = vshrl.u32 %v8133_v24, 16 }
 0x3b3   : > { %v17034_v41 = vrot.slane %v8240_v50, 4  ;;  %v6806_v36 = vshll.u32 %v17025_v22, 16  ;;  %13204 = vmatmul.mubr.msk.bf16.vlgmr.msra.gmra.mrb[32].mxu1 %vm1439_vm12, %v12150_v61  ;;  %v6610_v54 = vsel %vm14248_vm9, %v12135_v28, %v6609_v19  ;;  %v6810_v9 = vshrl.u32 %v17025_v22, 16  ;;  %v8135_v22 = vld [vmem:[#allocation2 + $0x40] sm:$0xf] }
 0x3b4   : > { %v8130_v23 = vld [vmem:[#allocation2 + $0x24] sm:$0xf]  ;;  %v8161_v20 = vld [vmem:[#allocation2 + $0x2c] sm:$0x1]  ;;  %13236 = vmatpush3.bf16.msra.mxu1 %v16970_v58  ;;  %13207 = vmatprep.mubr.msk.bf16.mxu1 %vm1439_vm12, %v12151_v39  ;;  %6611 = vst [vmem:[#allocation2 + $0x38] sm:$0x1] %v6610_v54 }
 0x3b5   : > { %v6657_v27 = vld [vmem:[#allocation2 + $0x24] sm:$0xf]  ;;  %v8224_v51 = vshrl.u32 %v8130_v23, 16  ;;  %v8227_v56 = vshll.u32 %v8130_v23, 16  ;;  %v8243_v59 = vshll.u32 %v8161_v20, 16  ;;  %v6790_v0 = vrot.slane %v6789_v17, 4 }
 0x3b6   : > { %v6687_v21 = vld [vmem:[#allocation2 + $0x2c] sm:$0x1]  ;;  %v6773_v31 = vshrl.u32 %v6657_v27, 16  ;;  %v6776_v3 = vshll.u32 %v6657_v27, 16  ;;  %v17043_v29 = vrot.slane %v8257_v18, 5  ;;  %v8263_v35 = vrot.slane %v8261_v63, 4 }
 0x3b7   : > { %v6792_v48 = vshll.u32 %v6687_v21, 16  ;;  %v8226_v61 = vrot.slane %v8224_v51, 4  ;;  %v8229_v1 = vrot.slane %v8227_v56, 5  ;;  %v8245_v10 = vrot.slane %v8243_v59, 5  ;;  %v6369_v59 = vld [vmem:[#allocation2 + $0x48] sm:$0x2] }
 0x3b8   : > { %v6775_v60 = vrot.slane %v6773_v31, 4  ;;  %v6778_v58 = vrot.slane %v6776_v3, 5  ;;  %v17045_v26 = vrot.slane %v6806_v36, 5  ;;  %v12118_v15 = vrot.slane %v6368_v32, 9 }
 0x3b9   : > { %v6794_v38 = vrot.slane %v6792_v48, 5  ;;  %v8230_v55 = vor.u32 %v8229_v1, %v8226_v61  ;;  %v8246_v46 = vsel %vm14300_vm13, %v17034_v41, %v8245_v10  ;;  %v8132_v25 = vld [vmem:[#allocation2 + $0x30] sm:$0xf]  ;;  %v8264_v2 = vor.u32 %v8263_v35, %v17043_v29  ;;  %v6662_v41 = vld [vmem:[#allocation2 + $0x40] sm:$0xf] }
 0x3ba   : > { %v6779_v4 = vor.u32 %v6778_v58, %v6775_v60  ;;  %v6659_v57 = vld [vmem:[#allocation2 + $0x30] sm:$0xf]  ;;  %v12136_v8 = vrot.slane %v6512_v6, 11  ;;  %v8248_v34 = vshrl.u32 %v8132_v25, 16  ;;  %v8251_v52 = vshll.u32 %v8132_v25, 16 }
 0x3bb   : > { %v6795_v44 = vsel %vm14300_vm13, %v6790_v0, %v6794_v38  ;;  %v8231_v42 = vrot.slane %v8230_v55, 4  ;;  %v6797_v5 = vshrl.u32 %v6659_v57, 16  ;;  %v8162_v24 = vld [vmem:[#allocation2 + $0x38] sm:$0x1]  ;;  %v8265_v49 = vrot.slane %v8264_v2, 4 }
 0x3bc   : > { %v6780_v47 = vrot.slane %v6779_v4, 4  ;;  %v6469_v11 = vsel %vm14211_vm8, %v12118_v15, %v6468_v62  ;;  %v6613_v14 = vsel %vm14248_vm9, %v12136_v8, %v6612_v43  ;;  %v8250_v37 = vrot.slane %v8248_v34, 4  ;;  %v6688_v7 = vld [vmem:[#allocation2 + $0x38] sm:$0x1]  ;;  %v6513_v55 = vld [vmem:[#allocation2 + $0x4c] sm:$0x8] }
 0x3bd   : > { %v8236_v16 = vsel %vm14300_vm13, %v8231_v42, %v17015_v30  ;;  %v8253_v50 = vrot.slane %v8251_v52, 5  ;;  %v8267_v12 = vshll.u32 %v8162_v24, 16  ;;  %6470 = vst [vmem:[#allocation2 + $0x3c] sm:$0x1] %v6469_v11  ;;  %6614 = vst [vmem:[#allocation2 + $0x44] sm:$0x1] %v6613_v14 }
 0x3be   : > { %v12264_v39 = vcombine.low %v8236_v16, %v8246_v46  ;;  %v6785_v13 = vsel %vm14300_vm13, %v6780_v47, %v17023_v45  ;;  %v6799_v28 = vrot.slane %v6797_v5, 4  ;;  %v6800_v18 = vshll.u32 %v6659_v57, 16  ;;  %v6664_v42 = vld [vmem:[#allocation2 + $0x4c] sm:$0xf]  ;;  %v6471_v47 = vld [vmem:[#allocation2 + $0x48] sm:$0x1] }
 0x3bf   : > { %v12152_v17 = vcombine.low %v6785_v13, %v6795_v44  ;;  %v8254_v19 = vor.u32 %v8253_v50, %v8250_v37  ;;  %v8269_v63 = vrot.slane %v8267_v12, 5  ;;  %v6812_v36 = vrot.slane %v6810_v9, 4  ;;  %v6615_v13 = vld [vmem:[#allocation2 + $0x50] sm:$0x1] }
 0x3c0   : > { %13309 = vmatprep.mubr.msk.bf16.mxu0 %vm1439_vm12, %v12264_v39  ;;  %v6802_v30 = vrot.slane %v6800_v18, 5  ;;  %v6816_v23 = vshll.u32 %v6688_v7, 16  ;;  %v8281_v20 = vshll.u32 %v8135_v22, 16  ;;  %v8285_v27 = vshrl.u32 %v8135_v22, 16  ;;  %v7801_v22 = vld [vmem:[%s19364_s2 + $0x4] sm:$0x3] }
 0x3c1   : > { %13208 = vmatmul.mubr.msk.bf16.gmra.mrb[36].mxu1 %vm1439_vm12, %v12152_v17  ;;  %v8255_v54 = vrot.slane %v8254_v19, 4  ;;  %v8270_v51 = vsel %vm14300_vm13, %v8265_v49, %v8269_v63  ;;  %v6813_v45 = vor.u32 %v6812_v36, %v17045_v26  ;;  %v6830_v56 = vshll.u32 %v6662_v41, 16  ;;  %13902 = vmatprep.subr.msk.bf16.mxu1 %vm1488_vm0, %v7801_v22  ;;  %v6370_v18 = vld [vmem:[#allocation2 + $0x54] sm:$0x2]  ;;  %v6515_v22 = vld [vmem:[#allocation2 + $0x64] sm:$0x8] }
 0x3c2   : > { %v6803_v21 = vor.u32 %v6802_v30, %v6799_v28  ;;  %v6818_v31 = vrot.slane %v6816_v23, 5  ;;  %v17069_v3 = vrot.slane %v8281_v20, 5  ;;  %v8287_v0 = vrot.slane %v8285_v27, 4  ;;  %v6514_v27 = vld [vmem:[#allocation2 + $0x58] sm:$0x8] }
 0x3c3   : > { %v8260_v48 = vsel %vm14300_vm13, %v8255_v54, %v17043_v29  ;;  %v6814_v32 = vrot.slane %v6813_v45, 4  ;;  %v17074_v61 = vrot.slane %v6830_v56, 5  ;;  %v6834_v1 = vshrl.u32 %v6662_v41, 16  ;;  %v8137_v29 = vld [vmem:[#allocation2 + $0x4c] sm:$0xf] }
 0x3c4   : > { %v12265_v10 = vcombine.low %v8260_v48, %v8270_v51  ;;  %v6804_v60 = vrot.slane %v6803_v21, 4  ;;  %v8134_v6 = vld [vmem:[#allocation2 + $0x3c] sm:$0xf]  ;;  %v8163_v58 = vld [vmem:[#allocation2 + $0x44] sm:$0x1]  ;;  %v8288_v38 = vor.u32 %v8287_v0, %v17069_v3  ;;  %v12119_v35 = vrot.slane %v6369_v59, 9 }
 0x3c5   : > { %v6819_v46 = vsel %vm14300_vm13, %v6814_v32, %v6818_v31  ;;  %v8272_v9 = vshrl.u32 %v8134_v6, 16  ;;  %v8275_v15 = vshll.u32 %v8134_v6, 16  ;;  %v8291_v62 = vshll.u32 %v8163_v58, 16  ;;  %v6661_v4 = vld [vmem:[#allocation2 + $0x3c] sm:$0xf] }
 0x3c6   : > { %13310 = vmatmul.mubr.msk.bf16.gmra.mrb[68].mxu0 %vm1439_vm12, %v12265_v10  ;;  %v6809_v44 = vsel %vm14300_vm13, %v6804_v60, %v17045_v26  ;;  %v8289_v25 = vrot.slane %v8288_v38, 4  ;;  %v6689_v2 = vld [vmem:[#allocation2 + $0x44] sm:$0x1]  ;;  %v6821_v57 = vshrl.u32 %v6661_v4, 16  ;;  %v6824_v8 = vshll.u32 %v6661_v4, 16 }
 0x3c7   : > { %v12153_v34 = vcombine.low %v6809_v44, %v6819_v46  ;;  %v8274_v52 = vrot.slane %v8272_v9, 4  ;;  %v8277_v5 = vrot.slane %v8275_v15, 5  ;;  %v8293_v43 = vrot.slane %v8291_v62, 5  ;;  %v8139_v59 = vld [vmem:[#allocation2 + $0x58] sm:$0xf] }
 0x3c8   : > { %v6823_v24 = vrot.slane %v6821_v57, 4  ;;  %v6826_v49 = vrot.slane %v6824_v8, 5  ;;  %v6836_v11 = vrot.slane %v6834_v1, 4  ;;  %v6840_v14 = vshll.u32 %v6689_v2, 16  ;;  %v6474_v32 = vld [vmem:[#allocation2 + $0x54] sm:$0x1] }
 0x3c9   : > { %13211 = vmatprep.mubr.msk.bf16.mxu1 %vm1439_vm12, %v12153_v34  ;;  %v8278_v26 = vor.u32 %v8277_v5, %v8274_v52  ;;  %v8294_v16 = vsel %vm14300_vm13, %v8289_v25, %v8293_v43  ;;  %v6472_v37 = vsel %vm14211_vm8, %v12119_v35, %v6471_v47  ;;  %v12137_v50 = vrot.slane %v6513_v55, 11  ;;  %v6666_v1 = vld [vmem:[#allocation2 + $0x58] sm:$0xf]  ;;  %v6618_v58 = vld [vmem:[#allocation2 + $0x5c] sm:$0x1] }
 0x3ca   : > { %v6827_v12 = vor.u32 %v6826_v49, %v6823_v24  ;;  %v6837_v7 = vor.u32 %v6836_v11, %v17074_v61  ;;  %v6842_v39 = vrot.slane %v6840_v14, 5  ;;  %6473 = vst [vmem:[#allocation2 + $0x48] sm:$0x1] %v6472_v37  ;;  %v8305_v28 = vshll.u32 %v8137_v29, 16  ;;  %v6371_v47 = vld [vmem:[#allocation2 + $0x60] sm:$0x2] }
 0x3cb   : > { %v8279_v41 = vrot.slane %v8278_v26, 4  ;;  %v6616_v17 = vsel %vm14248_vm9, %v12137_v50, %v6615_v13  ;;  %v8309_v19 = vshrl.u32 %v8137_v29, 16  ;;  %v6854_v63 = vshll.u32 %v6664_v42, 16 }
 0x3cc   : > { %v6828_v36 = vrot.slane %v6827_v12, 4  ;;  %v6838_v30 = vrot.slane %v6837_v7, 4  ;;  %6617 = vst [vmem:[#allocation2 + $0x50] sm:$0x1] %v6616_v17  ;;  %v17095_v23 = vrot.slane %v8305_v28, 5  ;;  %v6858_v20 = vshrl.u32 %v6664_v42, 16 }
 0x3cd   : > { %v8284_v54 = vsel %vm14300_vm13, %v8279_v41, %v17069_v3  ;;  %v8311_v51 = vrot.slane %v8309_v19, 4  ;;  %v17100_v45 = vrot.slane %v6854_v63, 5  ;;  %v12120_v56 = vrot.slane %v6370_v18, 9 }
 0x3ce   : > { %v12266_v21 = vcombine.low %v8284_v54, %v8294_v16  ;;  %v6833_v31 = vsel %vm14300_vm13, %v6828_v36, %v17074_v61  ;;  %v6843_v0 = vsel %vm14300_vm13, %v6838_v30, %v6842_v39  ;;  %v6860_v48 = vrot.slane %v6858_v20, 4 }
 0x3cf   : > { %v12154_v10 = vcombine.low %v6833_v31, %v6843_v0  ;;  %v8312_v60 = vor.u32 %v8311_v51, %v17095_v23  ;;  %v6475_v3 = vsel %vm14211_vm8, %v12120_v56, %v6474_v32  ;;  %v12138_v6 = vrot.slane %v6514_v27, 11 }
 0x3d0   : > { %13313 = vmatprep.mubr.msk.bf16.mxu0 %vm1439_vm12, %v12266_v21  ;;  %6476 = vst [vmem:[#allocation2 + $0x54] sm:$0x1] %v6475_v3  ;;  %v8329_v38 = vshll.u32 %v8139_v59, 16  ;;  %v8333_v35 = vshrl.u32 %v8139_v59, 16  ;;  %v6861_v46 = vor.u32 %v6860_v48, %v17100_v45  ;;  %v6878_v15 = vshll.u32 %v6666_v1, 16 }
 0x3d1   : > { %13212 = vmatmul.mubr.msk.bf16.gmra.mrb[40].mxu1 %vm1439_vm12, %v12154_v10  ;;  %v8136_v61 = vld [vmem:[#allocation2 + $0x48] sm:$0xf]  ;;  %v6619_v9 = vsel %vm14248_vm9, %v12138_v6, %v6618_v58  ;;  %v6882_v62 = vshrl.u32 %v6666_v1, 16  ;;  %v8313_v57 = vrot.slane %v8312_v60, 4  ;;  %v12121_v28 = vrot.slane %v6371_v47, 9 }
 0x3d2   : > { %v6663_v55 = vld [vmem:[#allocation2 + $0x48] sm:$0xf]  ;;  %v8296_v4 = vshrl.u32 %v8136_v61, 16  ;;  %v8299_v29 = vshll.u32 %v8136_v61, 16  ;;  %6620 = vst [vmem:[#allocation2 + $0x5c] sm:$0x1] %v6619_v9 }
 0x3d3   : > { %v6845_v44 = vshrl.u32 %v6663_v55, 16  ;;  %v6848_v25 = vshll.u32 %v6663_v55, 16  ;;  %v8164_v2 = vld [vmem:[#allocation2 + $0x50] sm:$0x1]  ;;  %v17115_v42 = vrot.slane %v8329_v38, 5  ;;  %v6862_v49 = vrot.slane %v6861_v46, 4 }
 0x3d4   : > { %v6690_v8 = vld [vmem:[#allocation2 + $0x50] sm:$0x1]  ;;  %v8298_v34 = vrot.slane %v8296_v4, 4  ;;  %v8301_v52 = vrot.slane %v8299_v29, 5  ;;  %v8315_v5 = vshll.u32 %v8164_v2, 16  ;;  %v8335_v14 = vrot.slane %v8333_v35, 4 }
 0x3d5   : > { %v6847_v43 = vrot.slane %v6845_v44, 4  ;;  %v6850_v24 = vrot.slane %v6848_v25, 5  ;;  %v6864_v11 = vshll.u32 %v6690_v8, 16  ;;  %v17117_v37 = vrot.slane %v6878_v15, 5  ;;  %v17130_v10 = vld [vmem:[#allocation2 + $0x64] sm:$0xf] }
 0x3d6   : > { %v8302_v26 = vor.u32 %v8301_v52, %v8298_v34  ;;  %v8317_v16 = vrot.slane %v8315_v5, 5  ;;  %v6884_v50 = vrot.slane %v6882_v62, 4  ;;  %v8336_v13 = vor.u32 %v8335_v14, %v17115_v42  ;;  %v17132_v60 = vld [vmem:[#allocation2 + $0x64] sm:$0xf]  ;;  %v6477_v38 = vld [vmem:[#allocation2 + $0x60] sm:$0x1] }
 0x3d7   : > { %v6851_v12 = vor.u32 %v6850_v24, %v6847_v43  ;;  %v6866_v7 = vrot.slane %v6864_v11, 5  ;;  %v8138_v39 = vld [vmem:[#allocation2 + $0x54] sm:$0xf]  ;;  %v12139_v63 = vrot.slane %v6515_v22, 11  ;;  %v6621_v35 = vld [vmem:[#allocation2 + $0x68] sm:$0x1] }
 0x3d8   : > { %v8303_v18 = vrot.slane %v8302_v26, 4  ;;  %v8320_v41 = vshrl.u32 %v8138_v39, 16  ;;  %v8323_v17 = vshll.u32 %v8138_v39, 16  ;;  %v6665_v19 = vld [vmem:[#allocation2 + $0x54] sm:$0xf]  ;;  %v8318_v36 = vsel %vm14300_vm13, %v8313_v57, %v8317_v16 }
 0x3d9   : > { %v6852_v30 = vrot.slane %v6851_v12, 4  ;;  %v6867_v20 = vsel %vm14300_vm13, %v6862_v49, %v6866_v7  ;;  %v8165_v27 = vld [vmem:[#allocation2 + $0x5c] sm:$0x1]  ;;  %v8337_v54 = vrot.slane %v8336_v13, 4  ;;  %v6869_v32 = vshrl.u32 %v6665_v19, 16 }
 0x3da   : > { %v8308_v51 = vsel %vm14300_vm13, %v8303_v18, %v17095_v23  ;;  %v8322_v56 = vrot.slane %v8320_v41, 4  ;;  %v8325_v59 = vrot.slane %v8323_v17, 5  ;;  %v8339_v21 = vshll.u32 %v8165_v27, 16  ;;  %v6691_v31 = vld [vmem:[#allocation2 + $0x5c] sm:$0x1] }
 0x3db   : > { %v12267_v0 = vcombine.low %v8308_v51, %v8318_v36  ;;  %v6857_v48 = vsel %vm14300_vm13, %v6852_v30, %v17100_v45  ;;  %v6872_v1 = vshll.u32 %v6665_v19, 16  ;;  %v6885_v23 = vor.u32 %v6884_v50, %v17117_v37  ;;  %v6372_v9 = vld [vmem:[#allocation2 + $0x6c] sm:$0x2]  ;;  %v6516_v8 = vld [vmem:[#allocation2 + $0x70] sm:$0x8] }
 0x3dc   : > { %v12155_v3 = vcombine.low %v6857_v48, %v6867_v20  ;;  %v8326_v6 = vor.u32 %v8325_v59, %v8322_v56  ;;  %v8341_v58 = vrot.slane %v8339_v21, 5  ;;  %v6871_v61 = vrot.slane %v6869_v32, 4  ;;  %v17152_v47 = vld [vmem:[#allocation2 + $0x70] sm:$0xf]  ;;  %v6480_v22 = vld [vmem:[#allocation2 + $0x6c] sm:$0x1] }
 0x3dd   : > { %13314 = vmatmul.mubr.msk.bf16.gmra.mrb[72].mxu0 %vm1439_vm12, %v12267_v0  ;;  %v6874_v55 = vrot.slane %v6872_v1, 5  ;;  %v6888_v46 = vshll.u32 %v6691_v31, 16  ;;  %v6478_v45 = vsel %vm14211_vm8, %v12121_v28, %v6477_v38  ;;  %v6622_v4 = vsel %vm14248_vm9, %v12139_v63, %v6621_v35  ;;  %v6624_v28 = vld [vmem:[#allocation2 + $0x74] sm:$0x1] }
 0x3de   : > { %13215 = vmatprep.mubr.msk.bf16.mxu1 %vm1439_vm12, %v12155_v3  ;;  %v8327_v15 = vrot.slane %v8326_v6, 4  ;;  %v8342_v62 = vsel %vm14300_vm13, %v8337_v54, %v8341_v58  ;;  %6479 = vst [vmem:[#allocation2 + $0x60] sm:$0x1] %v6478_v45  ;;  %v8353_v29 = vshll.u32 %v17130_v10, 16  ;;  %6623 = vst [vmem:[#allocation2 + $0x68] sm:$0x1] %v6622_v4 }
 0x3df   : > { %v6875_v44 = vor.u32 %v6874_v55, %v6871_v61  ;;  %v6890_v25 = vrot.slane %v6888_v46, 5  ;;  %v8357_v2 = vshrl.u32 %v17130_v10, 16  ;;  %v6902_v57 = vshll.u32 %v17132_v60, 16 }
 0x3e0   : > { %v8332_v34 = vsel %vm14300_vm13, %v8327_v15, %v17115_v42  ;;  %v17149_v52 = vrot.slane %v8353_v29, 5  ;;  %v6906_v5 = vshrl.u32 %v17132_v60, 16  ;;  %v12122_v43 = vrot.slane %v6372_v9, 9  ;;  %v17158_v42 = vld [vmem:[#allocation2 + $0x70] sm:$0xf] }
 0x3e1   : > { %v12268_v24 = vcombine.low %v8332_v34, %v8342_v62  ;;  %v6876_v49 = vrot.slane %v6875_v44, 4  ;;  %v6886_v11 = vrot.slane %v6885_v23, 4  ;;  %v8359_v14 = vrot.slane %v8357_v2, 4 }
 0x3e2   : > { %v17154_v26 = vrot.slane %v6902_v57, 5  ;;  %v6908_v16 = vrot.slane %v6906_v5, 4  ;;  %v6481_v50 = vsel %vm14211_vm8, %v12122_v43, %v6480_v22  ;;  %v12140_v12 = vrot.slane %v6516_v8, 11 }
 0x3e3   : > { %13317 = vmatprep.mubr.msk.bf16.mxu0 %vm1439_vm12, %v12268_v24  ;;  %v6881_v7 = vsel %vm14300_vm13, %v6876_v49, %v17117_v37  ;;  %v6891_v39 = vsel %vm14300_vm13, %v6886_v11, %v6890_v25  ;;  %v8360_v13 = vor.u32 %v8359_v14, %v17149_v52  ;;  %6482 = vst [vmem:[#allocation2 + $0x6c] sm:$0x1] %v6481_v50  ;;  %v8377_v18 = vshll.u32 %v17152_v47, 16  ;;  %v6373_v49 = vld [vmem:[#allocation2 + $0x78] sm:$0x2] }
 0x3e4   : > { %v12156_v41 = vcombine.low %v6881_v7, %v6891_v39  ;;  %v6625_v17 = vsel %vm14248_vm9, %v12140_v12, %v6624_v28  ;;  %v8381_v19 = vshrl.u32 %v17152_v47, 16  ;;  %v6909_v37 = vor.u32 %v6908_v16, %v17154_v26  ;;  %v6517_v28 = vld [vmem:[#allocation2 + $0x7c] sm:$0x8] }
 0x3e5   : > { %v17171_v63 = vld [vmem:[#allocation2 + $0x60] sm:$0xf]  ;;  %6626 = vst [vmem:[#allocation2 + $0x74] sm:$0x1] %v6625_v17  ;;  %v17176_v30 = vrot.slane %v8377_v18, 5  ;;  %v6926_v20 = vshll.u32 %v17158_v42, 16 }
 0x3e6   : > { %v17173_v36 = vld [vmem:[#allocation2 + $0x60] sm:$0xf]  ;;  %13216 = vmatmul.mubr.msk.bf16.gmra.mrb[44].mxu1 %vm1439_vm12, %v12156_v41  ;;  %v8166_v27 = vld [vmem:[#allocation2 + $0x68] sm:$0x1]  ;;  %v8344_v54 = vshrl.u32 %v17171_v63, 16  ;;  %v8347_v51 = vshll.u32 %v17171_v63, 16 }
 0x3e7   : > { %v6692_v56 = vld [vmem:[#allocation2 + $0x68] sm:$0x1]  ;;  %v8361_v59 = vrot.slane %v8360_v13, 4  ;;  %v8363_v21 = vshll.u32 %v8166_v27, 16  ;;  %v6893_v31 = vshrl.u32 %v17173_v36, 16  ;;  %v6896_v0 = vshll.u32 %v17173_v36, 16 }
 0x3e8   : > { %v8346_v48 = vrot.slane %v8344_v54, 4  ;;  %v8349_v32 = vrot.slane %v8347_v51, 5  ;;  %v6912_v1 = vshll.u32 %v6692_v56, 16  ;;  %v8383_v3 = vrot.slane %v8381_v19, 4  ;;  %v17206_v18 = vld [vmem:[#allocation2 + $0x7c] sm:$0xf] }
 0x3e9   : > { %v8365_v6 = vrot.slane %v8363_v21, 5  ;;  %v6895_v58 = vrot.slane %v6893_v31, 4  ;;  %v6898_v23 = vrot.slane %v6896_v0, 5  ;;  %v6910_v38 = vrot.slane %v6909_v37, 4  ;;  %v17209_v37 = vld [vmem:[#allocation2 + $0x7c] sm:$0xf] }
 0x3ea   : > { %v8350_v35 = vor.u32 %v8349_v32, %v8346_v48  ;;  %v6914_v61 = vrot.slane %v6912_v1, 5  ;;  %v17184_v55 = vld [vmem:[#allocation2 + $0x6c] sm:$0xf]  ;;  %v8384_v46 = vor.u32 %v8383_v3, %v17176_v30  ;;  %v6930_v45 = vshrl.u32 %v17158_v42, 16  ;;  %v6518_v51 = vld [vmem:[#allocation2 + $0x88] sm:$0x8] }
 0x3eb   : > { %v6899_v9 = vor.u32 %v6898_v23, %v6895_v58  ;;  %v8368_v15 = vshrl.u32 %v17184_v55, 16  ;;  %v8371_v62 = vshll.u32 %v17184_v55, 16  ;;  %v17190_v4 = vld [vmem:[#allocation2 + $0x6c] sm:$0xf]  ;;  %v17192_v29 = vrot.slane %v6926_v20, 5 }
 0x3ec   : > { %v8351_v44 = vrot.slane %v8350_v35, 4  ;;  %v8366_v25 = vsel %vm14300_vm13, %v8361_v59, %v8365_v6  ;;  %v6915_v2 = vsel %vm14300_vm13, %v6910_v38, %v6914_v61  ;;  %v8167_v57 = vld [vmem:[#allocation2 + $0x74] sm:$0x1]  ;;  %v8385_v8 = vrot.slane %v8384_v46, 4  ;;  %v17214_v56 = vld [vmem:[#allocation2 + $0x88] sm:$0xf] }
 0x3ed   : > { %v6900_v34 = vrot.slane %v6899_v9, 4  ;;  %v8370_v5 = vrot.slane %v8368_v15, 4  ;;  %v8373_v43 = vrot.slane %v8371_v62, 5  ;;  %v8387_v24 = vshll.u32 %v8167_v57, 16  ;;  %v6693_v14 = vld [vmem:[#allocation2 + $0x74] sm:$0x1] }
 0x3ee   : > { %v8356_v11 = vsel %vm14300_vm13, %v8351_v44, %v17149_v52  ;;  %v6917_v22 = vshrl.u32 %v17190_v4, 16  ;;  %v6920_v16 = vshll.u32 %v17190_v4, 16  ;;  %v6932_v50 = vrot.slane %v6930_v45, 4  ;;  %v6483_v31 = vld [vmem:[#allocation2 + $0x78] sm:$0x1] }
 0x3ef   : > { %v12269_v12 = vcombine.low %v8356_v11, %v8366_v25  ;;  %v6905_v7 = vsel %vm14300_vm13, %v6900_v34, %v17154_v26  ;;  %v8374_v39 = vor.u32 %v8373_v43, %v8370_v5  ;;  %v8389_v13 = vrot.slane %v8387_v24, 5  ;;  %v6627_v6 = vld [vmem:[#allocation2 + $0x80] sm:$0x1]  ;;  %v6374_v23 = vld [vmem:[#allocation2 + $0x84] sm:$0x2] }
 0x3f0   : > { %v12157_v41 = vcombine.low %v6905_v7, %v6915_v2  ;;  %v6919_v17 = vrot.slane %v6917_v22, 4  ;;  %v6922_v19 = vrot.slane %v6920_v16, 5  ;;  %v6933_v52 = vor.u32 %v6932_v50, %v17192_v29  ;;  %v17228_v45 = vld [vmem:[#allocation2 + $0x88] sm:$0xf]  ;;  %v6519_v44 = vld [vmem:[#allocation2 + $0x94] sm:$0x8] }
 0x3f1   : > { %13318 = vmatmul.mubr.msk.bf16.gmra.mrb[76].mxu0 %vm1439_vm12, %v12269_v12  ;;  %v8375_v20 = vrot.slane %v8374_v39, 4  ;;  %v8390_v27 = vsel %vm14300_vm13, %v8385_v8, %v8389_v13  ;;  %v6936_v54 = vshll.u32 %v6693_v14, 16  ;;  %v12123_v26 = vrot.slane %v6373_v49, 9  ;;  %v17234_v25 = vld [vmem:[#allocation2 + $0x94] sm:$0xf] }
 0x3f2   : > { %13219 = vmatprep.mubr.msk.bf16.mxu1 %vm1439_vm12, %v12157_v41  ;;  %v6923_v59 = vor.u32 %v6922_v19, %v6919_v17  ;;  %v6934_v21 = vrot.slane %v6933_v52, 4  ;;  %v12141_v0 = vrot.slane %v6517_v28, 11  ;;  %v8401_v48 = vshll.u32 %v17206_v18, 16  ;;  %v6486_v8 = vld [vmem:[#allocation2 + $0x84] sm:$0x1] }
 0x3f3   : > { %v8380_v32 = vsel %vm14300_vm13, %v8375_v20, %v17176_v30  ;;  %v6938_v1 = vrot.slane %v6936_v54, 5  ;;  %v6484_v3 = vsel %vm14211_vm8, %v12123_v26, %v6483_v31  ;;  %v8405_v58 = vshrl.u32 %v17206_v18, 16  ;;  %v6630_v14 = vld [vmem:[#allocation2 + $0x8c] sm:$0x1]  ;;  %v6375_v22 = vld [vmem:[#allocation2 + $0x90] sm:$0x2] }
 0x3f4   : > { %v12270_v38 = vcombine.low %v8380_v32, %v8390_v27  ;;  %v6924_v35 = vrot.slane %v6923_v59, 4  ;;  %6485 = vst [vmem:[#allocation2 + $0x78] sm:$0x1] %v6484_v3  ;;  %v6628_v61 = vsel %vm14248_vm9, %v12141_v0, %v6627_v6  ;;  %v17226_v46 = vrot.slane %v8401_v48, 5  ;;  %v6489_v19 = vld [vmem:[#allocation2 + $0x90] sm:$0x1] }
 0x3f5   : > { %v6939_v30 = vsel %vm14300_vm13, %v6934_v21, %v6938_v1  ;;  %6629 = vst [vmem:[#allocation2 + $0x80] sm:$0x1] %v6628_v61  ;;  %v8407_v9 = vrot.slane %v8405_v58, 4  ;;  %v6950_v15 = vshll.u32 %v17209_v37, 16  ;;  %v6954_v62 = vshrl.u32 %v17209_v37, 16 }
 0x3f6   : > { %13321 = vmatprep.mubr.msk.bf16.mxu0 %vm1439_vm12, %v12270_v38  ;;  %v6929_v2 = vsel %vm14300_vm13, %v6924_v35, %v17192_v29  ;;  %v12124_v57 = vrot.slane %v6374_v23, 9  ;;  %v12142_v34 = vrot.slane %v6518_v51, 11  ;;  %v8425_v5 = vshll.u32 %v17214_v56, 16 }
 0x3f7   : > { %v12158_v43 = vcombine.low %v6929_v2, %v6939_v30  ;;  %v8408_v24 = vor.u32 %v8407_v9, %v17226_v46  ;;  %v17242_v49 = vrot.slane %v6950_v15, 5  ;;  %v6956_v11 = vrot.slane %v6954_v62, 4 }
 0x3f8   : > { %v6487_v16 = vsel %vm14211_vm8, %v12124_v57, %v6486_v8  ;;  %v6631_v50 = vsel %vm14248_vm9, %v12142_v34, %v6630_v14  ;;  %v17248_v29 = vrot.slane %v8425_v5, 5  ;;  %v8429_v12 = vshrl.u32 %v17214_v56, 16 }
 0x3f9   : > { %13220 = vmatmul.mubr.msk.bf16.gmra.mrb[48].mxu1 %vm1439_vm12, %v12158_v43  ;;  %v8409_v7 = vrot.slane %v8408_v24, 4  ;;  %v6957_v39 = vor.u32 %v6956_v11, %v17242_v49  ;;  %6488 = vst [vmem:[#allocation2 + $0x84] sm:$0x1] %v6487_v16  ;;  %6632 = vst [vmem:[#allocation2 + $0x8c] sm:$0x1] %v6631_v50  ;;  %v6974_v13 = vshll.u32 %v17228_v45, 16 }
 0x3fa   : > { %v6978_v28 = vshrl.u32 %v17228_v45, 16  ;;  %v8431_v41 = vrot.slane %v8429_v12, 4  ;;  %v12125_v17 = vrot.slane %v6375_v22, 9  ;;  %v12143_v52 = vrot.slane %v6519_v44, 11  ;;  %v6633_v44 = vld [vmem:[#allocation2 + $0x98] sm:$0x1] }
 0x3fb   : > { %v8449_v20 = vshll.u32 %v17234_v25, 16  ;;  %v17256_v27 = vld [vmem:[#allocation2 + $0x78] sm:$0xf]  ;;  %v6958_v26 = vrot.slane %v6957_v39, 4  ;;  %v17260_v51 = vrot.slane %v6974_v13, 5 }
 0x3fc   : > { %v17258_v54 = vld [vmem:[#allocation2 + $0x78] sm:$0xf]  ;;  %v8168_v59 = vld [vmem:[#allocation2 + $0x80] sm:$0x1]  ;;  %v8392_v21 = vshrl.u32 %v17256_v27, 16  ;;  %v8395_v31 = vshll.u32 %v17256_v27, 16  ;;  %v8432_v48 = vor.u32 %v8431_v41, %v17248_v29  ;;  %v6490_v32 = vsel %vm14211_vm8, %v12125_v17, %v6489_v19 }
 0x3fd   : > { %v6694_v0 = vld [vmem:[#allocation2 + $0x80] sm:$0x1]  ;;  %v8411_v1 = vshll.u32 %v8168_v59, 16  ;;  %v6941_v3 = vshrl.u32 %v17258_v54, 16  ;;  %v6944_v6 = vshll.u32 %v17258_v54, 16  ;;  %v6980_v61 = vrot.slane %v6978_v28, 4 }
 0x3fe   : > { %v6960_v58 = vshll.u32 %v6694_v0, 16  ;;  %6491 = vst [vmem:[#allocation2 + $0x90] sm:$0x1] %v6490_v32  ;;  %v8394_v23 = vrot.slane %v8392_v21, 4  ;;  %v8397_v38 = vrot.slane %v8395_v31, 5  ;;  %v17269_v35 = vrot.slane %v8432_v48, 4 }
 0x3ff   : > { %v8413_v30 = vrot.slane %v8411_v1, 5  ;;  %v6943_v9 = vrot.slane %v6941_v3, 4  ;;  %v6946_v15 = vrot.slane %v6944_v6, 5  ;;  %v6981_v5 = vor.u32 %v6980_v61, %v17260_v51 }
 0x400   : > { %v6962_v62 = vrot.slane %v6960_v58, 5  ;;  %v8398_v2 = vor.u32 %v8397_v38, %v8394_v23  ;;  %v17271_v57 = vld [vmem:[#allocation2 + $0x84] sm:$0xf]  ;;  %v8169_v8 = vld [vmem:[#allocation2 + $0x8c] sm:$0x1]  ;;  %v6634_v43 = vsel %vm14248_vm9, %v12143_v52, %v6633_v44  ;;  %v8453_v44 = vshrl.u32 %v17234_v25, 16 }
 0x401   : > { %v17273_v34 = vld [vmem:[#allocation2 + $0x84] sm:$0xf]  ;;  %v8414_v24 = vsel %vm14300_vm13, %v8409_v7, %v8413_v30  ;;  %v6947_v11 = vor.u32 %v6946_v15, %v6943_v9  ;;  %v8416_v22 = vshrl.u32 %v17271_v57, 16  ;;  %6635 = vst [vmem:[#allocation2 + $0x98] sm:$0x1] %v6634_v43  ;;  %v8419_v50 = vshll.u32 %v17271_v57, 16 }
 0x402   : > { %v6963_v14 = vsel %vm14300_vm13, %v6958_v26, %v6962_v62  ;;  %v8399_v16 = vrot.slane %v8398_v2, 4  ;;  %v8435_v12 = vshll.u32 %v8169_v8, 16  ;;  %v6695_v39 = vld [vmem:[#allocation2 + $0x8c] sm:$0x1]  ;;  %v6965_v13 = vshrl.u32 %v17273_v34, 16 }
 0x403   : > { %v6948_v28 = vrot.slane %v6947_v11, 4  ;;  %v8418_v41 = vrot.slane %v8416_v22, 4  ;;  %v6968_v17 = vshll.u32 %v17273_v34, 16  ;;  %v6982_v19 = vrot.slane %v6981_v5, 4 }
 0x404   : > { %v8404_v7 = vsel %vm14300_vm13, %v8399_v16, %v17226_v46  ;;  %v8421_v52 = vrot.slane %v8419_v50, 5  ;;  %v8437_v26 = vrot.slane %v8435_v12, 5  ;;  %v6967_v59 = vrot.slane %v6965_v13, 4 }
 0x405   : > { %v17289_v21 = vld [vmem:[#allocation2 + $0x90] sm:$0xf]  ;;  %v12271_v31 = vcombine.low %v8404_v7, %v8414_v24  ;;  %v6953_v0 = vsel %vm14300_vm13, %v6948_v28, %v17242_v49  ;;  %v6970_v48 = vrot.slane %v6968_v17, 5  ;;  %v6984_v32 = vshll.u32 %v6695_v39, 16  ;;  %v17302_v49 = vld [vmem:[#allocation2 + $0x94] sm:$0xf] }
 0x406   : > { %v17294_v1 = vld [vmem:[#allocation2 + $0x90] sm:$0xf]  ;;  %v12159_v3 = vcombine.low %v6953_v0, %v6963_v14  ;;  %v8422_v6 = vor.u32 %v8421_v52, %v8418_v41  ;;  %v8438_v46 = vsel %vm14300_vm13, %v17269_v35, %v8437_v26  ;;  %v8440_v58 = vshrl.u32 %v17289_v21, 16  ;;  %v6520_v28 = vld [vmem:[#allocation2 + $0xa0] sm:$0x8] }
 0x407   : > { %13322 = vmatmul.mubr.msk.bf16.gmra.mrb[80].mxu0 %vm1439_vm12, %v12271_v31  ;;  %v6971_v23 = vor.u32 %v6970_v48, %v6967_v59  ;;  %v6986_v38 = vrot.slane %v6984_v32, 5  ;;  %v8443_v61 = vshll.u32 %v17289_v21, 16  ;;  %v8451_v30 = vrot.slane %v8449_v20, 5  ;;  %v6376_v20 = vld [vmem:[#allocation2 + $0x9c] sm:$0x2] }
 0x408   : > { %13223 = vmatprep.mubr.msk.bf16.mxu1 %vm1439_vm12, %v12159_v3  ;;  %v8423_v9 = vrot.slane %v8422_v6, 4  ;;  %v17305_v15 = vld [vmem:[#allocation2 + $0x98] sm:$0x1]  ;;  %v8442_v62 = vrot.slane %v8440_v58, 4  ;;  %v6989_v35 = vshrl.u32 %v17294_v1, 16  ;;  %v8455_v11 = vrot.slane %v8453_v44, 4 }
 0x409   : > { %19606 = vst [vmem:[#allocation12_spill] sm:$0xff] %v17305_v15  ;;  %v6972_v2 = vrot.slane %v6971_v23, 4  ;;  %v6987_v8 = vsel %vm14300_vm13, %v6982_v19, %v6986_v38  ;;  %v8445_v5 = vrot.slane %v8443_v61, 5  ;;  %v8459_v43 = vshll.u32 %v17305_v15, 16  ;;  %v17315_v14 = vld [vmem:[#allocation2 + $0x98] sm:$0x1] }
 0x40a   : > { %v8428_v24 = vsel %vm14300_vm13, %v8423_v9, %v17248_v29  ;;  %19607 = vst [vmem:[#allocation11_spill] sm:$0xff] %v17315_v14  ;;  %v6991_v22 = vrot.slane %v6989_v35, 4  ;;  %v6992_v16 = vshll.u32 %v17294_v1, 16  ;;  %v8456_v17 = vor.u32 %v8455_v11, %v8451_v30  ;;  %v17322_v29 = vld [vmem:[#allocation2 + $0xa0] sm:$0xf] }
 0x40b   : > { %v12272_v50 = vcombine.low %v8428_v24, %v8438_v46  ;;  %v6977_v12 = vsel %vm14300_vm13, %v6972_v2, %v17260_v51  ;;  %v8446_v39 = vor.u32 %v8445_v5, %v8442_v62  ;;  %v8461_v13 = vrot.slane %v8459_v43, 5  ;;  %v17327_v0 = vld [vmem:[#allocation2 + $0xa0] sm:$0xf]  ;;  %v6492_v3 = vld [vmem:[#allocation2 + $0x9c] sm:$0x1] }
 0x40c   : > { %v12160_v41 = vcombine.low %v6977_v12, %v6987_v8  ;;  %v6994_v19 = vrot.slane %v6992_v16, 5  ;;  %v6998_v7 = vshll.u32 %v17302_v49, 16  ;;  %v7002_v26 = vshrl.u32 %v17302_v49, 16  ;;  %v6636_v61 = vld [vmem:[#allocation2 + $0xa4] sm:$0x1] }
 0x40d   : > { %13325 = vmatprep.mubr.msk.bf16.mxu0 %vm1439_vm12, %v12272_v50  ;;  %v8447_v52 = vrot.slane %v8446_v39, 4  ;;  %v7008_v59 = vshll.u32 %v17315_v14, 16  ;;  %v12126_v31 = vrot.slane %v6376_v20, 9  ;;  %v8457_v51 = vrot.slane %v8456_v17, 4  ;;  %v6377_v9 = vld [vmem:[#allocation2 + $0xa8] sm:$0x2] }
 0x40e   : > { %13224 = vmatmul.mubr.msk.bf16.gmra.mrb[52].mxu1 %vm1439_vm12, %v12160_v41  ;;  %v6995_v48 = vor.u32 %v6994_v19, %v6991_v22  ;;  %v7000_v32 = vrot.slane %v6998_v7, 5  ;;  %v12144_v6 = vrot.slane %v6520_v28, 11  ;;  %v7004_v58 = vrot.slane %v7002_v26, 4  ;;  %v6521_v8 = vld [vmem:[#allocation2 + $0xac] sm:$0x8] }
 0x40f   : > { %v8452_v46 = vsel %vm14300_vm13, %v8447_v52, %v8451_v30  ;;  %v7010_v23 = vrot.slane %v7008_v59, 5  ;;  %v6493_v38 = vsel %vm14211_vm8, %v12126_v31, %v6492_v3  ;;  %v8462_v62 = vsel %vm14300_vm13, %v8457_v51, %v8461_v13  ;;  %v17341_v24 = vld [vmem:[#allocation2 + $0xac] sm:$0xf]  ;;  %v6495_v41 = vld [vmem:[#allocation2 + $0xa8] sm:$0x1] }
 0x410   : > { %v6996_v44 = vrot.slane %v6995_v48, 4  ;;  %6494 = vst [vmem:[#allocation2 + $0x9c] sm:$0x1] %v6493_v38  ;;  %v6637_v35 = vsel %vm14248_vm9, %v12144_v6, %v6636_v61  ;;  %v8473_v2 = vshll.u32 %v17322_v29, 16  ;;  %v12273_v5 = vcombine.low %v8452_v46, %v8462_v62  ;;  %v17348_v12 = vld [vmem:[#allocation2 + $0xac] sm:$0xf] }
 0x411   : > { %v7005_v30 = vor.u32 %v7004_v58, %v7000_v32  ;;  %6638 = vst [vmem:[#allocation2 + $0xa4] sm:$0x1] %v6637_v35  ;;  %v8477_v43 = vshrl.u32 %v17322_v29, 16  ;;  %v7022_v20 = vshll.u32 %v17327_v0, 16  ;;  %v7026_v16 = vshrl.u32 %v17327_v0, 16 }
 0x412   : > { %v7001_v11 = vsel %vm14300_vm13, %v6996_v44, %v7000_v32  ;;  %v17345_v22 = vrot.slane %v8473_v2, 5  ;;  %v12127_v50 = vrot.slane %v6377_v9, 9  ;;  %13326 = vmatmul.mubr.msk.bf16.gmra.mrb[84].mxu0 %vm1439_vm12, %v12273_v5  ;;  %v12145_v17 = vrot.slane %v6521_v8, 11  ;;  %v6639_v52 = vld [vmem:[#allocation2 + $0xb0] sm:$0x1] }
 0x413   : > { %v7006_v39 = vrot.slane %v7005_v30, 4  ;;  %v8479_v13 = vrot.slane %v8477_v43, 4  ;;  %v17351_v28 = vrot.slane %v7022_v20, 5  ;;  %v7028_v19 = vrot.slane %v7026_v16, 4  ;;  %v6378_v43 = vld [vmem:[#allocation2 + $0xb4] sm:$0x2] }
 0x414   : > { %v6496_v7 = vsel %vm14211_vm8, %v12127_v50, %v6495_v41  ;;  %v8497_v26 = vshll.u32 %v17341_v24, 16  ;;  %v8501_v59 = vshrl.u32 %v17341_v24, 16  ;;  %v6640_v48 = vsel %vm14248_vm9, %v12145_v17, %v6639_v52 }
 0x415   : > { %v7011_v31 = vsel %vm14300_vm13, %v7006_v39, %v7010_v23  ;;  %v8480_v51 = vor.u32 %v8479_v13, %v17345_v22  ;;  %6497 = vst [vmem:[#allocation2 + $0xa8] sm:$0x1] %v6496_v7  ;;  %v7046_v32 = vshll.u32 %v17348_v12, 16  ;;  %v7029_v6 = vor.u32 %v7028_v19, %v17351_v28  ;;  %6641 = vst [vmem:[#allocation2 + $0xb0] sm:$0x1] %v6640_v48 }
 0x416   : > { %v12161_v3 = vcombine.low %v7001_v11, %v7011_v31  ;;  %v17364_v46 = vrot.slane %v8497_v26, 5  ;;  %v8503_v23 = vrot.slane %v8501_v59, 4  ;;  %v7050_v17 = vshrl.u32 %v17348_v12, 16 }
 0x417   : > { %v17366_v58 = vld [vmem:[#allocation2 + $0x9c] sm:$0xf]  ;;  %v8481_v38 = vrot.slane %v8480_v51, 4  ;;  %v17380_v30 = vrot.slane %v7046_v32, 5  ;;  %v7030_v16 = vrot.slane %v7029_v6, 4  ;;  %v12128_v31 = vrot.slane %v6378_v43, 9 }
 0x418   : > { %v17368_v61 = vld [vmem:[#allocation2 + $0x9c] sm:$0xf]  ;;  %13227 = vmatprep.mubr.msk.bf16.mxu1 %vm1439_vm12, %v12161_v3  ;;  %v17371_v9 = vld [vmem:[#allocation2 + $0xa4] sm:$0x1]  ;;  %v8464_v62 = vshrl.u32 %v17366_v58, 16  ;;  %v8467_v44 = vshll.u32 %v17366_v58, 16  ;;  %v8504_v26 = vor.u32 %v8503_v23, %v17364_v46 }
 0x419   : > { %19608 = vst [vmem:[#allocation16_spill] sm:$0xff] %v17371_v9  ;;  %v17375_v35 = vld [vmem:[#allocation2 + $0xa4] sm:$0x1]  ;;  %v8483_v2 = vshll.u32 %v17371_v9, 16  ;;  %v7013_v8 = vshrl.u32 %v17368_v61, 16  ;;  %v7016_v5 = vshll.u32 %v17368_v61, 16 }
 0x41a   : > { %19609 = vst [vmem:[#allocation13_spill] sm:$0xff] %v17375_v35  ;;  %v8466_v20 = vrot.slane %v8464_v62, 4  ;;  %v8469_v11 = vrot.slane %v8467_v44, 5  ;;  %v7032_v50 = vshll.u32 %v17375_v35, 16 }
 0x41b   : > { %v8485_v39 = vrot.slane %v8483_v2, 5  ;;  %v7015_v13 = vrot.slane %v7013_v8, 4  ;;  %v7018_v41 = vrot.slane %v7016_v5, 5 }
 0x41c   : > { %v8470_v19 = vor.u32 %v8469_v11, %v8466_v20  ;;  %v7034_v7 = vrot.slane %v7032_v50, 5  ;;  %v17384_v52 = vld [vmem:[#allocation2 + $0xa8] sm:$0xf]  ;;  %v17391_v32 = vld [vmem:[#allocation2 + $0xb0] sm:$0x1] }
 0x41d   : > { %v17387_v59 = vld [vmem:[#allocation2 + $0xa8] sm:$0xf]  ;;  %v8486_v51 = vsel %vm14300_vm13, %v8481_v38, %v8485_v39  ;;  %v7019_v48 = vor.u32 %v7018_v41, %v7015_v13  ;;  %19610 = vst [vmem:[#allocation17_spill] sm:$0xff] %v17391_v32  ;;  %v8488_v3 = vshrl.u32 %v17384_v52, 16  ;;  %v8491_v6 = vshll.u32 %v17384_v52, 16 }
 0x41e   : > { %v8471_v62 = vrot.slane %v8470_v19, 4  ;;  %v7035_v44 = vsel %vm14300_vm13, %v7030_v16, %v7034_v7  ;;  %v8507_v2 = vshll.u32 %v17391_v32, 16  ;;  %v7037_v23 = vshrl.u32 %v17387_v59, 16  ;;  %v17399_v20 = vld [vmem:[#allocation2 + $0xb0] sm:$0x1] }
 0x41f   : > { %v7020_v8 = vrot.slane %v7019_v48, 4  ;;  %v8490_v5 = vrot.slane %v8488_v3, 4  ;;  %v8493_v43 = vrot.slane %v8491_v6, 5  ;;  %19611 = vst [vmem:[#allocation15_spill] sm:$0xff] %v17399_v20  ;;  %v7040_v38 = vshll.u32 %v17387_v59, 16 }
 0x420   : > { %v8476_v11 = vsel %vm14300_vm13, %v8471_v62, %v17345_v22  ;;  %v8509_v50 = vrot.slane %v8507_v2, 5  ;;  %v7039_v39 = vrot.slane %v7037_v23, 4  ;;  %v7052_v13 = vrot.slane %v7050_v17, 4  ;;  %v6522_v41 = vld [vmem:[#allocation2 + $0xb8] sm:$0x8] }
 0x421   : > { %v12274_v16 = vcombine.low %v8476_v11, %v8486_v51  ;;  %v7025_v19 = vsel %vm14300_vm13, %v7020_v8, %v17351_v28  ;;  %v8494_v7 = vor.u32 %v8493_v43, %v8490_v5  ;;  %v7042_v48 = vrot.slane %v7040_v38, 5  ;;  %v17408_v3 = vld [vmem:[#allocation2 + $0xb8] sm:$0xf]  ;;  %v6498_v22 = vld [vmem:[#allocation2 + $0xb4] sm:$0x1] }
 0x422   : > { %v12162_v6 = vcombine.low %v7025_v19, %v7035_v44  ;;  %v8505_v32 = vrot.slane %v8504_v26, 4  ;;  %v7053_v35 = vor.u32 %v7052_v13, %v17380_v30  ;;  %v7056_v9 = vshll.u32 %v17399_v20, 16  ;;  %v6642_v62 = vld [vmem:[#allocation2 + $0xbc] sm:$0x1]  ;;  %v17415_v23 = vld [vmem:[#allocation2 + $0xb8] sm:$0xf] }
 0x423   : > { %13329 = vmatprep.mubr.msk.bf16.mxu0 %vm1439_vm12, %v12274_v16  ;;  %v8495_v17 = vrot.slane %v8494_v7, 4  ;;  %v7043_v51 = vor.u32 %v7042_v48, %v7039_v39  ;;  %v6499_v2 = vsel %vm14211_vm8, %v12128_v31, %v6498_v22  ;;  %v12146_v28 = vrot.slane %v6522_v41, 11  ;;  %v6379_v8 = vld [vmem:[#allocation2 + $0xc0] sm:$0x2]  ;;  %v6523_v38 = vld [vmem:[#allocation2 + $0xc4] sm:$0x8] }
 0x424   : > { %13228 = vmatmul.mubr.msk.bf16.gmra.mrb[56].mxu1 %vm1439_vm12, %v12162_v6  ;;  %v8510_v26 = vsel %vm14300_vm13, %v8505_v32, %v8509_v50  ;;  %v7054_v44 = vrot.slane %v7053_v35, 4  ;;  %v7058_v5 = vrot.slane %v7056_v9, 5  ;;  %6500 = vst [vmem:[#allocation2 + $0xb4] sm:$0x1] %v6499_v2  ;;  %v8521_v43 = vshll.u32 %v17408_v3, 16 }
 0x425   : > { %v8500_v11 = vsel %vm14300_vm13, %v8495_v17, %v17364_v46  ;;  %v7044_v31 = vrot.slane %v7043_v51, 4  ;;  %v6643_v39 = vsel %vm14248_vm9, %v12146_v28, %v6642_v62  ;;  %v8525_v13 = vshrl.u32 %v17408_v3, 16  ;;  %v13941_v32 = vld [vmem:[%s19364_s2 + $0x4] ss:$0 sps:$4 sm:$0xcc]  }
 0x426   : > { %v12275_v35 = vcombine.low %v8500_v11, %v8510_v26  ;;  %6644 = vst [vmem:[#allocation2 + $0xbc] sm:$0x1] %v6643_v39  ;;  %v7070_v9 = vshll.u32 %v17415_v23, 16  ;;  %v17431_v50 = vld [vmem:[#allocation2 + $0xc4] sm:$0xf]  ;;  %v7059_v41 = vsel %vm14300_vm13, %v7054_v44, %v7058_v5  ;;  %v7074_v16 = vshrl.u32 %v17415_v23, 16 }
 0x427   : > { %19612 = vst [vmem:[#allocation20_spill] sm:$0xff] %v17431_v50  ;;  %v7049_v46 = vsel %vm14300_vm13, %v7044_v31, %v17380_v30  ;;  %v12129_v19 = vrot.slane %v6379_v8, 9  ;;  %v8523_v48 = vrot.slane %v8521_v43, 5  ;;  %v6501_v6 = vld [vmem:[#allocation2 + $0xc0] sm:$0x1]  ;;  %v12147_v22 = vrot.slane %v6523_v38, 11 }
 0x428   : > { %13330 = vmatmul.mubr.msk.bf16.gmra.mrb[88].mxu0 %vm1439_vm12, %v12275_v35  ;;  %v12163_v7 = vcombine.low %v7049_v46, %v7059_v41  ;;  %v8527_v62 = vrot.slane %v8525_v13, 4  ;;  %v6645_v51 = vld [vmem:[#allocation2 + $0xc8] sm:$0x1]  ;;  %v8545_v2 = vshll.u32 %v17431_v50, 16  ;;  %v8903_v30 = vrot.slane %v13941_v32, 2 }
 0x429   : > { %v6502_v17 = vsel %vm14211_vm8, %v12129_v19, %v6501_v6  ;;  %v7072_v28 = vrot.slane %v7070_v9, 5  ;;  %v7076_v26 = vrot.slane %v7074_v16, 4  ;;  %v6646_v8 = vsel %vm14248_vm9, %v12147_v22, %v6645_v51 }
 0x42a   : > { %13231 = vmatprep.mubr.msk.bf16.mxu1 %vm1439_vm12, %v12163_v7  ;;  %6503 = vst [vmem:[#allocation2 + $0xc0] sm:$0x1] %v6502_v17  ;;  %6647 = vst [vmem:[#allocation2 + $0xc8] sm:$0x1] %v6646_v8  ;;  %v8549_v43 = vshrl.u32 %v17431_v50, 16  ;;  %13904 = vmatprep.subr.msk.bf16.mxu0 %vm1488_vm0, %v8903_v30  ;;  %v8953_v38 = vsel %vm1488_vm0, %v8903_v30, 0  ;;  %v8528_v35 = vor.u32 %v8527_v62, %v8523_v48 }
 0x42b   : > { %v17446_v44 = vld [vmem:[#allocation2 + $0xb4] sm:$0xf]  ;;  %13338 = vmatpush3.bf16.msra.mxu0 %v8953_v38  ;;  %v8547_v46 = vrot.slane %v8545_v2, 5  ;;  %v7077_v22 = vor.u32 %v7076_v26, %v7072_v28  ;;  %v7644_v50 = vld [vmem:[#allocation2 + $0x24] sm:$0xe] }
 0x42c   : > { %v17448_v5 = vld [vmem:[#allocation2 + $0xb4] sm:$0xf]  ;;  %v8512_v11 = vshrl.u32 %v17446_v44, 16  ;;  %v8515_v31 = vshll.u32 %v17446_v44, 16  ;;  %v8551_v51 = vrot.slane %v8549_v43, 4  ;;  %v8529_v20 = vrot.slane %v8528_v35, 4 }
 0x42d   : > { %v7061_v39 = vshrl.u32 %v17448_v5, 16  ;;  %v7064_v13 = vshll.u32 %v17448_v5, 16  ;;  %v17457_v32 = vld [vmem:[#allocation2 + $0xbc] sm:$0x1] }
 0x42e   : > { %19613 = vst [vmem:[#allocation23_spill] sm:$0xff] %v17457_v32  ;;  %v17459_v9 = vld [vmem:[#allocation2 + $0xbc] sm:$0x1]  ;;  %v8514_v41 = vrot.slane %v8512_v11, 4  ;;  %v8517_v16 = vrot.slane %v8515_v31, 5  ;;  %v8531_v19 = vshll.u32 %v17457_v32, 16  ;;  %v8552_v26 = vor.u32 %v8551_v51, %v8547_v46 }
 0x42f   : > { %19614 = vst [vmem:[#allocation22_spill] sm:$0xff] %v17459_v9  ;;  %v7063_v7 = vrot.slane %v7061_v39, 4  ;;  %v7066_v6 = vrot.slane %v7064_v13, 5  ;;  %v7080_v17 = vshll.u32 %v17459_v9, 16  ;;  %v7078_v39 = vrot.slane %v7077_v22, 4 }
 0x430   : > { %v8518_v30 = vor.u32 %v8517_v16, %v8514_v41  ;;  %v8533_v8 = vrot.slane %v8531_v19, 5  ;;  %v9118_v9 = vld [vmem:[#allocation2 + $0x24] sm:$0xe]  ;;  %v14100_v32 = vld [vmem:[#allocation2 + $0x20] sm:$0x1] }
 0x431   : > { %v7067_v53 = vor.u32 %v7066_v6, %v7063_v7  ;;  %v7082_v38 = vrot.slane %v7080_v17, 5  ;;  %v17463_v40 = vld [vmem:[#allocation2 + $0xc0] sm:$0xf]  ;;  %v17465_v14 = vld [vmem:[#allocation2 + $0xc8] sm:$0x1]  ;;  %v7708_v15 = vrot.slane %v14100_v32, 5 }
 0x432   : > { %v8519_v62 = vrot.slane %v8518_v30, 4  ;;  %19615 = vst [vmem:[#allocation14_spill] sm:$0xff] %v17465_v14  ;;  %v8536_v2 = vshrl.u32 %v17463_v40, 16  ;;  %v8539_v11 = vshll.u32 %v17463_v40, 16  ;;  %v8555_v13 = vshll.u32 %v17465_v14, 16 }
 0x433   : > { %v7068_v31 = vrot.slane %v7067_v53, 4  ;;  %v8534_v41 = vsel %vm14300_vm13, %v8529_v20, %v8533_v8  ;;  %v7083_v6 = vsel %vm14300_vm13, %v7078_v39, %v7082_v38  ;;  %v13972_v53 = vld [vmem:[%s19364_s2 + $0x8] ss:$0 sps:$4 sm:$0xcc]   ;;  %v14066_v20 = vld [vmem:[#allocation2] sm:$0xf] }
 0x434   : > { %v8524_v43 = vsel %vm14300_vm13, %v8519_v62, %v8523_v48  ;;  %v8538_v16 = vrot.slane %v8536_v2, 4  ;;  %v8541_v19 = vrot.slane %v8539_v11, 5  ;;  %v8557_v51 = vrot.slane %v8555_v13, 5  ;;  %v17482_v48 = vld [vmem:[#allocation2 + $0x4] sm:$0xf] }
 0x435   : > { %v12276_v35 = vcombine.low %v8524_v43, %v8534_v41  ;;  %v7073_v7 = vsel %vm14300_vm13, %v7068_v31, %v7072_v28  ;;  %v12182_v30 = vcombine.low %v14066_v20, %v17482_v48  ;;  %v8553_v8 = vrot.slane %v8552_v26, 4  ;;  %v17494_v11 = vld [vmem:[%s19364_s2 + $0xc] ss:$0 sps:$4 sm:$0xcc]   ;;  %v17497_v39 = vld [vmem:[#allocation2 + $0x10] sm:$0xf] }
 0x436   : > { %v12164_v22 = vcombine.low %v7073_v7, %v7083_v6  ;;  %v8542_v17 = vor.u32 %v8541_v19, %v8538_v16  ;;  %v9328_v38 = vrot.slane %v13972_v53, 2  ;;  %v14068_v26 = vld [vmem:[#allocation2 + $0xc] sm:$0xf]  ;;  %v14071_v16 = vld [vmem:[%s19364_s2 + $0x4] sm:$0x3] }
 0x437   : > { %13333 = vmatprep.mubr.msk.bf16.mxu0 %vm1439_vm12, %v12276_v35  ;;  %v8558_v2 = vsel %vm14300_vm13, %v8553_v8, %v8557_v51  ;;  %v12294_v13 = vcombine.low %v14068_v26, %v17497_v39  ;;  %v14070_v43 = vld [vmem:[#allocation2 + $0xc] sm:$0xf]  ;;  %v7899_v19 = vsel %vm1488_vm0, %v14071_v16, 0  ;;  %v19421_v35 = vrot.slane %v17494_v11, 2  ;;  %v17510_v7 = vld [vmem:[#allocation2 + $0x1c] sm:$0xf] }
 0x438   : > { %13232 = vmatmul.mubr.msk.bf16.gmra.mrb[60].mxu1 %vm1439_vm12, %v12164_v22  ;;  %v8543_v28 = vrot.slane %v8542_v17, 4  ;;  %13905 = vmatprep.subr.msk.bf16.mxu0 %vm1488_vm0, %v9328_v38  ;;  %v14073_v6 = vld [vmem:[#allocation2 + $0x18] sm:$0xf]  ;;  %v17518_v22 = vld [vmem:[#allocation2 + $0x1c] sm:$0xf]  ;;  %v9378_v20 = vsel %vm1488_vm0, %v9328_v38, 0 }
 0x439   : > { %13237 = vmatprep.mubr.msk.bf16.mxu1 %vm1439_vm12, %v12182_v30  ;;  %v12184_v53 = vcombine.low %v14073_v6, %v17510_v7  ;;  %v14075_v17 = vld [vmem:[#allocation2 + $0x18] sm:$0xf]  ;;  %v17522_v30 = vld [vmem:[#allocation2 + $0x28] sm:$0xf]  ;;  %v17530_v26 = vld [vmem:[#allocation2 + $0x34] sm:$0xf] }
 0x43a   : > { %v8548_v62 = vsel %vm14300_vm13, %v8543_v28, %v8547_v46  ;;  %v17502_v46 = vld [vmem:[#allocation2 + $0x10] sm:$0xf]  ;;  %v12295_v51 = vcombine.low %v14075_v17, %v17518_v22  ;;  %v14077_v28 = vld [vmem:[#allocation2 + $0x24] sm:$0xf]  ;;  %v14085_v6 = vld [vmem:[#allocation2 + $0x3c] sm:$0xf] }
 0x43b   : > { %v12277_v31 = vcombine.low %v8548_v62, %v8558_v2  ;;  %v12183_v41 = vcombine.low %v14070_v43, %v17502_v46  ;;  %v12296_v8 = vcombine.low %v14077_v28, %v17522_v30  ;;  %v17527_v62 = vld [vmem:[#allocation2 + $0x28] sm:$0xf]  ;;  %v14079_v2 = vld [vmem:[#allocation2 + $0x24] sm:$0xf]  ;;  %v17535_v43 = vld [vmem:[#allocation2 + $0x34] sm:$0xf] }
 0x43c   : > { %v17543_v17 = vld [vmem:[#allocation2 + $0x40] sm:$0xf]  ;;  %v17546_v28 = vld [vmem:[#allocation2 + $0x4c] sm:$0xf] }
 0x43d   : > { %13334 = vmatmul.mubr.msk.bf16.gmra.mrb[92].mxu0 %vm1439_vm12, %v12277_v31  ;;  %v12185_v31 = vcombine.low %v14079_v2, %v17527_v62 }
 0x43e   : > { %13339 = vmatprep.mubr.msk.bf16.mxu0 %vm1439_vm12, %v12294_v13  ;;  %v14081_v13 = vld [vmem:[#allocation2 + $0x30] sm:$0xf] }
 0x43f   : > { %v12186_v38 = vcombine.low %v14081_v13, %v17530_v26  ;;  %v14091_v13 = vld [vmem:[#allocation2 + $0x48] sm:$0xf] }
 0x440   : > { %13238 = vmatmul.mubr.msk.bf16.vlgmr.msra.gmra.mrb[32].mxu1 %vm1439_vm12, %v12183_v41  ;;  %v14083_v41 = vld [vmem:[#allocation2 + $0x30] sm:$0xf] }
 0x441   : > { %13270 = vmatpush3.bf16.msra.mxu1 %v7899_v19  ;;  %13241 = vmatprep.mubr.msk.bf16.mxu1 %vm1439_vm12, %v12184_v53  ;;  %v12297_v16 = vcombine.low %v14083_v41, %v17535_v43  ;;  %v17538_v19 = vld [vmem:[#allocation2 + $0x40] sm:$0xf]  ;;  %v17554_v41 = vld [vmem:[#allocation2 + $0x58] sm:$0xf] }
 0x442   : > { %13906 = vmatprep.subr.msk.bf16.mxu1 %vm1488_vm0, %v19421_v35  ;;  %v12298_v53 = vcombine.low %v14085_v6, %v17538_v19  ;;  %v7641_v35 = vld [vmem:[#allocation2] sm:$0xe] }
 0x445   : > { %13340 = vmatmul.mubr.msk.bf16.vlgmr.msra.gmra.mrb[64].mxu0 %vm1439_vm12, %v12295_v51  ;;  %v14087_v51 = vld [vmem:[#allocation2 + $0x3c] sm:$0xf] }
 0x446   : > { %13343 = vmatprep.mubr.msk.bf16.mxu0 %vm1439_vm12, %v12296_v8  ;;  %13372 = vmatpush3.bf16.msra.mxu0 %v9378_v20  ;;  %v12187_v20 = vcombine.low %v14087_v51, %v17543_v17  ;;  %v14089_v8 = vld [vmem:[#allocation2 + $0x48] sm:$0xf]  ;;  %v14095_v51 = vld [vmem:[#allocation2 + $0x54] sm:$0xf] }
 0x447   : > { %v12188_v2 = vcombine.low %v14089_v8, %v17546_v28 }
 0x448   : > { %13242 = vmatmul.mubr.msk.bf16.gmra.mrb[36].mxu1 %vm1439_vm12, %v12185_v31  ;;  %v17551_v31 = vld [vmem:[#allocation2 + $0x4c] sm:$0xf] }
 0x449   : > { %13245 = vmatprep.mubr.msk.bf16.mxu1 %vm1439_vm12, %v12186_v38  ;;  %v12299_v38 = vcombine.low %v14091_v13, %v17551_v31  ;;  %v7691_v13 = vrot.slane %v17482_v48, 5 }
 0x44d   : > { %13344 = vmatmul.mubr.msk.bf16.gmra.mrb[68].mxu0 %vm1439_vm12, %v12297_v16  ;;  %v14093_v16 = vld [vmem:[#allocation2 + $0x54] sm:$0xf] }
 0x44e   : > { %13347 = vmatprep.mubr.msk.bf16.mxu0 %vm1439_vm12, %v12298_v53  ;;  %v12300_v6 = vcombine.low %v14093_v16, %v17554_v41  ;;  %v17558_v53 = vld [vmem:[#allocation2 + $0x58] sm:$0xf]  ;;  %v12191_v16 = vcombine.low %v17190_v4, %v17158_v42  ;;  %v12327_v4 = vrot.slane %v9116_v33, 9 }
 0x44f   : > { %v12189_v8 = vcombine.low %v14095_v51, %v17558_v53 }
 0x450   : > { %13246 = vmatmul.mubr.msk.bf16.gmra.mrb[40].mxu1 %vm1439_vm12, %v12187_v20  ;;  %v12301_v20 = vcombine.low %v17171_v63, %v17130_v10  ;;  %v12192_v10 = vcombine.low %v17258_v54, %v17209_v37 }
 0x451   : > { %13249 = vmatprep.mubr.msk.bf16.mxu1 %vm1439_vm12, %v12188_v2  ;;  %v12190_v2 = vcombine.low %v17173_v36, %v17132_v60  ;;  %v14096_v36 = vld [vmem:[#allocation2 + $0x8] sm:$0x1]  ;;  %v9117_v60 = vld [vmem:[#allocation2 + $0x18] sm:$0xe] }
 0x452   : > { %v7694_v48 = vrot.slane %v14096_v36, 5  ;;  %v7693_v36 = vrot.slane %v7691_v13, 4 }
 0x454   : > { %v17601_v54 = vsel %vm14997_vm1, %v7693_v36, %v7694_v48  ;;  %v7643_v48 = vld [vmem:[#allocation2 + $0x18] sm:$0xe] }
 0x455   : > { %13348 = vmatmul.mubr.msk.bf16.gmra.mrb[72].mxu0 %vm1439_vm12, %v12299_v38  ;;  %v12302_v38 = vcombine.low %v17184_v55, %v17152_v47  ;;  %v12214_v55 = vrot.slane %v7641_v35, 9  ;;  %v7698_v35 = vrot.slane %v17502_v46, 5  ;;  %v7705_v47 = vrot.slane %v17510_v7, 5 }
 0x456   : > { %13351 = vmatprep.mubr.msk.bf16.mxu0 %vm1439_vm12, %v12300_v6  ;;  %v9166_v6 = vrot.slane %v17497_v39, 5  ;;  %v14097_v39 = vld [vmem:[#allocation2 + $0x14] sm:$0x1] }
 0x457   : > { %v9169_v63 = vrot.slane %v14097_v39, 5  ;;  %v7642_v39 = vld [vmem:[#allocation2 + $0xc] sm:$0xe]  ;;  %v17608_v33 = vsel %vm14997_vm1, %v12214_v55, %v7691_v13  ;;  %v9180_v13 = vrot.slane %v17522_v30, 5 }
 0x458   : > { %13250 = vmatmul.mubr.msk.bf16.gmra.mrb[44].mxu1 %vm1439_vm12, %v12189_v8  ;;  %v9168_v42 = vrot.slane %v9166_v6, 4  ;;  %v9173_v8 = vrot.slane %v17518_v22, 5  ;;  %v17612_v46 = vsel %vm14997_vm1, %v12327_v4, %v9166_v6  ;;  %v14099_v22 = vld [vmem:[#allocation2 + $0x20] sm:$0x1]  ;;  %v12215_v55 = vrot.slane %v7642_v39, 9 }
 0x459   : > { %13253 = vmatprep.mubr.msk.bf16.mxu1 %vm1439_vm12, %v12190_v2  ;;  %v14098_v2 = vld [vmem:[#allocation2 + $0x14] sm:$0x1]  ;;  %v9176_v14 = vrot.slane %v14099_v22, 5  ;;  %v7700_v4 = vrot.slane %v7698_v35, 4  ;;  %v7712_v22 = vrot.slane %v17527_v62, 5  ;;  %v12329_v39 = vrot.slane %v9118_v9, 9 }
 0x45a   : > { %v7701_v51 = vrot.slane %v14098_v2, 5  ;;  %v17617_v36 = vsel %vm14997_vm1, %v9168_v42, %v9169_v63  ;;  %v12328_v2 = vrot.slane %v9117_v60, 9  ;;  %v14101_v63 = vld [vmem:[#allocation2 + $0x2c] sm:$0x1]  ;;  %v7707_v60 = vrot.slane %v7705_v47, 4 }
 0x45b   : > { %v9183_v42 = vrot.slane %v14101_v63, 5  ;;  %v9182_v63 = vrot.slane %v9180_v13, 4  ;;  %v14102_v62 = vld [vmem:[#allocation2 + $0x2c] sm:$0x1]  ;;  %v17639_v7 = vsel %vm14997_vm1, %v12215_v55, %v7698_v35  ;;  %v19617_v9 = vrot.slane %v17494_v11, 2 }
 0x45c   : > { %v17630_v30 = vsel %vm14997_vm1, %v7700_v4, %v7701_v51  ;;  %v7715_v6 = vrot.slane %v14102_v62, 5  ;;  %v17643_v51 = vsel %vm14997_vm1, %v12328_v2, %v9173_v8  ;;  %v7714_v35 = vrot.slane %v7712_v22, 4  ;;  %v14109_v11 = vld [vmem:[#allocation2 + $0x5c] sm:$0x1] }
 0x45d   : > { %13352 = vmatmul.mubr.msk.bf16.gmra.mrb[76].mxu0 %vm1439_vm12, %v12301_v20  ;;  %v9175_v20 = vrot.slane %v9173_v8, 4  ;;  %v17656_v4 = vsel %vm14997_vm1, %v9182_v63, %v9183_v42  ;;  %v9187_v55 = vrot.slane %v17535_v43, 5  ;;  %v19618_v2 = vcombine.low %v17256_v27, %v17206_v18 }
 0x45e   : > { %13355 = vmatprep.mubr.msk.bf16.mxu0 %vm1439_vm12, %v12302_v38  ;;  %v12216_v38 = vrot.slane %v7643_v48, 9  ;;  %v17652_v48 = vsel %vm14997_vm1, %v7707_v60, %v7708_v15  ;;  %v17673_v43 = vsel %vm14997_vm1, %v12329_v39, %v9180_v13  ;;  %v17677_v42 = vsel %vm14997_vm1, %v7714_v35, %v7715_v6  ;;  %v14103_v60 = vld [vmem:[#allocation2 + $0x38] sm:$0x1]  ;;  %v7646_v35 = vld [vmem:[#allocation2 + $0x3c] sm:$0xe] }
 0x45f   : > { %v17635_v32 = vsel %vm14997_vm1, %v9175_v20, %v9176_v14  ;;  %v12217_v14 = vrot.slane %v7644_v50, 9  ;;  %v7645_v20 = vld [vmem:[#allocation2 + $0x30] sm:$0xe]  ;;  %v9190_v63 = vrot.slane %v14103_v60, 5  ;;  %v7719_v62 = vrot.slane %v17530_v26, 5 }
 0x460   : > { %13254 = vmatmul.mubr.msk.bf16.gmra.mrb[48].mxu1 %vm1439_vm12, %v12191_v16  ;;  %v9119_v16 = vld [vmem:[#allocation2 + $0x30] sm:$0xe]  ;;  %v17665_v50 = vsel %vm14997_vm1, %v12216_v38, %v7705_v47  ;;  %v9120_v47 = vld [vmem:[#allocation2 + $0x3c] sm:$0xe]  ;;  %v19619_v38 = vcombine.low %v17271_v57, %v17214_v56  ;;  %v12218_v13 = vrot.slane %v7645_v20, 9  ;;  %v9194_v6 = vrot.slane %v17538_v19, 5 }
 0x461   : > { %13257 = vmatprep.mubr.msk.bf16.mxu1 %vm1439_vm12, %v12192_v10  ;;  %v17648_v10 = vsel %vm1488_vm0, %v19617_v9, 0  ;;  %v12330_v15 = vrot.slane %v9119_v16, 9  ;;  %v17691_v39 = vsel %vm14997_vm1, %v12217_v14, %v7712_v22  ;;  %v9189_v26 = vrot.slane %v9187_v55, 4  ;;  %v14104_v16 = vld [vmem:[#allocation2 + $0x38] sm:$0x1] }
 0x462   : > { %v7722_v9 = vrot.slane %v14104_v16, 5  ;;  %v7726_v56 = vrot.slane %v17543_v17, 5  ;;  %v19620_v57 = vcombine.low %v17273_v34, %v17228_v45  ;;  %v12331_v22 = vrot.slane %v9120_v47, 9  ;;  %v14105_v14 = vld [vmem:[#allocation2 + $0x44] sm:$0x1] }
 0x463   : > { %v17702_v19 = vsel %vm14997_vm1, %v12330_v15, %v9187_v55  ;;  %v19621_v60 = vcombine.low %v17294_v1, %v17302_v49  ;;  %v17710_v45 = vsel %vm14997_vm1, %v9189_v26, %v9190_v63  ;;  %v7721_v34 = vrot.slane %v7719_v62, 4  ;;  %v14106_v17 = vld [vmem:[#allocation2 + $0x44] sm:$0x1]  ;;  %v9121_v16 = vld [vmem:[#allocation2 + $0x48] sm:$0xe] }
 0x464   : > { %v17715_v55 = vsel %vm14997_vm1, %v12218_v13, %v7719_v62  ;;  %v9196_v15 = vrot.slane %v9194_v6, 4  ;;  %v12219_v47 = vrot.slane %v7646_v35, 9  ;;  %v7733_v1 = vrot.slane %v17546_v28, 5  ;;  %v14107_v26 = vld [vmem:[#allocation2 + $0x50] sm:$0x1] }
 0x465   : > { %13356 = vmatmul.mubr.msk.bf16.gmra.mrb[80].mxu0 %vm1439_vm12, %v19618_v2  ;;  %v9197_v2 = vrot.slane %v14105_v14, 5  ;;  %v7647_v14 = vld [vmem:[#allocation2 + $0x48] sm:$0xe]  ;;  %v7728_v63 = vrot.slane %v7726_v56, 4  ;;  %v9204_v20 = vrot.slane %v14107_v26, 5  ;;  %v9208_v27 = vrot.slane %v17554_v41, 5 }
 0x466   : > { %13359 = vmatprep.mubr.msk.bf16.mxu0 %vm1439_vm12, %v19619_v38  ;;  %v7729_v38 = vrot.slane %v14106_v17, 5  ;;  %v9122_v17 = vld [vmem:[#allocation2 + $0x54] sm:$0xe]  ;;  %v12332_v13 = vrot.slane %v9121_v16, 9  ;;  %v14108_v35 = vld [vmem:[#allocation2 + $0x50] sm:$0x1] }
 0x467   : > { %v17727_v62 = vsel %vm14997_vm1, %v9196_v15, %v9197_v2  ;;  %v7736_v28 = vrot.slane %v14108_v35, 5  ;;  %v12220_v26 = vrot.slane %v7647_v14, 9  ;;  %v19623_v2 = vcombine.low %v17366_v58, %v17322_v29  ;;  %v14115_v14 = vld [vmem:[#allocation2 + $0x68] sm:$0x1]  ;;  %v14116_v16 = vld [vmem:[#allocation2 + $0x70] sm:$0xf] }
 0x468   : > { %13258 = vmatmul.mubr.msk.bf16.gmra.mrb[52].mxu1 %vm1439_vm12, %v19620_v57  ;;  %v9201_v57 = vrot.slane %v17551_v31, 5  ;;  %v9211_v31 = vrot.slane %v14109_v11, 5  ;;  %v12333_v15 = vrot.slane %v9122_v17, 9  ;;  %v17751_v11 = vsel %vm14997_vm1, %v12219_v47, %v7726_v56  ;;  %v9123_v47 = vld [vmem:[#allocation2 + $0x60] sm:$0xe] }
 0x469   : > { %13261 = vmatprep.mubr.msk.bf16.mxu1 %vm1439_vm12, %v19621_v60  ;;  %v17720_v60 = vsel %vm14997_vm1, %v7721_v34, %v7722_v9  ;;  %v19622_v9 = vcombine.low %v17289_v21, %v17234_v25  ;;  %v17735_v34 = vsel %vm14997_vm1, %v7728_v63, %v7729_v38  ;;  %v17745_v25 = vsel %vm14997_vm1, %v12331_v22, %v9194_v6  ;;  %v7648_v38 = vld [vmem:[#allocation2 + $0x54] sm:$0xe] }
 0x46a   : > { %v9203_v41 = vrot.slane %v9201_v57, 4  ;;  %v7735_v21 = vrot.slane %v7733_v1, 4  ;;  %v9210_v63 = vrot.slane %v9208_v27, 4  ;;  %v19624_v35 = vcombine.low %v17368_v61, %v17327_v0 }
 0x46b   : > { %v17765_v22 = vsel %vm14997_vm1, %v12332_v13, %v9201_v57  ;;  %v19625_v17 = vcombine.low %v17387_v59, %v17348_v12  ;;  %v17778_v61 = vsel %vm14997_vm1, %v12220_v26, %v7733_v1  ;;  %v12221_v13 = vrot.slane %v7648_v38, 9  ;;  %v14111_v59 = vld [vmem:[#allocation2 + $0x5c] sm:$0x1]  ;;  %v14117_v26 = vld [vmem:[#allocation2 + $0x74] sm:$0x1] }
 0x46c   : > { %v17755_v58 = vsel %vm14997_vm1, %v9203_v41, %v9204_v20  ;;  %v17769_v56 = vsel %vm14997_vm1, %v7735_v21, %v7736_v28  ;;  %v7740_v20 = vrot.slane %v17558_v53, 5  ;;  %v17782_v57 = vsel %vm14997_vm1, %v9210_v63, %v9211_v31  ;;  %v7649_v21 = vld [vmem:[#allocation2 + $0x60] sm:$0xe]  ;;  %v14113_v63 = vld [vmem:[#allocation2 + $0x68] sm:$0x1] }
 0x46d   : > { %13360 = vmatmul.mubr.msk.bf16.gmra.mrb[84].mxu0 %vm1439_vm12, %v19622_v9  ;;  %19626 = vst [vmem:[#allocation21_spill] sm:$0xff] %v17782_v57  ;;  %v14110_v9 = vld [vmem:[#allocation2 + $0x64] sm:$0xf]  ;;  %v17788_v41 = vsel %vm14997_vm1, %v12333_v15, %v9208_v27  ;;  %v12334_v31 = vrot.slane %v9123_v47, 9  ;;  %v9218_v38 = vrot.slane %v14113_v63, 5  ;;  %v7750_v27 = vrot.slane %v14115_v14, 5 }
 0x46e   : > { %13363 = vmatprep.mubr.msk.bf16.mxu0 %vm1439_vm12, %v19623_v2  ;;  %v9215_v28 = vrot.slane %v14110_v9, 5  ;;  %19627 = vst [vmem:[#allocation18_spill] sm:$0xff] %v17788_v41  ;;  %v7743_v2 = vrot.slane %v14111_v59, 5  ;;  %v7742_v6 = vrot.slane %v7740_v20, 4  ;;  %v9124_v15 = vld [vmem:[#allocation2 + $0x6c] sm:$0xe]  ;;  %v17800_v47 = vsel %vm14997_vm1, %v12221_v13, %v7740_v20 }
 0x46f   : > { %v7754_v59 = vrot.slane %v14116_v16, 5  ;;  %v9225_v18 = vrot.slane %v14117_v26, 5  ;;  %v7650_v53 = vld [vmem:[#allocation2 + $0x6c] sm:$0xe]  ;;  %v19629_v14 = vcombine.low %v17446_v44, %v17408_v3  ;;  %v9125_v57 = vld [vmem:[#allocation2 + $0x78] sm:$0xe] }
 0x470   : > { %13262 = vmatmul.mubr.msk.bf16.gmra.mrb[56].mxu1 %vm1439_vm12, %v19624_v35  ;;  %v14112_v35 = vld [vmem:[#allocation2 + $0x64] sm:$0xf]  ;;  %v9217_v63 = vrot.slane %v9215_v28, 4  ;;  %v17808_v16 = vsel %vm14997_vm1, %v7742_v6, %v7743_v2  ;;  %v14119_v20 = vld [vmem:[#allocation2 + $0x7c] sm:$0xf]  ;;  %v12335_v44 = vrot.slane %v9124_v15, 9  ;;  %v19630_v6 = vcombine.low %v17448_v5, %v17415_v23 }
 0x471   : > { %13265 = vmatprep.mubr.msk.bf16.mxu1 %vm1439_vm12, %v19625_v17  ;;  %v7747_v1 = vrot.slane %v14112_v35, 5  ;;  %v14114_v17 = vld [vmem:[#allocation2 + $0x70] sm:$0xf]  ;;  %v19628_v35 = vcombine.low %v17384_v52, %v17341_v24  ;;  %v9229_v13 = vrot.slane %v14119_v20, 5  ;;  %v7651_v41 = vld [vmem:[#allocation2 + $0x78] sm:$0xe] }
 0x472   : > { %v9222_v9 = vrot.slane %v14114_v17, 5  ;;  %v12222_v17 = vrot.slane %v7649_v21, 9  ;;  %v17812_v21 = vsel %vm14997_vm1, %v12334_v31, %v9215_v28  ;;  %v17816_v26 = vsel %vm14997_vm1, %v9217_v63, %v9218_v38  ;;  %v14120_v28 = vld [vmem:[#allocation2 + $0x80] sm:$0x1]  ;;  %v9126_v63 = vld [vmem:[#allocation2 + $0x84] sm:$0xe] }
 0x473   : > { %v7749_v52 = vrot.slane %v7747_v1, 4  ;;  %v7756_v20 = vrot.slane %v7754_v59, 4  ;;  %v9232_v31 = vrot.slane %v14120_v28, 5  ;;  %v19631_v38 = vcombine.low %v17608_v33, %v17601_v54  ;;  %v7653_v15 = vld [vmem:[#allocation2 + $0x90] sm:$0xe] }
 0x474   : > { %v17834_v5 = vsel %vm14997_vm1, %v12222_v17, %v7747_v1  ;;  %v9231_v54 = vrot.slane %v9229_v13, 4  ;;  %v12224_v33 = vrot.slane %v7651_v41, 9  ;;  %v7652_v1 = vld [vmem:[#allocation2 + $0x84] sm:$0xe] }
 0x475   : > { %13364 = vmatmul.mubr.msk.bf16.gmra.mrb[88].mxu0 %vm1439_vm12, %v19628_v35  ;;  %v14118_v35 = vld [vmem:[#allocation2 + $0x74] sm:$0x1]  ;;  %v17824_v2 = vsel %vm14997_vm1, %v7749_v52, %v7750_v27 }
 0x476   : > { %13367 = vmatprep.mubr.msk.bf16.mxu0 %vm1439_vm12, %v19629_v14  ;;  %v7757_v8 = vrot.slane %v14118_v35, 5  ;;  %v9224_v14 = vrot.slane %v9222_v9, 4  ;;  %v12223_v35 = vrot.slane %v7650_v53, 9  ;;  %v12336_v53 = vrot.slane %v9125_v57, 9  ;;  %v14122_v57 = vld [vmem:[#allocation2 + $0x88] sm:$0xf] }
 0x477   : > { %v9236_v17 = vrot.slane %v14122_v57, 5  ;;  %v14123_v57 = vld [vmem:[#allocation2 + $0x80] sm:$0x1] }
 0x478   : > { %13266 = vmatmul.mubr.msk.bf16.gmra.mrb[60].mxu1 %vm1439_vm12, %v19630_v6  ;;  %v17838_v27 = vsel %vm14997_vm1, %v9224_v14, %v9225_v18  ;;  %v17842_v52 = vsel %vm14997_vm1, %v7756_v20, %v7757_v8  ;;  %v14121_v6 = vld [vmem:[#allocation2 + $0x7c] sm:$0xf]  ;;  %v17850_v18 = vsel %vm14997_vm1, %v12335_v44, %v9222_v9  ;;  %v17856_v41 = vsel %vm14997_vm1, %v12223_v35, %v7754_v59  ;;  %v14124_v35 = vld [vmem:[#allocation2 + $0x8c] sm:$0x1] }
 0x479   : > { %13271 = vmatprep.mubr.msk.bf16.mxu1 %vm1439_vm12, %v19631_v38  ;;  %19632 = vst [vmem:[#allocation10_spill] sm:$0xff] %v17842_v52  ;;  %v7761_v28 = vrot.slane %v14121_v6, 5  ;;  %19633 = vst [vmem:[#allocation9_spill] sm:$0xff] %v17856_v41  ;;  %v17860_v14 = vsel %vm14997_vm1, %v9231_v54, %v9232_v31  ;;  %v12337_v20 = vrot.slane %v9126_v63, 9  ;;  %v19635_v6 = vld [vmem:[#allocation20_spill] sm:$0xff]  ;;  %v17870_v44 = vsel %vm14997_vm1, %v12336_v53, %v9229_v13 }
 0x47a   : > { %19634 = vst [vmem:[#allocation24_spill] sm:$0xff] %v17860_v14  ;;  %v19636_v38 = vcombine.low %v17463_v40, %v19635_v6  ;;  %19637 = vst [vmem:[#allocation25_spill] sm:$0xff] %v17870_v44  ;;  %v7764_v59 = vrot.slane %v14123_v57, 5  ;;  %v9239_v8 = vrot.slane %v14124_v35, 5  ;;  %v9127_v31 = vld [vmem:[#allocation2 + $0x90] sm:$0xe]  ;;  %v19638_v63 = vcombine.low %v17612_v46, %v17617_v36 }
 0x47b   : > { %v17878_v40 = vsel %vm14997_vm1, %v12224_v33, %v7761_v28  ;;  %v7763_v54 = vrot.slane %v7761_v28, 4  ;;  %v14126_v13 = vld [vmem:[#allocation2 + $0x94] sm:$0xf]  ;;  %v9238_v35 = vrot.slane %v9236_v17, 4  ;;  %v7775_v52 = vrot.slane %v17302_v49, 5  ;;  %v19640_v49 = vld [vmem:[#allocation12_spill] sm:$0xff] }
 0x47c   : > { %v9243_v53 = vrot.slane %v14126_v13, 5  ;;  %v9250_v46 = vrot.slane %v17322_v29, 5  ;;  %v17887_v36 = vld [vmem:[%s19364_s2 + $0xc] sm:$0x3]  ;;  %v19639_v33 = vcombine.low %v17639_v7, %v17630_v30  ;;  %v17895_v28 = vsel %vm14997_vm1, %v12337_v20, %v9236_v17  ;;  %v9128_v29 = vld [vmem:[#allocation2 + $0x9c] sm:$0xe] }
 0x47d   : > { %13368 = vmatmul.mubr.msk.bf16.gmra.mrb[92].mxu0 %vm1439_vm12, %v19636_v38  ;;  %v14125_v38 = vld [vmem:[#allocation2 + $0x88] sm:$0xf]  ;;  %v9246_v57 = vrot.slane %v19640_v49, 5  ;;  %v19641_v14 = vcombine.low %v17665_v50, %v17652_v48  ;;  %v17905_v7 = vsel %vm14997_vm1, %v7763_v54, %v7764_v59  ;;  %v17909_v30 = vsel %vm14997_vm1, %v9238_v35, %v9239_v8  ;;  %v19643_v20 = vld [vmem:[#allocation16_spill] sm:$0xff] }
 0x47e   : > { %13373 = vmatprep.mubr.msk.bf16.mxu0 %vm1439_vm12, %v19638_v63  ;;  %v7768_v9 = vrot.slane %v14125_v38, 5  ;;  %v12225_v63 = vrot.slane %v7652_v1, 9  ;;  %v14127_v38 = vld [vmem:[#allocation2 + $0x8c] sm:$0x1]  ;;  %v19642_v1 = vld [vmem:[#allocation11_spill] sm:$0xff]  ;;  %v12338_v49 = vrot.slane %v9127_v31, 9 }
 0x47f   : > { %v7771_v13 = vrot.slane %v14127_v38, 5  ;;  %v7778_v17 = vrot.slane %v19642_v1, 5  ;;  %v12226_v44 = vrot.slane %v7653_v15, 9  ;;  %v7654_v41 = vld [vmem:[#allocation2 + $0x9c] sm:$0xe]  ;;  %v7777_v48 = vrot.slane %v7775_v52, 4 }
 0x480   : > { %13272 = vmatmul.mubr.msk.bf16.vlgmr.msra.gmra.mrb[32].mxu1 %vm1439_vm12, %v19639_v33  ;;  %v9253_v33 = vrot.slane %v19643_v20, 5  ;;  %v7770_v38 = vrot.slane %v7768_v9, 4  ;;  %v12339_v50 = vrot.slane %v9128_v29, 9  ;;  %v7782_v59 = vrot.slane %v17327_v0, 5  ;;  %v9129_v54 = vld [vmem:[#allocation2 + $0xa8] sm:$0xe] }
 0x481   : > { %13406 = vmatpush3.bf16.msra.mxu1 %v17648_v10  ;;  %13275 = vmatprep.mubr.msk.bf16.mxu1 %vm1439_vm12, %v19641_v14  ;;  %v9245_v10 = vrot.slane %v9243_v53, 4  ;;  %v9252_v14 = vrot.slane %v9250_v46, 4  ;;  %v19644_v29 = vcombine.low %v17643_v51, %v17635_v32  ;;  %v17934_v0 = vsel %vm14997_vm1, %v7777_v48, %v7778_v17  ;;  %v9130_v48 = vld [vmem:[#allocation2 + $0xb4] sm:$0xe]  ;;  %v18031_v35 = vld [vmem:[#allocation2 + $0x28] sm:$0xf] }
 0x482   : > { %13907 = vmatprep.subr.msk.bf16.mxu1 %vm1488_vm0, %v17887_v36  ;;  %v17922_v31 = vsel %vm14997_vm1, %v7770_v38, %v7771_v13  ;;  %v12227_v20 = vrot.slane %v7654_v41, 9  ;;  %v19645_v13 = vld [vmem:[#allocation13_spill] sm:$0xff]  ;;  %v17947_v32 = vsel %vm14997_vm1, %v12225_v63, %v7768_v9  ;;  %v17951_v51 = vsel %vm14997_vm1, %v12338_v49, %v9243_v53  ;;  %19658 = vst [vmem:[#allocation4_spill] sm:$0xff] %v18031_v35 }
 0x483   : > { %v17926_v15 = vsel %vm14997_vm1, %v9245_v10, %v9246_v57  ;;  %v17938_v1 = vsel %vm14997_vm1, %v9252_v14, %v9253_v33  ;;  %v7785_v38 = vrot.slane %v19645_v13, 5  ;;  %v19646_v57 = vcombine.low %v17673_v43, %v17656_v4  ;;  %v7655_v10 = vld [vmem:[#allocation2 + $0xa8] sm:$0xe] }
 0x484   : > { %v12340_v17 = vrot.slane %v9129_v54, 9  ;;  %v9257_v33 = vrot.slane %v17341_v24, 5  ;;  %v17958_v4 = vsel %vm14997_vm1, %v12226_v44, %v7775_v52  ;;  %v17962_v43 = vsel %vm14997_vm1, %v12339_v50, %v9250_v46  ;;  %v19648_v44 = vld [vmem:[#allocation17_spill] sm:$0xff]  ;;  %v17975_v46 = vld [vmem:[#allocation2 + $0x18] sm:$0xf]  ;;  %v19657_v52 = vld [vmem:[#allocation14_spill] sm:$0xff] }
 0x485   : > { %13374 = vmatmul.mubr.msk.bf16.vlgmr.msra.gmra.mrb[64].mxu0 %vm1439_vm12, %v19644_v29  ;;  %v7784_v9 = vrot.slane %v7782_v59, 4  ;;  %v19647_v53 = vcombine.low %v17691_v39, %v17677_v42  ;;  %v9260_v49 = vrot.slane %v19648_v44, 5  ;;  %19649 = vst [vmem:[#allocation26_spill] sm:$0xff] %v17975_v46  ;;  %v19650_v50 = vcombine.low %v17715_v55, %v17720_v60 }
 0x486   : > { %13377 = vmatprep.mubr.msk.bf16.mxu0 %vm1439_vm12, %v19646_v57  ;;  %v17983_v42 = vsel %vm14997_vm1, %v12227_v20, %v7782_v59  ;;  %v12228_v14 = vrot.slane %v7655_v10, 9  ;;  %v7789_v54 = vrot.slane %v17348_v12, 5  ;;  %v17992_v29 = vsel %vm14997_vm1, %v12340_v17, %v9257_v33  ;;  %v19651_v57 = vld [vmem:[#allocation15_spill] sm:$0xff] }
 0x487   : > { %v17987_v39 = vsel %vm14997_vm1, %v7784_v9, %v7785_v38  ;;  %v9259_v13 = vrot.slane %v9257_v33, 4  ;;  %v7792_v55 = vrot.slane %v19651_v57, 5  ;;  %v9264_v60 = vrot.slane %v17408_v3, 5  ;;  %v19652_v20 = vld [vmem:[#allocation23_spill] sm:$0xff]  ;;  %v9131_v3 = vld [vmem:[#allocation2 + $0xc0] sm:$0xe] }
 0x488   : > { %13276 = vmatmul.mubr.msk.bf16.gmra.mrb[36].mxu1 %vm1439_vm12, %v19647_v53  ;;  %v17996_v53 = vld [vmem:[#allocation2 + $0x1c] sm:$0xf]  ;;  %v12341_v59 = vrot.slane %v9130_v48, 9  ;;  %v9267_v44 = vrot.slane %v19652_v20, 5  ;;  %v9719_v38 = vshrl.u32 %v17975_v46, 16  ;;  %v9722_v10 = vshll.u32 %v17975_v46, 16 }
 0x489   : > { %13279 = vmatprep.mubr.msk.bf16.mxu1 %vm1439_vm12, %v19650_v50  ;;  %v7656_v50 = vld [vmem:[#allocation2 + $0xb4] sm:$0xe]  ;;  %v18005_v17 = vsel %vm14997_vm1, %v9259_v13, %v9260_v49  ;;  %v7796_v33 = vrot.slane %v17415_v23, 5  ;;  %v9271_v9 = vrot.slane %v19635_v6, 5  ;;  %v19653_v48 = vcombine.low %v17702_v19, %v17710_v45  ;;  %v18019_v13 = vld [vmem:[#allocation2 + $0x24] sm:$0xf] }
 0x48a   : > { %v18015_v57 = vsel %vm14997_vm1, %v12228_v14, %v7789_v54  ;;  %v7791_v20 = vrot.slane %v7789_v54, 4  ;;  %v9728_v12 = vshll.u32 %v17996_v53, 16  ;;  %v9732_v49 = vshrl.u32 %v17996_v53, 16  ;;  %19654 = vst [vmem:[#allocation27_spill] sm:$0xff] %v18019_v13  ;;  %v19656_v45 = vld [vmem:[#allocation22_spill] sm:$0xff] }
 0x48b   : > { %v19655_v23 = vcombine.low %v17745_v25, %v17727_v62  ;;  %v9266_v6 = vrot.slane %v9264_v60, 4  ;;  %v12229_v19 = vrot.slane %v7656_v50, 9  ;;  %v9274_v24 = vrot.slane %v19657_v52, 5  ;;  %v19681_v46 = vld [vmem:[#allocation10_spill] sm:$0xff] }
 0x48c   : > { %v18029_v14 = vsel %vm14997_vm1, %v7791_v20, %v7792_v55  ;;  %v12342_v54 = vrot.slane %v9131_v3, 9  ;;  %v9721_v63 = vrot.slane %v9719_v38, 4  ;;  %v9724_v41 = vrot.slane %v9722_v10, 5 }
 0x48d   : > { %13378 = vmatmul.mubr.msk.bf16.gmra.mrb[68].mxu0 %vm1439_vm12, %v19653_v48  ;;  %v7799_v48 = vrot.slane %v19656_v45, 5  ;;  %v19659_v62 = vcombine.low %v17751_v11, %v17735_v34  ;;  %v7798_v25 = vrot.slane %v7796_v33, 4  ;;  %v9273_v50 = vrot.slane %v9271_v9, 4 }
 0x48e   : > { %13381 = vmatprep.mubr.msk.bf16.mxu0 %vm1439_vm12, %v19655_v23  ;;  %v18037_v23 = vld [vmem:[#allocation2 + $0x20] sm:$0x1]  ;;  %v9743_v52 = vshrl.u32 %v18019_v13, 16  ;;  %v9746_v45 = vshll.u32 %v18019_v13, 16  ;;  %v19661_v55 = vcombine.low %v17778_v61, %v17769_v56  ;;  %v18049_v34 = vsel %vm14997_vm1, %v12341_v59, %v9264_v60  ;;  %v18162_v13 = vld [vmem:[#allocation2 + $0x58] sm:$0xf] }
 0x48f   : > { %19660 = vst [vmem:[#allocation5_spill] sm:$0xff] %v18037_v23  ;;  %v18051_v11 = vrot.slane %v9728_v12, 5  ;;  %v9734_v10 = vrot.slane %v9732_v49, 4  ;;  %v18057_v20 = vsel %vm14997_vm1, %v9266_v6, %v9267_v44  ;;  %v18061_v56 = vsel %vm14997_vm1, %v7798_v25, %v7799_v48  ;;  %v18075_v44 = vld [vmem:[#allocation2 + $0x3c] sm:$0xf] }
 0x490   : > { %13280 = vmatmul.mubr.msk.bf16.gmra.mrb[40].mxu1 %vm1439_vm12, %v19659_v62  ;;  %v18065_v61 = vsel %vm14997_vm1, %v9273_v50, %v9274_v24  ;;  %v18069_v60 = vsel %vm14997_vm1, %v12229_v19, %v7796_v33  ;;  %v9725_v59 = vor.u32 %v9724_v41, %v9721_v63  ;;  %v9738_v12 = vshll.u32 %v18037_v23, 16  ;;  %v18073_v62 = vld [vmem:[#allocation2 + $0x30] sm:$0xf]  ;;  %19663 = vst [vmem:[#allocation20_spill] sm:$0xff] %v18075_v44  ;;  %v18081_v48 = vld [vmem:[#allocation2 + $0x2c] sm:$0x1] }
 0x491   : > { %13283 = vmatprep.mubr.msk.bf16.mxu1 %vm1439_vm12, %v19661_v55  ;;  %v9752_v49 = vshll.u32 %v18031_v35, 16  ;;  %19662 = vst [vmem:[#allocation19_spill] sm:$0xff] %v18073_v62  ;;  %v18079_v6 = vsel %vm14997_vm1, %v12342_v54, %v9271_v9  ;;  %19664 = vst [vmem:[#allocation12_spill] sm:$0xff] %v18081_v48  ;;  %v9745_v24 = vrot.slane %v9743_v52, 4  ;;  %v9748_v25 = vrot.slane %v9746_v45, 5  ;;  %v19667_v52 = vld [vmem:[#allocation18_spill] sm:$0xff] }
 0x492   : > { %v9756_v33 = vshrl.u32 %v18031_v35, 16  ;;  %v19665_v41 = vcombine.low %v17765_v22, %v17755_v58  ;;  %v9735_v54 = vor.u32 %v9734_v10, %v18051_v11  ;;  %v18095_v50 = vld [vmem:[#allocation2 + $0x34] sm:$0xf]  ;;  %v19668_v45 = vld [vmem:[#allocation21_spill] sm:$0xff]  ;;  %v9767_v58 = vshrl.u32 %v18073_v62, 16 }
 0x493   : > { %19666 = vst [vmem:[#allocation11_spill] sm:$0xff] %v18095_v50  ;;  %v19669_v55 = vcombine.low %v19667_v52, %v19668_v45  ;;  %v9770_v22 = vshll.u32 %v18073_v62, 16  ;;  %v9791_v19 = vshrl.u32 %v18075_v44, 16  ;;  %v9794_v63 = vshll.u32 %v18075_v44, 16  ;;  %v18116_v62 = vld [vmem:[#allocation2 + $0x48] sm:$0xf] }
 0x494   : > { %v9726_v9 = vrot.slane %v9725_v59, 4  ;;  %v9740_v38 = vrot.slane %v9738_v12, 5  ;;  %v18107_v10 = vrot.slane %v9752_v49, 5  ;;  %v9762_v3 = vshll.u32 %v18081_v48, 16  ;;  %19672 = vst [vmem:[#allocation13_spill] sm:$0xff] %v18116_v62  ;;  %v19680_v35 = vld [vmem:[#allocation9_spill] sm:$0xff] }
 0x495   : > { %13382 = vmatmul.mubr.msk.bf16.gmra.mrb[72].mxu0 %vm1439_vm12, %v19665_v41  ;;  %v18103_v41 = vld [vmem:[#allocation2 + $0x40] sm:$0xf]  ;;  %v19671_v52 = vcombine.low %v17800_v47, %v17808_v16  ;;  %v9749_v45 = vor.u32 %v9748_v25, %v9745_v24  ;;  %v9776_v8 = vshll.u32 %v18095_v50, 16  ;;  %v9780_v23 = vshrl.u32 %v18095_v50, 16  ;;  %v18128_v48 = vld [vmem:[#allocation2 + $0x4c] sm:$0xf] }
 0x496   : > { %13385 = vmatprep.mubr.msk.bf16.mxu0 %vm1439_vm12, %v19669_v55  ;;  %19670 = vst [vmem:[#allocation16_spill] sm:$0xff] %v18103_v41  ;;  %v9758_v55 = vrot.slane %v9756_v33, 4  ;;  %v19673_v59 = vcombine.low %v17834_v5, %v17824_v2  ;;  %v9736_v12 = vrot.slane %v9735_v54, 4  ;;  %v18124_v49 = vsel %vm1488_vm0, %v17887_v36, 0  ;;  %19674 = vst [vmem:[#allocation17_spill] sm:$0xff] %v18128_v48 }
 0x497   : > { %v9800_v47 = vshll.u32 %v18103_v41, 16  ;;  %v9804_v16 = vshrl.u32 %v18103_v41, 16  ;;  %v9769_v24 = vrot.slane %v9767_v58, 4  ;;  %v9772_v25 = vrot.slane %v9770_v22, 5  ;;  %v18133_v54 = vld [vmem:[#allocation2 + $0x38] sm:$0x1] }
 0x498   : > { %13284 = vmatmul.mubr.msk.bf16.gmra.mrb[44].mxu1 %vm1439_vm12, %v19671_v52  ;;  %v9793_v33 = vrot.slane %v9791_v19, 4  ;;  %v9796_v52 = vrot.slane %v9794_v63, 5  ;;  %v9731_v2 = vsel %vm14300_vm13, %v9726_v9, %v18051_v11  ;;  %v9764_v5 = vrot.slane %v9762_v3, 5  ;;  %19676 = vst [vmem:[#allocation15_spill] sm:$0xff] %v18133_v54  ;;  %v18140_v63 = vld [vmem:[#allocation2 + $0x44] sm:$0x1] }
 0x499   : > { %13287 = vmatprep.mubr.msk.bf16.mxu1 %vm1439_vm12, %v19673_v59  ;;  %v9815_v36 = vshrl.u32 %v18116_v62, 16  ;;  %v9818_v59 = vshll.u32 %v18116_v62, 16  ;;  %v9750_v50 = vrot.slane %v9749_v45, 4  ;;  %v9759_v41 = vor.u32 %v9758_v55, %v18107_v10  ;;  %19677 = vst [vmem:[#allocation23_spill] sm:$0xff] %v18140_v63  ;;  %v18150_v45 = vld [vmem:[#allocation2 + $0x54] sm:$0xf] }
 0x49a   : > { %v18138_v58 = vrot.slane %v9776_v8, 5  ;;  %v9782_v19 = vrot.slane %v9780_v23, 4  ;;  %v19678_v22 = vcombine.low %v17812_v21, %v17816_v26  ;;  %v18146_v11 = vrot.slane %v9800_v47, 5 }
 0x49b   : > { %v9806_v3 = vrot.slane %v9804_v16, 4  ;;  %v9824_v9 = vshll.u32 %v18128_v48, 16  ;;  %v9828_v62 = vshrl.u32 %v18128_v48, 16  ;;  %v19679_v8 = vcombine.low %v17850_v18, %v17838_v27 }
 0x49c   : > { %v9741_v23 = vsel %vm14300_vm13, %v9736_v12, %v9740_v38  ;;  %v9773_v21 = vor.u32 %v9772_v25, %v9769_v24  ;;  %v9786_v26 = vshll.u32 %v18133_v54, 16  ;;  %v9797_v55 = vor.u32 %v9796_v52, %v9793_v33  ;;  %v18169_v12 = vld [vmem:[#allocation2 + $0x50] sm:$0x1] }
 0x49d   : > { %13386 = vmatmul.mubr.msk.bf16.gmra.mrb[76].mxu0 %vm1439_vm12, %v19678_v22  ;;  %v18159_v47 = vcombine.low %v9731_v2, %v9741_v23  ;;  %v9810_v16 = vshll.u32 %v18140_v63, 16  ;;  %v9817_v22 = vrot.slane %v9815_v36, 4  ;;  %v9820_v48 = vrot.slane %v9818_v59, 5  ;;  %19683 = vst [vmem:[#allocation22_spill] sm:$0xff] %v18169_v12  ;;  %v18362_v63 = vld [vmem:[#allocation2 + $0xc4] sm:$0xf] }
 0x49e   : > { %13389 = vmatprep.mubr.msk.bf16.mxu0 %vm1439_vm12, %v19679_v8  ;;  %v19682_v27 = vcombine.low %v19680_v35, %v19681_v46  ;;  %v9760_v18 = vrot.slane %v9759_v41, 4  ;;  %v9783_v38 = vor.u32 %v9782_v19, %v18138_v58  ;;  %v9839_v24 = vshrl.u32 %v18150_v45, 16  ;;  %v18185_v8 = vld [vmem:[#allocation2 + $0x60] sm:$0xf]  ;;  %v19730_v44 = vld [vmem:[#allocation16_spill] sm:$0xff] }
 0x49f   : > { %v9842_v25 = vshll.u32 %v18150_v45, 16  ;;  %v19684_v33 = vcombine.low %v17878_v40, %v17905_v7  ;;  %v9755_v35 = vsel %vm14300_vm13, %v9750_v50, %v18107_v10  ;;  %v9807_v46 = vor.u32 %v9806_v3, %v18146_v11  ;;  %v18189_v10 = vld [vmem:[#allocation2 + $0x5c] sm:$0x1] }
 0x4a0   : > { %13288 = vmatmul.mubr.msk.bf16.gmra.mrb[48].mxu1 %vm1439_vm12, %v19682_v27  ;;  %v18181_v41 = vrot.slane %v9824_v9, 5  ;;  %v9830_v52 = vrot.slane %v9828_v62, 4  ;;  %v9765_v2 = vsel %vm14300_vm13, %v9760_v18, %v9764_v5  ;;  %v9774_v36 = vrot.slane %v9773_v21, 4  ;;  %v19686_v5 = vld [vmem:[#allocation24_spill] sm:$0xff] }
 0x4a1   : > { %13291 = vmatprep.mubr.msk.bf16.mxu1 %vm1439_vm12, %v19684_v33  ;;  %v9788_v59 = vrot.slane %v9786_v26, 5  ;;  %v9798_v19 = vrot.slane %v9797_v55, 4  ;;  %v9812_v40 = vrot.slane %v9810_v16, 5  ;;  %v9821_v7 = vor.u32 %v9820_v48, %v9817_v22  ;;  %v19685_v33 = vld [vmem:[#allocation25_spill] sm:$0xff] }
 0x4a2   : > { %v9834_v23 = vshll.u32 %v18169_v12, 16  ;;  %v9848_v27 = vshll.u32 %v18162_v13, 16  ;;  %v9784_v50 = vrot.slane %v9783_v38, 4  ;;  %v9841_v3 = vrot.slane %v9839_v24, 4  ;;  %v18197_v48 = vld [vmem:[#allocation2 + $0x64] sm:$0xf] }
 0x4a3   : > { %v9844_v9 = vrot.slane %v9842_v25, 5  ;;  %v9852_v62 = vshrl.u32 %v18162_v13, 16  ;;  %v19687_v21 = vcombine.low %v19685_v33, %v19686_v5  ;;  %v9808_v26 = vrot.slane %v9807_v46, 4  ;;  %v18360_v12 = vld [vmem:[#allocation2 + $0xb8] sm:$0xf] }
 0x4a4   : > { %v9831_v55 = vor.u32 %v9830_v52, %v18181_v41  ;;  %v9863_v16 = vshrl.u32 %v18185_v8, 16  ;;  %v9866_v22 = vshll.u32 %v18185_v8, 16  ;;  %v19688_v18 = vcombine.low %v17895_v28, %v17909_v30 }
 0x4a5   : > { %13390 = vmatmul.mubr.msk.bf16.gmra.mrb[80].mxu0 %vm1439_vm12, %v19687_v21  ;;  %v18205_v38 = vcombine.low %v9755_v35, %v9765_v2  ;;  %v9779_v24 = vsel %vm14300_vm13, %v9774_v36, %v18138_v58  ;;  %v9789_v25 = vsel %vm14300_vm13, %v9784_v50, %v9788_v59  ;;  %v9803_v46 = vsel %vm14300_vm13, %v9798_v19, %v18146_v11  ;;  %v18219_v35 = vld [vmem:[#allocation2 + $0x6c] sm:$0xf]  ;;  %v18227_v19 = vld [vmem:[#allocation2 + $0x78] sm:$0xf] }
 0x4a6   : > { %13393 = vmatprep.mubr.msk.bf16.mxu0 %vm1439_vm12, %v19688_v18  ;;  %v9813_v52 = vsel %vm14300_vm13, %v9808_v26, %v9812_v40  ;;  %v9822_v33 = vrot.slane %v9821_v7, 4  ;;  %v9836_v28 = vrot.slane %v9834_v23, 5  ;;  %v18217_v30 = vrot.slane %v9848_v27, 5  ;;  %19690 = vst [vmem:[#allocation14_spill] sm:$0xff] %v18227_v19 }
 0x4a7   : > { %v19689_v2 = vcombine.low %v17947_v32, %v17922_v31  ;;  %v9845_v58 = vor.u32 %v9844_v9, %v9841_v3  ;;  %v9854_v36 = vrot.slane %v9852_v62, 4  ;;  %v9858_v59 = vshll.u32 %v18189_v10, 16  ;;  %v18238_v3 = vld [vmem:[#allocation2 + $0x68] sm:$0x1]  ;;  %v18240_v9 = vld [vmem:[#allocation2 + $0x70] sm:$0xf] }
 0x4a8   : > { %v9872_v11 = vshll.u32 %v18197_v48, 16  ;;  %v19691_v40 = vcombine.low %v17958_v4, %v17934_v0  ;;  %v9832_v7 = vrot.slane %v9831_v55, 4  ;;  %v9865_v23 = vrot.slane %v9863_v16, 4  ;;  %v6380_v55 = vld [vmem:[#allocation2 + $0xcc] sm:$0x2] }
 0x4a9   : > { %13292 = vmatmul.mubr.msk.bf16.gmra.mrb[52].mxu1 %vm1439_vm12, %v19689_v2  ;;  %v9868_v27 = vrot.slane %v9866_v22, 5  ;;  %v9876_v31 = vshrl.u32 %v18197_v48, 16  ;;  %v18234_v32 = vcombine.low %v9779_v24, %v9789_v25  ;;  %v18236_v50 = vcombine.low %v9803_v46, %v9813_v52  ;;  %v6524_v16 = vld [vmem:[#allocation2 + $0xd0] sm:$0x8]  ;;  %v18258_v46 = vld [vmem:[#allocation2 + $0x7c] sm:$0xf] }
 0x4aa   : > { %13295 = vmatprep.mubr.msk.bf16.mxu1 %vm1439_vm12, %v19691_v40  ;;  %v9887_v62 = vshrl.u32 %v18219_v35, 16  ;;  %v9890_v5 = vshll.u32 %v18219_v35, 16  ;;  %v9827_v0 = vsel %vm14300_vm13, %v9822_v33, %v18181_v41  ;;  %v9837_v4 = vsel %vm14300_vm13, %v9832_v7, %v9836_v28 }
 0x4ab   : > { %v9911_v21 = vshrl.u32 %v18227_v19, 16  ;;  %v9914_v26 = vshll.u32 %v18227_v19, 16  ;;  %v18251_v22 = vrot.slane %v9845_v58, 4  ;;  %v9855_v18 = vor.u32 %v9854_v36, %v18217_v30  ;;  %v18268_v58 = vld [vmem:[#allocation2 + $0x84] sm:$0xf] }
 0x4ac   : > { %v18254_v24 = vrot.slane %v9858_v59, 5  ;;  %v18256_v25 = vrot.slane %v9872_v11, 5  ;;  %v19692_v41 = vcombine.low %v17951_v51, %v17926_v15  ;;  %v9869_v52 = vor.u32 %v9868_v27, %v9865_v23  ;;  %19693 = vst [vmem:[#allocation18_spill] sm:$0xff] %v18268_v58  ;;  %v6504_v51 = vld [vmem:[#allocation2 + $0xcc] sm:$0x1] }
 0x4ad   : > { %v18264_v33 = vrot.slane %v9876_v31, 4  ;;  %v9882_v28 = vshll.u32 %v18238_v3, 16  ;;  %v9896_v2 = vshll.u32 %v18240_v9, 16  ;;  %v19694_v36 = vcombine.low %v17962_v43, %v17938_v1 }
 0x4ae   : > { %13394 = vmatmul.mubr.msk.bf16.gmra.mrb[84].mxu0 %vm1439_vm12, %v19692_v41  ;;  %v18274_v59 = vrot.slane %v9887_v62, 4  ;;  %v18276_v11 = vrot.slane %v9890_v5, 5  ;;  %v12130_v15 = vrot.slane %v6380_v55, 9  ;;  %v12148_v40 = vrot.slane %v6524_v16, 11  ;;  %v6648_v41 = vld [vmem:[#allocation2 + $0xd4] sm:$0x1] }
 0x4af   : > { %13397 = vmatprep.mubr.msk.bf16.mxu0 %vm1439_vm12, %v19694_v36  ;;  %v9900_v7 = vshrl.u32 %v18240_v9, 16  ;;  %v18279_v23 = vrot.slane %v9911_v21, 4  ;;  %v9916_v27 = vrot.slane %v9914_v26, 5  ;;  %v9920_v31 = vshll.u32 %v18258_v46, 16  ;;  %v18307_v36 = vld [vmem:[#allocation2 + $0x88] sm:$0xf] }
 0x4b0   : > { %v19695_v1 = vcombine.low %v17983_v42, %v17987_v39  ;;  %v18286_v43 = vcombine.low %v9827_v0, %v9837_v4  ;;  %v9924_v62 = vshrl.u32 %v18258_v46, 16  ;;  %v6505_v55 = vsel %vm14211_vm8, %v12130_v15, %v6504_v51  ;;  %v18335_v42 = vld [vmem:[#allocation2 + $0xc0] sm:$0xf] }
 0x4b1   : > { %v6649_v21 = vsel %vm14248_vm9, %v12148_v40, %v6648_v41  ;;  %v19698_v26 = vcombine.low %v18015_v57, %v18029_v14  ;;  %v18301_v39 = vrot.slane %v9855_v18, 4  ;;  %v18303_v0 = vrot.slane %v9869_v52, 4  ;;  %6506 = vst [vmem:[#allocation2 + $0xcc] sm:$0x1] %v6505_v55  ;;  %v18311_v14 = vld [vmem:[#allocation2 + $0x74] sm:$0x1] }
 0x4b2   : > { %13296 = vmatmul.mubr.msk.bf16.gmra.mrb[56].mxu1 %vm1439_vm12, %v19695_v1  ;;  %v18305_v4 = vrot.slane %v9882_v28, 5  ;;  %6650 = vst [vmem:[#allocation2 + $0xd4] sm:$0x1] %v6649_v21  ;;  %v9879_v57 = vor.u32 %v18264_v33, %v18256_v25  ;;  %v18313_v15 = vrot.slane %v9896_v2, 5  ;;  %v9935_v51 = vshrl.u32 %v18268_v58, 16 }
 0x4b3   : > { %13299 = vmatprep.mubr.msk.bf16.mxu1 %vm1439_vm12, %v19698_v26  ;;  %v9938_v18 = vshll.u32 %v18268_v58, 16  ;;  %v18317_v40 = vld [vmem:[#allocation2 + $0x90] sm:$0xf]  ;;  %v9893_v52 = vor.u32 %v18276_v11, %v18274_v59  ;;  %v9902_v28 = vrot.slane %v9900_v7, 4  ;;  %v18321_v41 = vld [vmem:[#allocation2 + $0x80] sm:$0x1]  ;;  %v9917_v1 = vor.u32 %v9916_v27, %v18279_v23 }
 0x4b4   : > { %19699 = vst [vmem:[#allocation21_spill] sm:$0xff] %v18317_v40  ;;  %v18324_v5 = vrot.slane %v9920_v31, 5  ;;  %v18326_v33 = vld [vmem:[#allocation2 + $0x94] sm:$0xf]  ;;  %v18328_v2 = vld [vmem:[#allocation2 + $0x9c] sm:$0xf]  ;;  %v19700_v7 = vcombine.low %v17992_v29, %v18005_v17  ;;  %v19701_v29 = vcombine.low %v18049_v34, %v18057_v20 }
 0x4b5   : > { %v18330_v55 = vld [vmem:[#allocation2 + $0xa8] sm:$0xf]  ;;  %v9926_v16 = vrot.slane %v9924_v62, 4  ;;  %v9944_v21 = vshll.u32 %v18307_v36, 16  ;;  %v18333_v26 = vld [vmem:[#allocation2 + $0xb4] sm:$0xf]  ;;  %v9903_v62 = vor.u32 %v9902_v28, %v18313_v15 }
 0x4b6   : > { %13398 = vmatmul.mubr.msk.bf16.gmra.mrb[88].mxu0 %vm1439_vm12, %v19700_v7  ;;  %v9948_v23 = vshrl.u32 %v18307_v36, 16  ;;  %v18346_v27 = vld [vmem:[#allocation2 + $0xa0] sm:$0xf]  ;;  %v18348_v31 = vld [vmem:[#allocation2 + $0xac] sm:$0xf]  ;;  %v9937_v17 = vrot.slane %v9935_v51, 4 }
 0x4b7   : > { %13401 = vmatprep.mubr.msk.bf16.mxu0 %vm1439_vm12, %v19701_v29  ;;  %v9940_v7 = vrot.slane %v9938_v18, 5  ;;  %v9906_v54 = vshll.u32 %v18311_v14, 16  ;;  %v18369_v11 = vld [vmem:[#allocation2 + $0xd0] sm:$0xf]  ;;  %v19702_v18 = vcombine.low %v18069_v60, %v18061_v56  ;;  %v9880_v29 = vrot.slane %v9879_v57, 4 }
 0x4b8   : > { %v9894_v59 = vrot.slane %v9893_v52, 4  ;;  %v9930_v58 = vshll.u32 %v18321_v41, 16  ;;  %v18383_v19 = vld [vmem:[#allocation2 + $0xcc] sm:$0xf]  ;;  %v9918_v20 = vrot.slane %v9917_v1, 4  ;;  %v18387_v34 = vrot.slane %v9944_v21, 5 }
 0x4b9   : > { %v9950_v51 = vrot.slane %v9948_v23, 4  ;;  %v9927_v60 = vor.u32 %v9926_v16, %v18324_v5  ;;  %v18392_v57 = vld [vmem:[#allocation2 + $0x8c] sm:$0x1]  ;;  %v9941_v52 = vor.u32 %v9940_v7, %v9937_v17  ;;  %v9959_v28 = vshrl.u32 %v18317_v40, 16 }
 0x4ba   : > { %13300 = vmatmul.mubr.msk.bf16.gmra.mrb[60].mxu1 %vm1439_vm12, %v19702_v18  ;;  %v9962_v18 = vshll.u32 %v18317_v40, 16  ;;  %v9908_v1 = vrot.slane %v9906_v54, 5  ;;  %v9968_v21 = vshll.u32 %v18326_v33, 16  ;;  %v9972_v23 = vshrl.u32 %v18326_v33, 16 }
 0x4bb   : > { %13407 = vmatprep.mubr.msk.bf16.mxu1 %vm1439_vm12, %v18159_v47  ;;  %v9861_v47 = vsel %vm14300_vm13, %v18301_v39, %v18254_v24  ;;  %v9875_v16 = vsel %vm14300_vm13, %v18303_v0, %v18256_v25  ;;  %v9885_v17 = vsel %vm14300_vm13, %v9880_v29, %v18305_v4  ;;  %v9899_v7 = vsel %vm14300_vm13, %v9894_v59, %v18313_v15  ;;  %v18421_v4 = vld [vmem:[#allocation2 + $0x98] sm:$0x1] }
 0x4bc   : > { %v9932_v56 = vrot.slane %v9930_v58, 5  ;;  %v19703_v54 = vcombine.low %v18079_v6, %v18065_v61  ;;  %v9904_v24 = vrot.slane %v9903_v62, 4  ;;  %v9923_v39 = vsel %vm14300_vm13, %v9918_v20, %v18324_v5  ;;  %v10664_v61 = vld [vmem:[#allocation2 + $0x54] sm:$0xe]  ;;  %v18439_v20 = vld [vmem:[%s19364_s2 + $0x10] sm:$0x3] }
 0x4bd   : > { %v9951_v25 = vor.u32 %v9950_v51, %v18387_v34  ;;  %v9954_v0 = vshll.u32 %v18392_v57, 16  ;;  %v9928_v29 = vrot.slane %v9927_v60, 4  ;;  %v18423_v40 = vrot.slane %v9941_v52, 4 }
 0x4be   : > { %13402 = vmatmul.mubr.msk.bf16.gmra.mrb[92].mxu0 %vm1439_vm12, %v19703_v54  ;;  %v18425_v58 = vrot.slane %v9959_v28, 4  ;;  %v18427_v15 = vrot.slane %v9962_v18, 5  ;;  %v9909_v6 = vsel %vm14300_vm13, %v9904_v24, %v9908_v1  ;;  %v18431_v59 = vrot.slane %v9968_v21, 5 }
 0x4bf   : > { %v18433_v5 = vrot.slane %v9972_v23, 4  ;;  %v9983_v62 = vshrl.u32 %v18328_v2, 16  ;;  %v19704_v51 = vsel %vm14300_vm13, %v18251_v22, %v18217_v30  ;;  %v18450_v52 = vcombine.low %v9875_v16, %v9885_v17  ;;  %v10665_v22 = vld [vmem:[#allocation2 + $0x60] sm:$0xe]  ;;  %v10666_v23 = vld [vmem:[#allocation2 + $0x6c] sm:$0xe] }
 0x4c0   : > { %v18448_v60 = vcombine.low %v19704_v51, %v9861_v47  ;;  %v18452_v28 = vcombine.low %v9899_v7, %v9909_v6  ;;  %v9933_v18 = vsel %vm14300_vm13, %v9928_v29, %v9932_v56  ;;  %v18461_v1 = vrot.slane %v9951_v25, 4  ;;  %v10667_v29 = vld [vmem:[#allocation2 + $0x78] sm:$0xe]  ;;  %v10668_v7 = vld [vmem:[#allocation2 + $0x84] sm:$0xe] }
 0x4c1   : > { %v18463_v21 = vrot.slane %v9954_v0, 5  ;;  %v9986_v30 = vshll.u32 %v18328_v2, 16  ;;  %v18477_v17 = vrot.slane %v9983_v62, 4  ;;  %v10744_v54 = vrot.slane %v18162_v13, 5 }
 0x4c2   : > { %13408 = vmatmul.mubr.msk.bf16.vlgmr.msra.gmra.mrb[64].mxu1 %vm1439_vm12, %v18205_v38  ;;  %v18459_v38 = vcombine.low %v9923_v39, %v9933_v18  ;;  %v10747_v24 = vrot.slane %v18189_v10, 5  ;;  %v12447_v39 = vrot.slane %v10665_v22, 9  ;;  %v10751_v25 = vrot.slane %v18197_v48, 5 }
 0x4c3   : > { %13440 = vmatpush3.bf16.msra.mxu1 %v18124_v49  ;;  %13411 = vmatprep.mubr.msk.bf16.mxu1 %vm1439_vm12, %v18234_v32  ;;  %v12446_v32 = vrot.slane %v10664_v61, 9  ;;  %v10754_v0 = vrot.slane %v18238_v3, 5  ;;  %v18484_v6 = vrot.slane %v9986_v30, 5  ;;  %v10746_v51 = vrot.slane %v10744_v54, 4  ;;  %v18547_v49 = vld [vmem:[#allocation2 + $0xbc] sm:$0x1] }
 0x4c4   : > { %13908 = vmatprep.subr.msk.bf16.mxu1 %vm1488_vm0, %v18439_v20  ;;  %v12448_v18 = vrot.slane %v10666_v23, 9  ;;  %v18493_v47 = vsel %vm14997_vm1, %v12447_v39, %v10751_v25  ;;  %v10753_v10 = vrot.slane %v10751_v25, 4  ;;  %v10758_v22 = vrot.slane %v18240_v9, 5 }
 0x4c5   : > { %v18489_v62 = vsel %vm14997_vm1, %v12446_v32, %v10744_v54  ;;  %19705 = vst [vmem:[#allocation8_spill] sm:$0xff] %v18493_v47  ;;  %v18498_v3 = vsel %vm14997_vm1, %v10746_v51, %v10747_v24  ;;  %v10761_v30 = vrot.slane %v18311_v14, 5  ;;  %v12449_v16 = vrot.slane %v10667_v29, 9  ;;  %v10669_v14 = vld [vmem:[#allocation2 + $0x90] sm:$0xe] }
 0x4c6   : > { %v10765_v23 = vrot.slane %v18258_v46, 5  ;;  %v18508_v54 = vsel %vm14997_vm1, %v10753_v10, %v10754_v0  ;;  %v18512_v24 = vsel %vm14997_vm1, %v12448_v18, %v10758_v22  ;;  %v10760_v39 = vrot.slane %v10758_v22, 4  ;;  %v18529_v32 = vld [vmem:[#allocation2 + $0xa4] sm:$0x1] }
 0x4c7   : > { %19706 = vst [vmem:[#allocation9_spill] sm:$0xff] %v18508_v54  ;;  %19707 = vst [vmem:[#allocation10_spill] sm:$0xff] %v18512_v24  ;;  %v10768_v0 = vrot.slane %v18321_v41, 5  ;;  %v12450_v18 = vrot.slane %v10668_v7, 9  ;;  %v10772_v10 = vrot.slane %v18307_v36, 5  ;;  %v10775_v22 = vrot.slane %v18392_v57, 5 }
 0x4c8   : > { %v10767_v29 = vrot.slane %v10765_v23, 4  ;;  %v18525_v51 = vsel %vm14997_vm1, %v10760_v39, %v10761_v30  ;;  %v12451_v41 = vrot.slane %v10669_v14, 9  ;;  %v10671_v30 = vld [vmem:[#allocation2 + $0xa8] sm:$0xe]  ;;  %v18538_v39 = vld [vmem:[#allocation2 + $0xb0] sm:$0x1] }
 0x4c9   : > { %19709 = vst [vmem:[#allocation24_spill] sm:$0xff] %v18525_v51  ;;  %v18544_v57 = vsel %vm14997_vm1, %v12450_v18, %v10772_v10  ;;  %v10774_v56 = vrot.slane %v10772_v10, 4  ;;  %v10782_v25 = vrot.slane %v18421_v4, 5  ;;  %v10786_v61 = vrot.slane %v18346_v27, 5 }
 0x4ca   : > { %13412 = vmatmul.mubr.msk.bf16.gmra.mrb[68].mxu1 %vm1439_vm12, %v18236_v50  ;;  %v18520_v50 = vsel %vm14997_vm1, %v12449_v16, %v10765_v23  ;;  %v18535_v16 = vsel %vm14997_vm1, %v10767_v29, %v10768_v0  ;;  %v10779_v23 = vrot.slane %v18326_v33, 5  ;;  %19711 = vst [vmem:[#allocation7_spill] sm:$0xff] %v18544_v57  ;;  %v10789_v18 = vrot.slane %v18529_v32, 5 }
 0x4cb   : > { %13415 = vmatprep.mubr.msk.bf16.mxu1 %vm1439_vm12, %v18286_v43  ;;  %19708 = vst [vmem:[#allocation25_spill] sm:$0xff] %v18520_v50  ;;  %v10670_v43 = vld [vmem:[#allocation2 + $0x9c] sm:$0xe]  ;;  %19710 = vst [vmem:[#allocation6_spill] sm:$0xff] %v18535_v16  ;;  %v18556_v7 = vsel %vm14997_vm1, %v10774_v56, %v10775_v22  ;;  %v12453_v16 = vrot.slane %v10671_v30, 9  ;;  %v10793_v10 = vrot.slane %v18348_v31, 5 }
 0x4cc   : > { %v18551_v14 = vsel %vm14997_vm1, %v12451_v41, %v10779_v23  ;;  %v10781_v29 = vrot.slane %v10779_v23, 4  ;;  %v12452_v0 = vrot.slane %v10670_v43, 9  ;;  %19713 = vst [vmem:[#allocation29_spill] sm:$0xff] %v18556_v7  ;;  %v10672_v50 = vld [vmem:[#allocation2 + $0xb4] sm:$0xe]  ;;  %v10788_v23 = vrot.slane %v10786_v61, 4 }
 0x4cd   : > { %19712 = vst [vmem:[#allocation28_spill] sm:$0xff] %v18551_v14  ;;  %v10673_v56 = vld [vmem:[#allocation2 + $0xc0] sm:$0xe]  ;;  %v18572_v22 = vld [vmem:[#allocation2 + $0xc8] sm:$0x1]  ;;  %v18578_v51 = vsel %vm14997_vm1, %v12453_v16, %v10793_v10  ;;  %v10803_v7 = vrot.slane %v18547_v49, 5 }
 0x4ce   : > { %v18564_v41 = vsel %vm14997_vm1, %v10781_v29, %v10782_v25  ;;  %v18568_v43 = vsel %vm14997_vm1, %v12452_v0, %v10786_v61  ;;  %19716 = vst [vmem:[#allocation32_spill] sm:$0xff] %v18578_v51  ;;  %v10795_v25 = vrot.slane %v10793_v10, 4  ;;  %v10796_v29 = vrot.slane %v18538_v39, 5  ;;  %v10674_v30 = vld [vmem:[#allocation2 + $0xcc] sm:$0xe] }
 0x4cf   : > { %19714 = vst [vmem:[#allocation30_spill] sm:$0xff] %v18564_v41  ;;  %19715 = vst [vmem:[#allocation31_spill] sm:$0xff] %v18568_v43  ;;  %v18585_v61 = vsel %vm14997_vm1, %v10788_v23, %v10789_v18  ;;  %v10800_v0 = vrot.slane %v18360_v12, 5  ;;  %v18589_v41 = vld [vmem:[#allocation2 + $0xd4] sm:$0x1]  ;;  %v10807_v14 = vrot.slane %v18362_v63, 5 }
 0x4d0   : > { %19717 = vst [vmem:[#allocation33_spill] sm:$0xff] %v18585_v61  ;;  %v18595_v10 = vsel %vm14997_vm1, %v10795_v25, %v10796_v29  ;;  %v10010_v18 = vshll.u32 %v18330_v55, 16  ;;  %v10810_v57 = vrot.slane %v18572_v22, 5  ;;  %v9996_v24 = vshrl.u32 %v18346_v27, 16 }
 0x4d1   : > { %19718 = vst [vmem:[#allocation34_spill] sm:$0xff] %v18595_v10  ;;  %v10802_v23 = vrot.slane %v10800_v0, 4  ;;  %v10809_v54 = vrot.slane %v10807_v14, 4  ;;  %v12456_v47 = vrot.slane %v10674_v30, 9  ;;  %v10814_v16 = vrot.slane %v18369_v11, 5 }
 0x4d2   : > { %13416 = vmatmul.mubr.msk.bf16.gmra.mrb[72].mxu1 %vm1439_vm12, %v18448_v60  ;;  %v12454_v60 = vrot.slane %v10672_v50, 9  ;;  %v10016_v25 = vshll.u32 %v18348_v31, 16  ;;  %v10817_v50 = vrot.slane %v18589_v41, 5  ;;  %v10012_v43 = vrot.slane %v10010_v18, 5 }
 0x4d3   : > { %13419 = vmatprep.mubr.msk.bf16.mxu1 %vm1439_vm12, %v18450_v52  ;;  %v12455_v52 = vrot.slane %v10673_v56, 9  ;;  %v18611_v29 = vsel %vm14997_vm1, %v10802_v23, %v10803_v7  ;;  %v18622_v51 = vsel %vm14997_vm1, %v10809_v54, %v10810_v57  ;;  %v10816_v61 = vrot.slane %v10814_v16, 4 }
 0x4d4   : > { %v18607_v56 = vsel %vm14997_vm1, %v12454_v60, %v10800_v0  ;;  %v19719_v60 = vshrl.u32 %v18330_v55, 16  ;;  %v10020_v7 = vshrl.u32 %v18348_v31, 16  ;;  %v19721_v54 = vshll.u32 %v18421_v4, 16 }
 0x4d5   : > { %v18618_v30 = vsel %vm14997_vm1, %v12455_v52, %v10807_v14  ;;  %v19720_v14 = vor.u32 %v18427_v15, %v18425_v58  ;;  %v18638_v10 = vsel %vm14997_vm1, %v12456_v47, %v10814_v16  ;;  %v18642_v18 = vsel %vm14997_vm1, %v10816_v61, %v10817_v50 }
 0x4d6   : > { %v10009_v0 = vrot.slane %v19719_v60, 4  ;;  %v9980_v57 = vrot.slane %v19721_v54, 5  ;;  %v19722_v58 = vshll.u32 %v18346_v27, 16  ;;  %v9998_v60 = vrot.slane %v9996_v24, 4 }
 0x4d7   : > { %v9966_v52 = vrot.slane %v19720_v14, 4  ;;  %v9957_v47 = vsel %vm14300_vm13, %v18461_v1, %v18463_v21  ;;  %v19723_v61 = vor.u32 %v18433_v5, %v18431_v59  ;;  %v10018_v24 = vrot.slane %v10016_v25, 5 }
 0x4d8   : > { %v9994_v15 = vrot.slane %v19722_v58, 5  ;;  %v10013_v50 = vor.u32 %v10012_v43, %v10009_v0  ;;  %v10022_v14 = vrot.slane %v10020_v7, 4  ;;  %v19724_v54 = vsel %vm14300_vm13, %v18423_v40, %v18387_v34 }
 0x4d9   : > { %v9976_v16 = vrot.slane %v19723_v61, 4  ;;  %v12385_v58 = vcombine.low %v19724_v54, %v9957_v47  ;;  %v9971_v5 = vsel %vm14300_vm13, %v9966_v52, %v18431_v59  ;;  %v10055_v1 = vshrl.u32 %v18335_v42, 16 }
 0x4da   : > { %13420 = vmatmul.mubr.msk.bf16.gmra.mrb[76].mxu1 %vm1439_vm12, %v18452_v28  ;;  %v9989_v28 = vor.u32 %v18484_v6, %v18477_v17  ;;  %v10034_v17 = vshll.u32 %v18333_v26, 16  ;;  %v10002_v6 = vshll.u32 %v18529_v32, 16  ;;  %v10058_v21 = vshll.u32 %v18335_v42, 16 }
 0x4db   : > { %13423 = vmatprep.mubr.msk.bf16.mxu1 %vm1439_vm12, %v18459_v38  ;;  %v10031_v38 = vshrl.u32 %v18333_v26, 16  ;;  %v9981_v32 = vsel %vm14300_vm13, %v9976_v16, %v9980_v57  ;;  %v9999_v25 = vor.u32 %v9998_v60, %v9994_v15  ;;  %v10026_v0 = vshll.u32 %v18538_v39, 16 }
 0x4dc   : > { %v9990_v43 = vrot.slane %v9989_v28, 4  ;;  %v10036_v61 = vrot.slane %v10034_v17, 5  ;;  %v10040_v40 = vshll.u32 %v18360_v12, 16  ;;  %v10044_v34 = vshrl.u32 %v18360_v12, 16 }
 0x4dd   : > { %v10033_v7 = vrot.slane %v10031_v38, 4  ;;  %v12386_v47 = vcombine.low %v9971_v5, %v9981_v32  ;;  %v10004_v54 = vrot.slane %v10002_v6, 5  ;;  %v10014_v59 = vrot.slane %v10013_v50, 4 }
 0x4de   : > { %v10023_v52 = vor.u32 %v10022_v14, %v10018_v24  ;;  %v10057_v4 = vrot.slane %v10055_v1, 4  ;;  %v10060_v23 = vrot.slane %v10058_v21, 5  ;;  %v10064_v57 = vshll.u32 %v18362_v63, 16 }
 0x4df   : > { %v10068_v28 = vshrl.u32 %v18362_v63, 16  ;;  %v9995_v39 = vsel %vm14300_vm13, %v9990_v43, %v9994_v15  ;;  %v10028_v60 = vrot.slane %v10026_v0, 5  ;;  %v10000_v16 = vrot.slane %v9999_v25, 4 }
 0x4e0   : > { %v10037_v38 = vor.u32 %v10036_v61, %v10033_v7  ;;  %v10042_v17 = vrot.slane %v10040_v40, 5  ;;  %v10046_v6 = vrot.slane %v10044_v34, 4  ;;  %v10019_v50 = vsel %vm14300_vm13, %v10014_v59, %v10018_v24 }
 0x4e1   : > { %v10024_v14 = vrot.slane %v10023_v52, 4  ;;  %v10082_v5 = vshll.u32 %v18383_v19, 16  ;;  %v10005_v1 = vsel %vm14300_vm13, %v10000_v16, %v10004_v54  ;;  %v10061_v21 = vor.u32 %v10060_v23, %v10057_v4 }
 0x4e2   : > { %13424 = vmatmul.mubr.msk.bf16.gmra.mrb[80].mxu1 %vm1439_vm12, %v12385_v58  ;;  %v10079_v58 = vshrl.u32 %v18383_v19, 16  ;;  %v10066_v32 = vrot.slane %v10064_v57, 5  ;;  %v12387_v15 = vcombine.low %v9995_v39, %v10005_v1  ;;  %v10050_v25 = vshll.u32 %v18547_v49, 16 }
 0x4e3   : > { %13427 = vmatprep.mubr.msk.bf16.mxu1 %vm1439_vm12, %v12386_v47  ;;  %v10070_v47 = vrot.slane %v10068_v28, 4  ;;  %v10029_v43 = vsel %vm14300_vm13, %v10024_v14, %v10028_v60  ;;  %v10038_v7 = vrot.slane %v10037_v38, 4  ;;  %v10047_v24 = vor.u32 %v10046_v6, %v10042_v17 }
 0x4e4   : > { %v12388_v0 = vcombine.low %v10019_v50, %v10029_v43  ;;  %v10074_v61 = vshll.u32 %v18572_v22, 16  ;;  %v10081_v40 = vrot.slane %v10079_v58, 4  ;;  %v10084_v34 = vrot.slane %v10082_v5, 5  ;;  %v19725_v43 = vld [vmem:[#allocation26_spill] sm:$0xff] }
 0x4e5   : > { %v10088_v59 = vshll.u32 %v18369_v11, 16  ;;  %v10092_v54 = vshrl.u32 %v18369_v11, 16  ;;  %v10062_v23 = vrot.slane %v10061_v21, 4  ;;  %v10071_v4 = vor.u32 %v10070_v47, %v10066_v32 }
 0x4e6   : > { %v10052_v52 = vrot.slane %v10050_v25, 5  ;;  %v10043_v49 = vsel %vm14300_vm13, %v10038_v7, %v10042_v17  ;;  %v10076_v57 = vrot.slane %v10074_v61, 5  ;;  %v10048_v28 = vrot.slane %v10047_v24, 4  ;;  %v19727_v7 = vld [vmem:[#allocation27_spill] sm:$0xff] }
 0x4e7   : > { %v10085_v39 = vor.u32 %v10084_v34, %v10081_v40  ;;  %v10090_v22 = vrot.slane %v10088_v59, 5  ;;  %v10094_v60 = vrot.slane %v10092_v54, 4  ;;  %v10067_v16 = vsel %vm14300_vm13, %v10062_v23, %v10066_v32  ;;  %v19728_v40 = vld [vmem:[#allocation11_spill] sm:$0xff]  ;;  %v19732_v23 = vld [vmem:[#allocation17_spill] sm:$0xff] }
 0x4e8   : > { %v10072_v38 = vrot.slane %v10071_v4, 4  ;;  %v10053_v6 = vsel %vm14300_vm13, %v10048_v28, %v10052_v52  ;;  %v10098_v50 = vshll.u32 %v18589_v41, 16  ;;  %v12409_v25 = vcombine.low %v19725_v43, %v17996_v53  ;;  %v19729_v34 = vld [vmem:[#allocation19_spill] sm:$0xff]  ;;  %v19731_v53 = vld [vmem:[#allocation20_spill] sm:$0xff]  ;;  %v19733_v4 = vld [vmem:[#allocation13_spill] sm:$0xff] }
 0x4e9   : > { %v12389_v14 = vcombine.low %v10043_v49, %v10053_v6  ;;  %v10086_v17 = vrot.slane %v10085_v39, 4  ;;  %v10095_v1 = vor.u32 %v10094_v60, %v10090_v22  ;;  %v10917_v61 = vsel %vm1488_vm0, %v18439_v20, 0  ;;  %v19737_v28 = vld [vmem:[#allocation14_spill] sm:$0xff] }
 0x4ea   : > { %13428 = vmatmul.mubr.msk.bf16.gmra.mrb[84].mxu1 %vm1439_vm12, %v12387_v15  ;;  %v10077_v58 = vsel %vm14300_vm13, %v10072_v38, %v10076_v57  ;;  %v10100_v21 = vrot.slane %v10098_v50, 5  ;;  %v12411_v59 = vcombine.low %v19729_v34, %v19728_v40  ;;  %v12412_v54 = vcombine.low %v19731_v53, %v19730_v44  ;;  %v10663_v34 = vld [vmem:[#allocation2 + $0x48] sm:$0xe] }
 0x4eb   : > { %13431 = vmatprep.mubr.msk.bf16.mxu1 %vm1439_vm12, %v12388_v0  ;;  %v12390_v5 = vcombine.low %v10067_v16, %v10077_v58  ;;  %v10091_v32 = vsel %vm14300_vm13, %v10086_v17, %v10090_v22  ;;  %v10096_v47 = vrot.slane %v10095_v1, 4  ;;  %v19726_v0 = vld [vmem:[#allocation4_spill] sm:$0xff]  ;;  %v12413_v52 = vcombine.low %v19733_v4, %v19732_v23  ;;  %v19739_v22 = vld [vmem:[#allocation18_spill] sm:$0xff] }
 0x4ec   : > { %v12410_v24 = vcombine.low %v19727_v7, %v19726_v0  ;;  %v19734_v20 = vcombine.low %v18150_v45, %v18162_v13  ;;  %v19735_v49 = vcombine.low %v18185_v8, %v18197_v48  ;;  %v19736_v57 = vcombine.low %v18219_v35, %v18240_v9  ;;  %v19741_v45 = vld [vmem:[#allocation21_spill] sm:$0xff]  ;;  %v14128_v9 = vld [vmem:[#allocation2 + $0x1c] sm:$0xf] }
 0x4ed   : > { %v10101_v15 = vsel %vm14300_vm13, %v10096_v47, %v10100_v21  ;;  %v19738_v39 = vcombine.low %v19737_v28, %v18258_v46  ;;  %v19740_v13 = vcombine.low %v19739_v22, %v18307_v36  ;;  %v19742_v8 = vcombine.low %v19741_v45, %v18326_v33  ;;  %v10659_v36 = vld [vmem:[#allocation2 + $0x18] sm:$0xe]  ;;  %v19746_v33 = vld [vmem:[#allocation5_spill] sm:$0xff] }
 0x4ee   : > { %v12391_v41 = vcombine.low %v10091_v32, %v10101_v15  ;;  %v19743_v48 = vcombine.low %v18328_v2, %v18346_v27  ;;  %v19744_v35 = vcombine.low %v18330_v55, %v18348_v31  ;;  %v10709_v46 = vrot.slane %v14128_v9, 5  ;;  %v19755_v45 = vld [vmem:[#allocation9_spill] sm:$0xff] }
 0x4ef   : > { %v19745_v60 = vcombine.low %v18333_v26, %v18360_v12  ;;  %v10712_v16 = vrot.slane %v19746_v33, 5  ;;  %v19747_v2 = vcombine.low %v18335_v42, %v18362_v63  ;;  %v12441_v27 = vrot.slane %v10659_v36, 9  ;;  %v10660_v12 = vld [vmem:[#allocation2 + $0x24] sm:$0xe]  ;;  %v19750_v42 = vld [vmem:[#allocation15_spill] sm:$0xff] }
 0x4f0   : > { %v10711_v38 = vrot.slane %v10709_v46, 4  ;;  %v10716_v31 = vrot.slane %v19726_v0, 5  ;;  %v10723_v26 = vrot.slane %v19728_v40, 5  ;;  %v19749_v63 = vcombine.low %v18383_v19, %v18369_v11  ;;  %v10662_v0 = vld [vmem:[#allocation2 + $0x3c] sm:$0xe]  ;;  %v19760_v33 = vld [vmem:[#allocation25_spill] sm:$0xff] }
 0x4f1   : > { %v10710_v6 = vsel %vm14997_vm1, %v12441_v27, %v10709_v46  ;;  %v10726_v17 = vrot.slane %v19750_v42, 5  ;;  %v12442_v1 = vrot.slane %v10660_v12, 9  ;;  %v10730_v19 = vrot.slane %v19730_v44, 5  ;;  %v19758_v46 = vld [vmem:[#allocation24_spill] sm:$0xff] }
 0x4f2   : > { %13432 = vmatmul.mubr.msk.bf16.gmra.mrb[88].mxu1 %vm1439_vm12, %v12389_v14  ;;  %v10713_v55 = vsel %vm14997_vm1, %v10711_v38, %v10712_v16  ;;  %v19748_v14 = vld [vmem:[#allocation12_spill] sm:$0xff]  ;;  %v10718_v21 = vrot.slane %v10716_v31, 4  ;;  %v10725_v47 = vrot.slane %v10723_v26, 4  ;;  %v10737_v7 = vrot.slane %v19732_v23, 5  ;;  %v19761_v16 = vld [vmem:[#allocation6_spill] sm:$0xff] }
 0x4f3   : > { %13435 = vmatprep.mubr.msk.bf16.mxu1 %vm1439_vm12, %v12390_v5  ;;  %v12457_v50 = vcombine.low %v10710_v6, %v10713_v55  ;;  %v10719_v58 = vrot.slane %v19748_v14, 5  ;;  %v10661_v5 = vld [vmem:[#allocation2 + $0x30] sm:$0xe]  ;;  %v10717_v43 = vsel %vm14997_vm1, %v12442_v1, %v10716_v31  ;;  %v10732_v4 = vrot.slane %v10730_v19, 4 }
 0x4f4   : > { %v12443_v32 = vrot.slane %v10661_v5, 9  ;;  %v12445_v44 = vrot.slane %v10663_v34, 9  ;;  %v19753_v22 = vcombine.low %v18489_v62, %v18498_v3  ;;  %v19757_v3 = vld [vmem:[#allocation10_spill] sm:$0xff] }
 0x4f5   : > { %v10720_v15 = vsel %vm14997_vm1, %v10718_v21, %v10719_v58  ;;  %v19759_v36 = vcombine.low %v19757_v3, %v19758_v46  ;;  %v19763_v21 = vld [vmem:[#allocation7_spill] sm:$0xff] }
 0x4f6   : > { %v12458_v11 = vcombine.low %v10717_v43, %v10720_v15  ;;  %v10738_v28 = vsel %vm14997_vm1, %v12445_v44, %v10737_v7  ;;  %v19767_v43 = vld [vmem:[#allocation30_spill] sm:$0xff] }
 0x4fa   : > { %13436 = vmatmul.mubr.msk.bf16.gmra.mrb[92].mxu1 %vm1439_vm12, %v12391_v41  ;;  %v10727_v41 = vsel %vm14997_vm1, %v10725_v47, %v10726_v17 }
 0x4fb   : > { %13441 = vmatprep.mubr.msk.bf16.mxu1 %vm1439_vm12, %v12409_v25  ;;  %v10724_v25 = vsel %vm14997_vm1, %v12443_v32, %v10723_v26  ;;  %v19764_v32 = vld [vmem:[#allocation29_spill] sm:$0xff] }
 0x4fc   : > { %v19765_v47 = vcombine.low %v19763_v21, %v19764_v32  ;;  %v19777_v21 = vcombine.low %v18638_v10, %v18642_v18 }
 0x502   : > { %13442 = vmatmul.mubr.msk.bf16.vlgmr.msra.gmra.mrb[64].mxu1 %vm1439_vm12, %v12410_v24  ;;  %v12459_v24 = vcombine.low %v10724_v25, %v10727_v41  ;;  %v19766_v41 = vld [vmem:[#allocation28_spill] sm:$0xff] }
 0x503   : > { %13474 = vmatpush3.bf16.msra.mxu1 %v10917_v61  ;;  %13445 = vmatprep.mubr.msk.bf16.mxu1 %vm1439_vm12, %v12411_v59  ;;  %v19751_v61 = vld [vmem:[#allocation23_spill] sm:$0xff]  ;;  %v19752_v59 = vld [vmem:[#allocation22_spill] sm:$0xff] }
 0x504   : > { %v10733_v40 = vrot.slane %v19751_v61, 5  ;;  %v10740_v53 = vrot.slane %v19752_v59, 5 }
 0x50a   : > { %13446 = vmatmul.mubr.msk.bf16.gmra.mrb[68].mxu1 %vm1439_vm12, %v12412_v54  ;;  %v12444_v54 = vrot.slane %v10662_v0, 9 }
 0x50b   : > { %13449 = vmatprep.mubr.msk.bf16.mxu1 %vm1439_vm12, %v12413_v52  ;;  %v10739_v52 = vrot.slane %v10737_v7, 4 }
 0x50d   : > { %v10741_v23 = vsel %vm14997_vm1, %v10739_v52, %v10740_v53 }
 0x512   : > { %13450 = vmatmul.mubr.msk.bf16.gmra.mrb[72].mxu1 %vm1439_vm12, %v19734_v20  ;;  %v10734_v20 = vsel %vm14997_vm1, %v10732_v4, %v10733_v40 }
 0x513   : > { %13453 = vmatprep.mubr.msk.bf16.mxu1 %vm1439_vm12, %v19735_v49  ;;  %v10731_v49 = vsel %vm14997_vm1, %v12444_v54, %v10730_v19  ;;  %v19768_v19 = vcombine.low %v19766_v41, %v19767_v43 }
 0x51a   : > { %13454 = vmatmul.mubr.msk.bf16.gmra.mrb[76].mxu1 %vm1439_vm12, %v19736_v57  ;;  %v12460_v57 = vcombine.low %v10731_v49, %v10734_v20  ;;  %v19770_v49 = vld [vmem:[#allocation33_spill] sm:$0xff] }
 0x51b   : > { %13457 = vmatprep.mubr.msk.bf16.mxu1 %vm1439_vm12, %v19738_v39  ;;  %v12461_v39 = vcombine.low %v10738_v28, %v10741_v23  ;;  %v19769_v23 = vld [vmem:[#allocation31_spill] sm:$0xff] }
 0x522   : > { %13458 = vmatmul.mubr.msk.bf16.gmra.mrb[80].mxu1 %vm1439_vm12, %v19740_v13  ;;  %v19754_v13 = vld [vmem:[#allocation8_spill] sm:$0xff] }
 0x523   : > { %13461 = vmatprep.mubr.msk.bf16.mxu1 %vm1439_vm12, %v19742_v8  ;;  %v19756_v8 = vcombine.low %v19754_v13, %v19755_v45 }
 0x52a   : > { %13462 = vmatmul.mubr.msk.bf16.gmra.mrb[84].mxu1 %vm1439_vm12, %v19743_v48 }
 0x52b   : > { %13465 = vmatprep.mubr.msk.bf16.mxu1 %vm1439_vm12, %v19744_v35 }
 0x532   : > { %13466 = vmatmul.mubr.msk.bf16.gmra.mrb[88].mxu1 %vm1439_vm12, %v19745_v60 }
 0x533   : > { %13469 = vmatprep.mubr.msk.bf16.mxu1 %vm1439_vm12, %v19747_v2  ;;  %v19762_v2 = vcombine.low %v19760_v33, %v19761_v16 }
 0x53a   : > { %13470 = vmatmul.mubr.msk.bf16.gmra.mrb[92].mxu1 %vm1439_vm12, %v19749_v63 }
 0x53b   : > { %13475 = vmatprep.mubr.msk.bf16.mxu1 %vm1439_vm12, %v12457_v50 }
 0x542   : > { %13476 = vmatmul.mubr.msk.bf16.vlgmr.msra.gmra.mrb[64].mxu1 %vm1439_vm12, %v12458_v11 }
 0x543   : > { %13479 = vmatprep.mubr.msk.bf16.mxu1 %vm1439_vm12, %v12459_v24 }
 0x54a   : > { %13480 = vmatmul.mubr.msk.bf16.gmra.mrb[68].mxu1 %vm1439_vm12, %v12460_v57  ;;  %v19771_v57 = vcombine.low %v19769_v23, %v19770_v49 }
 0x54b   : > { %13483 = vmatprep.mubr.msk.bf16.mxu1 %vm1439_vm12, %v12461_v39  ;;  %v19772_v39 = vld [vmem:[#allocation32_spill] sm:$0xff] }
 0x552   : > { %13484 = vmatmul.mubr.msk.bf16.gmra.mrb[72].mxu1 %vm1439_vm12, %v19753_v22  ;;  %v19773_v22 = vld [vmem:[#allocation34_spill] sm:$0xff] }
 0x553   : > { %13487 = vmatprep.mubr.msk.bf16.mxu1 %vm1439_vm12, %v19756_v8  ;;  %v13273_v48 = vpop.f32.mrb[32].mxu1  ;;  %v19774_v13 = vcombine.low %v19772_v39, %v19773_v22 }
 0x554   : > { %8096 = vst.msk [vmem:[#allocation3 + $0x10] sm:$0xff] %vm1439_vm12, %v13273_v48  ;;  %v7935_v37 = vpop.f32.mrb[33].mxu1 }
 0x555   : > { %8094 = vst.msk [vmem:[#allocation3] sm:$0xff] %vm1439_vm12, %v7935_v37  ;;  %v13274_v35 = vpop.f32.mrb[34].mxu1 }
 0x556   : > { %8097 = vst.msk [vmem:[#allocation3 + $0x18] sm:$0xff] %vm1439_vm12, %v13274_v35  ;;  %v7938_v9 = vpop.f32.mrb[35].mxu1 }
 0x557   : > { %8095 = vst.msk [vmem:[#allocation3 + $0x8] sm:$0xff] %vm1439_vm12, %v7938_v9 }
 0x558   : > { %v13375_v62 = vpop.f32.mrb[64].mxu0 }
 0x559   : > { %v9414_v60 = vpop.f32.mrb[65].mxu0 }
 0x55a   : > { %13488 = vmatmul.mubr.msk.bf16.gmra.mrb[76].mxu1 %vm1439_vm12, %v19759_v36  ;;  %v13376_v27 = vpop.f32.mrb[66].mxu0 }
 0x55b   : > { %13491 = vmatprep.mubr.msk.bf16.mxu1 %vm1439_vm12, %v19762_v2  ;;  %v9575_v38 = vld [vmem:[#allocation3 + $0x10] sm:$0xff]  ;;  %v9417_v55 = vpop.f32.mrb[67].mxu0  ;;  %v13277_v31 = vpop.f32.mrb[36].mxu1 }
 0x55c   : > { %v9607_v6 = vadd.f32 %v13375_v62, %v9575_v38  ;;  %v9573_v12 = vld [vmem:[#allocation3] sm:$0xff]  ;;  %8100 = vst.msk [vmem:[#allocation3 + $0x30] sm:$0xff] %vm1439_vm12, %v13277_v31  ;;  %v7951_v26 = vpop.f32.mrb[37].mxu1  ;;  %v19775_v38 = vcombine.low %v18607_v56, %v18611_v29  ;;  %v19776_v31 = vcombine.low %v18618_v30, %v18622_v51 }
 0x55d   : > { %v9605_v50 = vadd.f32 %v9573_v12, %v9414_v60  ;;  %v9576_v14 = vld [vmem:[#allocation3 + $0x18] sm:$0xff]  ;;  %8098 = vst.msk [vmem:[#allocation3 + $0x20] sm:$0xff] %vm1439_vm12, %v7951_v26  ;;  %v13278_v58 = vpop.f32.mrb[38].mxu1 }
 0x55e   : > { %9639 = vst.msk [vmem:[#allocation3 + $0x10] sm:$0xff] %vm1439_vm12, %v9607_v6  ;;  %v9608_v5 = vadd.f32 %v13376_v27, %v9576_v14  ;;  %v9574_v63 = vld [vmem:[#allocation3 + $0x8] sm:$0xff]  ;;  %8101 = vst.msk [vmem:[#allocation3 + $0x38] sm:$0xff] %vm1439_vm12, %v13278_v58  ;;  %v7954_v42 = vpop.f32.mrb[39].mxu1 }
 0x55f   : > { %9637 = vst.msk [vmem:[#allocation3] sm:$0xff] %vm1439_vm12, %v9605_v50  ;;  %v9606_v17 = vadd.f32 %v9574_v63, %v9417_v55  ;;  %8099 = vst.msk [vmem:[#allocation3 + $0x28] sm:$0xff] %vm1439_vm12, %v7954_v42 }
 0x560   : > { %9640 = vst.msk [vmem:[#allocation3 + $0x18] sm:$0xff] %vm1439_vm12, %v9608_v5  ;;  %v13379_v1 = vpop.f32.mrb[68].mxu0 }
 0x561   : > { %9638 = vst.msk [vmem:[#allocation3 + $0x8] sm:$0xff] %vm1439_vm12, %v9606_v17  ;;  %v9430_v15 = vpop.f32.mrb[69].mxu0 }
 0x562   : > { %13492 = vmatmul.mubr.msk.bf16.gmra.mrb[80].mxu1 %vm1439_vm12, %v19765_v47  ;;  %v13380_v11 = vpop.f32.mrb[70].mxu0 }
 0x563   : > { %13495 = vmatprep.mubr.msk.bf16.mxu1 %vm1439_vm12, %v19768_v19  ;;  %v9579_v25 = vld [vmem:[#allocation3 + $0x30] sm:$0xff]  ;;  %v9433_v0 = vpop.f32.mrb[71].mxu0  ;;  %v13281_v7 = vpop.f32.mrb[40].mxu1 }
 0x564   : > { %v9611_v24 = vadd.f32 %v13379_v1, %v9579_v25  ;;  %v9577_v61 = vld [vmem:[#allocation3 + $0x20] sm:$0xff]  ;;  %8104 = vst.msk [vmem:[#allocation3 + $0x50] sm:$0xff] %vm1439_vm12, %v13281_v7  ;;  %v7967_v40 = vpop.f32.mrb[41].mxu1 }
 0x565   : > { %v9609_v34 = vadd.f32 %v9577_v61, %v9430_v15  ;;  %v9580_v59 = vld [vmem:[#allocation3 + $0x38] sm:$0xff]  ;;  %8102 = vst.msk [vmem:[#allocation3 + $0x40] sm:$0xff] %vm1439_vm12, %v7967_v40  ;;  %v13282_v53 = vpop.f32.mrb[42].mxu1 }
 0x566   : > { %9643 = vst.msk [vmem:[#allocation3 + $0x30] sm:$0xff] %vm1439_vm12, %v9611_v24  ;;  %v9612_v54 = vadd.f32 %v13380_v11, %v9580_v59  ;;  %v9578_v4 = vld [vmem:[#allocation3 + $0x28] sm:$0xff]  ;;  %8105 = vst.msk [vmem:[#allocation3 + $0x58] sm:$0xff] %vm1439_vm12, %v13282_v53  ;;  %v7970_v44 = vpop.f32.mrb[43].mxu1 }
 0x567   : > { %9641 = vst.msk [vmem:[#allocation3 + $0x20] sm:$0xff] %vm1439_vm12, %v9609_v34  ;;  %v9610_v52 = vadd.f32 %v9578_v4, %v9433_v0  ;;  %8103 = vst.msk [vmem:[#allocation3 + $0x48] sm:$0xff] %vm1439_vm12, %v7970_v44 }
 0x568   : > { %9644 = vst.msk [vmem:[#allocation3 + $0x38] sm:$0xff] %vm1439_vm12, %v9612_v54  ;;  %v13383_v20 = vpop.f32.mrb[72].mxu0 }
 0x569   : > { %9642 = vst.msk [vmem:[#allocation3 + $0x28] sm:$0xff] %vm1439_vm12, %v9610_v52  ;;  %v9446_v28 = vpop.f32.mrb[73].mxu0 }
 0x56a   : > { %13496 = vmatmul.mubr.msk.bf16.gmra.mrb[84].mxu1 %vm1439_vm12, %v19771_v57  ;;  %v13384_v45 = vpop.f32.mrb[74].mxu0 }
 0x56b   : > { %13499 = vmatprep.mubr.msk.bf16.mxu1 %vm1439_vm12, %v19774_v13  ;;  %v9583_v8 = vld [vmem:[#allocation3 + $0x50] sm:$0xff]  ;;  %v9449_v48 = vpop.f32.mrb[75].mxu0  ;;  %v13285_v37 = vpop.f32.mrb[44].mxu1 }
 0x56c   : > { %v9615_v35 = vadd.f32 %v13383_v20, %v9583_v8  ;;  %v9581_v9 = vld [vmem:[#allocation3 + $0x40] sm:$0xff]  ;;  %8108 = vst.msk [vmem:[#allocation3 + $0x70] sm:$0xff] %vm1439_vm12, %v13285_v37  ;;  %v7983_v62 = vpop.f32.mrb[45].mxu1 }
 0x56d   : > { %v9613_v3 = vadd.f32 %v9581_v9, %v9446_v28  ;;  %v9584_v46 = vld [vmem:[#allocation3 + $0x58] sm:$0xff]  ;;  %8106 = vst.msk [vmem:[#allocation3 + $0x60] sm:$0xff] %vm1439_vm12, %v7983_v62  ;;  %v13286_v36 = vpop.f32.mrb[46].mxu1 }
 0x56e   : > { %9647 = vst.msk [vmem:[#allocation3 + $0x50] sm:$0xff] %vm1439_vm12, %v9615_v35  ;;  %v9616_v60 = vadd.f32 %v13384_v45, %v9584_v46  ;;  %v9582_v33 = vld [vmem:[#allocation3 + $0x48] sm:$0xff]  ;;  %8109 = vst.msk [vmem:[#allocation3 + $0x78] sm:$0xff] %vm1439_vm12, %v13286_v36  ;;  %v7986_v16 = vpop.f32.mrb[47].mxu1 }
 0x56f   : > { %9645 = vst.msk [vmem:[#allocation3 + $0x40] sm:$0xff] %vm1439_vm12, %v9613_v3  ;;  %v9614_v2 = vadd.f32 %v9582_v33, %v9449_v48  ;;  %8107 = vst.msk [vmem:[#allocation3 + $0x68] sm:$0xff] %vm1439_vm12, %v7986_v16 }
 0x570   : > { %9648 = vst.msk [vmem:[#allocation3 + $0x58] sm:$0xff] %vm1439_vm12, %v9616_v60  ;;  %v13387_v27 = vpop.f32.mrb[76].mxu0 }
 0x571   : > { %9646 = vst.msk [vmem:[#allocation3 + $0x48] sm:$0xff] %vm1439_vm12, %v9614_v2  ;;  %v9462_v55 = vpop.f32.mrb[77].mxu0 }
 0x572   : > { %13500 = vmatmul.mubr.msk.bf16.gmra.mrb[88].mxu1 %vm1439_vm12, %v19775_v38  ;;  %v13388_v6 = vpop.f32.mrb[78].mxu0 }
 0x573   : > { %13503 = vmatprep.mubr.msk.bf16.mxu1 %vm1439_vm12, %v19776_v31  ;;  %v9587_v12 = vld [vmem:[#allocation3 + $0x70] sm:$0xff]  ;;  %v9465_v26 = vpop.f32.mrb[79].mxu0  ;;  %v13289_v50 = vpop.f32.mrb[48].mxu1 }
 0x574   : > { %v9619_v14 = vadd.f32 %v13387_v27, %v9587_v12  ;;  %v9585_v58 = vld [vmem:[#allocation3 + $0x60] sm:$0xff]  ;;  %8112 = vst.msk [vmem:[#allocation3 + $0x90] sm:$0xff] %vm1439_vm12, %v13289_v50  ;;  %v7999_v5 = vpop.f32.mrb[49].mxu1 }
 0x575   : > { %v9617_v56 = vadd.f32 %v9585_v58, %v9462_v55  ;;  %v9588_v29 = vld [vmem:[#allocation3 + $0x78] sm:$0xff]  ;;  %8110 = vst.msk [vmem:[#allocation3 + $0x80] sm:$0xff] %vm1439_vm12, %v7999_v5  ;;  %v13290_v63 = vpop.f32.mrb[50].mxu1 }
 0x576   : > { %9651 = vst.msk [vmem:[#allocation3 + $0x70] sm:$0xff] %vm1439_vm12, %v9619_v14  ;;  %v9620_v42 = vadd.f32 %v13388_v6, %v9588_v29  ;;  %v9586_v51 = vld [vmem:[#allocation3 + $0x68] sm:$0xff]  ;;  %8113 = vst.msk [vmem:[#allocation3 + $0x98] sm:$0xff] %vm1439_vm12, %v13290_v63  ;;  %v8002_v30 = vpop.f32.mrb[51].mxu1 }
 0x577   : > { %9649 = vst.msk [vmem:[#allocation3 + $0x60] sm:$0xff] %vm1439_vm12, %v9617_v56  ;;  %v9618_v17 = vadd.f32 %v9586_v51, %v9465_v26  ;;  %8111 = vst.msk [vmem:[#allocation3 + $0x88] sm:$0xff] %vm1439_vm12, %v8002_v30  ;;  %v11114_v30 = vld [vmem:[#allocation3 + $0x10] sm:$0xff] }
 0x578   : > { %9652 = vst.msk [vmem:[#allocation3 + $0x78] sm:$0xff] %vm1439_vm12, %v9620_v42  ;;  %v13391_v1 = vpop.f32.mrb[80].mxu0 }
 0x579   : > { %9650 = vst.msk [vmem:[#allocation3 + $0x68] sm:$0xff] %vm1439_vm12, %v9618_v17  ;;  %v9478_v32 = vpop.f32.mrb[81].mxu0 }
 0x57a   : > { %13504 = vmatmul.mubr.msk.bf16.gmra.mrb[92].mxu1 %vm1439_vm12, %v19777_v21  ;;  %v13392_v47 = vpop.f32.mrb[82].mxu0  ;;  %v11112_v21 = vld [vmem:[#allocation3] sm:$0xff] }
 0x57b   : > { %v9591_v15 = vld [vmem:[#allocation3 + $0x90] sm:$0xff]  ;;  %v9481_v41 = vpop.f32.mrb[83].mxu0 }
 0x57c   : > { %v13293_v43 = vpop.f32.mrb[52].mxu1  ;;  %v9623_v19 = vadd.f32 %v13391_v1, %v9591_v15  ;;  %v9589_v11 = vld [vmem:[#allocation3 + $0x80] sm:$0xff]  ;;  %v11115_v15 = vld [vmem:[#allocation3 + $0x18] sm:$0xff] }
 0x57d   : > { %8116 = vst.msk [vmem:[#allocation3 + $0xb0] sm:$0xff] %vm1439_vm12, %v13293_v43  ;;  %v8015_v25 = vpop.f32.mrb[53].mxu1  ;;  %v9621_v0 = vadd.f32 %v9589_v11, %v9478_v32  ;;  %v9592_v7 = vld [vmem:[#allocation3 + $0x98] sm:$0xff] }
 0x57e   : > { %8114 = vst.msk [vmem:[#allocation3 + $0xa0] sm:$0xff] %vm1439_vm12, %v8015_v25  ;;  %v13294_v24 = vpop.f32.mrb[54].mxu1  ;;  %9655 = vst.msk [vmem:[#allocation3 + $0x90] sm:$0xff] %vm1439_vm12, %v9623_v19  ;;  %v9624_v10 = vadd.f32 %v13392_v47, %v9592_v7  ;;  %v9590_v18 = vld [vmem:[#allocation3 + $0x88] sm:$0xff] }
 0x57f   : > { %8117 = vst.msk [vmem:[#allocation3 + $0xb8] sm:$0xff] %vm1439_vm12, %v13294_v24  ;;  %v8018_v61 = vpop.f32.mrb[55].mxu1  ;;  %9653 = vst.msk [vmem:[#allocation3 + $0x80] sm:$0xff] %vm1439_vm12, %v9621_v0  ;;  %v9622_v40 = vadd.f32 %v9590_v18, %v9481_v41  ;;  %v11113_v19 = vld [vmem:[#allocation3 + $0x8] sm:$0xff]  ;;  %v11118_v0 = vld [vmem:[#allocation3 + $0x30] sm:$0xff] }
 0x580   : > { %8115 = vst.msk [vmem:[#allocation3 + $0xa8] sm:$0xff] %vm1439_vm12, %v8018_v61  ;;  %9656 = vst.msk [vmem:[#allocation3 + $0x98] sm:$0xff] %vm1439_vm12, %v9624_v10  ;;  %v11116_v10 = vld [vmem:[#allocation3 + $0x20] sm:$0xff] }
 0x581   : > { %v13395_v34 = vpop.f32.mrb[84].mxu0  ;;  %9654 = vst.msk [vmem:[#allocation3 + $0x88] sm:$0xff] %vm1439_vm12, %v9622_v40  ;;  %v11119_v40 = vld [vmem:[#allocation3 + $0x38] sm:$0xff] }
 0x582   : > { %v9494_v59 = vpop.f32.mrb[85].mxu0 }
 0x583   : > { %v13396_v53 = vpop.f32.mrb[86].mxu0 }
 0x584   : > { %v9595_v54 = vld [vmem:[#allocation3 + $0xb0] sm:$0xff]  ;;  %v9497_v4 = vpop.f32.mrb[87].mxu0 }
 0x585   : > { %v13297_v44 = vpop.f32.mrb[56].mxu1  ;;  %v9627_v52 = vadd.f32 %v13395_v34, %v9595_v54  ;;  %v9593_v20 = vld [vmem:[#allocation3 + $0xa0] sm:$0xff] }
 0x586   : > { %8120 = vst.msk [vmem:[#allocation3 + $0xd0] sm:$0xff] %vm1439_vm12, %v13297_v44  ;;  %v8031_v23 = vpop.f32.mrb[57].mxu1  ;;  %v9625_v49 = vadd.f32 %v9593_v20, %v9494_v59  ;;  %v9596_v57 = vld [vmem:[#allocation3 + $0xb8] sm:$0xff] }
 0x587   : > { %8118 = vst.msk [vmem:[#allocation3 + $0xc0] sm:$0xff] %vm1439_vm12, %v8031_v23  ;;  %v13298_v28 = vpop.f32.mrb[58].mxu1  ;;  %9659 = vst.msk [vmem:[#allocation3 + $0xb0] sm:$0xff] %vm1439_vm12, %v9627_v52  ;;  %v9628_v39 = vadd.f32 %v13396_v53, %v9596_v57  ;;  %v9594_v22 = vld [vmem:[#allocation3 + $0xa8] sm:$0xff] }
 0x588   : > { %8121 = vst.msk [vmem:[#allocation3 + $0xd8] sm:$0xff] %vm1439_vm12, %v13298_v28  ;;  %v8034_v13 = vpop.f32.mrb[59].mxu1  ;;  %9657 = vst.msk [vmem:[#allocation3 + $0xa0] sm:$0xff] %vm1439_vm12, %v9625_v49  ;;  %v9626_v45 = vadd.f32 %v9594_v22, %v9497_v4  ;;  %v11117_v4 = vld [vmem:[#allocation3 + $0x28] sm:$0xff] }
 0x589   : > { %8119 = vst.msk [vmem:[#allocation3 + $0xc8] sm:$0xff] %vm1439_vm12, %v8034_v13  ;;  %9660 = vst.msk [vmem:[#allocation3 + $0xb8] sm:$0xff] %vm1439_vm12, %v9628_v39  ;;  %v13399_v8 = vpop.f32.mrb[88].mxu0 }
 0x58a   : > { %9658 = vst.msk [vmem:[#allocation3 + $0xa8] sm:$0xff] %vm1439_vm12, %v9626_v45  ;;  %v9510_v48 = vpop.f32.mrb[89].mxu0 }
 0x58b   : > { %v13400_v37 = vpop.f32.mrb[90].mxu0 }
 0x58c   : > { %v9513_v9 = vpop.f32.mrb[91].mxu0 }
 0x58d   : > { %v9599_v35 = vld [vmem:[#allocation3 + $0xd0] sm:$0xff]  ;;  %v13301_v62 = vpop.f32.mrb[60].mxu1 }
 0x58e   : > { %v9631_v3 = vadd.f32 %v13399_v8, %v9599_v35  ;;  %v9597_v46 = vld [vmem:[#allocation3 + $0xc0] sm:$0xff]  ;;  %8124 = vst.msk [vmem:[#allocation3 + $0xf0] sm:$0xff] %vm1439_vm12, %v13301_v62  ;;  %v8047_v36 = vpop.f32.mrb[61].mxu1  ;;  %v11122_v35 = vld [vmem:[#allocation3 + $0x50] sm:$0xff] }
 0x58f   : > { %v9629_v60 = vadd.f32 %v9597_v46, %v9510_v48  ;;  %v9600_v33 = vld [vmem:[#allocation3 + $0xd8] sm:$0xff]  ;;  %8122 = vst.msk [vmem:[#allocation3 + $0xe0] sm:$0xff] %vm1439_vm12, %v8047_v36  ;;  %v13302_v16 = vpop.f32.mrb[62].mxu1  ;;  %v11120_v36 = vld [vmem:[#allocation3 + $0x40] sm:$0xff] }
 0x590   : > { %9663 = vst.msk [vmem:[#allocation3 + $0xd0] sm:$0xff] %vm1439_vm12, %v9631_v3  ;;  %v9632_v2 = vadd.f32 %v13400_v37, %v9600_v33  ;;  %v9598_v27 = vld [vmem:[#allocation3 + $0xc8] sm:$0xff]  ;;  %8125 = vst.msk [vmem:[#allocation3 + $0xf8] sm:$0xff] %vm1439_vm12, %v13302_v16  ;;  %v8050_v38 = vpop.f32.mrb[63].mxu1 }
 0x591   : > { %9661 = vst.msk [vmem:[#allocation3 + $0xc0] sm:$0xff] %vm1439_vm12, %v9629_v60  ;;  %v9630_v55 = vadd.f32 %v9598_v27, %v9513_v9  ;;  %8123 = vst.msk [vmem:[#allocation3 + $0xe8] sm:$0xff] %vm1439_vm12, %v8050_v38  ;;  %v13403_v31 = vpop.f32.mrb[92].mxu0  ;;  %v11123_v27 = vld [vmem:[#allocation3 + $0x58] sm:$0xff] }
 0x592   : > { %9664 = vst.msk [vmem:[#allocation3 + $0xd8] sm:$0xff] %vm1439_vm12, %v9632_v2  ;;  %v9526_v6 = vpop.f32.mrb[93].mxu0 }
 0x593   : > { %9662 = vst.msk [vmem:[#allocation3 + $0xc8] sm:$0xff] %vm1439_vm12, %v9630_v55  ;;  %v13404_v12 = vpop.f32.mrb[94].mxu0 }
 0x594   : > { %v9529_v50 = vpop.f32.mrb[95].mxu0 }
 0x595   : > { %v9603_v26 = vld [vmem:[#allocation3 + $0xf0] sm:$0xff] }
 0x596   : > { %v9635_v14 = vadd.f32 %v13403_v31, %v9603_v26  ;;  %v9601_v58 = vld [vmem:[#allocation3 + $0xe0] sm:$0xff] }
 0x597   : > { %v9633_v5 = vadd.f32 %v9601_v58, %v9526_v6  ;;  %v9604_v56 = vld [vmem:[#allocation3 + $0xf8] sm:$0xff] }
 0x598   : > { %9667 = vst.msk [vmem:[#allocation3 + $0xf0] sm:$0xff] %vm1439_vm12, %v9635_v14  ;;  %v9636_v29 = vadd.f32 %v13404_v12, %v9604_v56  ;;  %v9602_v63 = vld [vmem:[#allocation3 + $0xe8] sm:$0xff] }
 0x599   : > { %9665 = vst.msk [vmem:[#allocation3 + $0xe0] sm:$0xff] %vm1439_vm12, %v9633_v5  ;;  %v9634_v42 = vadd.f32 %v9602_v63, %v9529_v50  ;;  %v11121_v50 = vld [vmem:[#allocation3 + $0x48] sm:$0xff] }
 0x59a   : > { %9668 = vst.msk [vmem:[#allocation3 + $0xf8] sm:$0xff] %vm1439_vm12, %v9636_v29 }
 0x59b   : > { %9666 = vst.msk [vmem:[#allocation3 + $0xe8] sm:$0xff] %vm1439_vm12, %v9634_v42 }
 0x615   : > { %v13477_v51 = vpop.f32.mrb[64].mxu1 }
 0x616   : > { %v11146_v17 = vadd.f32 %v13477_v51, %v11114_v30  ;;  %v10953_v1 = vpop.f32.mrb[65].mxu1 }
 0x617   : > { %v11144_v32 = vadd.f32 %v11112_v21, %v10953_v1  ;;  %v13478_v47 = vpop.f32.mrb[66].mxu1 }
 0x618   : > { %11178 = vst.msk [vmem:[#allocation3 + $0x10] sm:$0xff] %vm1439_vm12, %v11146_v17  ;;  %v11147_v41 = vadd.f32 %v13478_v47, %v11115_v15  ;;  %v10956_v43 = vpop.f32.mrb[67].mxu1 }
 0x619   : > { %11176 = vst.msk [vmem:[#allocation3] sm:$0xff] %vm1439_vm12, %v11144_v32  ;;  %v11145_v11 = vadd.f32 %v11113_v19, %v10956_v43 }
 0x61a   : > { %11179 = vst.msk [vmem:[#allocation3 + $0x18] sm:$0xff] %vm1439_vm12, %v11147_v41 }
 0x61b   : > { %11177 = vst.msk [vmem:[#allocation3 + $0x8] sm:$0xff] %vm1439_vm12, %v11145_v11  ;;  %v11126_v11 = vld [vmem:[#allocation3 + $0x70] sm:$0xff] }
 0x61d   : > { %v13481_v25 = vpop.f32.mrb[68].mxu1 }
 0x61e   : > { %v11150_v7 = vadd.f32 %v13481_v25, %v11118_v0  ;;  %v10969_v24 = vpop.f32.mrb[69].mxu1 }
 0x61f   : > { %v11148_v18 = vadd.f32 %v11116_v10, %v10969_v24  ;;  %v13482_v61 = vpop.f32.mrb[70].mxu1  ;;  %v18920_v34 = vld [vmem:[#allocation3 + $0x10] sm:$0xff]  ;;  %v11124_v10 = vld [vmem:[#allocation3 + $0x60] sm:$0xff] }
 0x620   : > { %v18922_v59 = vld [vmem:[#allocation3] sm:$0xff]  ;;  %11182 = vst.msk [vmem:[#allocation3 + $0x30] sm:$0xff] %vm1439_vm12, %v11150_v7  ;;  %v11151_v53 = vadd.f32 %v13482_v61, %v11119_v40  ;;  %v10972_v54 = vpop.f32.mrb[71].mxu1  ;;  %v11312_v49 = vmul.f32 %v18920_v34, %v18920_v34  ;;  %v11243_v45 = vsel %vm1439_vm12, %v18920_v34, 0.0 }
 0x621   : > { %v11310_v44 = vmul.f32 %v18922_v59, %v18922_v59  ;;  %v18927_v52 = vld [vmem:[#allocation3 + $0x18] sm:$0xff]  ;;  %11180 = vst.msk [vmem:[#allocation3 + $0x20] sm:$0xff] %vm1439_vm12, %v11148_v18  ;;  %v11149_v20 = vadd.f32 %v11117_v4, %v10972_v54  ;;  %v11240_v57 = vsel %vm1439_vm12, %v18922_v59, 0.0 }
 0x622   : > { %v18930_v23 = vld [vmem:[#allocation3 + $0x8] sm:$0xff]  ;;  %11183 = vst.msk [vmem:[#allocation3 + $0x38] sm:$0xff] %vm1439_vm12, %v11151_v53  ;;  %v11313_v22 = vmul.f32 %v18927_v52, %v18927_v52  ;;  %v11345_v60 = vsel %vm1439_vm12, %v11312_v49, 0.0  ;;  %v11245_v33 = vsel %vm1439_vm12, %v18927_v52, 0.0  ;;  %v11127_v49 = vld [vmem:[#allocation3 + $0x78] sm:$0xff] }
 0x623   : > { %v11241_v28 = vsel %vm1439_vm12, %v18930_v23, 0.0  ;;  %v11311_v39 = vmul.f32 %v18930_v23, %v18930_v23  ;;  %11181 = vst.msk [vmem:[#allocation3 + $0x28] sm:$0xff] %vm1439_vm12, %v11149_v20  ;;  %v11342_v8 = vsel %vm1439_vm12, %v11310_v44, 0.0 }
 0x624   : > { %v11242_v13 = vadd.f32 %v11241_v28, %v11240_v57  ;;  %v11347_v38 = vsel %vm1439_vm12, %v11313_v22, 0.0  ;;  %v11125_v28 = vld [vmem:[#allocation3 + $0x68] sm:$0xff] }
 0x625   : > { %v11343_v48 = vsel %vm1439_vm12, %v11311_v39, 0.0  ;;  %v13485_v37 = vpop.f32.mrb[72].mxu1 }
 0x626   : > { %v11244_v9 = vadd.f32 %v11243_v45, %v11242_v13  ;;  %v11344_v62 = vadd.f32 %v11343_v48, %v11342_v8  ;;  %v11154_v3 = vadd.f32 %v13485_v37, %v11122_v35  ;;  %v10985_v46 = vpop.f32.mrb[73].mxu1 }
 0x627   : > { %v11152_v16 = vadd.f32 %v11120_v36, %v10985_v46  ;;  %v13486_v2 = vpop.f32.mrb[74].mxu1  ;;  %v18952_v31 = vld [vmem:[#allocation3 + $0x30] sm:$0xff] }
 0x628   : > { %v11346_v55 = vadd.f32 %v11345_v60, %v11344_v62  ;;  %v18954_v6 = vld [vmem:[#allocation3 + $0x20] sm:$0xff]  ;;  %v11246_v12 = vadd.f32 %v11245_v33, %v11244_v9  ;;  %11186 = vst.msk [vmem:[#allocation3 + $0x50] sm:$0xff] %vm1439_vm12, %v11154_v3  ;;  %v10988_v26 = vpop.f32.mrb[75].mxu1  ;;  %v11155_v56 = vadd.f32 %v13486_v2, %v11123_v27  ;;  %v11316_v30 = vmul.f32 %v18952_v31, %v18952_v31  ;;  %v11130_v27 = vld [vmem:[#allocation3 + $0x90] sm:$0xff] }
 0x629   : > { %v11247_v14 = vsel %vm1439_vm12, %v18954_v6, 0.0  ;;  %v11314_v58 = vmul.f32 %v18954_v6, %v18954_v6  ;;  %v18961_v5 = vld [vmem:[#allocation3 + $0x38] sm:$0xff]  ;;  %11184 = vst.msk [vmem:[#allocation3 + $0x40] sm:$0xff] %vm1439_vm12, %v11152_v16  ;;  %v11153_v29 = vadd.f32 %v11121_v50, %v10988_v26  ;;  %v11251_v41 = vsel %vm1439_vm12, %v18952_v31, 0.0 }
 0x62a   : > { %v11248_v63 = vadd.f32 %v11247_v14, %v11246_v12  ;;  %v11348_v42 = vadd.f32 %v11347_v38, %v11346_v55  ;;  %v18964_v51 = vld [vmem:[#allocation3 + $0x28] sm:$0xff]  ;;  %11187 = vst.msk [vmem:[#allocation3 + $0x58] sm:$0xff] %vm1439_vm12, %v11155_v56  ;;  %v11317_v47 = vmul.f32 %v18961_v5, %v18961_v5  ;;  %v11353_v18 = vsel %vm1439_vm12, %v11316_v30, 0.0  ;;  %v11128_v14 = vld [vmem:[#allocation3 + $0x80] sm:$0xff] }
 0x62b   : > { %v11349_v17 = vsel %vm1439_vm12, %v11314_v58, 0.0  ;;  %v11249_v1 = vsel %vm1439_vm12, %v18964_v51, 0.0  ;;  %v11315_v21 = vmul.f32 %v18964_v51, %v18964_v51  ;;  %11185 = vst.msk [vmem:[#allocation3 + $0x48] sm:$0xff] %vm1439_vm12, %v11153_v29  ;;  %v11253_v61 = vsel %vm1439_vm12, %v18961_v5, 0.0 }
 0x62c   : > { %v11350_v32 = vadd.f32 %v11349_v17, %v11348_v42  ;;  %v11250_v15 = vadd.f32 %v11249_v1, %v11248_v63  ;;  %v11355_v54 = vsel %vm1439_vm12, %v11317_v47, 0.0  ;;  %v11131_v42 = vld [vmem:[#allocation3 + $0x98] sm:$0xff]  ;;  %v11129_v47 = vld [vmem:[#allocation3 + $0x88] sm:$0xff] }
 0x62d   : > { %v11351_v43 = vsel %vm1439_vm12, %v11315_v21, 0.0  ;;  %v13489_v19 = vpop.f32.mrb[76].mxu1 }
 0x62e   : > { %v11252_v25 = vadd.f32 %v11251_v41, %v11250_v15  ;;  %v11352_v0 = vadd.f32 %v11351_v43, %v11350_v32  ;;  %v11158_v7 = vadd.f32 %v13489_v19, %v11126_v11  ;;  %v11001_v24 = vpop.f32.mrb[77].mxu1 }
 0x62f   : > { %v11156_v40 = vadd.f32 %v11124_v10, %v11001_v24  ;;  %v13490_v53 = vpop.f32.mrb[78].mxu1  ;;  %v18987_v39 = vld [vmem:[#allocation3 + $0x50] sm:$0xff] }
 0x630   : > { %v11354_v4 = vadd.f32 %v11353_v18, %v11352_v0  ;;  %v18984_v44 = vld [vmem:[#allocation3 + $0x40] sm:$0xff]  ;;  %v11254_v20 = vadd.f32 %v11253_v61, %v11252_v25  ;;  %11190 = vst.msk [vmem:[#allocation3 + $0x70] sm:$0xff] %vm1439_vm12, %v11158_v7  ;;  %v11004_v57 = vpop.f32.mrb[79].mxu1  ;;  %v11159_v45 = vadd.f32 %v13490_v53, %v11127_v49  ;;  %v11320_v46 = vmul.f32 %v18987_v39, %v18987_v39  ;;  %v11134_v49 = vld [vmem:[#allocation3 + $0xb0] sm:$0xff] }
 0x631   : > { %v11255_v22 = vsel %vm1439_vm12, %v18984_v44, 0.0  ;;  %v11318_v13 = vmul.f32 %v18984_v44, %v18984_v44  ;;  %11188 = vst.msk [vmem:[#allocation3 + $0x60] sm:$0xff] %vm1439_vm12, %v11156_v40  ;;  %v11157_v8 = vadd.f32 %v11125_v28, %v11004_v57  ;;  %v18997_v62 = vld [vmem:[#allocation3 + $0x58] sm:$0xff]  ;;  %v11259_v16 = vsel %vm1439_vm12, %v18987_v39, 0.0 }
 0x632   : > { %v11256_v48 = vadd.f32 %v11255_v22, %v11254_v20  ;;  %v11356_v37 = vadd.f32 %v11355_v54, %v11354_v4  ;;  %v18994_v35 = vld [vmem:[#allocation3 + $0x48] sm:$0xff]  ;;  %11191 = vst.msk [vmem:[#allocation3 + $0x78] sm:$0xff] %vm1439_vm12, %v11159_v45  ;;  %v11321_v38 = vmul.f32 %v18997_v62, %v18997_v62  ;;  %v11261_v58 = vsel %vm1439_vm12, %v18997_v62, 0.0 }
 0x633   : > { %v11357_v9 = vsel %vm1439_vm12, %v11318_v13, 0.0  ;;  %v11257_v3 = vsel %vm1439_vm12, %v18994_v35, 0.0  ;;  %11189 = vst.msk [vmem:[#allocation3 + $0x68] sm:$0xff] %vm1439_vm12, %v11157_v8  ;;  %v11319_v33 = vmul.f32 %v18994_v35, %v18994_v35  ;;  %v11361_v30 = vsel %vm1439_vm12, %v11320_v46, 0.0  ;;  %v11132_v8 = vld [vmem:[#allocation3 + $0xa0] sm:$0xff]  ;;  %v11135_v46 = vld [vmem:[#allocation3 + $0xb8] sm:$0xff] }
 0x634   : > { %v11358_v36 = vadd.f32 %v11357_v9, %v11356_v37  ;;  %v11258_v60 = vadd.f32 %v11257_v3, %v11256_v48  ;;  %v11363_v25 = vsel %vm1439_vm12, %v11321_v38, 0.0 }
 0x635   : > { %v13493_v2 = vpop.f32.mrb[80].mxu1  ;;  %v11359_v12 = vsel %vm1439_vm12, %v11319_v33, 0.0 }
 0x636   : > { %v11260_v55 = vadd.f32 %v11259_v16, %v11258_v60  ;;  %v11162_v26 = vadd.f32 %v13493_v2, %v11130_v27  ;;  %v11017_v50 = vpop.f32.mrb[81].mxu1  ;;  %v11360_v56 = vadd.f32 %v11359_v12, %v11358_v36 }
 0x637   : > { %v11160_v29 = vadd.f32 %v11128_v14, %v11017_v50  ;;  %v13494_v63 = vpop.f32.mrb[82].mxu1  ;;  %v19018_v41 = vld [vmem:[#allocation3 + $0x70] sm:$0xff]  ;;  %v11133_v50 = vld [vmem:[#allocation3 + $0xa8] sm:$0xff] }
 0x638   : > { %v19015_v17 = vld [vmem:[#allocation3 + $0x60] sm:$0xff]  ;;  %v11262_v1 = vadd.f32 %v11261_v58, %v11260_v55  ;;  %11194 = vst.msk [vmem:[#allocation3 + $0x90] sm:$0xff] %vm1439_vm12, %v11162_v26  ;;  %v11163_v21 = vadd.f32 %v13494_v63, %v11131_v42  ;;  %v11020_v32 = vpop.f32.mrb[83].mxu1  ;;  %v11362_v15 = vadd.f32 %v11361_v30, %v11360_v56  ;;  %v11324_v61 = vmul.f32 %v19018_v41, %v19018_v41 }
 0x639   : > { %v11263_v43 = vsel %vm1439_vm12, %v19015_v17, 0.0  ;;  %v11322_v19 = vmul.f32 %v19015_v17, %v19015_v17  ;;  %11192 = vst.msk [vmem:[#allocation3 + $0x80] sm:$0xff] %vm1439_vm12, %v11160_v29  ;;  %v11161_v11 = vadd.f32 %v11129_v47, %v11020_v32  ;;  %v19030_v18 = vld [vmem:[#allocation3 + $0x78] sm:$0xff]  ;;  %v11267_v57 = vsel %vm1439_vm12, %v19018_v41, 0.0 }
 0x63a   : > { %v11264_v0 = vadd.f32 %v11263_v43, %v11262_v1  ;;  %v19026_v7 = vld [vmem:[#allocation3 + $0x68] sm:$0xff]  ;;  %11195 = vst.msk [vmem:[#allocation3 + $0x98] sm:$0xff] %vm1439_vm12, %v11163_v21  ;;  %v11364_v24 = vadd.f32 %v11363_v25, %v11362_v15  ;;  %v11325_v28 = vmul.f32 %v19030_v18, %v19030_v18  ;;  %v11369_v36 = vsel %vm1439_vm12, %v11324_v61, 0.0  ;;  %v11136_v61 = vld [vmem:[#allocation3 + $0xc0] sm:$0xff] }
 0x63b   : > { %v11365_v10 = vsel %vm1439_vm12, %v11322_v19, 0.0  ;;  %11193 = vst.msk [vmem:[#allocation3 + $0x88] sm:$0xff] %vm1439_vm12, %v11161_v11  ;;  %v11265_v40 = vsel %vm1439_vm12, %v19026_v7, 0.0  ;;  %v11323_v53 = vmul.f32 %v19026_v7, %v19026_v7  ;;  %v11269_v60 = vsel %vm1439_vm12, %v19030_v18, 0.0  ;;  %v11138_v19 = vld [vmem:[#allocation3 + $0xd0] sm:$0xff] }
 0x63c   : > { %v11366_v54 = vadd.f32 %v11365_v10, %v11364_v24  ;;  %v11266_v4 = vadd.f32 %v11265_v40, %v11264_v0  ;;  %v11371_v14 = vsel %vm1439_vm12, %v11325_v28, 0.0 }
 0x63d   : > { %v13497_v20 = vpop.f32.mrb[84].mxu1  ;;  %v11367_v22 = vsel %vm1439_vm12, %v11323_v53, 0.0 }
 0x63e   : > { %v11166_v13 = vadd.f32 %v13497_v20, %v11134_v49  ;;  %v11033_v45 = vpop.f32.mrb[85].mxu1  ;;  %v11268_v48 = vadd.f32 %v11267_v57, %v11266_v4  ;;  %v11368_v37 = vadd.f32 %v11367_v22, %v11366_v54  ;;  %v11139_v20 = vld [vmem:[#allocation3 + $0xd8] sm:$0xff] }
 0x63f   : > { %v11164_v9 = vadd.f32 %v11132_v8, %v11033_v45  ;;  %v13498_v3 = vpop.f32.mrb[86].mxu1  ;;  %v19050_v38 = vld [vmem:[#allocation3 + $0x90] sm:$0xff] }
 0x640   : > { %v19047_v33 = vld [vmem:[#allocation3 + $0x80] sm:$0xff]  ;;  %11198 = vst.msk [vmem:[#allocation3 + $0xb0] sm:$0xff] %vm1439_vm12, %v11166_v13  ;;  %v11167_v16 = vadd.f32 %v13498_v3, %v11135_v46  ;;  %v11036_v2 = vpop.f32.mrb[87].mxu1  ;;  %v11370_v27 = vadd.f32 %v11369_v36, %v11368_v37  ;;  %v11270_v55 = vadd.f32 %v11269_v60, %v11268_v48  ;;  %v11328_v21 = vmul.f32 %v19050_v38, %v19050_v38  ;;  %v11137_v3 = vld [vmem:[#allocation3 + $0xc8] sm:$0xff] }
 0x641   : > { %v11271_v12 = vsel %vm1439_vm12, %v19047_v33, 0.0  ;;  %v11326_v26 = vmul.f32 %v19047_v33, %v19047_v33  ;;  %11196 = vst.msk [vmem:[#allocation3 + $0xa0] sm:$0xff] %vm1439_vm12, %v11164_v9  ;;  %v11165_v56 = vadd.f32 %v11133_v50, %v11036_v2  ;;  %v19062_v30 = vld [vmem:[#allocation3 + $0x98] sm:$0xff]  ;;  %v11275_v11 = vsel %vm1439_vm12, %v19050_v38, 0.0 }
 0x642   : > { %v19058_v58 = vld [vmem:[#allocation3 + $0x88] sm:$0xff]  ;;  %11199 = vst.msk [vmem:[#allocation3 + $0xb8] sm:$0xff] %vm1439_vm12, %v11167_v16  ;;  %v11272_v29 = vadd.f32 %v11271_v12, %v11270_v55  ;;  %v11372_v63 = vadd.f32 %v11371_v14, %v11370_v27  ;;  %v11329_v25 = vmul.f32 %v19062_v30, %v19062_v30  ;;  %v11377_v49 = vsel %vm1439_vm12, %v11328_v21, 0.0 }
 0x643   : > { %v11373_v42 = vsel %vm1439_vm12, %v11326_v26, 0.0  ;;  %v11273_v1 = vsel %vm1439_vm12, %v19058_v58, 0.0  ;;  %v11327_v32 = vmul.f32 %v19058_v58, %v19058_v58  ;;  %11197 = vst.msk [vmem:[#allocation3 + $0xa8] sm:$0xff] %vm1439_vm12, %v11165_v56  ;;  %v11277_v57 = vsel %vm1439_vm12, %v19062_v30, 0.0 }
 0x644   : > { %v11374_v47 = vadd.f32 %v11373_v42, %v11372_v63  ;;  %v11274_v15 = vadd.f32 %v11273_v1, %v11272_v29  ;;  %v11379_v46 = vsel %vm1439_vm12, %v11329_v25, 0.0  ;;  %v11142_v63 = vld [vmem:[#allocation3 + $0xf0] sm:$0xff] }
 0x645   : > { %v13501_v43 = vpop.f32.mrb[88].mxu1  ;;  %v11375_v0 = vsel %vm1439_vm12, %v11327_v32, 0.0 }
 0x646   : > { %v11170_v24 = vadd.f32 %v13501_v43, %v11138_v19  ;;  %v11049_v10 = vpop.f32.mrb[89].mxu1  ;;  %v11276_v40 = vadd.f32 %v11275_v11, %v11274_v15  ;;  %v11376_v53 = vadd.f32 %v11375_v0, %v11374_v47  ;;  %v11140_v15 = vld [vmem:[#allocation3 + $0xe0] sm:$0xff]  ;;  %v11143_v0 = vld [vmem:[#allocation3 + $0xf8] sm:$0xff] }
 0x647   : > { %v11168_v54 = vadd.f32 %v11136_v61, %v11049_v10  ;;  %v13502_v4 = vpop.f32.mrb[90].mxu1  ;;  %v19082_v8 = vld [vmem:[#allocation3 + $0xb0] sm:$0xff] }
 0x648   : > { %v19079_v28 = vld [vmem:[#allocation3 + $0xa0] sm:$0xff]  ;;  %11202 = vst.msk [vmem:[#allocation3 + $0xd0] sm:$0xff] %vm1439_vm12, %v11170_v24  ;;  %v11171_v22 = vadd.f32 %v13502_v4, %v11139_v20  ;;  %v11052_v13 = vpop.f32.mrb[91].mxu1  ;;  %v11378_v45 = vadd.f32 %v11377_v49, %v11376_v53  ;;  %v11278_v48 = vadd.f32 %v11277_v57, %v11276_v40  ;;  %v11332_v12 = vmul.f32 %v19082_v8, %v19082_v8 }
 0x649   : > { %v11279_v37 = vsel %vm1439_vm12, %v19079_v28, 0.0  ;;  %v11330_v9 = vmul.f32 %v19079_v28, %v19079_v28  ;;  %11200 = vst.msk [vmem:[#allocation3 + $0xc0] sm:$0xff] %vm1439_vm12, %v11168_v54  ;;  %v11169_v36 = vadd.f32 %v11137_v3, %v11052_v13  ;;  %v19092_v27 = vld [vmem:[#allocation3 + $0xb8] sm:$0xff]  ;;  %v11283_v42 = vsel %vm1439_vm12, %v19082_v8, 0.0 }
 0x64a   : > { %11203 = vst.msk [vmem:[#allocation3 + $0xd8] sm:$0xff] %vm1439_vm12, %v11171_v22  ;;  %v11280_v60 = vadd.f32 %v11279_v37, %v11278_v48  ;;  %v11380_v16 = vadd.f32 %v11379_v46, %v11378_v45  ;;  %v19094_v55 = vld [vmem:[#allocation3 + $0xa8] sm:$0xff]  ;;  %v11333_v1 = vmul.f32 %v19092_v27, %v19092_v27  ;;  %v11385_v24 = vsel %vm1439_vm12, %v11332_v12, 0.0 }
 0x64b   : > { %v11381_v2 = vsel %vm1439_vm12, %v11330_v9, 0.0  ;;  %v11281_v26 = vsel %vm1439_vm12, %v19094_v55, 0.0  ;;  %v11331_v50 = vmul.f32 %v19094_v55, %v19094_v55  ;;  %11201 = vst.msk [vmem:[#allocation3 + $0xc8] sm:$0xff] %vm1439_vm12, %v11169_v36  ;;  %v11285_v10 = vsel %vm1439_vm12, %v19092_v27, 0.0  ;;  %v11141_v22 = vld [vmem:[#allocation3 + $0xe8] sm:$0xff] }
 0x64c   : > { %v11382_v14 = vadd.f32 %v11381_v2, %v11380_v16  ;;  %v11282_v56 = vadd.f32 %v11281_v26, %v11280_v60  ;;  %v11387_v13 = vsel %vm1439_vm12, %v11333_v1, 0.0 }
 0x64d   : > { %v13505_v29 = vpop.f32.mrb[92].mxu1  ;;  %v11383_v21 = vsel %vm1439_vm12, %v11331_v50, 0.0 }
 0x64e   : > { %v11174_v32 = vadd.f32 %v13505_v29, %v11142_v63  ;;  %v11065_v47 = vpop.f32.mrb[93].mxu1  ;;  %v11284_v43 = vadd.f32 %v11283_v42, %v11282_v56  ;;  %v11384_v19 = vadd.f32 %v11383_v21, %v11382_v14 }
 0x64f   : > { %v11172_v11 = vadd.f32 %v11140_v15, %v11065_v47  ;;  %v13506_v25 = vpop.f32.mrb[94].mxu1  ;;  %v19114_v4 = vld [vmem:[#allocation3 + $0xd0] sm:$0xff] }
 0x650   : > { %v19111_v61 = vld [vmem:[#allocation3 + $0xc0] sm:$0xff]  ;;  %11206 = vst.msk [vmem:[#allocation3 + $0xf0] sm:$0xff] %vm1439_vm12, %v11174_v32  ;;  %v11175_v40 = vadd.f32 %v13506_v25, %v11143_v0  ;;  %v11068_v53 = vpop.f32.mrb[95].mxu1  ;;  %v11386_v54 = vadd.f32 %v11385_v24, %v11384_v19  ;;  %v11286_v20 = vadd.f32 %v11285_v10, %v11284_v43  ;;  %v11336_v36 = vmul.f32 %v19114_v4, %v19114_v4 }
 0x651   : > { %v11287_v49 = vsel %vm1439_vm12, %v19111_v61, 0.0  ;;  %v11334_v57 = vmul.f32 %v19111_v61, %v19111_v61  ;;  %11204 = vst.msk [vmem:[#allocation3 + $0xe0] sm:$0xff] %vm1439_vm12, %v11172_v11  ;;  %v11173_v45 = vadd.f32 %v11141_v22, %v11068_v53  ;;  %v19124_v3 = vld [vmem:[#allocation3 + $0xd8] sm:$0xff]  ;;  %v11291_v26 = vsel %vm1439_vm12, %v19114_v4, 0.0 }
 0x652   : > { %11207 = vst.msk [vmem:[#allocation3 + $0xf8] sm:$0xff] %vm1439_vm12, %v11175_v40  ;;  %v11288_v48 = vadd.f32 %v11287_v49, %v11286_v20  ;;  %v11388_v37 = vadd.f32 %v11387_v13, %v11386_v54  ;;  %v19126_v46 = vld [vmem:[#allocation3 + $0xc8] sm:$0xff]  ;;  %v11337_v50 = vmul.f32 %v19124_v3, %v19124_v3  ;;  %v11393_v63 = vsel %vm1439_vm12, %v11336_v36, 0.0 }
 0x653   : > { %v11389_v9 = vsel %vm1439_vm12, %v11334_v57, 0.0  ;;  %v11289_v60 = vsel %vm1439_vm12, %v19126_v46, 0.0  ;;  %v11335_v16 = vmul.f32 %v19126_v46, %v19126_v46  ;;  %11205 = vst.msk [vmem:[#allocation3 + $0xe8] sm:$0xff] %vm1439_vm12, %v11173_v45  ;;  %v11293_v42 = vsel %vm1439_vm12, %v19124_v3, 0.0 }
 0x654   : > { %v11390_v2 = vadd.f32 %v11389_v9, %v11388_v37  ;;  %v11290_v12 = vadd.f32 %v11289_v60, %v11288_v48  ;;  %v11395_v19 = vsel %vm1439_vm12, %v11337_v50, 0.0 }
 0x655   : > { %v11391_v14 = vsel %vm1439_vm12, %v11335_v16, 0.0 }
 0x656   : > { %v11292_v56 = vadd.f32 %v11291_v26, %v11290_v12  ;;  %v11392_v29 = vadd.f32 %v11391_v14, %v11390_v2 }
 0x657   : > { %v19145_v32 = vld [vmem:[#allocation3 + $0xf0] sm:$0xff] }
 0x658   : > { %v19143_v1 = vld [vmem:[#allocation3 + $0xe0] sm:$0xff]  ;;  %v11394_v21 = vadd.f32 %v11393_v63, %v11392_v29  ;;  %v11294_v47 = vadd.f32 %v11293_v42, %v11292_v56  ;;  %v11340_v40 = vmul.f32 %v19145_v32, %v19145_v32  ;;  %v11299_v57 = vsel %vm1439_vm12, %v19145_v32, 0.0 }
 0x659   : > { %v11295_v15 = vsel %vm1439_vm12, %v19143_v1, 0.0  ;;  %v11338_v43 = vmul.f32 %v19143_v1, %v19143_v1  ;;  %v19153_v24 = vld [vmem:[#allocation3 + $0xf8] sm:$0xff] }
 0x65a   : > { %v11296_v11 = vadd.f32 %v11295_v15, %v11294_v47  ;;  %v11396_v25 = vadd.f32 %v11395_v19, %v11394_v21  ;;  %v19155_v10 = vld [vmem:[#allocation3 + $0xe8] sm:$0xff]  ;;  %v11341_v22 = vmul.f32 %v19153_v24, %v19153_v24  ;;  %v11401_v37 = vsel %vm1439_vm12, %v11340_v40, 0.0 }
 0x65b   : > { %v11397_v0 = vsel %vm1439_vm12, %v11338_v43, 0.0  ;;  %v11297_v53 = vsel %vm1439_vm12, %v19155_v10, 0.0  ;;  %v11339_v54 = vmul.f32 %v19155_v10, %v19155_v10  ;;  %v11301_v9 = vsel %vm1439_vm12, %v19153_v24, 0.0 }
 0x65c   : > { %v11398_v20 = vadd.f32 %v11397_v0, %v11396_v25  ;;  %v11298_v49 = vadd.f32 %v11297_v53, %v11296_v11  ;;  %v11403_v16 = vsel %vm1439_vm12, %v11341_v22, 0.0 }
 0x65d   : > { %v11399_v13 = vsel %vm1439_vm12, %v11339_v54, 0.0 }
 0x65e   : > { %v11300_v45 = vadd.f32 %v11299_v57, %v11298_v49  ;;  %v11400_v48 = vadd.f32 %v11399_v13, %v11398_v20 }
 0x660   : > { %v11302_v36 = vadd.f32 %v11301_v9, %v11300_v45  ;;  %v11402_v60 = vadd.f32 %v11401_v37, %v11400_v48 }
 0x662   : > { %v11303_v2 = vrot.slane %v11302_v36, 4  ;;  %v11404_v12 = vadd.f32 %v11403_v16, %v11402_v60 }
 0x664   : > { %v11304_v26 = vadd.f32 %v11303_v2, %v11302_v36  ;;  %v11405_v50 = vrot.slane %v11404_v12, 4 }
 0x666   : > { %v11305_v14 = vrot.slane %v11304_v26, 2  ;;  %v11406_v56 = vadd.f32 %v11405_v50, %v11404_v12 }
 0x668   : > { %v11306_v29 = vadd.f32 %v11305_v14, %v11304_v26  ;;  %v11407_v63 = vrot.slane %v11406_v56, 2 }
 0x66a   : > { %v11307_v42 = vrot.slane %v11306_v29, 1  ;;  %v11408_v21 = vadd.f32 %v11407_v63, %v11406_v56 }
 0x66c   : > { %v11308_v47 = vadd.f32 %v11307_v42, %v11306_v29  ;;  %v11409_v15 = vrot.slane %v11408_v21, 1 }
 0x66e   : > { %v19172_v43 = vmul.f32 0.00390625, %v11308_v47  ;;  %v11410_v19 = vadd.f32 %v11409_v15, %v11408_v21 }
 0x670   : > { %v11411_v11 = vmul.f32 0.00390625, %v11410_v19  ;;  %v11412_v25 = vmul.f32 %v19172_v43, %v19172_v43  ;;  %v11415_v54 = vsub.f32 %v18922_v59, %v19172_v43  ;;  %v11416_v20 = vsub.f32 %v18930_v23, %v19172_v43 }
 0x671   : > { %v11417_v49 = vsub.f32 %v18920_v34, %v19172_v43  ;;  %v11418_v57 = vsub.f32 %v18927_v52, %v19172_v43  ;;  %v11419_v22 = vsub.f32 %v18954_v6, %v19172_v43  ;;  %v11420_v13 = vsub.f32 %v18964_v51, %v19172_v43 }
 0x672   : > { %v11413_v0 = vsub.f32 %v11411_v11, %v11412_v25  ;;  %v11421_v45 = vsub.f32 %v18952_v31, %v19172_v43  ;;  %v11422_v59 = vsub.f32 %v18961_v5, %v19172_v43  ;;  %v11423_v23 = vsub.f32 %v18984_v44, %v19172_v43 }
 0x673   : > { %v11424_v34 = vsub.f32 %v18994_v35, %v19172_v43  ;;  %v11425_v52 = vsub.f32 %v18987_v39, %v19172_v43  ;;  %v11426_v6 = vsub.f32 %v18997_v62, %v19172_v43  ;;  %v11427_v51 = vsub.f32 %v19015_v17, %v19172_v43 }
 0x674   : > { %v11414_v40 = vmax.f32 %v11413_v0, 0.0  ;;  %v11428_v31 = vsub.f32 %v19026_v7, %v19172_v43  ;;  %v11429_v5 = vsub.f32 %v19018_v41, %v19172_v43  ;;  %v11430_v44 = vsub.f32 %v19030_v18, %v19172_v43 }
 0x675   : > { %v11431_v35 = vsub.f32 %v19047_v33, %v19172_v43  ;;  %v11432_v39 = vsub.f32 %v19058_v58, %v19172_v43  ;;  %v11433_v62 = vsub.f32 %v19050_v38, %v19172_v43  ;;  %v11434_v17 = vsub.f32 %v19062_v30, %v19172_v43 }
 0x676   : > { %v11447_v53 = vadd.f32 1e-05, %v11414_v40  ;;  %v11435_v7 = vsub.f32 %v19079_v28, %v19172_v43  ;;  %v11436_v41 = vsub.f32 %v19094_v55, %v19172_v43  ;;  %v11437_v18 = vsub.f32 %v19082_v8, %v19172_v43 }
 0x677   : > { %v11438_v33 = vsub.f32 %v19092_v27, %v19172_v43  ;;  %v11439_v58 = vsub.f32 %v19111_v61, %v19172_v43  ;;  %v11440_v38 = vsub.f32 %v19126_v46, %v19172_v43  ;;  %v11441_v30 = vsub.f32 %v19114_v4, %v19172_v43 }
 0x678   : > { %13992 = vrsqrt.f32 %v11447_v53  ;;  %v11442_v28 = vsub.f32 %v19124_v3, %v19172_v43  ;;  %v11443_v55 = vsub.f32 %v19143_v1, %v19172_v43  ;;  %v11444_v8 = vsub.f32 %v19155_v10, %v19172_v43 }
 0x679   : > { %v11445_v27 = vsub.f32 %v19145_v32, %v19172_v43  ;;  %v11446_v61 = vsub.f32 %v19153_v24, %v19172_v43 }
 0x682   : > { %v13993_v48 = vpop.eup %13992 }
 0x683   : > { %v11449_v46 = vmul.f32 %v13993_v48, %v11415_v54  ;;  %v11450_v37 = vmul.f32 %v13993_v48, %v11416_v20  ;;  %v11451_v9 = vmul.f32 %v13993_v48, %v11417_v49  ;;  %v11452_v4 = vmul.f32 %v13993_v48, %v11418_v57 }
 0x684   : > { %v11453_v36 = vmul.f32 %v13993_v48, %v11419_v22  ;;  %v11454_v60 = vmul.f32 %v13993_v48, %v11420_v13  ;;  %v11455_v3 = vmul.f32 %v13993_v48, %v11421_v45  ;;  %v11456_v16 = vmul.f32 %v13993_v48, %v11422_v59 }
 0x685   : > { %v11457_v2 = vmul.f32 %v13993_v48, %v11423_v23  ;;  %v11458_v12 = vmul.f32 %v13993_v48, %v11424_v34  ;;  %v11459_v1 = vmul.f32 %v13993_v48, %v11425_v52  ;;  %v11460_v26 = vmul.f32 %v13993_v48, %v11426_v6 }
 0x686   : > { %v11461_v50 = vmul.f32 %v13993_v48, %v11427_v51  ;;  %v11462_v10 = vmul.f32 %v13993_v48, %v11428_v31  ;;  %v11463_v14 = vmul.f32 %v13993_v48, %v11429_v5  ;;  %v11464_v32 = vmul.f32 %v13993_v48, %v11430_v44 }
 0x687   : > { %v11465_v56 = vmul.f32 %v13993_v48, %v11431_v35  ;;  %v11466_v29 = vmul.f32 %v13993_v48, %v11432_v39  ;;  %v11467_v24 = vmul.f32 %v13993_v48, %v11433_v62  ;;  %v11468_v63 = vmul.f32 %v13993_v48, %v11434_v17 }
 0x688   : > { %v19240_v42 = vmul.f32 %v13993_v48, %v11435_v7  ;;  %v19242_v21 = vmul.f32 %v13993_v48, %v11436_v41  ;;  %v19244_v47 = vmul.f32 %v13993_v48, %v11437_v18  ;;  %v19246_v15 = vmul.f32 %v13993_v48, %v11438_v33 }
 0x689   : > { %v19248_v43 = vmul.f32 %v13993_v48, %v11439_v58  ;;  %v19250_v19 = vmul.f32 %v13993_v48, %v11440_v38  ;;  %v19252_v11 = vmul.f32 %v13993_v48, %v11441_v30  ;;  %v19254_v25 = vmul.f32 %v13993_v48, %v11442_v28 }
 0x68a   : > { %v19263_v0 = vmul.f32 %v13993_v48, %v11443_v55  ;;  %v19265_v40 = vmul.f32 %v13993_v48, %v11444_v8  ;;  %v19267_v53 = vmul.f32 %v13993_v48, %v11445_v27  ;;  %v19269_v54 = vmul.f32 %v13993_v48, %v11446_v61 }
 0x68b   : > { %v12557_v20 = vpack.c.bf16 %v11449_v46, %v11449_v46  ;;  %v12558_v49 = vpack.c.bf16 %v11450_v37, %v11450_v37  ;;  %v12559_v57 = vpack.c.bf16 %v11451_v9, %v11451_v9  ;;  %v12560_v22 = vpack.c.bf16 %v11452_v4, %v11452_v4 }
 0x68c   : > { %v12561_v13 = vpack.c.bf16 %v11453_v36, %v11453_v36  ;;  %v12562_v45 = vpack.c.bf16 %v11454_v60, %v11454_v60  ;;  %v12563_v59 = vpack.c.bf16 %v11455_v3, %v11455_v3  ;;  %v12564_v23 = vpack.c.bf16 %v11456_v16, %v11456_v16 }
 0x68d   : > { %v12565_v34 = vpack.c.bf16 %v11457_v2, %v11457_v2  ;;  %v12566_v52 = vpack.c.bf16 %v11458_v12, %v11458_v12  ;;  %v12567_v6 = vpack.c.bf16 %v11459_v1, %v11459_v1  ;;  %v12568_v51 = vpack.c.bf16 %v11460_v26, %v11460_v26  ;;  %11609 = vst.msk [vmem:[%s19261_s9] sm:$0xf] %vm528_vm3, %v12557_v20 }
 0x68e   : > { %11610 = vst.msk [vmem:[%s19261_s9 + $0x4] sm:$0xf] %vm528_vm3, %v12558_v49  ;;  %11611 = vst.msk [vmem:[%s19261_s9 + $0x8] sm:$0xf] %vm528_vm3, %v12559_v57  ;;  %v12569_v31 = vpack.c.bf16 %v11461_v50, %v11461_v50  ;;  %v12570_v5 = vpack.c.bf16 %v11462_v10, %v11462_v10  ;;  %v12571_v44 = vpack.c.bf16 %v11463_v14, %v11463_v14 }
 0x68f   : > { %11612 = vst.msk [vmem:[%s19261_s9 + $0xc] sm:$0xf] %vm528_vm3, %v12560_v22  ;;  %v12572_v35 = vpack.c.bf16 %v11464_v32, %v11464_v32  ;;  %11613 = vst.msk [vmem:[%s19261_s9 + $0x10] sm:$0xf] %vm528_vm3, %v12561_v13  ;;  %v12573_v39 = vpack.c.bf16 %v11465_v56, %v11465_v56  ;;  %v12574_v62 = vpack.c.bf16 %v11466_v29, %v11466_v29 }
 0x690   : > { %11614 = vst.msk [vmem:[%s19261_s9 + $0x14] sm:$0xf] %vm528_vm3, %v12562_v45  ;;  %11615 = vst.msk [vmem:[%s19261_s9 + $0x18] sm:$0xf] %vm528_vm3, %v12563_v59  ;;  %v12575_v17 = vpack.c.bf16 %v11467_v24, %v11467_v24  ;;  %v12576_v7 = vpack.c.bf16 %v11468_v63, %v11468_v63  ;;  %v12577_v41 = vpack.c.bf16 %v19240_v42, %v19240_v42 }
 0x691   : > { %11616 = vst.msk [vmem:[%s19261_s9 + $0x1c] sm:$0xf] %vm528_vm3, %v12564_v23  ;;  %11617 = vst.msk [vmem:[%s19261_s9 + $0x20] sm:$0xf] %vm528_vm3, %v12565_v34  ;;  %v12578_v18 = vpack.c.bf16 %v19242_v21, %v19242_v21  ;;  %v12579_v33 = vpack.c.bf16 %v19244_v47, %v19244_v47  ;;  %v12580_v58 = vpack.c.bf16 %v19246_v15, %v19246_v15 }
 0x692   : > { %11618 = vst.msk [vmem:[%s19261_s9 + $0x24] sm:$0xf] %vm528_vm3, %v12566_v52  ;;  %11619 = vst.msk [vmem:[%s19261_s9 + $0x28] sm:$0xf] %vm528_vm3, %v12567_v6  ;;  %v12581_v38 = vpack.c.bf16 %v19248_v43, %v19248_v43  ;;  %v12582_v30 = vpack.c.bf16 %v19250_v19, %v19250_v19  ;;  %v12583_v28 = vpack.c.bf16 %v19252_v11, %v19252_v11 }
 0x693   : > { %11620 = vst.msk [vmem:[%s19261_s9 + $0x2c] sm:$0xf] %vm528_vm3, %v12568_v51  ;;  %11621 = vst.msk [vmem:[%s19261_s9 + $0x30] sm:$0xf] %vm528_vm3, %v12569_v31  ;;  %v12584_v48 = vpack.c.bf16 %v19254_v25, %v19254_v25  ;;  %v12585_v55 = vpack.c.bf16 %v19263_v0, %v19263_v0  ;;  %v12586_v8 = vpack.c.bf16 %v19265_v40, %v19265_v40 }
 0x694   : > { %11622 = vst.msk [vmem:[%s19261_s9 + $0x34] sm:$0xf] %vm528_vm3, %v12570_v5  ;;  %11623 = vst.msk [vmem:[%s19261_s9 + $0x38] sm:$0xf] %vm528_vm3, %v12571_v44  ;;  %v12587_v27 = vpack.c.bf16 %v19267_v53, %v19267_v53  ;;  %v12588_v61 = vpack.c.bf16 %v19269_v54, %v19269_v54 }
 0x695   : > { %11624 = vst.msk [vmem:[%s19261_s9 + $0x3c] sm:$0xf] %vm528_vm3, %v12572_v35  ;;  %11625 = vst.msk [vmem:[%s19261_s9 + $0x40] sm:$0xf] %vm528_vm3, %v12573_v39 }
 0x696   : > { %11626 = vst.msk [vmem:[%s19261_s9 + $0x44] sm:$0xf] %vm528_vm3, %v12574_v62  ;;  %11627 = vst.msk [vmem:[%s19261_s9 + $0x48] sm:$0xf] %vm528_vm3, %v12575_v17 }
 0x697   : > { %11628 = vst.msk [vmem:[%s19261_s9 + $0x4c] sm:$0xf] %vm528_vm3, %v12576_v7  ;;  %11629 = vst.msk [vmem:[%s19261_s9 + $0x50] sm:$0xf] %vm528_vm3, %v12577_v41 }
 0x698   : > { %11630 = vst.msk [vmem:[%s19261_s9 + $0x54] sm:$0xf] %vm528_vm3, %v12578_v18  ;;  %11631 = vst.msk [vmem:[%s19261_s9 + $0x58] sm:$0xf] %vm528_vm3, %v12579_v33 }
 0x699   : > { %11632 = vst.msk [vmem:[%s19261_s9 + $0x5c] sm:$0xf] %vm528_vm3, %v12580_v58  ;;  %11633 = vst.msk [vmem:[%s19261_s9 + $0x60] sm:$0xf] %vm528_vm3, %v12581_v38 }
 0x69a   : > { %11634 = vst.msk [vmem:[%s19261_s9 + $0x64] sm:$0xf] %vm528_vm3, %v12582_v30  ;;  %11635 = vst.msk [vmem:[%s19261_s9 + $0x68] sm:$0xf] %vm528_vm3, %v12583_v28 }
 0x69b   : > { %11636 = vst.msk [vmem:[%s19261_s9 + $0x6c] sm:$0xf] %vm528_vm3, %v12584_v48  ;;  %11637 = vst.msk [vmem:[%s19261_s9 + $0x70] sm:$0xf] %vm528_vm3, %v12585_v55 }
 0x69c   : > { %11638 = vst.msk [vmem:[%s19261_s9 + $0x74] sm:$0xf] %vm528_vm3, %v12586_v8  ;;  %11639 = vst.msk [vmem:[%s19261_s9 + $0x78] sm:$0xf] %vm528_vm3, %v12587_v27 }
 0x69d   : > { %11640 = vst.msk [vmem:[%s19261_s9 + $0x7c] sm:$0xf] %vm528_vm3, %v12588_v61 }
 0x69e PF: > { %s13_s12 = sadd.s32 1, %s14135_s12  }
 0x69f   : > { %p10_p4 = scmp.ge.s32.totalorder %s13_s12, 4  }
 0x6a1   :  { %12 = sbr.rel (!%p10_p4) target bundleno = 1 (0x1), region = 65 }

</bundles_post_ra>
